<compile_context>
chip_gen: v5e
topology: v5e:2x2
jax: 0.10.0
libtpu: 0.0.40
codegen_flags: <defaults>
</compile_context>

<pallas_src>
import numpy as np
import jax
import jax.numpy as jnp
from jax import lax
from jax.experimental import pallas as pl
from jax.experimental.pallas import tpu as pltpu

EPS = 1e-5          # torch.nn.InstanceNorm3d default eps
NEG_SLOPE = 0.01    # LeakyReLU negative_slope


def _round_up(v, m):
    return (v + m - 1) // m * m


def _pick_l_tile(L, halo, target):
    """Largest multiple of 128 that divides L, covers the halo and is close to `target`."""
    if L % 128 != 0 or L <= max(target, 128):
        return L                                   # single full-extent tile
    lt = max(128, (min(target, L) // 128) * 128, _round_up(halo, 128))
    while lt < L and L % lt != 0:
        lt += 128
    return lt if L % lt == 0 else L


def _make_conv_block_kernel(offsets, NB, Cin, Cin_p, Cout, L, LT, num_lt, halo):
    """offsets: flattened tap offsets (kd-pad)*H*W + (kh-pad)*W + (kw-pad)."""
    K3 = len(offsets)
    inv_L = 1.0 / float(L)

    def kernel(x_ref, w_ref, mask_ref, o_ref, xpad_ref, conv_ref, sum_ref, sumsq_ref):
        # x_ref    : (NB, Cin, L)               resident sample block, NC(DHW) lane-dense
        # w_ref    : (K^3, Cout, Cin_p) bf16    one (Cout, Cin_p) slab per tap
        # mask_ref : (K^3, LT)          bf16    {0,1} per-tap validity mask for this L tile
        # o_ref    : (NB, Cout, L)              output block, written only at the last tile
        # xpad_ref : (NB, num_lt+2, Cin_p, LT)  chunked input copy; chunks 0 / num_lt+1 are
        #                                       the zero halo, chunk j+1 holds L-tile j
        # conv_ref : (NB, num_lt, Cout, LT) f32 un-normalized conv output (stats source)
        # sum_ref, sumsq_ref : (NB, Cout, 1) f32 running per-channel instance-norm sums
        lt_pid = pl.program_id(1)
        lt = 0 if num_lt == 1 else lt_pid          # static on the single-tile path

        # ---- once per sample block (first L tile): build chunked input, reset stats -----
        @pl.when(lt_pid == 0)
        def _init():
            zdt = xpad_ref.dtype
            # Only halo chunks + padded-channel rows need zeroing; data chunks are fully
            # overwritten below (no full-buffer memset every grid step).
            xpad_ref[:, 0, :, :] = jnp.zeros((NB, Cin_p, LT), zdt)
            xpad_ref[:, num_lt + 1, :, :] = jnp.zeros((NB, Cin_p, LT), zdt)
            if Cin_p != Cin:
                xpad_ref[:, :, Cin:, :] = jnp.zeros((NB, num_lt + 2, Cin_p - Cin, LT), zdt)
            for j in range(num_lt):
                xpad_ref[:, j + 1, :Cin, :] = x_ref[:, :, j * LT:(j + 1) * LT].astype(zdt)
            sum_ref[...] = jnp.zeros_like(sum_ref)
            sumsq_ref[...] = jnp.zeros_like(sumsq_ref)

        mask = mask_ref[...]                                       # (K^3, LT) bf16

        for b in range(NB):                                        # NB is small; unrolled
            prev = xpad_ref[b, lt, :, :]                           # (Cin_p, LT)
            cur = xpad_ref[b, lt + 1, :, :]
            nxt = xpad_ref[b, lt + 2, :, :]
            # Halo'd window of this L tile; the 27 shifted taps are static slices of it.
            win = jnp.concatenate([prev[:, LT - halo:], cur, nxt[:, :halo]], axis=1)

            acc = jnp.zeros((Cout, LT), jnp.float32)
            for t in range(K3):
                s = halo + offsets[t]                              # static in-window offset
                sl = win[:, s:s + LT] * mask[t:t + 1, :]           # kill row/plane bleed
                # Streamed per-tap MXU matmul, f32 accumulation (no im2col materialized).
                acc = acc + jnp.dot(w_ref[t], sl, preferred_element_type=jnp.float32)

            conv_ref[b, lt, :, :] = acc                            # stage un-normalized out
            sum_ref[b, :, :] = sum_ref[b, :, :] + jnp.sum(acc, axis=1, keepdims=True)
            sumsq_ref[b, :, :] = sumsq_ref[b, :, :] + jnp.sum(acc * acc, axis=1,
                                                              keepdims=True)

        # ---- last L tile: whole-sample InstanceNorm(affine=False) + LeakyReLU -----------
        @pl.when(lt_pid == num_lt - 1)
        def _finalize():
            for b in range(NB):
                mean = sum_ref[b, :, :] * inv_L                    # (Cout, 1)
                var = sumsq_ref[b, :, :] * inv_L - mean * mean     # f32 sums -> safe form
                inv_std = lax.rsqrt(var + EPS)
                for j in range(num_lt):                            # static chunks
                    y = (conv_ref[b, j, :, :] - mean) * inv_std
                    y = jnp.where(y >= 0, y, NEG_SLOPE * y)        # LeakyReLU(0.01)
                    o_ref[b, :, j * LT:(j + 1) * LT] = y.astype(o_ref.dtype)

    return kernel


def conv_block_forward(x_ncdhw, weight_oidhw, bias=None, *, l_tile=8192,
                       samples_per_block=None):
    """Fused ConvBlock forward (Conv3d k=3 s=1 p=1 + InstanceNorm3d + LeakyReLU + Identity).

    x_ncdhw:      (N, Cin, D, H, W)   PyTorch layout
    weight_oidhw: (Cout, Cin, K, K, K)
    bias:         (Cout,) accepted for API parity but unused: InstanceNorm3d(affine=False)
                  subtracts the per-channel mean, cancelling a constant channel bias exactly.
    """
    del bias
    N, Cin, D, H, W = x_ncdhw.shape
    Cout, _, K, _, _ = weight_oidhw.shape
    pad = K // 2
    L = D * H * W
    Cin_p = _round_up(Cin, 8)                    # sublane-aligned channel pad
    K3 = K * K * K

    halo = pad * (H * W + W + 1)                 # largest |flattened tap offset|
    assert L >= halo, "volume too small for the flat-halo scheme (need D,H >= 2)"

    LT = _pick_l_tile(L, halo, l_tile)
    num_lt = L // LT

    # Batch whole samples per grid step only when each sample's resident state is tiny.
    if samples_per_block is None:
        per_sample_bytes = (Cin + 2 * Cout) * L * 4
        samples_per_block = N if N * per_sample_bytes <= (4 << 20) else 1
    NB = max(1, min(N, samples_per_block))
    while N % NB:
        NB -= 1

    # Tap offsets + validity masks (shape-only, host precomputed).  {0,1} is exact in bf16.
    pos = np.arange(L)
    d_idx, h_idx, w_idx = pos // (H * W), (pos // W) % H, pos % W
    offsets, masks = [], []
    for kd in range(K):
        for kh in range(K):
            for kw in range(K):
                dd, dh, dw = kd - pad, kh - pad, kw - pad
                offsets.append(dd * H * W + dh * W + dw)
                masks.append((d_idx + dd >= 0) & (d_idx + dd < D) &
                             (h_idx + dh >= 0) & (h_idx + dh < H) &
                             (w_idx + dw >= 0) & (w_idx + dw < W))
    mask = jnp.asarray(np.stack(masks).astype(np.float32)).astype(jnp.bfloat16)  # (K^3, L)

    # (Cout, Cin, K,K,K) -> (K^3, Cout, Cin_p) bf16; padded channel columns are zero and
    # line up with the zeroed channel-pad rows of the scratch.
    w = jnp.transpose(weight_oidhw, (2, 3, 4, 0, 1)).reshape(K3, Cout, Cin)
    if Cin_p != Cin:
        w = jnp.pad(w, ((0, 0), (0, 0), (0, Cin_p - Cin)))
    w = w.astype(jnp.bfloat16)

    x_flat = x_ncdhw.reshape(N, Cin, L)          # NCDHW -> NC(DHW): free reshape, no copy

    kernel = _make_conv_block_kernel(offsets, NB, Cin, Cin_p, Cout, L, LT, num_lt, halo)

    # VMEM plan (x2 for double-buffered specs) -> explicit limit with headroom so the same
    # plan also compiles under v5e's 16 MiB default scoped VMEM.
    itemsize = x_ncdhw.dtype.itemsize
    est = (2 * NB * Cin * L * itemsize           # input block
           + 2 * NB * Cout * L * itemsize        # output block
           + 2 * K3 * Cout * Cin_p * 2           # weights (bf16)
           + 2 * K3 * LT * 2                     # mask tile (bf16)
           + NB * (num_lt + 2) * Cin_p * LT * 2  # chunked halo'd input scratch (bf16)
           + NB * num_lt * Cout * LT * 4         # staged conv output (f32)
           + Cout * LT * 4 + Cin_p * (LT + 2 * halo) * 2)   # accumulator + window temps
    vmem_limit = int(min(64 << 20, max(32 << 20, 2 * est)))

    out_flat = pl.pallas_call(
        kernel,
        out_shape=jax.ShapeDtypeStruct((N, Cout, L), x_ncdhw.dtype),
        grid_spec=pltpu.PrefetchScalarGridSpec(
            num_scalar_prefetch=0,
            grid=(N // NB, num_lt),                                   # (sample blocks, L tiles)
            in_specs=[
                pl.BlockSpec((NB, Cin, L), lambda n, l: (n, 0, 0)),   # resident per block
                pl.BlockSpec((K3, Cout, Cin_p), lambda n, l: (0, 0, 0)),
                pl.BlockSpec((K3, LT), lambda n, l: (0, l)),
            ],
            out_specs=pl.BlockSpec((NB, Cout, L), lambda n, l: (n, 0, 0)),
            scratch_shapes=[
                pltpu.VMEM((NB, num_lt + 2, Cin_p, LT), jnp.bfloat16),  # chunked halo input
                pltpu.VMEM((NB, num_lt, Cout, LT), jnp.float32),        # staged conv output
                pltpu.VMEM((NB, Cout, 1), jnp.float32),                 # per-channel sum
                pltpu.VMEM((NB, Cout, 1), jnp.float32),                 # per-channel sumsq
            ],
        ),
        compiler_params=pltpu.CompilerParams(
            dimension_semantics=("parallel", "arbitrary"),
            vmem_limit_bytes=vmem_limit,
        ),
    )(x_flat, w, mask)

    # TODO(synk): for volumes where the per-sample resident state (input + chunked scratch +
    #   staged output) exceeds ~24 MiB (v7x has 64 MiB VMEM/TC), switch to per-L-tile halo'd
    #   input DMA (memory_space=pl.ANY + make_async_copy) and a 2-pass norm through HBM.
    # TODO(synk): single-buffer the constant-index weight/mask specs (pl.Buffered(1)) once
    #   pipeline_mode is verified on the target jax version.
    # TODO(synk): N==1 on v7x leaves one TensorCore idle; needs a parallel spatial split.
    # TODO(synk): stride>1, dropout>0 and 'batch'/'group' norm constructor options are not
    #   implemented (module defaults: stride=1, dropout=0.0, norm_name='instance').
    return out_flat.reshape(N, Cout, D, H, W)


def _reference(x_ncdhw, weight_oidhw, bias):
    """Pure-JAX reference mirroring the PyTorch forward (sanity check)."""
    dn = lax.conv_dimension_numbers(x_ncdhw.shape, weight_oidhw.shape,
                                    ("NCDHW", "OIDHW", "NCDHW"))
    y = lax.conv_general_dilated(x_ncdhw, weight_oidhw, window_strides=(1, 1, 1),
                                 padding=[(1, 1)] * 3, dimension_numbers=dn)
    y = y + bias[None, :, None, None, None]
    mean = y.mean(axis=(2, 3, 4), keepdims=True)
    var = ((y - mean) ** 2).mean(axis=(2, 3, 4), keepdims=True)
    y = (y - mean) / jnp.sqrt(var + EPS)
    return jnp.where(y >= 0, y, NEG_SLOPE * y)


if __name__ == "__main__":
    # Small shapes consistent with ConvBlock(in_channels=4, out_channels=8)
    N, Cin, Cout, D, H, W, K = 2, 4, 8, 8, 8, 8, 3

    key = jax.random.PRNGKey(0)
    kx, kw, kb = jax.random.split(key, 3)
    x = jax.random.normal(kx, (N, Cin, D, H, W), dtype=jnp.float32)
    weight = 0.1 * jax.random.normal(kw, (Cout, Cin, K, K, K), dtype=jnp.float32)
    bias = 0.1 * jax.random.normal(kb, (Cout,), dtype=jnp.float32)

    ref = jax.block_until_ready(_reference(x, weight, bias))

    # Default plan: this toy volume fits a single L tile (both samples in one grid step).
    out = jax.block_until_ready(conv_block_forward(x, weight, bias))
    assert out.shape == (N, Cout, D, H, W)
    # bf16 matmul operands (f32 accumulation) -> correspondingly loosened tolerance.
    assert jnp.allclose(out, ref, atol=2e-2, rtol=2e-2), "mismatch vs JAX reference"

    # Also exercise the multi-tile / two-phase instance-norm path.
    out_tiled = jax.block_until_ready(conv_block_forward(x, weight, bias, l_tile=256))
    assert jnp.allclose(out_tiled, ref, atol=2e-2, rtol=2e-2), "tiled mismatch vs reference"

    print("KERNEL_OK")
</pallas_src>

<mosaic_0001>
module attributes {stable_mosaic.version = 11 : i64} {
  func.func @kernel(%arg0: i32, %arg1: i32, %arg2: memref<2x4x512xf32, #tpu.memory_space<vmem>>, %arg3: memref<27x8x8xbf16, #tpu.memory_space<vmem>>, %arg4: memref<27x512xbf16, #tpu.memory_space<vmem>>, %arg5: memref<2x8x512xf32, #tpu.memory_space<vmem>>, %arg6: memref<2x3x8x512xbf16, #tpu.memory_space<vmem>>, %arg7: memref<2x1x8x512xf32, #tpu.memory_space<vmem>>, %arg8: memref<2x8x1xf32, #tpu.memory_space<vmem>>, %arg9: memref<2x8x1xf32, #tpu.memory_space<vmem>>) attributes {dimension_semantics = [#tpu.dimension_semantics<parallel>, #tpu.dimension_semantics<arbitrary>], iteration_bounds = array<i64: 1, 1>, scalar_prefetch = 0 : i64, scratch_operands = 4 : i64, tpu.core_type = #tpu.core_type<tc>, window_params = [{transform_indices = @transform_0, window_bounds = array<i64: 2, 4, 512>}, {pipeline_mode = #tpu.pipeline_mode<synchronous>, transform_indices = @transform_1, window_bounds = array<i64: 27, 8, 8>}, {transform_indices = @transform_2, window_bounds = array<i64: 27, 512>}, {transform_indices = @transform_3, window_bounds = array<i64: 2, 8, 512>}]} {
    %c0_i32 = arith.constant 0 : i32
    %0 = arith.cmpi eq, %arg1, %c0_i32 : i32
    %1 = arith.extui %0 : i1 to i32
    %c0_i32_0 = arith.constant 0 : i32
    %2 = arith.cmpi ne, %1, %c0_i32_0 : i32
    scf.if %2 {
      %cst_255 = arith.constant 0.000000e+00 : bf16
      %499 = vector.broadcast %cst_255 : bf16 to vector<2x8x512xbf16>
      %c0_256 = arith.constant 0 : index
      %c0_257 = arith.constant 0 : index
      %c0_258 = arith.constant 0 : index
      %c0_259 = arith.constant 0 : index
      %500 = vector.load %arg6[%c0_256, %c0_257, %c0_258, %c0_259] : memref<2x3x8x512xbf16, #tpu.memory_space<vmem>>, vector<2x1x8x512xbf16>
      %501 = vector.shape_cast %500 : vector<2x1x8x512xbf16> to vector<2x8x512xbf16>
      %502 = vector.shape_cast %499 : vector<2x8x512xbf16> to vector<2x1x8x512xbf16>
      tpu.vector_store %arg6[%c0_256, %c0_257, %c0_258, %c0_259], %502 {strides = array<i32>} : memref<2x3x8x512xbf16, #tpu.memory_space<vmem>>, vector<2x1x8x512xbf16>,
      %cst_260 = arith.constant 0.000000e+00 : bf16
      %503 = vector.broadcast %cst_260 : bf16 to vector<2x8x512xbf16>
      %c0_261 = arith.constant 0 : index
      %c2_262 = arith.constant 2 : index
      %c0_263 = arith.constant 0 : index
      %c0_264 = arith.constant 0 : index
      %504 = vector.load %arg6[%c0_261, %c2_262, %c0_263, %c0_264] : memref<2x3x8x512xbf16, #tpu.memory_space<vmem>>, vector<2x1x8x512xbf16>
      %505 = vector.shape_cast %504 : vector<2x1x8x512xbf16> to vector<2x8x512xbf16>
      %506 = vector.shape_cast %503 : vector<2x8x512xbf16> to vector<2x1x8x512xbf16>
      tpu.vector_store %arg6[%c0_261, %c2_262, %c0_263, %c0_264], %506 {strides = array<i32>} : memref<2x3x8x512xbf16, #tpu.memory_space<vmem>>, vector<2x1x8x512xbf16>,
      %cst_265 = arith.constant 0.000000e+00 : bf16
      %507 = vector.broadcast %cst_265 : bf16 to vector<2x3x4x512xbf16>
      %c0_266 = arith.constant 0 : index
      %c0_267 = arith.constant 0 : index
      %c4_268 = arith.constant 4 : index
      %c0_269 = arith.constant 0 : index
      %508 = vector.load %arg6[%c0_266, %c0_267, %c4_268, %c0_269] : memref<2x3x8x512xbf16, #tpu.memory_space<vmem>>, vector<2x3x4x512xbf16>
      tpu.vector_store %arg6[%c0_266, %c0_267, %c4_268, %c0_269], %507 {strides = array<i32>} : memref<2x3x8x512xbf16, #tpu.memory_space<vmem>>, vector<2x3x4x512xbf16>,
      %c0_270 = arith.constant 0 : index
      %c0_271 = arith.constant 0 : index
      %c0_272 = arith.constant 0 : index
      %509 = vector.load %arg2[%c0_270, %c0_271, %c0_272] : memref<2x4x512xf32, #tpu.memory_space<vmem>>, vector<2x4x512xf32>
      %510 = arith.truncf %509 : vector<2x4x512xf32> to vector<2x4x512xbf16>
      %c0_273 = arith.constant 0 : index
      %c1_274 = arith.constant 1 : index
      %c0_275 = arith.constant 0 : index
      %c0_276 = arith.constant 0 : index
      %511 = vector.load %arg6[%c0_273, %c1_274, %c0_275, %c0_276] : memref<2x3x8x512xbf16, #tpu.memory_space<vmem>>, vector<2x1x4x512xbf16>
      %512 = vector.shape_cast %511 : vector<2x1x4x512xbf16> to vector<2x4x512xbf16>
      %513 = vector.shape_cast %510 : vector<2x4x512xbf16> to vector<2x1x4x512xbf16>
      tpu.vector_store %arg6[%c0_273, %c1_274, %c0_275, %c0_276], %513 {strides = array<i32>} : memref<2x3x8x512xbf16, #tpu.memory_space<vmem>>, vector<2x1x4x512xbf16>,
      %cst_277 = arith.constant 0.000000e+00 : f32
      %514 = vector.broadcast %cst_277 : f32 to vector<2x8x1xf32>
      %c0_278 = arith.constant 0 : index
      %c0_279 = arith.constant 0 : index
      %c0_280 = arith.constant 0 : index
      %515 = vector.load %arg8[%c0_278, %c0_279, %c0_280] : memref<2x8x1xf32, #tpu.memory_space<vmem>>, vector<2x8x1xf32>
      tpu.vector_store %arg8[%c0_278, %c0_279, %c0_280], %514 {strides = array<i32>} : memref<2x8x1xf32, #tpu.memory_space<vmem>>, vector<2x8x1xf32>,
      %cst_281 = arith.constant 0.000000e+00 : f32
      %516 = vector.broadcast %cst_281 : f32 to vector<2x8x1xf32>
      %c0_282 = arith.constant 0 : index
      %c0_283 = arith.constant 0 : index
      %c0_284 = arith.constant 0 : index
      %517 = vector.load %arg9[%c0_282, %c0_283, %c0_284] : memref<2x8x1xf32, #tpu.memory_space<vmem>>, vector<2x8x1xf32>
      tpu.vector_store %arg9[%c0_282, %c0_283, %c0_284], %516 {strides = array<i32>} : memref<2x8x1xf32, #tpu.memory_space<vmem>>, vector<2x8x1xf32>,
    } else {
    }
    %c0 = arith.constant 0 : index
    %c0_1 = arith.constant 0 : index
    %3 = vector.load %arg4[%c0, %c0_1] : memref<27x512xbf16, #tpu.memory_space<vmem>>, vector<27x512xbf16>
    %c0_2 = arith.constant 0 : index
    %c0_3 = arith.constant 0 : index
    %c0_4 = arith.constant 0 : index
    %c0_5 = arith.constant 0 : index
    %4 = vector.load %arg6[%c0_2, %c0_3, %c0_4, %c0_5] : memref<2x3x8x512xbf16, #tpu.memory_space<vmem>>, vector<1x1x8x512xbf16>
    %5 = vector.shape_cast %4 : vector<1x1x8x512xbf16> to vector<8x512xbf16>
    %c0_6 = arith.constant 0 : index
    %c1 = arith.constant 1 : index
    %c0_7 = arith.constant 0 : index
    %c0_8 = arith.constant 0 : index
    %6 = vector.load %arg6[%c0_6, %c1, %c0_7, %c0_8] : memref<2x3x8x512xbf16, #tpu.memory_space<vmem>>, vector<1x1x8x512xbf16>
    %7 = vector.shape_cast %6 : vector<1x1x8x512xbf16> to vector<8x512xbf16>
    %c0_9 = arith.constant 0 : index
    %c2 = arith.constant 2 : index
    %c0_10 = arith.constant 0 : index
    %c0_11 = arith.constant 0 : index
    %8 = vector.load %arg6[%c0_9, %c2, %c0_10, %c0_11] : memref<2x3x8x512xbf16, #tpu.memory_space<vmem>>, vector<1x1x8x512xbf16>
    %9 = vector.shape_cast %8 : vector<1x1x8x512xbf16> to vector<8x512xbf16>
    %10 = vector.extract_strided_slice %5 {offsets = [0, 439], sizes = [8, 73], strides = [1, 1]} : vector<8x512xbf16> to vector<8x73xbf16>
    %11 = vector.extract_strided_slice %9 {offsets = [0, 0], sizes = [8, 73], strides = [1, 1]} : vector<8x512xbf16> to vector<8x73xbf16>
    %12 = tpu.concatenate %10, %7, %11 in 1 : vector<8x73xbf16>, vector<8x512xbf16>, vector<8x73xbf16> -> vector<8x658xbf16>
    %cst = arith.constant 0.000000e+00 : f32
    %13 = vector.broadcast %cst : f32 to vector<8x512xf32>
    %14 = vector.extract_strided_slice %12 {offsets = [0, 0], sizes = [8, 512], strides = [1, 1]} : vector<8x658xbf16> to vector<8x512xbf16>
    %15 = vector.extract_strided_slice %3 {offsets = [0, 0], sizes = [1, 512], strides = [1, 1]} : vector<27x512xbf16> to vector<1x512xbf16>
    %16 = vector.broadcast %15 : vector<1x512xbf16> to vector<8x512xbf16>
    %17 = arith.mulf %14, %16 : vector<8x512xbf16>
    %c0_12 = arith.constant 0 : index
    %c0_13 = arith.constant 0 : index
    %c0_14 = arith.constant 0 : index
    %18 = vector.load %arg3[%c0_12, %c0_13, %c0_14] : memref<27x8x8xbf16, #tpu.memory_space<vmem>>, vector<1x8x8xbf16>
    %19 = vector.shape_cast %18 : vector<1x8x8xbf16> to vector<8x8xbf16>
    %cst_15 = arith.constant dense<0.000000e+00> : vector<8x512xf32>
    %20 = tpu.matmul %19, %17, %cst_15 {dimension_numbers = #tpu.dot_dimension_numbers<[1], [0], [0], [1], [0, 0, 1, 1], [], []>} : vector<8x8xbf16>, vector<8x512xbf16>, vector<8x512xf32> -> vector<8x512xf32>
    %21 = arith.addf %13, %20 : vector<8x512xf32>
    %22 = vector.extract_strided_slice %12 {offsets = [0, 1], sizes = [8, 512], strides = [1, 1]} : vector<8x658xbf16> to vector<8x512xbf16>
    %23 = vector.extract_strided_slice %3 {offsets = [1, 0], sizes = [1, 512], strides = [1, 1]} : vector<27x512xbf16> to vector<1x512xbf16>
    %24 = vector.broadcast %23 : vector<1x512xbf16> to vector<8x512xbf16>
    %25 = arith.mulf %22, %24 : vector<8x512xbf16>
    %c1_16 = arith.constant 1 : index
    %c0_17 = arith.constant 0 : index
    %c0_18 = arith.constant 0 : index
    %26 = vector.load %arg3[%c1_16, %c0_17, %c0_18] : memref<27x8x8xbf16, #tpu.memory_space<vmem>>, vector<1x8x8xbf16>
    %27 = vector.shape_cast %26 : vector<1x8x8xbf16> to vector<8x8xbf16>
    %cst_19 = arith.constant dense<0.000000e+00> : vector<8x512xf32>
    %28 = tpu.matmul %27, %25, %cst_19 {dimension_numbers = #tpu.dot_dimension_numbers<[1], [0], [0], [1], [0, 0, 1, 1], [], []>} : vector<8x8xbf16>, vector<8x512xbf16>, vector<8x512xf32> -> vector<8x512xf32>
    %29 = arith.addf %21, %28 : vector<8x512xf32>
    %30 = vector.extract_strided_slice %12 {offsets = [0, 2], sizes = [8, 512], strides = [1, 1]} : vector<8x658xbf16> to vector<8x512xbf16>
    %31 = vector.extract_strided_slice %3 {offsets = [2, 0], sizes = [1, 512], strides = [1, 1]} : vector<27x512xbf16> to vector<1x512xbf16>
    %32 = vector.broadcast %31 : vector<1x512xbf16> to vector<8x512xbf16>
    %33 = arith.mulf %30, %32 : vector<8x512xbf16>
    %c2_20 = arith.constant 2 : index
    %c0_21 = arith.constant 0 : index
    %c0_22 = arith.constant 0 : index
    %34 = vector.load %arg3[%c2_20, %c0_21, %c0_22] : memref<27x8x8xbf16, #tpu.memory_space<vmem>>, vector<1x8x8xbf16>
    %35 = vector.shape_cast %34 : vector<1x8x8xbf16> to vector<8x8xbf16>
    %cst_23 = arith.constant dense<0.000000e+00> : vector<8x512xf32>
    %36 = tpu.matmul %35, %33, %cst_23 {dimension_numbers = #tpu.dot_dimension_numbers<[1], [0], [0], [1], [0, 0, 1, 1], [], []>} : vector<8x8xbf16>, vector<8x512xbf16>, vector<8x512xf32> -> vector<8x512xf32>
    %37 = arith.addf %29, %36 : vector<8x512xf32>
    %38 = vector.extract_strided_slice %12 {offsets = [0, 8], sizes = [8, 512], strides = [1, 1]} : vector<8x658xbf16> to vector<8x512xbf16>
    %39 = vector.extract_strided_slice %3 {offsets = [3, 0], sizes = [1, 512], strides = [1, 1]} : vector<27x512xbf16> to vector<1x512xbf16>
    %40 = vector.broadcast %39 : vector<1x512xbf16> to vector<8x512xbf16>
    %41 = arith.mulf %38, %40 : vector<8x512xbf16>
    %c3 = arith.constant 3 : index
    %c0_24 = arith.constant 0 : index
    %c0_25 = arith.constant 0 : index
    %42 = vector.load %arg3[%c3, %c0_24, %c0_25] : memref<27x8x8xbf16, #tpu.memory_space<vmem>>, vector<1x8x8xbf16>
    %43 = vector.shape_cast %42 : vector<1x8x8xbf16> to vector<8x8xbf16>
    %cst_26 = arith.constant dense<0.000000e+00> : vector<8x512xf32>
    %44 = tpu.matmul %43, %41, %cst_26 {dimension_numbers = #tpu.dot_dimension_numbers<[1], [0], [0], [1], [0, 0, 1, 1], [], []>} : vector<8x8xbf16>, vector<8x512xbf16>, vector<8x512xf32> -> vector<8x512xf32>
    %45 = arith.addf %37, %44 : vector<8x512xf32>
    %46 = vector.extract_strided_slice %12 {offsets = [0, 9], sizes = [8, 512], strides = [1, 1]} : vector<8x658xbf16> to vector<8x512xbf16>
    %47 = vector.extract_strided_slice %3 {offsets = [4, 0], sizes = [1, 512], strides = [1, 1]} : vector<27x512xbf16> to vector<1x512xbf16>
    %48 = vector.broadcast %47 : vector<1x512xbf16> to vector<8x512xbf16>
    %49 = arith.mulf %46, %48 : vector<8x512xbf16>
    %c4 = arith.constant 4 : index
    %c0_27 = arith.constant 0 : index
    %c0_28 = arith.constant 0 : index
    %50 = vector.load %arg3[%c4, %c0_27, %c0_28] : memref<27x8x8xbf16, #tpu.memory_space<vmem>>, vector<1x8x8xbf16>
    %51 = vector.shape_cast %50 : vector<1x8x8xbf16> to vector<8x8xbf16>
    %cst_29 = arith.constant dense<0.000000e+00> : vector<8x512xf32>
    %52 = tpu.matmul %51, %49, %cst_29 {dimension_numbers = #tpu.dot_dimension_numbers<[1], [0], [0], [1], [0, 0, 1, 1], [], []>} : vector<8x8xbf16>, vector<8x512xbf16>, vector<8x512xf32> -> vector<8x512xf32>
    %53 = arith.addf %45, %52 : vector<8x512xf32>
    %54 = vector.extract_strided_slice %12 {offsets = [0, 10], sizes = [8, 512], strides = [1, 1]} : vector<8x658xbf16> to vector<8x512xbf16>
    %55 = vector.extract_strided_slice %3 {offsets = [5, 0], sizes = [1, 512], strides = [1, 1]} : vector<27x512xbf16> to vector<1x512xbf16>
    %56 = vector.broadcast %55 : vector<1x512xbf16> to vector<8x512xbf16>
    %57 = arith.mulf %54, %56 : vector<8x512xbf16>
    %c5 = arith.constant 5 : index
    %c0_30 = arith.constant 0 : index
    %c0_31 = arith.constant 0 : index
    %58 = vector.load %arg3[%c5, %c0_30, %c0_31] : memref<27x8x8xbf16, #tpu.memory_space<vmem>>, vector<1x8x8xbf16>
    %59 = vector.shape_cast %58 : vector<1x8x8xbf16> to vector<8x8xbf16>
    %cst_32 = arith.constant dense<0.000000e+00> : vector<8x512xf32>
    %60 = tpu.matmul %59, %57, %cst_32 {dimension_numbers = #tpu.dot_dimension_numbers<[1], [0], [0], [1], [0, 0, 1, 1], [], []>} : vector<8x8xbf16>, vector<8x512xbf16>, vector<8x512xf32> -> vector<8x512xf32>
    %61 = arith.addf %53, %60 : vector<8x512xf32>
    %62 = vector.extract_strided_slice %12 {offsets = [0, 16], sizes = [8, 512], strides = [1, 1]} : vector<8x658xbf16> to vector<8x512xbf16>
    %63 = vector.extract_strided_slice %3 {offsets = [6, 0], sizes = [1, 512], strides = [1, 1]} : vector<27x512xbf16> to vector<1x512xbf16>
    %64 = vector.broadcast %63 : vector<1x512xbf16> to vector<8x512xbf16>
    %65 = arith.mulf %62, %64 : vector<8x512xbf16>
    %c6 = arith.constant 6 : index
    %c0_33 = arith.constant 0 : index
    %c0_34 = arith.constant 0 : index
    %66 = vector.load %arg3[%c6, %c0_33, %c0_34] : memref<27x8x8xbf16, #tpu.memory_space<vmem>>, vector<1x8x8xbf16>
    %67 = vector.shape_cast %66 : vector<1x8x8xbf16> to vector<8x8xbf16>
    %cst_35 = arith.constant dense<0.000000e+00> : vector<8x512xf32>
    %68 = tpu.matmul %67, %65, %cst_35 {dimension_numbers = #tpu.dot_dimension_numbers<[1], [0], [0], [1], [0, 0, 1, 1], [], []>} : vector<8x8xbf16>, vector<8x512xbf16>, vector<8x512xf32> -> vector<8x512xf32>
    %69 = arith.addf %61, %68 : vector<8x512xf32>
    %70 = vector.extract_strided_slice %12 {offsets = [0, 17], sizes = [8, 512], strides = [1, 1]} : vector<8x658xbf16> to vector<8x512xbf16>
    %71 = vector.extract_strided_slice %3 {offsets = [7, 0], sizes = [1, 512], strides = [1, 1]} : vector<27x512xbf16> to vector<1x512xbf16>
    %72 = vector.broadcast %71 : vector<1x512xbf16> to vector<8x512xbf16>
    %73 = arith.mulf %70, %72 : vector<8x512xbf16>
    %c7 = arith.constant 7 : index
    %c0_36 = arith.constant 0 : index
    %c0_37 = arith.constant 0 : index
    %74 = vector.load %arg3[%c7, %c0_36, %c0_37] : memref<27x8x8xbf16, #tpu.memory_space<vmem>>, vector<1x8x8xbf16>
    %75 = vector.shape_cast %74 : vector<1x8x8xbf16> to vector<8x8xbf16>
    %cst_38 = arith.constant dense<0.000000e+00> : vector<8x512xf32>
    %76 = tpu.matmul %75, %73, %cst_38 {dimension_numbers = #tpu.dot_dimension_numbers<[1], [0], [0], [1], [0, 0, 1, 1], [], []>} : vector<8x8xbf16>, vector<8x512xbf16>, vector<8x512xf32> -> vector<8x512xf32>
    %77 = arith.addf %69, %76 : vector<8x512xf32>
    %78 = vector.extract_strided_slice %12 {offsets = [0, 18], sizes = [8, 512], strides = [1, 1]} : vector<8x658xbf16> to vector<8x512xbf16>
    %79 = vector.extract_strided_slice %3 {offsets = [8, 0], sizes = [1, 512], strides = [1, 1]} : vector<27x512xbf16> to vector<1x512xbf16>
    %80 = vector.broadcast %79 : vector<1x512xbf16> to vector<8x512xbf16>
    %81 = arith.mulf %78, %80 : vector<8x512xbf16>
    %c8 = arith.constant 8 : index
    %c0_39 = arith.constant 0 : index
    %c0_40 = arith.constant 0 : index
    %82 = vector.load %arg3[%c8, %c0_39, %c0_40] : memref<27x8x8xbf16, #tpu.memory_space<vmem>>, vector<1x8x8xbf16>
    %83 = vector.shape_cast %82 : vector<1x8x8xbf16> to vector<8x8xbf16>
    %cst_41 = arith.constant dense<0.000000e+00> : vector<8x512xf32>
    %84 = tpu.matmul %83, %81, %cst_41 {dimension_numbers = #tpu.dot_dimension_numbers<[1], [0], [0], [1], [0, 0, 1, 1], [], []>} : vector<8x8xbf16>, vector<8x512xbf16>, vector<8x512xf32> -> vector<8x512xf32>
    %85 = arith.addf %77, %84 : vector<8x512xf32>
    %86 = vector.extract_strided_slice %12 {offsets = [0, 64], sizes = [8, 512], strides = [1, 1]} : vector<8x658xbf16> to vector<8x512xbf16>
    %87 = vector.extract_strided_slice %3 {offsets = [9, 0], sizes = [1, 512], strides = [1, 1]} : vector<27x512xbf16> to vector<1x512xbf16>
    %88 = vector.broadcast %87 : vector<1x512xbf16> to vector<8x512xbf16>
    %89 = arith.mulf %86, %88 : vector<8x512xbf16>
    %c9 = arith.constant 9 : index
    %c0_42 = arith.constant 0 : index
    %c0_43 = arith.constant 0 : index
    %90 = vector.load %arg3[%c9, %c0_42, %c0_43] : memref<27x8x8xbf16, #tpu.memory_space<vmem>>, vector<1x8x8xbf16>
    %91 = vector.shape_cast %90 : vector<1x8x8xbf16> to vector<8x8xbf16>
    %cst_44 = arith.constant dense<0.000000e+00> : vector<8x512xf32>
    %92 = tpu.matmul %91, %89, %cst_44 {dimension_numbers = #tpu.dot_dimension_numbers<[1], [0], [0], [1], [0, 0, 1, 1], [], []>} : vector<8x8xbf16>, vector<8x512xbf16>, vector<8x512xf32> -> vector<8x512xf32>
    %93 = arith.addf %85, %92 : vector<8x512xf32>
    %94 = vector.extract_strided_slice %12 {offsets = [0, 65], sizes = [8, 512], strides = [1, 1]} : vector<8x658xbf16> to vector<8x512xbf16>
    %95 = vector.extract_strided_slice %3 {offsets = [10, 0], sizes = [1, 512], strides = [1, 1]} : vector<27x512xbf16> to vector<1x512xbf16>
    %96 = vector.broadcast %95 : vector<1x512xbf16> to vector<8x512xbf16>
    %97 = arith.mulf %94, %96 : vector<8x512xbf16>
    %c10 = arith.constant 10 : index
    %c0_45 = arith.constant 0 : index
    %c0_46 = arith.constant 0 : index
    %98 = vector.load %arg3[%c10, %c0_45, %c0_46] : memref<27x8x8xbf16, #tpu.memory_space<vmem>>, vector<1x8x8xbf16>
    %99 = vector.shape_cast %98 : vector<1x8x8xbf16> to vector<8x8xbf16>
    %cst_47 = arith.constant dense<0.000000e+00> : vector<8x512xf32>
    %100 = tpu.matmul %99, %97, %cst_47 {dimension_numbers = #tpu.dot_dimension_numbers<[1], [0], [0], [1], [0, 0, 1, 1], [], []>} : vector<8x8xbf16>, vector<8x512xbf16>, vector<8x512xf32> -> vector<8x512xf32>
    %101 = arith.addf %93, %100 : vector<8x512xf32>
    %102 = vector.extract_strided_slice %12 {offsets = [0, 66], sizes = [8, 512], strides = [1, 1]} : vector<8x658xbf16> to vector<8x512xbf16>
    %103 = vector.extract_strided_slice %3 {offsets = [11, 0], sizes = [1, 512], strides = [1, 1]} : vector<27x512xbf16> to vector<1x512xbf16>
    %104 = vector.broadcast %103 : vector<1x512xbf16> to vector<8x512xbf16>
    %105 = arith.mulf %102, %104 : vector<8x512xbf16>
    %c11 = arith.constant 11 : index
    %c0_48 = arith.constant 0 : index
    %c0_49 = arith.constant 0 : index
    %106 = vector.load %arg3[%c11, %c0_48, %c0_49] : memref<27x8x8xbf16, #tpu.memory_space<vmem>>, vector<1x8x8xbf16>
    %107 = vector.shape_cast %106 : vector<1x8x8xbf16> to vector<8x8xbf16>
    %cst_50 = arith.constant dense<0.000000e+00> : vector<8x512xf32>
    %108 = tpu.matmul %107, %105, %cst_50 {dimension_numbers = #tpu.dot_dimension_numbers<[1], [0], [0], [1], [0, 0, 1, 1], [], []>} : vector<8x8xbf16>, vector<8x512xbf16>, vector<8x512xf32> -> vector<8x512xf32>
    %109 = arith.addf %101, %108 : vector<8x512xf32>
    %110 = vector.extract_strided_slice %12 {offsets = [0, 72], sizes = [8, 512], strides = [1, 1]} : vector<8x658xbf16> to vector<8x512xbf16>
    %111 = vector.extract_strided_slice %3 {offsets = [12, 0], sizes = [1, 512], strides = [1, 1]} : vector<27x512xbf16> to vector<1x512xbf16>
    %112 = vector.broadcast %111 : vector<1x512xbf16> to vector<8x512xbf16>
    %113 = arith.mulf %110, %112 : vector<8x512xbf16>
    %c12 = arith.constant 12 : index
    %c0_51 = arith.constant 0 : index
    %c0_52 = arith.constant 0 : index
    %114 = vector.load %arg3[%c12, %c0_51, %c0_52] : memref<27x8x8xbf16, #tpu.memory_space<vmem>>, vector<1x8x8xbf16>
    %115 = vector.shape_cast %114 : vector<1x8x8xbf16> to vector<8x8xbf16>
    %cst_53 = arith.constant dense<0.000000e+00> : vector<8x512xf32>
    %116 = tpu.matmul %115, %113, %cst_53 {dimension_numbers = #tpu.dot_dimension_numbers<[1], [0], [0], [1], [0, 0, 1, 1], [], []>} : vector<8x8xbf16>, vector<8x512xbf16>, vector<8x512xf32> -> vector<8x512xf32>
    %117 = arith.addf %109, %116 : vector<8x512xf32>
    %118 = vector.extract_strided_slice %12 {offsets = [0, 73], sizes = [8, 512], strides = [1, 1]} : vector<8x658xbf16> to vector<8x512xbf16>
    %119 = vector.extract_strided_slice %3 {offsets = [13, 0], sizes = [1, 512], strides = [1, 1]} : vector<27x512xbf16> to vector<1x512xbf16>
    %120 = vector.broadcast %119 : vector<1x512xbf16> to vector<8x512xbf16>
    %121 = arith.mulf %118, %120 : vector<8x512xbf16>
    %c13 = arith.constant 13 : index
    %c0_54 = arith.constant 0 : index
    %c0_55 = arith.constant 0 : index
    %122 = vector.load %arg3[%c13, %c0_54, %c0_55] : memref<27x8x8xbf16, #tpu.memory_space<vmem>>, vector<1x8x8xbf16>
    %123 = vector.shape_cast %122 : vector<1x8x8xbf16> to vector<8x8xbf16>
    %cst_56 = arith.constant dense<0.000000e+00> : vector<8x512xf32>
    %124 = tpu.matmul %123, %121, %cst_56 {dimension_numbers = #tpu.dot_dimension_numbers<[1], [0], [0], [1], [0, 0, 1, 1], [], []>} : vector<8x8xbf16>, vector<8x512xbf16>, vector<8x512xf32> -> vector<8x512xf32>
    %125 = arith.addf %117, %124 : vector<8x512xf32>
    %126 = vector.extract_strided_slice %12 {offsets = [0, 74], sizes = [8, 512], strides = [1, 1]} : vector<8x658xbf16> to vector<8x512xbf16>
    %127 = vector.extract_strided_slice %3 {offsets = [14, 0], sizes = [1, 512], strides = [1, 1]} : vector<27x512xbf16> to vector<1x512xbf16>
    %128 = vector.broadcast %127 : vector<1x512xbf16> to vector<8x512xbf16>
    %129 = arith.mulf %126, %128 : vector<8x512xbf16>
    %c14 = arith.constant 14 : index
    %c0_57 = arith.constant 0 : index
    %c0_58 = arith.constant 0 : index
    %130 = vector.load %arg3[%c14, %c0_57, %c0_58] : memref<27x8x8xbf16, #tpu.memory_space<vmem>>, vector<1x8x8xbf16>
    %131 = vector.shape_cast %130 : vector<1x8x8xbf16> to vector<8x8xbf16>
    %cst_59 = arith.constant dense<0.000000e+00> : vector<8x512xf32>
    %132 = tpu.matmul %131, %129, %cst_59 {dimension_numbers = #tpu.dot_dimension_numbers<[1], [0], [0], [1], [0, 0, 1, 1], [], []>} : vector<8x8xbf16>, vector<8x512xbf16>, vector<8x512xf32> -> vector<8x512xf32>
    %133 = arith.addf %125, %132 : vector<8x512xf32>
    %134 = vector.extract_strided_slice %12 {offsets = [0, 80], sizes = [8, 512], strides = [1, 1]} : vector<8x658xbf16> to vector<8x512xbf16>
    %135 = vector.extract_strided_slice %3 {offsets = [15, 0], sizes = [1, 512], strides = [1, 1]} : vector<27x512xbf16> to vector<1x512xbf16>
    %136 = vector.broadcast %135 : vector<1x512xbf16> to vector<8x512xbf16>
    %137 = arith.mulf %134, %136 : vector<8x512xbf16>
    %c15 = arith.constant 15 : index
    %c0_60 = arith.constant 0 : index
    %c0_61 = arith.constant 0 : index
    %138 = vector.load %arg3[%c15, %c0_60, %c0_61] : memref<27x8x8xbf16, #tpu.memory_space<vmem>>, vector<1x8x8xbf16>
    %139 = vector.shape_cast %138 : vector<1x8x8xbf16> to vector<8x8xbf16>
    %cst_62 = arith.constant dense<0.000000e+00> : vector<8x512xf32>
    %140 = tpu.matmul %139, %137, %cst_62 {dimension_numbers = #tpu.dot_dimension_numbers<[1], [0], [0], [1], [0, 0, 1, 1], [], []>} : vector<8x8xbf16>, vector<8x512xbf16>, vector<8x512xf32> -> vector<8x512xf32>
    %141 = arith.addf %133, %140 : vector<8x512xf32>
    %142 = vector.extract_strided_slice %12 {offsets = [0, 81], sizes = [8, 512], strides = [1, 1]} : vector<8x658xbf16> to vector<8x512xbf16>
    %143 = vector.extract_strided_slice %3 {offsets = [16, 0], sizes = [1, 512], strides = [1, 1]} : vector<27x512xbf16> to vector<1x512xbf16>
    %144 = vector.broadcast %143 : vector<1x512xbf16> to vector<8x512xbf16>
    %145 = arith.mulf %142, %144 : vector<8x512xbf16>
    %c16 = arith.constant 16 : index
    %c0_63 = arith.constant 0 : index
    %c0_64 = arith.constant 0 : index
    %146 = vector.load %arg3[%c16, %c0_63, %c0_64] : memref<27x8x8xbf16, #tpu.memory_space<vmem>>, vector<1x8x8xbf16>
    %147 = vector.shape_cast %146 : vector<1x8x8xbf16> to vector<8x8xbf16>
    %cst_65 = arith.constant dense<0.000000e+00> : vector<8x512xf32>
    %148 = tpu.matmul %147, %145, %cst_65 {dimension_numbers = #tpu.dot_dimension_numbers<[1], [0], [0], [1], [0, 0, 1, 1], [], []>} : vector<8x8xbf16>, vector<8x512xbf16>, vector<8x512xf32> -> vector<8x512xf32>
    %149 = arith.addf %141, %148 : vector<8x512xf32>
    %150 = vector.extract_strided_slice %12 {offsets = [0, 82], sizes = [8, 512], strides = [1, 1]} : vector<8x658xbf16> to vector<8x512xbf16>
    %151 = vector.extract_strided_slice %3 {offsets = [17, 0], sizes = [1, 512], strides = [1, 1]} : vector<27x512xbf16> to vector<1x512xbf16>
    %152 = vector.broadcast %151 : vector<1x512xbf16> to vector<8x512xbf16>
    %153 = arith.mulf %150, %152 : vector<8x512xbf16>
    %c17 = arith.constant 17 : index
    %c0_66 = arith.constant 0 : index
    %c0_67 = arith.constant 0 : index
    %154 = vector.load %arg3[%c17, %c0_66, %c0_67] : memref<27x8x8xbf16, #tpu.memory_space<vmem>>, vector<1x8x8xbf16>
    %155 = vector.shape_cast %154 : vector<1x8x8xbf16> to vector<8x8xbf16>
    %cst_68 = arith.constant dense<0.000000e+00> : vector<8x512xf32>
    %156 = tpu.matmul %155, %153, %cst_68 {dimension_numbers = #tpu.dot_dimension_numbers<[1], [0], [0], [1], [0, 0, 1, 1], [], []>} : vector<8x8xbf16>, vector<8x512xbf16>, vector<8x512xf32> -> vector<8x512xf32>
    %157 = arith.addf %149, %156 : vector<8x512xf32>
    %158 = vector.extract_strided_slice %12 {offsets = [0, 128], sizes = [8, 512], strides = [1, 1]} : vector<8x658xbf16> to vector<8x512xbf16>
    %159 = vector.extract_strided_slice %3 {offsets = [18, 0], sizes = [1, 512], strides = [1, 1]} : vector<27x512xbf16> to vector<1x512xbf16>
    %160 = vector.broadcast %159 : vector<1x512xbf16> to vector<8x512xbf16>
    %161 = arith.mulf %158, %160 : vector<8x512xbf16>
    %c18 = arith.constant 18 : index
    %c0_69 = arith.constant 0 : index
    %c0_70 = arith.constant 0 : index
    %162 = vector.load %arg3[%c18, %c0_69, %c0_70] : memref<27x8x8xbf16, #tpu.memory_space<vmem>>, vector<1x8x8xbf16>
    %163 = vector.shape_cast %162 : vector<1x8x8xbf16> to vector<8x8xbf16>
    %cst_71 = arith.constant dense<0.000000e+00> : vector<8x512xf32>
    %164 = tpu.matmul %163, %161, %cst_71 {dimension_numbers = #tpu.dot_dimension_numbers<[1], [0], [0], [1], [0, 0, 1, 1], [], []>} : vector<8x8xbf16>, vector<8x512xbf16>, vector<8x512xf32> -> vector<8x512xf32>
    %165 = arith.addf %157, %164 : vector<8x512xf32>
    %166 = vector.extract_strided_slice %12 {offsets = [0, 129], sizes = [8, 512], strides = [1, 1]} : vector<8x658xbf16> to vector<8x512xbf16>
    %167 = vector.extract_strided_slice %3 {offsets = [19, 0], sizes = [1, 512], strides = [1, 1]} : vector<27x512xbf16> to vector<1x512xbf16>
    %168 = vector.broadcast %167 : vector<1x512xbf16> to vector<8x512xbf16>
    %169 = arith.mulf %166, %168 : vector<8x512xbf16>
    %c19 = arith.constant 19 : index
    %c0_72 = arith.constant 0 : index
    %c0_73 = arith.constant 0 : index
    %170 = vector.load %arg3[%c19, %c0_72, %c0_73] : memref<27x8x8xbf16, #tpu.memory_space<vmem>>, vector<1x8x8xbf16>
    %171 = vector.shape_cast %170 : vector<1x8x8xbf16> to vector<8x8xbf16>
    %cst_74 = arith.constant dense<0.000000e+00> : vector<8x512xf32>
    %172 = tpu.matmul %171, %169, %cst_74 {dimension_numbers = #tpu.dot_dimension_numbers<[1], [0], [0], [1], [0, 0, 1, 1], [], []>} : vector<8x8xbf16>, vector<8x512xbf16>, vector<8x512xf32> -> vector<8x512xf32>
    %173 = arith.addf %165, %172 : vector<8x512xf32>
    %174 = vector.extract_strided_slice %12 {offsets = [0, 130], sizes = [8, 512], strides = [1, 1]} : vector<8x658xbf16> to vector<8x512xbf16>
    %175 = vector.extract_strided_slice %3 {offsets = [20, 0], sizes = [1, 512], strides = [1, 1]} : vector<27x512xbf16> to vector<1x512xbf16>
    %176 = vector.broadcast %175 : vector<1x512xbf16> to vector<8x512xbf16>
    %177 = arith.mulf %174, %176 : vector<8x512xbf16>
    %c20 = arith.constant 20 : index
    %c0_75 = arith.constant 0 : index
    %c0_76 = arith.constant 0 : index
    %178 = vector.load %arg3[%c20, %c0_75, %c0_76] : memref<27x8x8xbf16, #tpu.memory_space<vmem>>, vector<1x8x8xbf16>
    %179 = vector.shape_cast %178 : vector<1x8x8xbf16> to vector<8x8xbf16>
    %cst_77 = arith.constant dense<0.000000e+00> : vector<8x512xf32>
    %180 = tpu.matmul %179, %177, %cst_77 {dimension_numbers = #tpu.dot_dimension_numbers<[1], [0], [0], [1], [0, 0, 1, 1], [], []>} : vector<8x8xbf16>, vector<8x512xbf16>, vector<8x512xf32> -> vector<8x512xf32>
    %181 = arith.addf %173, %180 : vector<8x512xf32>
    %182 = vector.extract_strided_slice %12 {offsets = [0, 136], sizes = [8, 512], strides = [1, 1]} : vector<8x658xbf16> to vector<8x512xbf16>
    %183 = vector.extract_strided_slice %3 {offsets = [21, 0], sizes = [1, 512], strides = [1, 1]} : vector<27x512xbf16> to vector<1x512xbf16>
    %184 = vector.broadcast %183 : vector<1x512xbf16> to vector<8x512xbf16>
    %185 = arith.mulf %182, %184 : vector<8x512xbf16>
    %c21 = arith.constant 21 : index
    %c0_78 = arith.constant 0 : index
    %c0_79 = arith.constant 0 : index
    %186 = vector.load %arg3[%c21, %c0_78, %c0_79] : memref<27x8x8xbf16, #tpu.memory_space<vmem>>, vector<1x8x8xbf16>
    %187 = vector.shape_cast %186 : vector<1x8x8xbf16> to vector<8x8xbf16>
    %cst_80 = arith.constant dense<0.000000e+00> : vector<8x512xf32>
    %188 = tpu.matmul %187, %185, %cst_80 {dimension_numbers = #tpu.dot_dimension_numbers<[1], [0], [0], [1], [0, 0, 1, 1], [], []>} : vector<8x8xbf16>, vector<8x512xbf16>, vector<8x512xf32> -> vector<8x512xf32>
    %189 = arith.addf %181, %188 : vector<8x512xf32>
    %190 = vector.extract_strided_slice %12 {offsets = [0, 137], sizes = [8, 512], strides = [1, 1]} : vector<8x658xbf16> to vector<8x512xbf16>
    %191 = vector.extract_strided_slice %3 {offsets = [22, 0], sizes = [1, 512], strides = [1, 1]} : vector<27x512xbf16> to vector<1x512xbf16>
    %192 = vector.broadcast %191 : vector<1x512xbf16> to vector<8x512xbf16>
    %193 = arith.mulf %190, %192 : vector<8x512xbf16>
    %c22 = arith.constant 22 : index
    %c0_81 = arith.constant 0 : index
    %c0_82 = arith.constant 0 : index
    %194 = vector.load %arg3[%c22, %c0_81, %c0_82] : memref<27x8x8xbf16, #tpu.memory_space<vmem>>, vector<1x8x8xbf16>
    %195 = vector.shape_cast %194 : vector<1x8x8xbf16> to vector<8x8xbf16>
    %cst_83 = arith.constant dense<0.000000e+00> : vector<8x512xf32>
    %196 = tpu.matmul %195, %193, %cst_83 {dimension_numbers = #tpu.dot_dimension_numbers<[1], [0], [0], [1], [0, 0, 1, 1], [], []>} : vector<8x8xbf16>, vector<8x512xbf16>, vector<8x512xf32> -> vector<8x512xf32>
    %197 = arith.addf %189, %196 : vector<8x512xf32>
    %198 = vector.extract_strided_slice %12 {offsets = [0, 138], sizes = [8, 512], strides = [1, 1]} : vector<8x658xbf16> to vector<8x512xbf16>
    %199 = vector.extract_strided_slice %3 {offsets = [23, 0], sizes = [1, 512], strides = [1, 1]} : vector<27x512xbf16> to vector<1x512xbf16>
    %200 = vector.broadcast %199 : vector<1x512xbf16> to vector<8x512xbf16>
    %201 = arith.mulf %198, %200 : vector<8x512xbf16>
    %c23 = arith.constant 23 : index
    %c0_84 = arith.constant 0 : index
    %c0_85 = arith.constant 0 : index
    %202 = vector.load %arg3[%c23, %c0_84, %c0_85] : memref<27x8x8xbf16, #tpu.memory_space<vmem>>, vector<1x8x8xbf16>
    %203 = vector.shape_cast %202 : vector<1x8x8xbf16> to vector<8x8xbf16>
    %cst_86 = arith.constant dense<0.000000e+00> : vector<8x512xf32>
    %204 = tpu.matmul %203, %201, %cst_86 {dimension_numbers = #tpu.dot_dimension_numbers<[1], [0], [0], [1], [0, 0, 1, 1], [], []>} : vector<8x8xbf16>, vector<8x512xbf16>, vector<8x512xf32> -> vector<8x512xf32>
    %205 = arith.addf %197, %204 : vector<8x512xf32>
    %206 = vector.extract_strided_slice %12 {offsets = [0, 144], sizes = [8, 512], strides = [1, 1]} : vector<8x658xbf16> to vector<8x512xbf16>
    %207 = vector.extract_strided_slice %3 {offsets = [24, 0], sizes = [1, 512], strides = [1, 1]} : vector<27x512xbf16> to vector<1x512xbf16>
    %208 = vector.broadcast %207 : vector<1x512xbf16> to vector<8x512xbf16>
    %209 = arith.mulf %206, %208 : vector<8x512xbf16>
    %c24 = arith.constant 24 : index
    %c0_87 = arith.constant 0 : index
    %c0_88 = arith.constant 0 : index
    %210 = vector.load %arg3[%c24, %c0_87, %c0_88] : memref<27x8x8xbf16, #tpu.memory_space<vmem>>, vector<1x8x8xbf16>
    %211 = vector.shape_cast %210 : vector<1x8x8xbf16> to vector<8x8xbf16>
    %cst_89 = arith.constant dense<0.000000e+00> : vector<8x512xf32>
    %212 = tpu.matmul %211, %209, %cst_89 {dimension_numbers = #tpu.dot_dimension_numbers<[1], [0], [0], [1], [0, 0, 1, 1], [], []>} : vector<8x8xbf16>, vector<8x512xbf16>, vector<8x512xf32> -> vector<8x512xf32>
    %213 = arith.addf %205, %212 : vector<8x512xf32>
    %214 = vector.extract_strided_slice %12 {offsets = [0, 145], sizes = [8, 512], strides = [1, 1]} : vector<8x658xbf16> to vector<8x512xbf16>
    %215 = vector.extract_strided_slice %3 {offsets = [25, 0], sizes = [1, 512], strides = [1, 1]} : vector<27x512xbf16> to vector<1x512xbf16>
    %216 = vector.broadcast %215 : vector<1x512xbf16> to vector<8x512xbf16>
    %217 = arith.mulf %214, %216 : vector<8x512xbf16>
    %c25 = arith.constant 25 : index
    %c0_90 = arith.constant 0 : index
    %c0_91 = arith.constant 0 : index
    %218 = vector.load %arg3[%c25, %c0_90, %c0_91] : memref<27x8x8xbf16, #tpu.memory_space<vmem>>, vector<1x8x8xbf16>
    %219 = vector.shape_cast %218 : vector<1x8x8xbf16> to vector<8x8xbf16>
    %cst_92 = arith.constant dense<0.000000e+00> : vector<8x512xf32>
    %220 = tpu.matmul %219, %217, %cst_92 {dimension_numbers = #tpu.dot_dimension_numbers<[1], [0], [0], [1], [0, 0, 1, 1], [], []>} : vector<8x8xbf16>, vector<8x512xbf16>, vector<8x512xf32> -> vector<8x512xf32>
    %221 = arith.addf %213, %220 : vector<8x512xf32>
    %222 = vector.extract_strided_slice %12 {offsets = [0, 146], sizes = [8, 512], strides = [1, 1]} : vector<8x658xbf16> to vector<8x512xbf16>
    %223 = vector.extract_strided_slice %3 {offsets = [26, 0], sizes = [1, 512], strides = [1, 1]} : vector<27x512xbf16> to vector<1x512xbf16>
    %224 = vector.broadcast %223 : vector<1x512xbf16> to vector<8x512xbf16>
    %225 = arith.mulf %222, %224 : vector<8x512xbf16>
    %c26 = arith.constant 26 : index
    %c0_93 = arith.constant 0 : index
    %c0_94 = arith.constant 0 : index
    %226 = vector.load %arg3[%c26, %c0_93, %c0_94] : memref<27x8x8xbf16, #tpu.memory_space<vmem>>, vector<1x8x8xbf16>
    %227 = vector.shape_cast %226 : vector<1x8x8xbf16> to vector<8x8xbf16>
    %cst_95 = arith.constant dense<0.000000e+00> : vector<8x512xf32>
    %228 = tpu.matmul %227, %225, %cst_95 {dimension_numbers = #tpu.dot_dimension_numbers<[1], [0], [0], [1], [0, 0, 1, 1], [], []>} : vector<8x8xbf16>, vector<8x512xbf16>, vector<8x512xf32> -> vector<8x512xf32>
    %229 = arith.addf %221, %228 : vector<8x512xf32>
    %c0_96 = arith.constant 0 : index
    %c0_97 = arith.constant 0 : index
    %c0_98 = arith.constant 0 : index
    %c0_99 = arith.constant 0 : index
    %230 = vector.load %arg7[%c0_96, %c0_97, %c0_98, %c0_99] : memref<2x1x8x512xf32, #tpu.memory_space<vmem>>, vector<1x1x8x512xf32>
    %231 = vector.shape_cast %230 : vector<1x1x8x512xf32> to vector<8x512xf32>
    %232 = vector.shape_cast %229 : vector<8x512xf32> to vector<1x1x8x512xf32>
    tpu.vector_store %arg7[%c0_96, %c0_97, %c0_98, %c0_99], %232 {strides = array<i32>} : memref<2x1x8x512xf32, #tpu.memory_space<vmem>>, vector<1x1x8x512xf32>,
    %c0_100 = arith.constant 0 : index
    %c0_101 = arith.constant 0 : index
    %c0_102 = arith.constant 0 : index
    %233 = vector.load %arg8[%c0_100, %c0_101, %c0_102] : memref<2x8x1xf32, #tpu.memory_space<vmem>>, vector<1x8x1xf32>
    %234 = vector.shape_cast %233 : vector<1x8x1xf32> to vector<8x1xf32>
    %cst_103 = arith.constant dense<0.000000e+00> : vector<8xf32>
    %235 = vector.multi_reduction <add>, %229, %cst_103 [1] : vector<8x512xf32> to vector<8xf32>
    %236 = vector.shape_cast %235 : vector<8xf32> to vector<8x1xf32>
    %237 = arith.addf %234, %236 : vector<8x1xf32>
    %c0_104 = arith.constant 0 : index
    %c0_105 = arith.constant 0 : index
    %c0_106 = arith.constant 0 : index
    %238 = vector.load %arg8[%c0_104, %c0_105, %c0_106] : memref<2x8x1xf32, #tpu.memory_space<vmem>>, vector<1x8x1xf32>
    %239 = vector.shape_cast %238 : vector<1x8x1xf32> to vector<8x1xf32>
    %240 = vector.shape_cast %237 : vector<8x1xf32> to vector<1x8x1xf32>
    tpu.vector_store %arg8[%c0_104, %c0_105, %c0_106], %240 {strides = array<i32>} : memref<2x8x1xf32, #tpu.memory_space<vmem>>, vector<1x8x1xf32>,
    %c0_107 = arith.constant 0 : index
    %c0_108 = arith.constant 0 : index
    %c0_109 = arith.constant 0 : index
    %241 = vector.load %arg9[%c0_107, %c0_108, %c0_109] : memref<2x8x1xf32, #tpu.memory_space<vmem>>, vector<1x8x1xf32>
    %242 = vector.shape_cast %241 : vector<1x8x1xf32> to vector<8x1xf32>
    %243 = arith.mulf %229, %229 : vector<8x512xf32>
    %cst_110 = arith.constant dense<0.000000e+00> : vector<8xf32>
    %244 = vector.multi_reduction <add>, %243, %cst_110 [1] : vector<8x512xf32> to vector<8xf32>
    %245 = vector.shape_cast %244 : vector<8xf32> to vector<8x1xf32>
    %246 = arith.addf %242, %245 : vector<8x1xf32>
    %c0_111 = arith.constant 0 : index
    %c0_112 = arith.constant 0 : index
    %c0_113 = arith.constant 0 : index
    %247 = vector.load %arg9[%c0_111, %c0_112, %c0_113] : memref<2x8x1xf32, #tpu.memory_space<vmem>>, vector<1x8x1xf32>
    %248 = vector.shape_cast %247 : vector<1x8x1xf32> to vector<8x1xf32>
    %249 = vector.shape_cast %246 : vector<8x1xf32> to vector<1x8x1xf32>
    tpu.vector_store %arg9[%c0_111, %c0_112, %c0_113], %249 {strides = array<i32>} : memref<2x8x1xf32, #tpu.memory_space<vmem>>, vector<1x8x1xf32>,
    %c1_114 = arith.constant 1 : index
    %c0_115 = arith.constant 0 : index
    %c0_116 = arith.constant 0 : index
    %c0_117 = arith.constant 0 : index
    %250 = vector.load %arg6[%c1_114, %c0_115, %c0_116, %c0_117] : memref<2x3x8x512xbf16, #tpu.memory_space<vmem>>, vector<1x1x8x512xbf16>
    %251 = vector.shape_cast %250 : vector<1x1x8x512xbf16> to vector<8x512xbf16>
    %c1_118 = arith.constant 1 : index
    %c1_119 = arith.constant 1 : index
    %c0_120 = arith.constant 0 : index
    %c0_121 = arith.constant 0 : index
    %252 = vector.load %arg6[%c1_118, %c1_119, %c0_120, %c0_121] : memref<2x3x8x512xbf16, #tpu.memory_space<vmem>>, vector<1x1x8x512xbf16>
    %253 = vector.shape_cast %252 : vector<1x1x8x512xbf16> to vector<8x512xbf16>
    %c1_122 = arith.constant 1 : index
    %c2_123 = arith.constant 2 : index
    %c0_124 = arith.constant 0 : index
    %c0_125 = arith.constant 0 : index
    %254 = vector.load %arg6[%c1_122, %c2_123, %c0_124, %c0_125] : memref<2x3x8x512xbf16, #tpu.memory_space<vmem>>, vector<1x1x8x512xbf16>
    %255 = vector.shape_cast %254 : vector<1x1x8x512xbf16> to vector<8x512xbf16>
    %256 = vector.extract_strided_slice %251 {offsets = [0, 439], sizes = [8, 73], strides = [1, 1]} : vector<8x512xbf16> to vector<8x73xbf16>
    %257 = vector.extract_strided_slice %255 {offsets = [0, 0], sizes = [8, 73], strides = [1, 1]} : vector<8x512xbf16> to vector<8x73xbf16>
    %258 = tpu.concatenate %256, %253, %257 in 1 : vector<8x73xbf16>, vector<8x512xbf16>, vector<8x73xbf16> -> vector<8x658xbf16>
    %cst_126 = arith.constant 0.000000e+00 : f32
    %259 = vector.broadcast %cst_126 : f32 to vector<8x512xf32>
    %260 = vector.extract_strided_slice %258 {offsets = [0, 0], sizes = [8, 512], strides = [1, 1]} : vector<8x658xbf16> to vector<8x512xbf16>
    %261 = vector.extract_strided_slice %3 {offsets = [0, 0], sizes = [1, 512], strides = [1, 1]} : vector<27x512xbf16> to vector<1x512xbf16>
    %262 = vector.broadcast %261 : vector<1x512xbf16> to vector<8x512xbf16>
    %263 = arith.mulf %260, %262 : vector<8x512xbf16>
    %c0_127 = arith.constant 0 : index
    %c0_128 = arith.constant 0 : index
    %c0_129 = arith.constant 0 : index
    %264 = vector.load %arg3[%c0_127, %c0_128, %c0_129] : memref<27x8x8xbf16, #tpu.memory_space<vmem>>, vector<1x8x8xbf16>
    %265 = vector.shape_cast %264 : vector<1x8x8xbf16> to vector<8x8xbf16>
    %cst_130 = arith.constant dense<0.000000e+00> : vector<8x512xf32>
    %266 = tpu.matmul %265, %263, %cst_130 {dimension_numbers = #tpu.dot_dimension_numbers<[1], [0], [0], [1], [0, 0, 1, 1], [], []>} : vector<8x8xbf16>, vector<8x512xbf16>, vector<8x512xf32> -> vector<8x512xf32>
    %267 = arith.addf %259, %266 : vector<8x512xf32>
    %268 = vector.extract_strided_slice %258 {offsets = [0, 1], sizes = [8, 512], strides = [1, 1]} : vector<8x658xbf16> to vector<8x512xbf16>
    %269 = vector.extract_strided_slice %3 {offsets = [1, 0], sizes = [1, 512], strides = [1, 1]} : vector<27x512xbf16> to vector<1x512xbf16>
    %270 = vector.broadcast %269 : vector<1x512xbf16> to vector<8x512xbf16>
    %271 = arith.mulf %268, %270 : vector<8x512xbf16>
    %c1_131 = arith.constant 1 : index
    %c0_132 = arith.constant 0 : index
    %c0_133 = arith.constant 0 : index
    %272 = vector.load %arg3[%c1_131, %c0_132, %c0_133] : memref<27x8x8xbf16, #tpu.memory_space<vmem>>, vector<1x8x8xbf16>
    %273 = vector.shape_cast %272 : vector<1x8x8xbf16> to vector<8x8xbf16>
    %cst_134 = arith.constant dense<0.000000e+00> : vector<8x512xf32>
    %274 = tpu.matmul %273, %271, %cst_134 {dimension_numbers = #tpu.dot_dimension_numbers<[1], [0], [0], [1], [0, 0, 1, 1], [], []>} : vector<8x8xbf16>, vector<8x512xbf16>, vector<8x512xf32> -> vector<8x512xf32>
    %275 = arith.addf %267, %274 : vector<8x512xf32>
    %276 = vector.extract_strided_slice %258 {offsets = [0, 2], sizes = [8, 512], strides = [1, 1]} : vector<8x658xbf16> to vector<8x512xbf16>
    %277 = vector.extract_strided_slice %3 {offsets = [2, 0], sizes = [1, 512], strides = [1, 1]} : vector<27x512xbf16> to vector<1x512xbf16>
    %278 = vector.broadcast %277 : vector<1x512xbf16> to vector<8x512xbf16>
    %279 = arith.mulf %276, %278 : vector<8x512xbf16>
    %c2_135 = arith.constant 2 : index
    %c0_136 = arith.constant 0 : index
    %c0_137 = arith.constant 0 : index
    %280 = vector.load %arg3[%c2_135, %c0_136, %c0_137] : memref<27x8x8xbf16, #tpu.memory_space<vmem>>, vector<1x8x8xbf16>
    %281 = vector.shape_cast %280 : vector<1x8x8xbf16> to vector<8x8xbf16>
    %cst_138 = arith.constant dense<0.000000e+00> : vector<8x512xf32>
    %282 = tpu.matmul %281, %279, %cst_138 {dimension_numbers = #tpu.dot_dimension_numbers<[1], [0], [0], [1], [0, 0, 1, 1], [], []>} : vector<8x8xbf16>, vector<8x512xbf16>, vector<8x512xf32> -> vector<8x512xf32>
    %283 = arith.addf %275, %282 : vector<8x512xf32>
    %284 = vector.extract_strided_slice %258 {offsets = [0, 8], sizes = [8, 512], strides = [1, 1]} : vector<8x658xbf16> to vector<8x512xbf16>
    %285 = vector.extract_strided_slice %3 {offsets = [3, 0], sizes = [1, 512], strides = [1, 1]} : vector<27x512xbf16> to vector<1x512xbf16>
    %286 = vector.broadcast %285 : vector<1x512xbf16> to vector<8x512xbf16>
    %287 = arith.mulf %284, %286 : vector<8x512xbf16>
    %c3_139 = arith.constant 3 : index
    %c0_140 = arith.constant 0 : index
    %c0_141 = arith.constant 0 : index
    %288 = vector.load %arg3[%c3_139, %c0_140, %c0_141] : memref<27x8x8xbf16, #tpu.memory_space<vmem>>, vector<1x8x8xbf16>
    %289 = vector.shape_cast %288 : vector<1x8x8xbf16> to vector<8x8xbf16>
    %cst_142 = arith.constant dense<0.000000e+00> : vector<8x512xf32>
    %290 = tpu.matmul %289, %287, %cst_142 {dimension_numbers = #tpu.dot_dimension_numbers<[1], [0], [0], [1], [0, 0, 1, 1], [], []>} : vector<8x8xbf16>, vector<8x512xbf16>, vector<8x512xf32> -> vector<8x512xf32>
    %291 = arith.addf %283, %290 : vector<8x512xf32>
    %292 = vector.extract_strided_slice %258 {offsets = [0, 9], sizes = [8, 512], strides = [1, 1]} : vector<8x658xbf16> to vector<8x512xbf16>
    %293 = vector.extract_strided_slice %3 {offsets = [4, 0], sizes = [1, 512], strides = [1, 1]} : vector<27x512xbf16> to vector<1x512xbf16>
    %294 = vector.broadcast %293 : vector<1x512xbf16> to vector<8x512xbf16>
    %295 = arith.mulf %292, %294 : vector<8x512xbf16>
    %c4_143 = arith.constant 4 : index
    %c0_144 = arith.constant 0 : index
    %c0_145 = arith.constant 0 : index
    %296 = vector.load %arg3[%c4_143, %c0_144, %c0_145] : memref<27x8x8xbf16, #tpu.memory_space<vmem>>, vector<1x8x8xbf16>
    %297 = vector.shape_cast %296 : vector<1x8x8xbf16> to vector<8x8xbf16>
    %cst_146 = arith.constant dense<0.000000e+00> : vector<8x512xf32>
    %298 = tpu.matmul %297, %295, %cst_146 {dimension_numbers = #tpu.dot_dimension_numbers<[1], [0], [0], [1], [0, 0, 1, 1], [], []>} : vector<8x8xbf16>, vector<8x512xbf16>, vector<8x512xf32> -> vector<8x512xf32>
    %299 = arith.addf %291, %298 : vector<8x512xf32>
    %300 = vector.extract_strided_slice %258 {offsets = [0, 10], sizes = [8, 512], strides = [1, 1]} : vector<8x658xbf16> to vector<8x512xbf16>
    %301 = vector.extract_strided_slice %3 {offsets = [5, 0], sizes = [1, 512], strides = [1, 1]} : vector<27x512xbf16> to vector<1x512xbf16>
    %302 = vector.broadcast %301 : vector<1x512xbf16> to vector<8x512xbf16>
    %303 = arith.mulf %300, %302 : vector<8x512xbf16>
    %c5_147 = arith.constant 5 : index
    %c0_148 = arith.constant 0 : index
    %c0_149 = arith.constant 0 : index
    %304 = vector.load %arg3[%c5_147, %c0_148, %c0_149] : memref<27x8x8xbf16, #tpu.memory_space<vmem>>, vector<1x8x8xbf16>
    %305 = vector.shape_cast %304 : vector<1x8x8xbf16> to vector<8x8xbf16>
    %cst_150 = arith.constant dense<0.000000e+00> : vector<8x512xf32>
    %306 = tpu.matmul %305, %303, %cst_150 {dimension_numbers = #tpu.dot_dimension_numbers<[1], [0], [0], [1], [0, 0, 1, 1], [], []>} : vector<8x8xbf16>, vector<8x512xbf16>, vector<8x512xf32> -> vector<8x512xf32>
    %307 = arith.addf %299, %306 : vector<8x512xf32>
    %308 = vector.extract_strided_slice %258 {offsets = [0, 16], sizes = [8, 512], strides = [1, 1]} : vector<8x658xbf16> to vector<8x512xbf16>
    %309 = vector.extract_strided_slice %3 {offsets = [6, 0], sizes = [1, 512], strides = [1, 1]} : vector<27x512xbf16> to vector<1x512xbf16>
    %310 = vector.broadcast %309 : vector<1x512xbf16> to vector<8x512xbf16>
    %311 = arith.mulf %308, %310 : vector<8x512xbf16>
    %c6_151 = arith.constant 6 : index
    %c0_152 = arith.constant 0 : index
    %c0_153 = arith.constant 0 : index
    %312 = vector.load %arg3[%c6_151, %c0_152, %c0_153] : memref<27x8x8xbf16, #tpu.memory_space<vmem>>, vector<1x8x8xbf16>
    %313 = vector.shape_cast %312 : vector<1x8x8xbf16> to vector<8x8xbf16>
    %cst_154 = arith.constant dense<0.000000e+00> : vector<8x512xf32>
    %314 = tpu.matmul %313, %311, %cst_154 {dimension_numbers = #tpu.dot_dimension_numbers<[1], [0], [0], [1], [0, 0, 1, 1], [], []>} : vector<8x8xbf16>, vector<8x512xbf16>, vector<8x512xf32> -> vector<8x512xf32>
    %315 = arith.addf %307, %314 : vector<8x512xf32>
    %316 = vector.extract_strided_slice %258 {offsets = [0, 17], sizes = [8, 512], strides = [1, 1]} : vector<8x658xbf16> to vector<8x512xbf16>
    %317 = vector.extract_strided_slice %3 {offsets = [7, 0], sizes = [1, 512], strides = [1, 1]} : vector<27x512xbf16> to vector<1x512xbf16>
    %318 = vector.broadcast %317 : vector<1x512xbf16> to vector<8x512xbf16>
    %319 = arith.mulf %316, %318 : vector<8x512xbf16>
    %c7_155 = arith.constant 7 : index
    %c0_156 = arith.constant 0 : index
    %c0_157 = arith.constant 0 : index
    %320 = vector.load %arg3[%c7_155, %c0_156, %c0_157] : memref<27x8x8xbf16, #tpu.memory_space<vmem>>, vector<1x8x8xbf16>
    %321 = vector.shape_cast %320 : vector<1x8x8xbf16> to vector<8x8xbf16>
    %cst_158 = arith.constant dense<0.000000e+00> : vector<8x512xf32>
    %322 = tpu.matmul %321, %319, %cst_158 {dimension_numbers = #tpu.dot_dimension_numbers<[1], [0], [0], [1], [0, 0, 1, 1], [], []>} : vector<8x8xbf16>, vector<8x512xbf16>, vector<8x512xf32> -> vector<8x512xf32>
    %323 = arith.addf %315, %322 : vector<8x512xf32>
    %324 = vector.extract_strided_slice %258 {offsets = [0, 18], sizes = [8, 512], strides = [1, 1]} : vector<8x658xbf16> to vector<8x512xbf16>
    %325 = vector.extract_strided_slice %3 {offsets = [8, 0], sizes = [1, 512], strides = [1, 1]} : vector<27x512xbf16> to vector<1x512xbf16>
    %326 = vector.broadcast %325 : vector<1x512xbf16> to vector<8x512xbf16>
    %327 = arith.mulf %324, %326 : vector<8x512xbf16>
    %c8_159 = arith.constant 8 : index
    %c0_160 = arith.constant 0 : index
    %c0_161 = arith.constant 0 : index
    %328 = vector.load %arg3[%c8_159, %c0_160, %c0_161] : memref<27x8x8xbf16, #tpu.memory_space<vmem>>, vector<1x8x8xbf16>
    %329 = vector.shape_cast %328 : vector<1x8x8xbf16> to vector<8x8xbf16>
    %cst_162 = arith.constant dense<0.000000e+00> : vector<8x512xf32>
    %330 = tpu.matmul %329, %327, %cst_162 {dimension_numbers = #tpu.dot_dimension_numbers<[1], [0], [0], [1], [0, 0, 1, 1], [], []>} : vector<8x8xbf16>, vector<8x512xbf16>, vector<8x512xf32> -> vector<8x512xf32>
    %331 = arith.addf %323, %330 : vector<8x512xf32>
    %332 = vector.extract_strided_slice %258 {offsets = [0, 64], sizes = [8, 512], strides = [1, 1]} : vector<8x658xbf16> to vector<8x512xbf16>
    %333 = vector.extract_strided_slice %3 {offsets = [9, 0], sizes = [1, 512], strides = [1, 1]} : vector<27x512xbf16> to vector<1x512xbf16>
    %334 = vector.broadcast %333 : vector<1x512xbf16> to vector<8x512xbf16>
    %335 = arith.mulf %332, %334 : vector<8x512xbf16>
    %c9_163 = arith.constant 9 : index
    %c0_164 = arith.constant 0 : index
    %c0_165 = arith.constant 0 : index
    %336 = vector.load %arg3[%c9_163, %c0_164, %c0_165] : memref<27x8x8xbf16, #tpu.memory_space<vmem>>, vector<1x8x8xbf16>
    %337 = vector.shape_cast %336 : vector<1x8x8xbf16> to vector<8x8xbf16>
    %cst_166 = arith.constant dense<0.000000e+00> : vector<8x512xf32>
    %338 = tpu.matmul %337, %335, %cst_166 {dimension_numbers = #tpu.dot_dimension_numbers<[1], [0], [0], [1], [0, 0, 1, 1], [], []>} : vector<8x8xbf16>, vector<8x512xbf16>, vector<8x512xf32> -> vector<8x512xf32>
    %339 = arith.addf %331, %338 : vector<8x512xf32>
    %340 = vector.extract_strided_slice %258 {offsets = [0, 65], sizes = [8, 512], strides = [1, 1]} : vector<8x658xbf16> to vector<8x512xbf16>
    %341 = vector.extract_strided_slice %3 {offsets = [10, 0], sizes = [1, 512], strides = [1, 1]} : vector<27x512xbf16> to vector<1x512xbf16>
    %342 = vector.broadcast %341 : vector<1x512xbf16> to vector<8x512xbf16>
    %343 = arith.mulf %340, %342 : vector<8x512xbf16>
    %c10_167 = arith.constant 10 : index
    %c0_168 = arith.constant 0 : index
    %c0_169 = arith.constant 0 : index
    %344 = vector.load %arg3[%c10_167, %c0_168, %c0_169] : memref<27x8x8xbf16, #tpu.memory_space<vmem>>, vector<1x8x8xbf16>
    %345 = vector.shape_cast %344 : vector<1x8x8xbf16> to vector<8x8xbf16>
    %cst_170 = arith.constant dense<0.000000e+00> : vector<8x512xf32>
    %346 = tpu.matmul %345, %343, %cst_170 {dimension_numbers = #tpu.dot_dimension_numbers<[1], [0], [0], [1], [0, 0, 1, 1], [], []>} : vector<8x8xbf16>, vector<8x512xbf16>, vector<8x512xf32> -> vector<8x512xf32>
    %347 = arith.addf %339, %346 : vector<8x512xf32>
    %348 = vector.extract_strided_slice %258 {offsets = [0, 66], sizes = [8, 512], strides = [1, 1]} : vector<8x658xbf16> to vector<8x512xbf16>
    %349 = vector.extract_strided_slice %3 {offsets = [11, 0], sizes = [1, 512], strides = [1, 1]} : vector<27x512xbf16> to vector<1x512xbf16>
    %350 = vector.broadcast %349 : vector<1x512xbf16> to vector<8x512xbf16>
    %351 = arith.mulf %348, %350 : vector<8x512xbf16>
    %c11_171 = arith.constant 11 : index
    %c0_172 = arith.constant 0 : index
    %c0_173 = arith.constant 0 : index
    %352 = vector.load %arg3[%c11_171, %c0_172, %c0_173] : memref<27x8x8xbf16, #tpu.memory_space<vmem>>, vector<1x8x8xbf16>
    %353 = vector.shape_cast %352 : vector<1x8x8xbf16> to vector<8x8xbf16>
    %cst_174 = arith.constant dense<0.000000e+00> : vector<8x512xf32>
    %354 = tpu.matmul %353, %351, %cst_174 {dimension_numbers = #tpu.dot_dimension_numbers<[1], [0], [0], [1], [0, 0, 1, 1], [], []>} : vector<8x8xbf16>, vector<8x512xbf16>, vector<8x512xf32> -> vector<8x512xf32>
    %355 = arith.addf %347, %354 : vector<8x512xf32>
    %356 = vector.extract_strided_slice %258 {offsets = [0, 72], sizes = [8, 512], strides = [1, 1]} : vector<8x658xbf16> to vector<8x512xbf16>
    %357 = vector.extract_strided_slice %3 {offsets = [12, 0], sizes = [1, 512], strides = [1, 1]} : vector<27x512xbf16> to vector<1x512xbf16>
    %358 = vector.broadcast %357 : vector<1x512xbf16> to vector<8x512xbf16>
    %359 = arith.mulf %356, %358 : vector<8x512xbf16>
    %c12_175 = arith.constant 12 : index
    %c0_176 = arith.constant 0 : index
    %c0_177 = arith.constant 0 : index
    %360 = vector.load %arg3[%c12_175, %c0_176, %c0_177] : memref<27x8x8xbf16, #tpu.memory_space<vmem>>, vector<1x8x8xbf16>
    %361 = vector.shape_cast %360 : vector<1x8x8xbf16> to vector<8x8xbf16>
    %cst_178 = arith.constant dense<0.000000e+00> : vector<8x512xf32>
    %362 = tpu.matmul %361, %359, %cst_178 {dimension_numbers = #tpu.dot_dimension_numbers<[1], [0], [0], [1], [0, 0, 1, 1], [], []>} : vector<8x8xbf16>, vector<8x512xbf16>, vector<8x512xf32> -> vector<8x512xf32>
    %363 = arith.addf %355, %362 : vector<8x512xf32>
    %364 = vector.extract_strided_slice %258 {offsets = [0, 73], sizes = [8, 512], strides = [1, 1]} : vector<8x658xbf16> to vector<8x512xbf16>
    %365 = vector.extract_strided_slice %3 {offsets = [13, 0], sizes = [1, 512], strides = [1, 1]} : vector<27x512xbf16> to vector<1x512xbf16>
    %366 = vector.broadcast %365 : vector<1x512xbf16> to vector<8x512xbf16>
    %367 = arith.mulf %364, %366 : vector<8x512xbf16>
    %c13_179 = arith.constant 13 : index
    %c0_180 = arith.constant 0 : index
    %c0_181 = arith.constant 0 : index
    %368 = vector.load %arg3[%c13_179, %c0_180, %c0_181] : memref<27x8x8xbf16, #tpu.memory_space<vmem>>, vector<1x8x8xbf16>
    %369 = vector.shape_cast %368 : vector<1x8x8xbf16> to vector<8x8xbf16>
    %cst_182 = arith.constant dense<0.000000e+00> : vector<8x512xf32>
    %370 = tpu.matmul %369, %367, %cst_182 {dimension_numbers = #tpu.dot_dimension_numbers<[1], [0], [0], [1], [0, 0, 1, 1], [], []>} : vector<8x8xbf16>, vector<8x512xbf16>, vector<8x512xf32> -> vector<8x512xf32>
    %371 = arith.addf %363, %370 : vector<8x512xf32>
    %372 = vector.extract_strided_slice %258 {offsets = [0, 74], sizes = [8, 512], strides = [1, 1]} : vector<8x658xbf16> to vector<8x512xbf16>
    %373 = vector.extract_strided_slice %3 {offsets = [14, 0], sizes = [1, 512], strides = [1, 1]} : vector<27x512xbf16> to vector<1x512xbf16>
    %374 = vector.broadcast %373 : vector<1x512xbf16> to vector<8x512xbf16>
    %375 = arith.mulf %372, %374 : vector<8x512xbf16>
    %c14_183 = arith.constant 14 : index
    %c0_184 = arith.constant 0 : index
    %c0_185 = arith.constant 0 : index
    %376 = vector.load %arg3[%c14_183, %c0_184, %c0_185] : memref<27x8x8xbf16, #tpu.memory_space<vmem>>, vector<1x8x8xbf16>
    %377 = vector.shape_cast %376 : vector<1x8x8xbf16> to vector<8x8xbf16>
    %cst_186 = arith.constant dense<0.000000e+00> : vector<8x512xf32>
    %378 = tpu.matmul %377, %375, %cst_186 {dimension_numbers = #tpu.dot_dimension_numbers<[1], [0], [0], [1], [0, 0, 1, 1], [], []>} : vector<8x8xbf16>, vector<8x512xbf16>, vector<8x512xf32> -> vector<8x512xf32>
    %379 = arith.addf %371, %378 : vector<8x512xf32>
    %380 = vector.extract_strided_slice %258 {offsets = [0, 80], sizes = [8, 512], strides = [1, 1]} : vector<8x658xbf16> to vector<8x512xbf16>
    %381 = vector.extract_strided_slice %3 {offsets = [15, 0], sizes = [1, 512], strides = [1, 1]} : vector<27x512xbf16> to vector<1x512xbf16>
    %382 = vector.broadcast %381 : vector<1x512xbf16> to vector<8x512xbf16>
    %383 = arith.mulf %380, %382 : vector<8x512xbf16>
    %c15_187 = arith.constant 15 : index
    %c0_188 = arith.constant 0 : index
    %c0_189 = arith.constant 0 : index
    %384 = vector.load %arg3[%c15_187, %c0_188, %c0_189] : memref<27x8x8xbf16, #tpu.memory_space<vmem>>, vector<1x8x8xbf16>
    %385 = vector.shape_cast %384 : vector<1x8x8xbf16> to vector<8x8xbf16>
    %cst_190 = arith.constant dense<0.000000e+00> : vector<8x512xf32>
    %386 = tpu.matmul %385, %383, %cst_190 {dimension_numbers = #tpu.dot_dimension_numbers<[1], [0], [0], [1], [0, 0, 1, 1], [], []>} : vector<8x8xbf16>, vector<8x512xbf16>, vector<8x512xf32> -> vector<8x512xf32>
    %387 = arith.addf %379, %386 : vector<8x512xf32>
    %388 = vector.extract_strided_slice %258 {offsets = [0, 81], sizes = [8, 512], strides = [1, 1]} : vector<8x658xbf16> to vector<8x512xbf16>
    %389 = vector.extract_strided_slice %3 {offsets = [16, 0], sizes = [1, 512], strides = [1, 1]} : vector<27x512xbf16> to vector<1x512xbf16>
    %390 = vector.broadcast %389 : vector<1x512xbf16> to vector<8x512xbf16>
    %391 = arith.mulf %388, %390 : vector<8x512xbf16>
    %c16_191 = arith.constant 16 : index
    %c0_192 = arith.constant 0 : index
    %c0_193 = arith.constant 0 : index
    %392 = vector.load %arg3[%c16_191, %c0_192, %c0_193] : memref<27x8x8xbf16, #tpu.memory_space<vmem>>, vector<1x8x8xbf16>
    %393 = vector.shape_cast %392 : vector<1x8x8xbf16> to vector<8x8xbf16>
    %cst_194 = arith.constant dense<0.000000e+00> : vector<8x512xf32>
    %394 = tpu.matmul %393, %391, %cst_194 {dimension_numbers = #tpu.dot_dimension_numbers<[1], [0], [0], [1], [0, 0, 1, 1], [], []>} : vector<8x8xbf16>, vector<8x512xbf16>, vector<8x512xf32> -> vector<8x512xf32>
    %395 = arith.addf %387, %394 : vector<8x512xf32>
    %396 = vector.extract_strided_slice %258 {offsets = [0, 82], sizes = [8, 512], strides = [1, 1]} : vector<8x658xbf16> to vector<8x512xbf16>
    %397 = vector.extract_strided_slice %3 {offsets = [17, 0], sizes = [1, 512], strides = [1, 1]} : vector<27x512xbf16> to vector<1x512xbf16>
    %398 = vector.broadcast %397 : vector<1x512xbf16> to vector<8x512xbf16>
    %399 = arith.mulf %396, %398 : vector<8x512xbf16>
    %c17_195 = arith.constant 17 : index
    %c0_196 = arith.constant 0 : index
    %c0_197 = arith.constant 0 : index
    %400 = vector.load %arg3[%c17_195, %c0_196, %c0_197] : memref<27x8x8xbf16, #tpu.memory_space<vmem>>, vector<1x8x8xbf16>
    %401 = vector.shape_cast %400 : vector<1x8x8xbf16> to vector<8x8xbf16>
    %cst_198 = arith.constant dense<0.000000e+00> : vector<8x512xf32>
    %402 = tpu.matmul %401, %399, %cst_198 {dimension_numbers = #tpu.dot_dimension_numbers<[1], [0], [0], [1], [0, 0, 1, 1], [], []>} : vector<8x8xbf16>, vector<8x512xbf16>, vector<8x512xf32> -> vector<8x512xf32>
    %403 = arith.addf %395, %402 : vector<8x512xf32>
    %404 = vector.extract_strided_slice %258 {offsets = [0, 128], sizes = [8, 512], strides = [1, 1]} : vector<8x658xbf16> to vector<8x512xbf16>
    %405 = vector.extract_strided_slice %3 {offsets = [18, 0], sizes = [1, 512], strides = [1, 1]} : vector<27x512xbf16> to vector<1x512xbf16>
    %406 = vector.broadcast %405 : vector<1x512xbf16> to vector<8x512xbf16>
    %407 = arith.mulf %404, %406 : vector<8x512xbf16>
    %c18_199 = arith.constant 18 : index
    %c0_200 = arith.constant 0 : index
    %c0_201 = arith.constant 0 : index
    %408 = vector.load %arg3[%c18_199, %c0_200, %c0_201] : memref<27x8x8xbf16, #tpu.memory_space<vmem>>, vector<1x8x8xbf16>
    %409 = vector.shape_cast %408 : vector<1x8x8xbf16> to vector<8x8xbf16>
    %cst_202 = arith.constant dense<0.000000e+00> : vector<8x512xf32>
    %410 = tpu.matmul %409, %407, %cst_202 {dimension_numbers = #tpu.dot_dimension_numbers<[1], [0], [0], [1], [0, 0, 1, 1], [], []>} : vector<8x8xbf16>, vector<8x512xbf16>, vector<8x512xf32> -> vector<8x512xf32>
    %411 = arith.addf %403, %410 : vector<8x512xf32>
    %412 = vector.extract_strided_slice %258 {offsets = [0, 129], sizes = [8, 512], strides = [1, 1]} : vector<8x658xbf16> to vector<8x512xbf16>
    %413 = vector.extract_strided_slice %3 {offsets = [19, 0], sizes = [1, 512], strides = [1, 1]} : vector<27x512xbf16> to vector<1x512xbf16>
    %414 = vector.broadcast %413 : vector<1x512xbf16> to vector<8x512xbf16>
    %415 = arith.mulf %412, %414 : vector<8x512xbf16>
    %c19_203 = arith.constant 19 : index
    %c0_204 = arith.constant 0 : index
    %c0_205 = arith.constant 0 : index
    %416 = vector.load %arg3[%c19_203, %c0_204, %c0_205] : memref<27x8x8xbf16, #tpu.memory_space<vmem>>, vector<1x8x8xbf16>
    %417 = vector.shape_cast %416 : vector<1x8x8xbf16> to vector<8x8xbf16>
    %cst_206 = arith.constant dense<0.000000e+00> : vector<8x512xf32>
    %418 = tpu.matmul %417, %415, %cst_206 {dimension_numbers = #tpu.dot_dimension_numbers<[1], [0], [0], [1], [0, 0, 1, 1], [], []>} : vector<8x8xbf16>, vector<8x512xbf16>, vector<8x512xf32> -> vector<8x512xf32>
    %419 = arith.addf %411, %418 : vector<8x512xf32>
    %420 = vector.extract_strided_slice %258 {offsets = [0, 130], sizes = [8, 512], strides = [1, 1]} : vector<8x658xbf16> to vector<8x512xbf16>
    %421 = vector.extract_strided_slice %3 {offsets = [20, 0], sizes = [1, 512], strides = [1, 1]} : vector<27x512xbf16> to vector<1x512xbf16>
    %422 = vector.broadcast %421 : vector<1x512xbf16> to vector<8x512xbf16>
    %423 = arith.mulf %420, %422 : vector<8x512xbf16>
    %c20_207 = arith.constant 20 : index
    %c0_208 = arith.constant 0 : index
    %c0_209 = arith.constant 0 : index
    %424 = vector.load %arg3[%c20_207, %c0_208, %c0_209] : memref<27x8x8xbf16, #tpu.memory_space<vmem>>, vector<1x8x8xbf16>
    %425 = vector.shape_cast %424 : vector<1x8x8xbf16> to vector<8x8xbf16>
    %cst_210 = arith.constant dense<0.000000e+00> : vector<8x512xf32>
    %426 = tpu.matmul %425, %423, %cst_210 {dimension_numbers = #tpu.dot_dimension_numbers<[1], [0], [0], [1], [0, 0, 1, 1], [], []>} : vector<8x8xbf16>, vector<8x512xbf16>, vector<8x512xf32> -> vector<8x512xf32>
    %427 = arith.addf %419, %426 : vector<8x512xf32>
    %428 = vector.extract_strided_slice %258 {offsets = [0, 136], sizes = [8, 512], strides = [1, 1]} : vector<8x658xbf16> to vector<8x512xbf16>
    %429 = vector.extract_strided_slice %3 {offsets = [21, 0], sizes = [1, 512], strides = [1, 1]} : vector<27x512xbf16> to vector<1x512xbf16>
    %430 = vector.broadcast %429 : vector<1x512xbf16> to vector<8x512xbf16>
    %431 = arith.mulf %428, %430 : vector<8x512xbf16>
    %c21_211 = arith.constant 21 : index
    %c0_212 = arith.constant 0 : index
    %c0_213 = arith.constant 0 : index
    %432 = vector.load %arg3[%c21_211, %c0_212, %c0_213] : memref<27x8x8xbf16, #tpu.memory_space<vmem>>, vector<1x8x8xbf16>
    %433 = vector.shape_cast %432 : vector<1x8x8xbf16> to vector<8x8xbf16>
    %cst_214 = arith.constant dense<0.000000e+00> : vector<8x512xf32>
    %434 = tpu.matmul %433, %431, %cst_214 {dimension_numbers = #tpu.dot_dimension_numbers<[1], [0], [0], [1], [0, 0, 1, 1], [], []>} : vector<8x8xbf16>, vector<8x512xbf16>, vector<8x512xf32> -> vector<8x512xf32>
    %435 = arith.addf %427, %434 : vector<8x512xf32>
    %436 = vector.extract_strided_slice %258 {offsets = [0, 137], sizes = [8, 512], strides = [1, 1]} : vector<8x658xbf16> to vector<8x512xbf16>
    %437 = vector.extract_strided_slice %3 {offsets = [22, 0], sizes = [1, 512], strides = [1, 1]} : vector<27x512xbf16> to vector<1x512xbf16>
    %438 = vector.broadcast %437 : vector<1x512xbf16> to vector<8x512xbf16>
    %439 = arith.mulf %436, %438 : vector<8x512xbf16>
    %c22_215 = arith.constant 22 : index
    %c0_216 = arith.constant 0 : index
    %c0_217 = arith.constant 0 : index
    %440 = vector.load %arg3[%c22_215, %c0_216, %c0_217] : memref<27x8x8xbf16, #tpu.memory_space<vmem>>, vector<1x8x8xbf16>
    %441 = vector.shape_cast %440 : vector<1x8x8xbf16> to vector<8x8xbf16>
    %cst_218 = arith.constant dense<0.000000e+00> : vector<8x512xf32>
    %442 = tpu.matmul %441, %439, %cst_218 {dimension_numbers = #tpu.dot_dimension_numbers<[1], [0], [0], [1], [0, 0, 1, 1], [], []>} : vector<8x8xbf16>, vector<8x512xbf16>, vector<8x512xf32> -> vector<8x512xf32>
    %443 = arith.addf %435, %442 : vector<8x512xf32>
    %444 = vector.extract_strided_slice %258 {offsets = [0, 138], sizes = [8, 512], strides = [1, 1]} : vector<8x658xbf16> to vector<8x512xbf16>
    %445 = vector.extract_strided_slice %3 {offsets = [23, 0], sizes = [1, 512], strides = [1, 1]} : vector<27x512xbf16> to vector<1x512xbf16>
    %446 = vector.broadcast %445 : vector<1x512xbf16> to vector<8x512xbf16>
    %447 = arith.mulf %444, %446 : vector<8x512xbf16>
    %c23_219 = arith.constant 23 : index
    %c0_220 = arith.constant 0 : index
    %c0_221 = arith.constant 0 : index
    %448 = vector.load %arg3[%c23_219, %c0_220, %c0_221] : memref<27x8x8xbf16, #tpu.memory_space<vmem>>, vector<1x8x8xbf16>
    %449 = vector.shape_cast %448 : vector<1x8x8xbf16> to vector<8x8xbf16>
    %cst_222 = arith.constant dense<0.000000e+00> : vector<8x512xf32>
    %450 = tpu.matmul %449, %447, %cst_222 {dimension_numbers = #tpu.dot_dimension_numbers<[1], [0], [0], [1], [0, 0, 1, 1], [], []>} : vector<8x8xbf16>, vector<8x512xbf16>, vector<8x512xf32> -> vector<8x512xf32>
    %451 = arith.addf %443, %450 : vector<8x512xf32>
    %452 = vector.extract_strided_slice %258 {offsets = [0, 144], sizes = [8, 512], strides = [1, 1]} : vector<8x658xbf16> to vector<8x512xbf16>
    %453 = vector.extract_strided_slice %3 {offsets = [24, 0], sizes = [1, 512], strides = [1, 1]} : vector<27x512xbf16> to vector<1x512xbf16>
    %454 = vector.broadcast %453 : vector<1x512xbf16> to vector<8x512xbf16>
    %455 = arith.mulf %452, %454 : vector<8x512xbf16>
    %c24_223 = arith.constant 24 : index
    %c0_224 = arith.constant 0 : index
    %c0_225 = arith.constant 0 : index
    %456 = vector.load %arg3[%c24_223, %c0_224, %c0_225] : memref<27x8x8xbf16, #tpu.memory_space<vmem>>, vector<1x8x8xbf16>
    %457 = vector.shape_cast %456 : vector<1x8x8xbf16> to vector<8x8xbf16>
    %cst_226 = arith.constant dense<0.000000e+00> : vector<8x512xf32>
    %458 = tpu.matmul %457, %455, %cst_226 {dimension_numbers = #tpu.dot_dimension_numbers<[1], [0], [0], [1], [0, 0, 1, 1], [], []>} : vector<8x8xbf16>, vector<8x512xbf16>, vector<8x512xf32> -> vector<8x512xf32>
    %459 = arith.addf %451, %458 : vector<8x512xf32>
    %460 = vector.extract_strided_slice %258 {offsets = [0, 145], sizes = [8, 512], strides = [1, 1]} : vector<8x658xbf16> to vector<8x512xbf16>
    %461 = vector.extract_strided_slice %3 {offsets = [25, 0], sizes = [1, 512], strides = [1, 1]} : vector<27x512xbf16> to vector<1x512xbf16>
    %462 = vector.broadcast %461 : vector<1x512xbf16> to vector<8x512xbf16>
    %463 = arith.mulf %460, %462 : vector<8x512xbf16>
    %c25_227 = arith.constant 25 : index
    %c0_228 = arith.constant 0 : index
    %c0_229 = arith.constant 0 : index
    %464 = vector.load %arg3[%c25_227, %c0_228, %c0_229] : memref<27x8x8xbf16, #tpu.memory_space<vmem>>, vector<1x8x8xbf16>
    %465 = vector.shape_cast %464 : vector<1x8x8xbf16> to vector<8x8xbf16>
    %cst_230 = arith.constant dense<0.000000e+00> : vector<8x512xf32>
    %466 = tpu.matmul %465, %463, %cst_230 {dimension_numbers = #tpu.dot_dimension_numbers<[1], [0], [0], [1], [0, 0, 1, 1], [], []>} : vector<8x8xbf16>, vector<8x512xbf16>, vector<8x512xf32> -> vector<8x512xf32>
    %467 = arith.addf %459, %466 : vector<8x512xf32>
    %468 = vector.extract_strided_slice %258 {offsets = [0, 146], sizes = [8, 512], strides = [1, 1]} : vector<8x658xbf16> to vector<8x512xbf16>
    %469 = vector.extract_strided_slice %3 {offsets = [26, 0], sizes = [1, 512], strides = [1, 1]} : vector<27x512xbf16> to vector<1x512xbf16>
    %470 = vector.broadcast %469 : vector<1x512xbf16> to vector<8x512xbf16>
    %471 = arith.mulf %468, %470 : vector<8x512xbf16>
    %c26_231 = arith.constant 26 : index
    %c0_232 = arith.constant 0 : index
    %c0_233 = arith.constant 0 : index
    %472 = vector.load %arg3[%c26_231, %c0_232, %c0_233] : memref<27x8x8xbf16, #tpu.memory_space<vmem>>, vector<1x8x8xbf16>
    %473 = vector.shape_cast %472 : vector<1x8x8xbf16> to vector<8x8xbf16>
    %cst_234 = arith.constant dense<0.000000e+00> : vector<8x512xf32>
    %474 = tpu.matmul %473, %471, %cst_234 {dimension_numbers = #tpu.dot_dimension_numbers<[1], [0], [0], [1], [0, 0, 1, 1], [], []>} : vector<8x8xbf16>, vector<8x512xbf16>, vector<8x512xf32> -> vector<8x512xf32>
    %475 = arith.addf %467, %474 : vector<8x512xf32>
    %c1_235 = arith.constant 1 : index
    %c0_236 = arith.constant 0 : index
    %c0_237 = arith.constant 0 : index
    %c0_238 = arith.constant 0 : index
    %476 = vector.load %arg7[%c1_235, %c0_236, %c0_237, %c0_238] : memref<2x1x8x512xf32, #tpu.memory_space<vmem>>, vector<1x1x8x512xf32>
    %477 = vector.shape_cast %476 : vector<1x1x8x512xf32> to vector<8x512xf32>
    %478 = vector.shape_cast %475 : vector<8x512xf32> to vector<1x1x8x512xf32>
    tpu.vector_store %arg7[%c1_235, %c0_236, %c0_237, %c0_238], %478 {strides = array<i32>} : memref<2x1x8x512xf32, #tpu.memory_space<vmem>>, vector<1x1x8x512xf32>,
    %c1_239 = arith.constant 1 : index
    %c0_240 = arith.constant 0 : index
    %c0_241 = arith.constant 0 : index
    %479 = vector.load %arg8[%c1_239, %c0_240, %c0_241] : memref<2x8x1xf32, #tpu.memory_space<vmem>>, vector<1x8x1xf32>
    %480 = vector.shape_cast %479 : vector<1x8x1xf32> to vector<8x1xf32>
    %cst_242 = arith.constant dense<0.000000e+00> : vector<8xf32>
    %481 = vector.multi_reduction <add>, %475, %cst_242 [1] : vector<8x512xf32> to vector<8xf32>
    %482 = vector.shape_cast %481 : vector<8xf32> to vector<8x1xf32>
    %483 = arith.addf %480, %482 : vector<8x1xf32>
    %c1_243 = arith.constant 1 : index
    %c0_244 = arith.constant 0 : index
    %c0_245 = arith.constant 0 : index
    %484 = vector.load %arg8[%c1_243, %c0_244, %c0_245] : memref<2x8x1xf32, #tpu.memory_space<vmem>>, vector<1x8x1xf32>
    %485 = vector.shape_cast %484 : vector<1x8x1xf32> to vector<8x1xf32>
    %486 = vector.shape_cast %483 : vector<8x1xf32> to vector<1x8x1xf32>
    tpu.vector_store %arg8[%c1_243, %c0_244, %c0_245], %486 {strides = array<i32>} : memref<2x8x1xf32, #tpu.memory_space<vmem>>, vector<1x8x1xf32>,
    %c1_246 = arith.constant 1 : index
    %c0_247 = arith.constant 0 : index
    %c0_248 = arith.constant 0 : index
    %487 = vector.load %arg9[%c1_246, %c0_247, %c0_248] : memref<2x8x1xf32, #tpu.memory_space<vmem>>, vector<1x8x1xf32>
    %488 = vector.shape_cast %487 : vector<1x8x1xf32> to vector<8x1xf32>
    %489 = arith.mulf %475, %475 : vector<8x512xf32>
    %cst_249 = arith.constant dense<0.000000e+00> : vector<8xf32>
    %490 = vector.multi_reduction <add>, %489, %cst_249 [1] : vector<8x512xf32> to vector<8xf32>
    %491 = vector.shape_cast %490 : vector<8xf32> to vector<8x1xf32>
    %492 = arith.addf %488, %491 : vector<8x1xf32>
    %c1_250 = arith.constant 1 : index
    %c0_251 = arith.constant 0 : index
    %c0_252 = arith.constant 0 : index
    %493 = vector.load %arg9[%c1_250, %c0_251, %c0_252] : memref<2x8x1xf32, #tpu.memory_space<vmem>>, vector<1x8x1xf32>
    %494 = vector.shape_cast %493 : vector<1x8x1xf32> to vector<8x1xf32>
    %495 = vector.shape_cast %492 : vector<8x1xf32> to vector<1x8x1xf32>
    tpu.vector_store %arg9[%c1_250, %c0_251, %c0_252], %495 {strides = array<i32>} : memref<2x8x1xf32, #tpu.memory_space<vmem>>, vector<1x8x1xf32>,
    %c0_i32_253 = arith.constant 0 : i32
    %496 = arith.cmpi eq, %arg1, %c0_i32_253 : i32
    %497 = arith.extui %496 : i1 to i32
    %c0_i32_254 = arith.constant 0 : i32
    %498 = arith.cmpi ne, %497, %c0_i32_254 : i32
    scf.if %498 {
      %c0_255 = arith.constant 0 : index
      %c0_256 = arith.constant 0 : index
      %c0_257 = arith.constant 0 : index
      %499 = vector.load %arg8[%c0_255, %c0_256, %c0_257] : memref<2x8x1xf32, #tpu.memory_space<vmem>>, vector<1x8x1xf32>
      %500 = vector.shape_cast %499 : vector<1x8x1xf32> to vector<8x1xf32>
      %cst_258 = arith.constant 0.001953125 : f32
      %501 = vector.broadcast %cst_258 : f32 to vector<8x1xf32>
      %502 = arith.mulf %500, %501 : vector<8x1xf32>
      %c0_259 = arith.constant 0 : index
      %c0_260 = arith.constant 0 : index
      %c0_261 = arith.constant 0 : index
      %503 = vector.load %arg9[%c0_259, %c0_260, %c0_261] : memref<2x8x1xf32, #tpu.memory_space<vmem>>, vector<1x8x1xf32>
      %504 = vector.shape_cast %503 : vector<1x8x1xf32> to vector<8x1xf32>
      %cst_262 = arith.constant 0.001953125 : f32
      %505 = vector.broadcast %cst_262 : f32 to vector<8x1xf32>
      %506 = arith.mulf %504, %505 : vector<8x1xf32>
      %507 = arith.mulf %502, %502 : vector<8x1xf32>
      %508 = arith.subf %506, %507 : vector<8x1xf32>
      %cst_263 = arith.constant 9.99999974E-6 : f32
      %509 = vector.broadcast %cst_263 : f32 to vector<8x1xf32>
      %510 = arith.addf %508, %509 : vector<8x1xf32>
      %511 = math.rsqrt %510 : vector<8x1xf32>
      %c0_264 = arith.constant 0 : index
      %c0_265 = arith.constant 0 : index
      %c0_266 = arith.constant 0 : index
      %c0_267 = arith.constant 0 : index
      %512 = vector.load %arg7[%c0_264, %c0_265, %c0_266, %c0_267] : memref<2x1x8x512xf32, #tpu.memory_space<vmem>>, vector<1x1x8x512xf32>
      %513 = vector.shape_cast %512 : vector<1x1x8x512xf32> to vector<8x512xf32>
      %514 = vector.broadcast %502 : vector<8x1xf32> to vector<8x512xf32>
      %515 = arith.subf %513, %514 : vector<8x512xf32>
      %516 = vector.broadcast %511 : vector<8x1xf32> to vector<8x512xf32>
      %517 = arith.mulf %515, %516 : vector<8x512xf32>
      %cst_268 = arith.constant 0.000000e+00 : f32
      %518 = vector.broadcast %cst_268 : f32 to vector<8x512xf32>
      %519 = arith.cmpf oge, %517, %518 : vector<8x512xf32>
      %cst_269 = arith.constant 0.00999999977 : f32
      %520 = vector.broadcast %cst_269 : f32 to vector<8x512xf32>
      %521 = arith.mulf %520, %517 : vector<8x512xf32>
      %522 = arith.select %519, %517, %521 : vector<8x512xi1>, vector<8x512xf32>
      %c0_270 = arith.constant 0 : index
      %c0_271 = arith.constant 0 : index
      %c0_272 = arith.constant 0 : index
      %523 = vector.load %arg5[%c0_270, %c0_271, %c0_272] : memref<2x8x512xf32, #tpu.memory_space<vmem>>, vector<1x8x512xf32>
      %524 = vector.shape_cast %523 : vector<1x8x512xf32> to vector<8x512xf32>
      %525 = vector.shape_cast %522 : vector<8x512xf32> to vector<1x8x512xf32>
      tpu.vector_store %arg5[%c0_270, %c0_271, %c0_272], %525 {strides = array<i32>} : memref<2x8x512xf32, #tpu.memory_space<vmem>>, vector<1x8x512xf32>,
      %c1_273 = arith.constant 1 : index
      %c0_274 = arith.constant 0 : index
      %c0_275 = arith.constant 0 : index
      %526 = vector.load %arg8[%c1_273, %c0_274, %c0_275] : memref<2x8x1xf32, #tpu.memory_space<vmem>>, vector<1x8x1xf32>
      %527 = vector.shape_cast %526 : vector<1x8x1xf32> to vector<8x1xf32>
      %cst_276 = arith.constant 0.001953125 : f32
      %528 = vector.broadcast %cst_276 : f32 to vector<8x1xf32>
      %529 = arith.mulf %527, %528 : vector<8x1xf32>
      %c1_277 = arith.constant 1 : index
      %c0_278 = arith.constant 0 : index
      %c0_279 = arith.constant 0 : index
      %530 = vector.load %arg9[%c1_277, %c0_278, %c0_279] : memref<2x8x1xf32, #tpu.memory_space<vmem>>, vector<1x8x1xf32>
      %531 = vector.shape_cast %530 : vector<1x8x1xf32> to vector<8x1xf32>
      %cst_280 = arith.constant 0.001953125 : f32
      %532 = vector.broadcast %cst_280 : f32 to vector<8x1xf32>
      %533 = arith.mulf %531, %532 : vector<8x1xf32>
      %534 = arith.mulf %529, %529 : vector<8x1xf32>
      %535 = arith.subf %533, %534 : vector<8x1xf32>
      %cst_281 = arith.constant 9.99999974E-6 : f32
      %536 = vector.broadcast %cst_281 : f32 to vector<8x1xf32>
      %537 = arith.addf %535, %536 : vector<8x1xf32>
      %538 = math.rsqrt %537 : vector<8x1xf32>
      %c1_282 = arith.constant 1 : index
      %c0_283 = arith.constant 0 : index
      %c0_284 = arith.constant 0 : index
      %c0_285 = arith.constant 0 : index
      %539 = vector.load %arg7[%c1_282, %c0_283, %c0_284, %c0_285] : memref<2x1x8x512xf32, #tpu.memory_space<vmem>>, vector<1x1x8x512xf32>
      %540 = vector.shape_cast %539 : vector<1x1x8x512xf32> to vector<8x512xf32>
      %541 = vector.broadcast %529 : vector<8x1xf32> to vector<8x512xf32>
      %542 = arith.subf %540, %541 : vector<8x512xf32>
      %543 = vector.broadcast %538 : vector<8x1xf32> to vector<8x512xf32>
      %544 = arith.mulf %542, %543 : vector<8x512xf32>
      %cst_286 = arith.constant 0.000000e+00 : f32
      %545 = vector.broadcast %cst_286 : f32 to vector<8x512xf32>
      %546 = arith.cmpf oge, %544, %545 : vector<8x512xf32>
      %cst_287 = arith.constant 0.00999999977 : f32
      %547 = vector.broadcast %cst_287 : f32 to vector<8x512xf32>
      %548 = arith.mulf %547, %544 : vector<8x512xf32>
      %549 = arith.select %546, %544, %548 : vector<8x512xi1>, vector<8x512xf32>
      %c1_288 = arith.constant 1 : index
      %c0_289 = arith.constant 0 : index
      %c0_290 = arith.constant 0 : index
      %550 = vector.load %arg5[%c1_288, %c0_289, %c0_290] : memref<2x8x512xf32, #tpu.memory_space<vmem>>, vector<1x8x512xf32>
      %551 = vector.shape_cast %550 : vector<1x8x512xf32> to vector<8x512xf32>
      %552 = vector.shape_cast %549 : vector<8x512xf32> to vector<1x8x512xf32>
      tpu.vector_store %arg5[%c1_288, %c0_289, %c0_290], %552 {strides = array<i32>} : memref<2x8x512xf32, #tpu.memory_space<vmem>>, vector<1x8x512xf32>,
    } else {
    }
    return
  }
  func.func @transform_0(%arg0: i32, %arg1: i32) -> (i32, i32, i32) {
    %c0_i32 = arith.constant 0 : i32
    %c0_i32_0 = arith.constant 0 : i32
    %c0_i32_1 = arith.constant 0 : i32
    return %arg0, %c0_i32, %c0_i32_0 : i32, i32, i32
  }
  func.func @transform_1(%arg0: i32, %arg1: i32) -> (i32, i32, i32) {
    %c0_i32 = arith.constant 0 : i32
    %c0_i32_0 = arith.constant 0 : i32
    %c0_i32_1 = arith.constant 0 : i32
    %c0_i32_2 = arith.constant 0 : i32
    return %c0_i32, %c0_i32_0, %c0_i32_1 : i32, i32, i32
  }
  func.func @transform_2(%arg0: i32, %arg1: i32) -> (i32, i32) {
    %c0_i32 = arith.constant 0 : i32
    %c0_i32_0 = arith.constant 0 : i32
    return %c0_i32, %arg1 : i32, i32
  }
  func.func @transform_3(%arg0: i32, %arg1: i32) -> (i32, i32, i32) {
    %c0_i32 = arith.constant 0 : i32
    %c0_i32_0 = arith.constant 0 : i32
    %c0_i32_1 = arith.constant 0 : i32
    return %arg0, %c0_i32, %c0_i32_0 : i32, i32, i32
  }
}

</mosaic_0001>

<bundles_post_ra>
// kernel: tpu_custom_call.1
= control target key start
LH: loop header
LB: loop body
LE: loop exit
PB: predicated region body
PF: predicated region fallthrough
CT: control target
= control target key end

     0   :  { %v7245_v6 = vmov 0   ;;  %s10111_s0 = inlined_call_operand.vmem [shape: f32[2,4,512], index: 0, kind: input, shape index: {}]   ;;  %s10112_s1 = inlined_call_operand.vmem [shape: bf16[27,8,8], index: 1, kind: input, shape index: {}]   ;;  %s10113_s2 = inlined_call_operand.vmem [shape: bf16[27,512], index: 2, kind: input, shape index: {}]   ;;  %s10114_s3 = inlined_call_operand.hbm [shape: f32[2,8,512], index: 3, kind: output, shape index: {}]  }
   0x1   :  { %v86_v0 = vld [vmem:[%s10113_s2] sm:$0xff]  ;;  %v87_v1 = vld [vmem:[%s10113_s2 + $0x8] sm:$0xff]  ;;  %25 = vst [vmem:[#allocation2 + $0x40] sm:$0xff] %v7245_v6  ;;  %7212 = vset.pattern.permute.xlu0 %v7245_v6  ;;  %7214 = vset.pattern.permute.xlu2 %v7245_v6 }
   0x2   :  { %v148_v2 = vunpack.c.h.b16 %v86_v0  ;;  %v149_v3 = vunpack.c.l.b16 %v87_v1  ;;  %v150_v4 = vunpack.c.h.b16 %v87_v1  ;;  %v147_v5 = vunpack.c.l.b16 %v86_v0 }
   0x3   :  { %8 = vsyncpa [#allocation7], 0  ;;  %7213 = vset.pattern.permute.xlu1 %v7245_v6  ;;  %33 = vst [vmem:[#allocation2 + $0x40] sm:$0xcc] %v7245_v6  ;;  %s7246_s16 = smov 1   ;;  %s7247_s17 = smov 73  }
   0x4   :  { %v152_v7 = vpack.c.b16 %v148_v2, %v148_v2  ;;  %v153_v8 = vpack.c.b16 %v149_v3, %v149_v3  ;;  %v7309_v9 = vpack.c.b16 %v147_v5, %v147_v5  ;;  %v7311_v10 = vpack.c.b16 %v150_v4, %v150_v4  ;;  %21 = vst [vmem:[#allocation2] sm:$0xff] %v7245_v6  ;;  %v42_v33 = vld [vmem:[%s10111_s0 + $0x8] sm:$0xff]  ;;  %v41_v35 = vld [vmem:[%s10111_s0] sm:$0xff]  ;;  %s7248_s22 = smov 2   ;;  %s7249_s23 = smov 9   ;;  %v7360_v0 = vld [vmem:[%s10113_s2 + $0x10] sm:$0xff] }
   0x5   :  { %23 = vst [vmem:[#allocation2 + $0x38] sm:$0xff] %v7245_v6  ;;  %v7365_v1 = vld [vmem:[%s10113_s2 + $0x18] sm:$0xff]  ;;  %s7250_s28 = smov 16   ;;  %s7251_s29 = smov 17   ;;  %vm123_vm0 = vcmask 596992   ;;  %vm10195_vm1 = vcmask 7168  }
   0x6   :  { %v192_v11 = vshrl.u32 %v152_v7, 16  ;;  %v196_v12 = vshrl.u32 %v153_v8, 16  ;;  %v188_v13 = vshrl.u32 %v7309_v9, 16  ;;  %v200_v14 = vshrl.u32 %v7311_v10, 16  ;;  %27 = vst [vmem:[#allocation2 + $0x8] sm:$0xff] %v7245_v6  ;;  %s7252_s30 = smov 8  }
   0x7   :  { %31 = vst [vmem:[#allocation2 + $0x28] sm:$0xcc] %v7245_v6  ;;  %v7328_v31 = vpack.i.b16 %v152_v7, %v152_v7  ;;  %v7330_v32 = vpack.i.b16 %v153_v8, %v153_v8  ;;  %v7348_v54 = vpack.i.b16 %v7309_v9, %v7309_v9  ;;  %v7352_v55 = vpack.i.b16 %v7311_v10, %v7311_v10  ;;  %s7253_s4 = smov 64   ;;  %s7254_s5 = smov 10  }
   0x8   :  { %v7315_v15 = vpack.i.b16 %v192_v11, %v192_v11  ;;  %v7317_v16 = vpack.i.b16 %v196_v12, %v196_v12  ;;  %v7319_v17 = vpack.i.b16 %v188_v13, %v188_v13  ;;  %v7321_v18 = vpack.i.b16 %v200_v14, %v200_v14  ;;  %32 = vst [vmem:[#allocation2 + $0x18] sm:$0xcc] %v7245_v6  ;;  %s7255_s6 = smov 18   ;;  %s7256_s7 = smov 127  }
   0x9   :  { %37 = vst [vmem:[#allocation2 + $0x30] sm:$0xcc] %v7245_v6  ;;  %v399_v36 = vperm.slane %v7328_v31, 1  ;;  %v400_v37 = vperm.slane %v7330_v32, 1  ;;  %v662_v43 = vperm.slane %v7328_v31, 2  ;;  %v663_v44 = vperm.slane %v7330_v32, 2 }
   0xa   :  { %v195_v19 = vperm.slane %v7315_v15, 0  ;;  %v199_v20 = vperm.slane %v7317_v16, 0  ;;  %v99_v23 = vld [vmem:[#allocation2 + $0x40] sm:$0xf]  ;;  %v191_v24 = vperm.slane %v7319_v17, 0  ;;  %v203_v25 = vperm.slane %v7321_v18, 0 }
   0xb   :  { %v131_v26 = vunpack.c.l.b16 %v99_v23  ;;  %38 = vst [vmem:[#allocation2 + $0x10] sm:$0xcc] %v7245_v6  ;;  %v403_v38 = vunpack.c.l.bf16 %v399_v36  ;;  %v404_v39 = vunpack.c.l.bf16 %v400_v37  ;;  %v666_v52 = vunpack.c.l.bf16 %v662_v43  ;;  %s7257_s8 = smov 126   ;;  %s7258_s9 = smov 120  }
   0xc   :  { %v206_v21 = vunpack.c.l.bf16 %v195_v19  ;;  %v207_v22 = vunpack.c.l.bf16 %v199_v20  ;;  %v205_v29 = vunpack.c.l.bf16 %v191_v24  ;;  %v208_v30 = vunpack.c.l.bf16 %v203_v25  ;;  %30 = vst [vmem:[#allocation2] sm:$0xcc] %v7245_v6  ;;  %s7259_s10 = smov 119   ;;  %s7260_s11 = smov 118  }
   0xd   :  { %v132_v28 = vpack.c.b16 %v131_v26, %v131_v26  ;;  %36 = vst [vmem:[#allocation2 + $0x38] sm:$0xcc] %v7245_v6  ;;  %v6972_v42 = vpack.i.bf16 %v404_v39, %v403_v38  ;;  %v667_v53 = vunpack.c.l.bf16 %v663_v44  ;;  %v925_v57 = vperm.slane %v7348_v54, 3  ;;  %s7261_s12 = smov 112   ;;  %s7262_s13 = smov 111  }
   0xe   :  { %v6962_v27 = vpack.i.bf16 %v207_v22, %v206_v21  ;;  %v6967_v34 = vpack.i.bf16 %v205_v29, %v208_v30  ;;  %39 = vst [vmem:[#allocation2 + $0x8] sm:$0xcc] %v7245_v6  ;;  %v928_v58 = vperm.slane %v7352_v55, 3  ;;  %v1058_v5 = vperm.slane %v7315_v15, 3  ;;  %s7263_s14 = smov 65   ;;  %s7264_s15 = smov 110  }
   0xf   :  { %133 = vrot.lane.b32.xlu1 %v132_v28, %s7247_s17  ;;  %51 = vst [vmem:[#allocation1 + $0x10] ss:$2 sm:$0xff] %v42_v33  ;;  %v6992_v56 = vpack.i.bf16 %v667_v53, %v666_v52  ;;  %v929_v62 = vunpack.c.l.bf16 %v925_v57  ;;  %v1191_v6 = vunpack.c.l.b16 %v7360_v0  ;;  %v1194_v7 = vunpack.c.h.b16 %v7365_v1  ;;  %s7265_s18 = smov 66   ;;  %s7266_s25 = smov 72  }
  0x10   :  { %6963 = vrot.lane.b32.xlu2 %v6962_v27, %s7246_s16  ;;  %49 = vst [vmem:[#allocation1] ss:$2 sm:$0xff] %v41_v35  ;;  %v932_v63 = vunpack.c.l.bf16 %v928_v58  ;;  %v1059_v10 = vperm.slane %v7317_v16, 3  ;;  %v530_v14 = vperm.slane %v7319_v17, 1  ;;  %v533_v19 = vperm.slane %v7321_v18, 1  ;;  %s7268_s19 = smov 62  }
  0x11   :  { %v7373_v12 = vpack.c.b16 %v1191_v6, %v1191_v6  ;;  %v7375_v13 = vpack.c.b16 %v1194_v7, %v1194_v7  ;;  %v398_v20 = vperm.slane %v7348_v54, 1  ;;  %v401_v21 = vperm.slane %v7352_v55, 1  ;;  %s7269_s20 = smov 74   ;;  %s7270_s21 = smov 56  }
  0x12   :  { %v7017_v9 = vpack.i.bf16 %v929_v62, %v932_v63  ;;  %v1062_v22 = vunpack.c.l.bf16 %v1058_v5  ;;  %v1063_v26 = vunpack.c.l.bf16 %v1059_v10  ;;  %v794_v27 = vperm.slane %v7315_v15, 2  ;;  %s7271_s24 = smov 80   ;;  %s7273_s26 = smov 81  }
  0x13   :  { %v94_v40 = vld [vmem:[#allocation2] sm:$0xff]  ;;  %v1343_v23 = vshrl.u32 %v7373_v12, 16  ;;  %v1355_v24 = vshrl.u32 %v7375_v13, 16  ;;  %v795_v28 = vperm.slane %v7317_v16, 2  ;;  %v534_v36 = vunpack.c.l.bf16 %v530_v14  ;;  %s7274_s27 = smov 54  }
  0x14   :  { %v101_v41 = vunpack.c.h.b16 %v94_v40  ;;  %v537_v37 = vunpack.c.l.bf16 %v533_v19  ;;  %v402_v38 = vunpack.c.l.bf16 %v398_v20  ;;  %v405_v39 = vunpack.c.l.bf16 %v401_v21 }
  0x15   :  { %v7386_v30 = vpack.i.b16 %v1343_v23, %v1343_v23  ;;  %v7388_v33 = vpack.i.b16 %v1355_v24, %v1355_v24  ;;  %v7392_v35 = vunpack.c.l.bf16 %v795_v28  ;;  %v7022_v40 = vpack.i.bf16 %v1063_v26, %v1062_v22 }
  0x16   :  { %v102_v45 = vpack.c.b16 %v101_v41, %v101_v41  ;;  %v54_v46 = vld.sshfl [vmem:[#allocation1 + $0x10] sm:$0xff pattern:$0x75316420]  ;;  %v55_v47 = vld.sshfl [vmem:[#allocation1 + $0x18] sm:$0xff pattern:$0x75316420]  ;;  %v6987_v44 = vpack.i.bf16 %v534_v36, %v537_v37 }
  0x17   :  { %v73_v48 = vpack.c.bf16 %v55_v47, %v54_v46  ;;  %v52_v49 = vld.sshfl [vmem:[#allocation1] sm:$0xff pattern:$0x75316420]  ;;  %v53_v50 = vld.sshfl [vmem:[#allocation1 + $0x8] sm:$0xff pattern:$0x75316420] }
  0x18   :  { %6968 = vrot.lane.b32.xlu2 %v6967_v34, %s7246_s16  ;;  %103 = vrot.lane.b32.xlu0 %v102_v45, %s7247_s17  ;;  %v72_v51 = vpack.c.bf16 %v53_v50, %v52_v49  ;;  %v7390_v34 = vunpack.c.l.bf16 %v794_v27  ;;  %v1346_v41 = vperm.slane %v7386_v30, 0  ;;  %v6977_v45 = vpack.i.bf16 %v402_v38, %v405_v39 }
  0x19   :  { %78 = vst [vmem:[#allocation2 + $0x18] sm:$0x33] %v73_v48  ;;  %v1057_v46 = vperm.slane %v7319_v17, 3  ;;  %v1060_v47 = vperm.slane %v7321_v18, 3  ;;  %v793_v48 = vperm.slane %v7319_v17, 2  ;;  %v796_v49 = vperm.slane %v7321_v18, 2 }
  0x1a   :  { %77 = vst [vmem:[#allocation2 + $0x28] sm:$0x33] %v72_v51  ;;  %v7002_v43 = vpack.i.bf16 %v7392_v35, %v7390_v34  ;;  %v1359_v50 = vunpack.c.l.bf16 %v1346_v41  ;;  %v531_v52 = vperm.slane %v7315_v15, 1  ;;  %v532_v53 = vperm.slane %v7317_v16, 1 }
  0x1b   :  { %v1064_v57 = vunpack.c.l.bf16 %v1060_v47  ;;  %v926_v62 = vperm.slane %v7328_v31, 3  ;;  %v927_v63 = vperm.slane %v7330_v32, 3  ;;  %v1192_v16 = vunpack.c.h.b16 %v7360_v0 }
  0x1c   :  { %v535_v18 = vunpack.c.l.bf16 %v531_v52  ;;  %v664_v5 = vperm.slane %v7352_v55, 2  ;;  %vm418_vm2 = vcmask 15360   ;;  %vm262_vm3 = vcmask 64512  }
  0x1d   :  { %v930_v6 = vunpack.c.l.bf16 %v926_v62  ;;  %v931_v7 = vunpack.c.l.bf16 %v927_v63  ;;  %v1196_v0 = vpack.c.b16 %v1192_v16, %v1192_v16  ;;  %vm681_vm4 = vcmask 72704  }
  0x1e   :  { %vm813_vm5 = vcmask 80896   ;;  %vm945_vm6 = vcmask 130048   ;;  %vm1077_vm7 = vcmask 138240   ;;  %vm10133_vm8 = vcmask 146432  }
  0x1f   :  { %v7012_v14 = vpack.i.bf16 %v931_v7, %v930_v6  ;;  %v1347_v21 = vshrl.u32 %v1196_v0, 16  ;;  %v7441_v37 = vpack.i.b16 %v1196_v0, %v1196_v0  ;;  %vm10157_vm9 = vcmask 523264  }
  0x20   :  { %6973 = vrot.lane.b32.xlu2 %v6972_v42, %s7248_s22  ;;  %v97_v59 = vld [vmem:[#allocation2 + $0x18] sm:$0xff]  ;;  %v1358_v42 = vperm.slane %v7388_v33, 0  ;;  %vm257_vm10 = vcmask 1039360   ;;  %vm266_vm11 = vcmask 1043456   ;;  %vm454_vm12 = vcmask 1031168  }
  0x21   :  { %v110_v60 = vunpack.c.h.b16 %v97_v59  ;;  %v96_v61 = vld [vmem:[#allocation2 + $0x28] sm:$0xff]  ;;  %v109_v11 = vunpack.c.l.b16 %v97_v59  ;;  %v797_v59 = vunpack.c.l.bf16 %v793_v48  ;;  %vm585_vm13 = vcmask 982016  }
  0x22   :  { %v108_v2 = vunpack.c.h.b16 %v96_v61  ;;  %v107_v8 = vunpack.c.l.b16 %v96_v61  ;;  %v1362_v51 = vunpack.c.l.bf16 %v1358_v42  ;;  %v536_v61 = vunpack.c.l.bf16 %v532_v53 }
  0x23   :  { %v114_v3 = vpack.c.b16 %v110_v60, %v110_v60  ;;  %v113_v29 = vpack.c.b16 %v109_v11, %v109_v11  ;;  %v800_v60 = vunpack.c.l.bf16 %v796_v49  ;;  %v668_v11 = vunpack.c.l.bf16 %v664_v5 }
  0x24   :  { %v112_v4 = vpack.c.b16 %v108_v2, %v108_v2  ;;  %v111_v25 = vpack.c.b16 %v107_v8, %v107_v8  ;;  %v7047_v17 = vpack.i.bf16 %v1359_v50, %v1362_v51  ;;  %v1193_v2 = vunpack.c.l.b16 %v7365_v1 }
  0x25   :  { %121 = vrot.lane.b32.xlu1 %v114_v3, %s7247_s17  ;;  %v7007_v15 = vpack.i.bf16 %v797_v59, %v800_v60  ;;  %v6982_v3 = vpack.i.bf16 %v536_v61, %v535_v18  ;;  %v7419_v8 = vpack.i.b16 %v7373_v12, %v7373_v12  ;;  %vm10135_vm14 = vcmask 973824  }
  0x26   :  { %117 = vrot.lane.b32.xlu0 %v112_v4, %s7247_s17  ;;  %v661_v4 = vperm.slane %v7348_v54, 2  ;;  %v1197_v1 = vpack.c.b16 %v1193_v2, %v1193_v2  ;;  %vm10134_vm15 = vcmask 965632  }
  0x27   :  { %v1202_v19 = vperm.slane %v7419_v8, 0 }
  0x28   :  { %6993 = vrot.lane.b32.xlu2 %v6992_v56, %s7249_s23  ;;  %v1061_v56 = vunpack.c.l.bf16 %v1057_v46  ;;  %v665_v10 = vunpack.c.l.bf16 %v661_v4  ;;  %v1351_v22 = vshrl.u32 %v1197_v1, 16  ;;  %v7443_v38 = vpack.i.b16 %v1197_v1, %v1197_v1 }
  0x29   :  { %v1215_v12 = vunpack.c.l.bf16 %v1202_v19 }
  0x2a   :  { %v7027_v58 = vpack.i.bf16 %v1061_v56, %v1064_v57  ;;  %v6997_v23 = vpack.i.bf16 %v665_v10, %v668_v11  ;;  %v1210_v41 = vperm.slane %v7443_v38, 0 }
  0x2d   :  { %115 = vrot.lane.b32.xlu1 %v111_v25, %s7247_s17  ;;  %v7431_v25 = vpack.i.b16 %v1351_v22, %v1351_v22 }
  0x2e   :  { %119 = vrot.lane.b32.xlu0 %v113_v29, %s7247_s17 }
  0x2f   :  { %v1354_v28 = vperm.slane %v7431_v25, 0 }
  0x30   :  { %7018 = vrot.lane.b32.xlu2 %v7017_v9, %s7250_s28  ;;  %v7423_v9 = vpack.i.b16 %v7375_v13, %v7375_v13  ;;  %v7429_v13 = vpack.i.b16 %v1347_v21, %v1347_v21 }
  0x31   :  { %v1361_v36 = vunpack.c.l.bf16 %v1354_v28 }
  0x32   :  { %v1214_v20 = vperm.slane %v7423_v9, 0  ;;  %v1350_v27 = vperm.slane %v7429_v13, 0 }
  0x34   :  { %v1218_v24 = vunpack.c.l.bf16 %v1214_v20  ;;  %v1360_v29 = vunpack.c.l.bf16 %v1350_v27 }
  0x35   :  { %6988 = vrot.lane.b32.xlu1 %v6987_v44, %s7252_s30  ;;  %v1217_v44 = vunpack.c.l.bf16 %v1210_v41 }
  0x36   :  { %6978 = vrot.lane.b32.xlu0 %v6977_v45, %s7248_s22  ;;  %v7037_v26 = vpack.i.bf16 %v1215_v12, %v1218_v24  ;;  %v7042_v39 = vpack.i.bf16 %v1361_v36, %v1360_v29 }
  0x38   :  { %7023 = vrot.lane.b32.xlu2 %v7022_v40, %s7251_s29  ;;  %v1206_v40 = vperm.slane %v7441_v37, 0 }
  0x3a   :  { %v1216_v42 = vunpack.c.l.bf16 %v1206_v40 }
  0x3c   :  { %v7032_v45 = vpack.i.bf16 %v1217_v44, %v1216_v42 }
  0x3d   :  { %7008 = vrot.lane.b32.xlu1 %v7007_v15, %s7254_s5 }
  0x3e   :  { %6983 = vrot.lane.b32.xlu0 %v6982_v3, %s7252_s30 }
  0x40   :  { %7048 = vrot.lane.b32.xlu2 %v7047_v17, %s7253_s4 }
  0x45   :  { %7013 = vrot.lane.b32.xlu1 %v7012_v14, %s7250_s28 }
  0x46   :  { %6998 = vrot.lane.b32.xlu0 %v6997_v23, %s7249_s23 }
  0x4d   :  { %7038 = vrot.lane.b32.xlu1 %v7037_v26, %s7255_s6 }
  0x4e   :  { %7003 = vrot.lane.b32.xlu0 %v7002_v43, %s7254_s5 }
  0x55   :  { %7043 = vrot.lane.b32.xlu1 %v7042_v39, %s7253_s4 }
  0x56   :  { %7028 = vrot.lane.b32.xlu0 %v7027_v58, %s7251_s29 }
  0x5e   :  { %7033 = vrot.lane.b32.xlu0 %v7032_v45, %s7255_s6 }
  0x6a   :  { %v6964_v34 = vpop.permute.xlu2 %6963 }
  0x6b   :  { %v6966_v53 = vunpack.i.h.bf16 %v6964_v34  ;;  %v6965_v56 = vunpack.i.l.bf16 %v6964_v34 }
  0x6d   :  { %v7468_v61 = vsel %vm10195_vm1, %v6965_v56, %v6966_v53 }
  0x72   :  { %v6969_v46 = vpop.permute.xlu2 %6968 }
  0x73   :  { %v7452_v47 = vunpack.i.l.bf16 %v6969_v46  ;;  %v7474_v15 = vunpack.i.h.bf16 %v6969_v46 }
  0x75   :  { %v7465_v18 = vsel %vm10195_vm1, %v6966_v53, %v7452_v47  ;;  %v7488_v1 = vsel %vm10195_vm1, %v7474_v15, %v6965_v56 }
  0x7a   :  { %v6974_v14 = vpop.permute.xlu2 %6973 }
  0x7b   :  { %v6976_v21 = vunpack.i.h.bf16 %v6974_v14  ;;  %v6975_v22 = vunpack.i.l.bf16 %v6974_v14 }
  0x7d   :  { %v7502_v28 = vsel %vm418_vm2, %v6975_v22, %v6976_v21 }
  0x81   :  { %v7450_v35 = vpop.permute.xlu1 %133 }
  0x82   :  { %v6994_v56 = vpop.permute.xlu2 %6993 }
  0x8a   :  { %v104_v43 = vpop.permute.xlu0 %103 }
  0x97   :  { %v122_v48 = vpop.permute.xlu1 %121 }
  0x98   :  { %v143_v49 = vsel %vm123_vm0, %v122_v48, %v7450_v35  ;;  %v118_v50 = vpop.permute.xlu0 %117 }
  0x99   :  { %v7456_v51 = vunpack.c.l.bf16 %v143_v49 }
  0x9b   :  { %v234_v52 = vmul.f32 %v7452_v47, %v7456_v51 }
  0x9d   :  { %v239_v57 = vpack.c.bf16 %v234_v52, %v234_v52 }
  0x9f   :  { %255 = vrot.lane.b32.xlu0 %v239_v57, %s7256_s7  ;;  %v116_v58 = vpop.permute.xlu1 %115 }
  0xa0   :  { %v120_v59 = vpop.permute.xlu0 %119  ;;  %v124_v16 = vsel %vm123_vm0, %v116_v58, %v118_v50  ;;  %v139_v2 = vsel %vm123_vm0, %v104_v43, %v116_v58 }
  0xa1   :  { %v125_v60 = vsel %vm123_vm0, %v118_v50, %v120_v59  ;;  %v126_v17 = vsel %vm123_vm0, %v120_v59, %v122_v48  ;;  %v7482_v5 = vunpack.c.l.bf16 %v139_v2  ;;  %v7484_v6 = vunpack.c.l.bf16 %v124_v16 }
  0xa2   :  { %v7470_v62 = vunpack.c.l.bf16 %v125_v60  ;;  %v7472_v63 = vunpack.c.l.bf16 %v126_v17  ;;  %v6996_v59 = vunpack.i.h.bf16 %v6994_v56  ;;  %v6995_v60 = vunpack.i.l.bf16 %v6994_v56  ;;  %v7019_v56 = vpop.permute.xlu2 %7018 }
  0xa3   :  { %v231_v19 = vmul.f32 %v7488_v1, %v7484_v6  ;;  %v230_v20 = vmul.f32 %v7474_v15, %v7482_v5 }
  0xa4   :  { %v233_v3 = vmul.f32 %v7465_v18, %v7472_v63  ;;  %v232_v4 = vmul.f32 %v7468_v61, %v7470_v62  ;;  %v429_v41 = vmul.f32 %v7502_v28, %v7470_v62 }
  0xa5   :  { %v236_v26 = vpack.c.bf16 %v231_v19, %v231_v19  ;;  %v235_v27 = vpack.c.bf16 %v230_v20, %v230_v20 }
  0xa6   :  { %v238_v7 = vpack.c.bf16 %v233_v3, %v233_v3  ;;  %v237_v0 = vpack.c.bf16 %v232_v4, %v232_v4  ;;  %v434_v48 = vpack.c.bf16 %v429_v41, %v429_v41  ;;  %v7544_v4 = vsel %vm681_vm4, %v6995_v60, %v6996_v59 }
  0xa7   :  { %v6989_v24 = vpop.permute.xlu1 %6988  ;;  %v692_v14 = vmul.f32 %v7544_v4, %v7470_v62 }
  0xa8   :  { %253 = vrot.lane.b32.xlu2 %v238_v7, %s7256_s7  ;;  %251 = vrot.lane.b32.xlu1 %v237_v0, %s7256_s7  ;;  %v6979_v10 = vpop.permute.xlu0 %6978  ;;  %v7510_v39 = vunpack.i.l.bf16 %v6989_v24  ;;  %v7524_v46 = vunpack.i.h.bf16 %v6989_v24 }
  0xa9   :  { %v7492_v11 = vunpack.i.l.bf16 %v6979_v10  ;;  %v7520_v34 = vunpack.i.h.bf16 %v6979_v10 }
  0xaa   :  { %v562_v10 = vmul.f32 %v7510_v39, %v7456_v51 }
  0xab   :  { %v431_v23 = vmul.f32 %v7492_v11, %v7456_v51  ;;  %v7508_v36 = vsel %vm418_vm2, %v6976_v21, %v7492_v11  ;;  %v7534_v53 = vsel %vm418_vm2, %v7520_v34, %v6975_v22  ;;  %v427_v57 = vmul.f32 %v7520_v34, %v7482_v5 }
  0xac   :  { %v430_v45 = vmul.f32 %v7508_v36, %v7472_v63  ;;  %v428_v17 = vmul.f32 %v7534_v53, %v7484_v6 }
  0xad   :  { %v436_v12 = vpack.c.bf16 %v431_v23, %v431_v23  ;;  %v432_v16 = vpack.c.bf16 %v427_v57, %v427_v57  ;;  %v567_v23 = vpack.c.bf16 %v562_v10, %v562_v10 }
  0xae   :  { %v435_v50 = vpack.c.bf16 %v430_v45, %v430_v45  ;;  %v433_v3 = vpack.c.bf16 %v428_v17, %v428_v17 }
  0xaf   :  { %452 = vrot.lane.b32.xlu0 %v436_v12, %s7257_s8  ;;  %v7009_v21 = vpop.permute.xlu1 %7008  ;;  %v697_v12 = vpack.c.bf16 %v692_v14, %v692_v14 }
  0xb0   :  { %249 = vrot.lane.b32.xlu2 %v236_v26, %s7256_s7  ;;  %247 = vrot.lane.b32.xlu1 %v235_v27, %s7256_s7  ;;  %v6984_v29 = vpop.permute.xlu0 %6983  ;;  %v7575_v41 = vunpack.i.l.bf16 %v7009_v21 }
  0xb1   :  { %v6986_v40 = vunpack.i.h.bf16 %v6984_v29  ;;  %v6985_v42 = vunpack.i.l.bf16 %v6984_v29 }
  0xb3   :  { %v7516_v44 = vsel %vm262_vm3, %v6986_v40, %v7510_v39  ;;  %v7528_v52 = vsel %vm262_vm3, %v7524_v46, %v6985_v42  ;;  %v7549_v0 = vsel %vm262_vm3, %v6985_v42, %v6986_v40  ;;  %v558_v40 = vmul.f32 %v7524_v46, %v7482_v5 }
  0xb4   :  { %v561_v43 = vmul.f32 %v7516_v44, %v7472_v63  ;;  %v559_v58 = vmul.f32 %v7528_v52, %v7484_v6  ;;  %v560_v20 = vmul.f32 %v7549_v0, %v7470_v62 }
  0xb6   :  { %v566_v49 = vpack.c.bf16 %v561_v43, %v561_v43  ;;  %v564_v2 = vpack.c.bf16 %v559_v58, %v559_v58  ;;  %v565_v24 = vpack.c.bf16 %v560_v20, %v560_v20  ;;  %v563_v43 = vpack.c.bf16 %v558_v40, %v558_v40 }
  0xb7   :  { %v826_v58 = vmul.f32 %v7575_v41, %v7456_v51  ;;  %v7612_v40 = vunpack.i.h.bf16 %v7019_v56 }
  0xb8   :  { %448 = vrot.lane.b32.xlu1 %v434_v48, %s7257_s8  ;;  %581 = vrot.lane.b32.xlu0 %v566_v49, %s7258_s9  ;;  %v6999_v7 = vpop.permute.xlu0 %6998  ;;  %v7014_v49 = vpop.permute.xlu1 %7013 }
  0xb9   :  { %450 = vrot.lane.b32.xlu2 %v435_v50, %s7257_s8  ;;  %v7556_v19 = vunpack.i.l.bf16 %v6999_v7  ;;  %v7560_v22 = vunpack.i.h.bf16 %v6999_v7  ;;  %v831_v7 = vpack.c.bf16 %v826_v58, %v826_v58  ;;  %10228 = vst [vmem:[#allocation13_spill] sm:$0xff] %v7612_v40  ;;  %v7024_v58 = vpop.permute.xlu2 %7023 }
  0xbb   :  { %10224 = vst [vmem:[#allocation9_spill] sm:$0xff] %v7560_v22  ;;  %v7564_v26 = vsel %vm681_vm4, %v6996_v59, %v7556_v19  ;;  %v690_v29 = vmul.f32 %v7560_v22, %v7482_v5  ;;  %v7579_v48 = vsel %vm681_vm4, %v7560_v22, %v6995_v60  ;;  %v7016_v59 = vunpack.i.h.bf16 %v7014_v49 }
  0xbc   :  { %v693_v27 = vmul.f32 %v7564_v26, %v7472_v63  ;;  %v691_v57 = vmul.f32 %v7579_v48, %v7484_v6  ;;  %v694_v60 = vmul.f32 %v7556_v19, %v7456_v51 }
  0xbd   :  { %v695_v45 = vpack.c.bf16 %v690_v29, %v690_v29 }
  0xbe   :  { %v698_v42 = vpack.c.bf16 %v693_v27, %v693_v27  ;;  %v699_v10 = vpack.c.bf16 %v694_v60, %v694_v60  ;;  %v7015_v27 = vunpack.i.l.bf16 %v7014_v49  ;;  %v7025_v60 = vunpack.i.l.bf16 %v7024_v58 }
  0xc0   :  { %444 = vrot.lane.b32.xlu1 %v432_v16, %s7257_s8  ;;  %577 = vrot.lane.b32.xlu0 %v564_v2, %s7258_s9  ;;  %v7004_v50 = vpop.permute.xlu0 %7003  ;;  %v7590_v2 = vunpack.i.l.bf16 %v7019_v56 }
  0xc1   :  { %446 = vrot.lane.b32.xlu2 %v433_v3, %s7257_s8  ;;  %v7006_v17 = vunpack.i.h.bf16 %v7004_v50  ;;  %v7005_v16 = vunpack.i.l.bf16 %v7004_v50  ;;  %v696_v3 = vpack.c.bf16 %v691_v57, %v691_v57  ;;  %v7618_v57 = vsel %vm945_vm6, %v7612_v40, %v7015_v27 }
  0xc2   :  { %10225 = vst [vmem:[#allocation10_spill] sm:$0xff] %v7590_v2  ;;  %v7597_v20 = vsel %vm945_vm6, %v7016_v59, %v7590_v2  ;;  %v955_v56 = vmul.f32 %v7618_v57, %v7484_v6 }
  0xc3   :  { %v7593_v14 = vsel %vm813_vm5, %v7005_v16, %v7006_v17  ;;  %10226 = vst [vmem:[#allocation11_spill] sm:$0xff] %v7597_v20 }
  0xc4   :  { %10230 = vst [vmem:[#allocation15_spill] sm:$0xff] %v7618_v57  ;;  %v1620_v57 = vperm.slane %v7429_v13, 1 }
  0xc8   :  { %583 = vrot.lane.b32.xlu1 %v567_v23, %s7258_s9  ;;  %711 = vrot.lane.b32.xlu0 %v697_v12, %s7259_s10  ;;  %v7603_v23 = vsel %vm813_vm5, %v7006_v17, %v7575_v41  ;;  %v824_v12 = vmul.f32 %v7593_v14, %v7470_v62  ;;  %v7026_v17 = vunpack.i.h.bf16 %v7024_v58 }
  0xc9   :  { %579 = vrot.lane.b32.xlu2 %v565_v24, %s7258_s9  ;;  %10227 = vst [vmem:[#allocation12_spill] sm:$0xff] %v7603_v23  ;;  %v957_v24 = vmul.f32 %v7597_v20, %v7472_v63  ;;  %v825_v29 = vmul.f32 %v7603_v23, %v7472_v63 }
  0xcb   :  { %v830_v50 = vpack.c.bf16 %v825_v29, %v825_v29  ;;  %v7639_v29 = vsel %vm945_vm6, %v7015_v27, %v7016_v59 }
  0xcc   :  { %10233 = vst [vmem:[#allocation18_spill] sm:$0xff] %v7639_v29  ;;  %v956_v58 = vmul.f32 %v7639_v29, %v7470_v62 }
  0xd0   :  { %713 = vrot.lane.b32.xlu1 %v698_v42, %s7259_s10  ;;  %707 = vrot.lane.b32.xlu0 %v695_v45, %s7259_s10  ;;  %v7614_v42 = vunpack.i.h.bf16 %v7009_v21  ;;  %v829_v45 = vpack.c.bf16 %v824_v12, %v824_v12 }
  0xd1   :  { %575 = vrot.lane.b32.xlu2 %v563_v43, %s7258_s9  ;;  %v962_v43 = vpack.c.bf16 %v957_v24, %v957_v24  ;;  %v7029_v24 = vpop.permute.xlu0 %7028 }
  0xd2   :  { %10229 = vst [vmem:[#allocation14_spill] sm:$0xff] %v7614_v42  ;;  %v7624_v49 = vsel %vm813_vm5, %v7614_v42, %v7005_v16  ;;  %v822_v21 = vmul.f32 %v7614_v42, %v7482_v5  ;;  %v7634_v16 = vsel %vm1077_vm7, %v7025_v60, %v7026_v17 }
  0xd3   :  { %10231 = vst [vmem:[#allocation16_spill] sm:$0xff] %v7624_v49 }
  0xd4   :  { %10232 = vst [vmem:[#allocation17_spill] sm:$0xff] %v7634_v16 }
  0xd8   :  { %709 = vrot.lane.b32.xlu1 %v696_v3, %s7259_s10  ;;  %847 = vrot.lane.b32.xlu0 %v831_v7, %s7260_s11  ;;  %v823_v3 = vmul.f32 %v7624_v49, %v7484_v6  ;;  %v827_v7 = vpack.c.bf16 %v822_v21, %v822_v21  ;;  %v7650_v21 = vunpack.i.h.bf16 %v7029_v24 }
  0xd9   :  { %715 = vrot.lane.b32.xlu2 %v699_v10, %s7259_s10  ;;  %v960_v10 = vpack.c.bf16 %v955_v56, %v955_v56 }
  0xda   :  { %v828_v12 = vpack.c.bf16 %v823_v3, %v823_v3  ;;  %10235 = vst [vmem:[#allocation20_spill] sm:$0xff] %v7650_v21 }
  0xe0   :  { %843 = vrot.lane.b32.xlu1 %v829_v45, %s7260_s11  ;;  %977 = vrot.lane.b32.xlu0 %v962_v43, %s7261_s12  ;;  %v958_v45 = vmul.f32 %v7590_v2, %v7456_v51  ;;  %v1088_v43 = vmul.f32 %v7634_v16, %v7470_v62  ;;  %v7676_v2 = vpop.permute.xlu2 %7048 }
  0xe1   :  { %845 = vrot.lane.b32.xlu2 %v830_v50, %s7260_s11  ;;  %v7646_v50 = vunpack.i.l.bf16 %v7029_v24  ;;  %v1487_v24 = vperm.slane %v7419_v8, 1 }
  0xe2   :  { %v963_v56 = vpack.c.bf16 %v958_v45, %v958_v45  ;;  %v1093_v3 = vpack.c.bf16 %v1088_v43, %v1088_v43 }
  0xe3   :  { %10234 = vst [vmem:[#allocation19_spill] sm:$0xff] %v7646_v50  ;;  %v7654_v59 = vsel %vm1077_vm7, %v7026_v17, %v7646_v50  ;;  %v1490_v17 = vperm.slane %v7423_v9, 1 }
  0xe4   :  { %10236 = vst [vmem:[#allocation21_spill] sm:$0xff] %v7654_v59  ;;  %v1089_v27 = vmul.f32 %v7654_v59, %v7472_v63 }
  0xe5   :  { %v1494_v16 = vunpack.c.l.bf16 %v1490_v17  ;;  %v1489_v17 = vperm.slane %v7443_v38, 1 }
  0xe6   :  { %v1094_v45 = vpack.c.bf16 %v1089_v27, %v1089_v27 }
  0xe8   :  { %839 = vrot.lane.b32.xlu1 %v827_v7, %s7260_s11  ;;  %973 = vrot.lane.b32.xlu0 %v960_v10, %s7261_s12  ;;  %v961_v7 = vpack.c.bf16 %v956_v58, %v956_v58  ;;  %v1086_v10 = vmul.f32 %v7650_v21, %v7482_v5 }
  0xe9   :  { %841 = vrot.lane.b32.xlu2 %v828_v12, %s7260_s11  ;;  %v954_v12 = vmul.f32 %v7612_v40, %v7482_v5 }
  0xea   :  { %v1091_v43 = vpack.c.bf16 %v1086_v10, %v1086_v10  ;;  %v7039_v10 = vpop.permute.xlu1 %7038 }
  0xeb   :  { %v959_v58 = vpack.c.bf16 %v954_v12, %v954_v12 }
  0xf0   :  { %979 = vrot.lane.b32.xlu1 %v963_v56, %s7261_s12  ;;  %1107 = vrot.lane.b32.xlu0 %v1093_v3, %s7262_s13  ;;  %v7669_v56 = vsel %vm1077_vm7, %v7650_v21, %v7025_v60  ;;  %v7671_v3 = vpop.permute.xlu0 %7033  ;;  %v1090_v21 = vmul.f32 %v7646_v50, %v7456_v51 }
  0xf1   :  { %975 = vrot.lane.b32.xlu2 %v961_v7, %s7261_s12  ;;  %10237 = vst [vmem:[#allocation22_spill] sm:$0xff] %v7669_v56  ;;  %v1491_v7 = vunpack.c.l.bf16 %v1487_v24  ;;  %v1087_v27 = vmul.f32 %v7669_v56, %v7484_v6  ;;  %v7036_v12 = vunpack.i.h.bf16 %v7671_v3  ;;  %v7035_v60 = vunpack.i.l.bf16 %v7671_v3 }
  0xf2   :  { %v1488_v24 = vperm.slane %v7441_v37, 1  ;;  %v1095_v59 = vpack.c.bf16 %v1090_v21, %v1090_v21  ;;  %v170_v21 = vperm.slane %v7352_v55, 0  ;;  %v7706_v40 = vpop.permute.xlu1 %7043 }
  0xf3   :  { %v7689_v56 = vsel %vm10133_vm8, %v7035_v60, %v7036_v12 }
  0xf4   :  { %10239 = vst [vmem:[#allocation24_spill] sm:$0xff] %v7689_v56  ;;  %v1492_v3 = vunpack.c.l.bf16 %v1488_v24  ;;  %v1242_v50 = vmul.f32 %v7689_v56, %v7470_v62  ;;  %v1624_v56 = vunpack.c.l.bf16 %v1620_v57 }
  0xf8   :  { %1109 = vrot.lane.b32.xlu1 %v1094_v45, %s7262_s13  ;;  %1103 = vrot.lane.b32.xlu0 %v1091_v43, %s7262_s13  ;;  %v7057_v45 = vpack.i.bf16 %v1491_v7, %v1494_v16  ;;  %v7686_v43 = vunpack.i.l.bf16 %v7039_v10  ;;  %v1493_v16 = vunpack.c.l.bf16 %v1489_v17  ;;  %v7704_v17 = vunpack.c.l.bf16 %v170_v21 }
  0xf9   :  { %971 = vrot.lane.b32.xlu2 %v959_v58, %s7261_s12  ;;  %v1092_v58 = vpack.c.bf16 %v1087_v27, %v1087_v27  ;;  %v1619_v21 = vperm.slane %v7386_v30, 1 }
  0xfa   :  { %10238 = vst [vmem:[#allocation23_spill] sm:$0xff] %v7686_v43  ;;  %v1244_v27 = vmul.f32 %v7686_v43, %v7456_v51  ;;  %v7052_v49 = vpack.i.bf16 %v1493_v16, %v1492_v3  ;;  %v7712_v20 = vsel %vm10133_vm8, %v7036_v12, %v7686_v43  ;;  %v7046_v3 = vunpack.i.h.bf16 %v7706_v40 }
  0xfb   :  { %10241 = vst [vmem:[#allocation26_spill] sm:$0xff] %v7704_v17  ;;  %v1243_v16 = vmul.f32 %v7712_v20, %v7472_v63  ;;  %v1622_v12 = vperm.slane %v7388_v33, 1 }
  0xfc   :  { %v1249_v24 = vpack.c.bf16 %v1244_v27, %v1244_v27  ;;  %10242 = vst [vmem:[#allocation27_spill] sm:$0xff] %v7712_v20  ;;  %v182_v27 = vmul.f32 %v7704_v17, %v7472_v63 }
  0xfd   :  { %v1248_v43 = vpack.c.bf16 %v1243_v16, %v1243_v16  ;;  %v1626_v17 = vunpack.c.l.bf16 %v1622_v12 }
 0x100   :  { %1105 = vrot.lane.b32.xlu1 %v1092_v58, %s7262_s13  ;;  %7058 = vrot.lane.b32.xlu0 %v7057_v45, %s7263_s14  ;;  %v1621_v58 = vperm.slane %v7431_v25, 1  ;;  %v7702_v45 = vunpack.i.h.bf16 %v7039_v10 }
 0x101   :  { %1111 = vrot.lane.b32.xlu2 %v1095_v59, %s7262_s13  ;;  %v1247_v59 = vpack.c.bf16 %v1242_v50, %v1242_v50 }
 0x102   :  { %v7693_v7 = vpop.permute.xlu2 %253  ;;  %10240 = vst [vmem:[#allocation25_spill] sm:$0xff] %v7702_v45  ;;  %v1625_v55 = vunpack.c.l.bf16 %v1621_v58  ;;  %v1240_v50 = vmul.f32 %v7702_v45, %v7482_v5  ;;  %v162_v58 = vperm.slane %v7328_v31, 0  ;;  %v7737_v23 = vsel %vm10133_vm8, %v7702_v45, %v7035_v60 }
 0x103   :  { %10245 = vst [vmem:[#allocation30_spill] sm:$0xff] %v7737_v23  ;;  %v1241_v60 = vmul.f32 %v7737_v23, %v7484_v6  ;;  %vm981_vm8 = vcmask 916480  }
 0x104   :  { %v7062_v57 = vpack.i.bf16 %v1625_v55, %v1624_v56  ;;  %v186_v56 = vpack.c.bf16 %v182_v27, %v182_v27  ;;  %v1623_v55 = vunpack.c.l.bf16 %v1619_v21 }
 0x106   :  { %v344_v12 = vsel %vm266_vm11, %v186_v56, 0  ;;  %v1246_v56 = vpack.c.bf16 %v1241_v60, %v1241_v60 }
 0x108   :  { %1261 = vrot.lane.b32.xlu1 %v1247_v59, %s7264_s15  ;;  %1265 = vrot.lane.b32.xlu0 %v1249_v24, %s7264_s15  ;;  %v166_v59 = vperm.slane %v7330_v32, 0  ;;  %v1245_v24 = vpack.c.bf16 %v1240_v50, %v1240_v50  ;;  %v7740_v32 = vunpack.c.l.bf16 %v162_v58  ;;  %v7067_v58 = vpack.i.bf16 %v1623_v55, %v1626_v17 }
 0x109   :  { %7053 = vrot.lane.b32.xlu2 %v7052_v49, %s7263_s14  ;;  %v7726_v49 = vunpack.i.l.bf16 %v7676_v2  ;;  %s7275_s14 = smov 82  }
 0x10a   :  { %v7714_v10 = vpop.permute.xlu2 %249  ;;  %10246 = vst [vmem:[#allocation31_spill] sm:$0xff] %v7740_v32  ;;  %v7742_v50 = vunpack.c.l.bf16 %v166_v59  ;;  %v7758_v59 = vld [vmem:[%s10112_s1 + $0x4] sm:$0xf] }
 0x10b   :  { %10243 = vst [vmem:[#allocation28_spill] sm:$0xff] %v7726_v49  ;;  %v7732_v20 = vsel %vm10157_vm9, %v7046_v3, %v7726_v49 }
 0x10c   :  { %10244 = vst [vmem:[#allocation29_spill] sm:$0xff] %v7732_v20  ;;  %v1387_v27 = vmul.f32 %v7732_v20, %v7472_v63 }
 0x10d   :  { %10247 = vst [vmem:[#allocation32_spill] sm:$0xff] %v7742_v50 }
 0x110   :  { %1257 = vrot.lane.b32.xlu1 %v1245_v24, %s7264_s15  ;;  %7063 = vrot.lane.b32.xlu0 %v7062_v57, %s7265_s18  ;;  %v158_v24 = vperm.slane %v7348_v54, 0 }
 0x111   :  { %1263 = vrot.lane.b32.xlu2 %v1248_v43, %s7264_s15  ;;  %v256_v31 = vpop.permute.xlu0 %255  ;;  %v7045_v43 = vunpack.i.l.bf16 %v7706_v40  ;;  %v7766_v40 = vunpack.i.h.bf16 %v7676_v2 }
 0x112   :  { %v261_v16 = vsel %vm257_vm10, %v7693_v7, %v256_v31  ;;  %v180_v31 = vmul.f32 %v7740_v32, %v7484_v6  ;;  %v7775_v17 = vunpack.c.l.bf16 %v158_v24  ;;  %v1388_v24 = vmul.f32 %v7726_v49, %v7456_v51 }
 0x113   :  { %v7748_v57 = vpop.permute.xlu2 %450  ;;  %v277_v21 = vsel %vm266_vm11, %v261_v16, 0  ;;  %v181_v16 = vmul.f32 %v7742_v50, %v7470_v62  ;;  %10248 = vst [vmem:[#allocation33_spill] sm:$0xff] %v7766_v40  ;;  %v7773_v54 = vsel %vm10157_vm9, %v7766_v40, %v7045_v43  ;;  %v7779_v2 = vsel %vm10157_vm9, %v7045_v43, %v7046_v3 }
 0x114   :  { %325 = vmatpush.bf16.msra.mxu3 %v277_v21  ;;  %v1392_v21 = vpack.c.bf16 %v1387_v27, %v1387_v27  ;;  %10249 = vst [vmem:[#allocation34_spill] sm:$0xff] %v7773_v54  ;;  %v184_v55 = vpack.c.bf16 %v180_v31, %v180_v31  ;;  %v1386_v43 = vmul.f32 %v7779_v2, %v7470_v62  ;;  %v1752_v49 = vperm.slane %v7441_v37, 2 }
 0x115   :  { %10250 = vst [vmem:[#allocation35_spill] sm:$0xff] %v7775_v17 }
 0x116   :  { %10251 = vst [vmem:[#allocation36_spill] sm:$0xff] %v7779_v2 }
 0x117   :  { %6660 = vmatmul.msk.bf16.vlgmr.msra.gmra.mxu3 %vm262_vm3, %v7758_v59 }
 0x118   :  { %392 = vmatpush.bf16.msrb.mxu3 %v344_v12  ;;  %7068 = vrot.lane.b32.xlu1 %v7067_v58, %s7265_s18  ;;  %v185_v12 = vpack.c.bf16 %v181_v16, %v181_v16  ;;  %v179_v16 = vmul.f32 %v7775_v17, %v7482_v5  ;;  %s7276_s18 = smov 48  }
 0x119   :  { %1407 = vrot.lane.b32.xlu0 %v1392_v21, %s7253_s4  ;;  %1259 = vrot.lane.b32.xlu2 %v1246_v56, %s7264_s15  ;;  %v1385_v56 = vmul.f32 %v7773_v54, %v7484_v6  ;;  %v1753_v54 = vperm.slane %v7443_v38, 2 }
 0x11a   :  { %v252_v27 = vpop.permute.xlu1 %251 }
 0x11b   :  { %v7781_v60 = vpop.permute.xlu2 %446  ;;  %v259_v58 = vsel %vm257_vm10, %v7714_v10, %v252_v27  ;;  %v260_v21 = vsel %vm257_vm10, %v252_v27, %v7693_v7  ;;  %v338_v7 = vsel %vm266_vm11, %v184_v55, 0  ;;  %v341_v27 = vsel %vm266_vm11, %v185_v12, 0 }
 0x11c   :  { %v271_v31 = vsel %vm266_vm11, %v259_v58, 0  ;;  %v274_v3 = vsel %vm266_vm11, %v260_v21, 0  ;;  %v1393_v58 = vpack.c.bf16 %v1388_v24, %v1388_v24  ;;  %v1390_v21 = vpack.c.bf16 %v1385_v56, %v1385_v56 }
 0x11d   :  { %299 = vmatpush.bf16.msra.mxu1 %v271_v31  ;;  %312 = vmatpush.bf16.msra.mxu2 %v274_v3  ;;  %v1391_v31 = vpack.c.bf16 %v1386_v43, %v1386_v43  ;;  %v183_v12 = vpack.c.bf16 %v179_v16, %v179_v16  ;;  %v1756_v3 = vunpack.c.l.bf16 %v1752_v49  ;;  %v1757_v17 = vunpack.c.l.bf16 %v1753_v54  ;;  %v187_v49 = vld [vmem:[%s10112_s1] sm:$0xf] }
 0x11e   :  { %v1384_v16 = vmul.f32 %v7766_v40, %v7482_v5 }
 0x11f   :  { %v335_v54 = vsel %vm266_vm11, %v183_v12, 0 }
 0x120   :  { %6658 = vmatmul.msk.bf16.vlgmr.msra.gmra.mxu1 %vm262_vm3, %v7758_v59  ;;  %6659 = vmatmul.msk.bf16.vlgmr.msra.gmra.mxu2 %vm262_vm3, %v7758_v59 }
 0x121   :  { %366 = vmatpush.bf16.msrb.mxu1 %v338_v7  ;;  %379 = vmatpush.bf16.msrb.mxu2 %v341_v27  ;;  %v453_v55 = vpop.permute.xlu0 %452 }
 0x122   :  { %1409 = vrot.lane.b32.xlu1 %v1393_v58, %s7253_s4  ;;  %1403 = vrot.lane.b32.xlu0 %v1390_v21, %s7253_s4  ;;  %v458_v24 = vsel %vm454_vm12, %v7748_v57, %v453_v55  ;;  %v248_v56 = vpop.permute.xlu1 %247  ;;  %v7072_v21 = vpack.i.bf16 %v1757_v17, %v1756_v3  ;;  %v1754_v55 = vperm.slane %v7423_v9, 2 }
 0x123   :  { %1405 = vrot.lane.b32.xlu2 %v1391_v31, %s7253_s4  ;;  %v472_v7 = vsel %vm266_vm11, %v458_v24, 0  ;;  %v580_v27 = vpop.permute.xlu2 %579  ;;  %v258_v43 = vsel %vm257_vm10, %v248_v56, %v7714_v10  ;;  %v1751_v31 = vperm.slane %v7419_v8, 2  ;;  %v1389_v10 = vpack.c.bf16 %v1384_v16, %v1384_v16 }
 0x124   :  { %520 = vmatpush.bf16.msra.mxu3 %v472_v7  ;;  %v268_v58 = vsel %vm266_vm11, %v258_v43, 0  ;;  %v1758_v17 = vunpack.c.l.bf16 %v1754_v55 }
 0x125   :  { %286 = vmatpush.bf16.msra.mxu0 %v268_v58  ;;  %v1755_v12 = vunpack.c.l.bf16 %v1751_v31 }
 0x127   :  { %6664 = vmatmul.msk.bf16.vlgmr.msrb.gmra.mxu3 %vm262_vm3, %v187_v49 }
 0x128   :  { %6657 = vmatmul.msk.bf16.vlgmr.msra.gmra.mxu0 %vm262_vm3, %v7758_v59 }
 0x129   :  { %353 = vmatpush.bf16.msrb.mxu0 %v335_v54  ;;  %v7077_v54 = vpack.i.bf16 %v1755_v12, %v1758_v17  ;;  %v6665_v17 = vld [vmem:[%s10112_s1 + $0x8] sm:$0xf] }
 0x12a   :  { %7073 = vrot.lane.b32.xlu1 %v7072_v21, %s7266_s25  ;;  %v449_v24 = vpop.permute.xlu1 %448  ;;  %v582_v56 = vpop.permute.xlu0 %581 }
 0x12b   :  { %1401 = vrot.lane.b32.xlu2 %v1389_v10, %s7253_s4  ;;  %v456_v3 = vsel %vm454_vm12, %v7781_v60, %v449_v24  ;;  %v457_v7 = vsel %vm454_vm12, %v449_v24, %v7748_v57  ;;  %v576_v43 = vpop.permute.xlu2 %575  ;;  %v588_v16 = vsel %vm585_vm13, %v580_v27, %v582_v56 }
 0x12c   :  { %v466_v58 = vsel %vm266_vm11, %v456_v3, 0  ;;  %v469_v59 = vsel %vm266_vm11, %v457_v7, 0  ;;  %v600_v21 = vsel %vm266_vm11, %v588_v16, 0 }
 0x12d   :  { %494 = vmatpush.bf16.msra.mxu1 %v466_v58  ;;  %507 = vmatpush.bf16.msra.mxu2 %v469_v59 }
 0x130   :  { %6662 = vmatmul.msk.bf16.vlgmr.msrb.gmra.mxu1 %vm262_vm3, %v187_v49  ;;  %6663 = vmatmul.msk.bf16.vlgmr.msrb.gmra.mxu2 %vm262_vm3, %v187_v49 }
 0x131   :  { %638 = vmatpush.bf16.msrb.mxu2 %v600_v21 }
 0x132   :  { %v445_v31 = vpop.permute.xlu1 %444  ;;  %v578_v57 = vpop.permute.xlu0 %577 }
 0x133   :  { %7078 = vrot.lane.b32.xlu2 %v7077_v54, %s7266_s25  ;;  %v455_v55 = vsel %vm454_vm12, %v445_v31, %v7781_v60  ;;  %v587_v10 = vsel %vm585_vm13, %v578_v57, %v580_v27  ;;  %v716_v24 = vpop.permute.xlu2 %715  ;;  %v586_v7 = vsel %vm585_vm13, %v576_v43, %v578_v57  ;;  %s7267_s25 = smov 63  }
 0x134   :  { %v463_v3 = vsel %vm266_vm11, %v455_v55, 0  ;;  %v597_v12 = vsel %vm266_vm11, %v587_v10, 0  ;;  %v594_v60 = vsel %vm266_vm11, %v586_v7, 0  ;;  %v6670_v10 = vld [vmem:[%s10112_s1 + $0xc] sm:$0xf] }
 0x135   :  { %481 = vmatpush.bf16.msra.mxu0 %v463_v3  ;;  %625 = vmatpush.bf16.msrb.mxu1 %v597_v12 }
 0x137   :  { %6669 = vmatmul.msk.bf16.vlgmr.msra.gmra.mxu3 %vm262_vm3, %v6665_v17 }
 0x138   :  { %6661 = vmatmul.msk.bf16.vlgmr.msrb.gmra.mxu0 %vm262_vm3, %v187_v49 }
 0x139   :  { %612 = vmatpush.bf16.msrb.mxu0 %v594_v60 }
 0x13a   :  { %v584_v27 = vpop.permute.xlu1 %583  ;;  %v712_v58 = vpop.permute.xlu0 %711 }
 0x13b   :  { %v589_v59 = vsel %vm585_vm13, %v582_v56, %v584_v27  ;;  %v846_v16 = vpop.permute.xlu2 %845 }
 0x13c   :  { %v603_v54 = vsel %vm266_vm11, %v589_v59, 0 }
 0x13d   :  { %651 = vmatpush.bf16.msrb.mxu3 %v603_v54 }
 0x140   :  { %6667 = vmatmul.msk.bf16.vlgmr.msra.gmra.mxu1 %vm262_vm3, %v6665_v17  ;;  %6668 = vmatmul.msk.bf16.vlgmr.msra.gmra.mxu2 %vm262_vm3, %v6665_v17 }
 0x142   :  { %v714_v43 = vpop.permute.xlu1 %713  ;;  %v708_v21 = vpop.permute.xlu0 %707 }
 0x143   :  { %v720_v49 = vsel %vm10135_vm14, %v712_v58, %v714_v43  ;;  %v721_v31 = vsel %vm10135_vm14, %v714_v43, %v716_v24  ;;  %v842_v57 = vpop.permute.xlu2 %841 }
 0x144   :  { %v732_v55 = vsel %vm266_vm11, %v720_v49, 0  ;;  %v735_v56 = vsel %vm266_vm11, %v721_v31, 0 }
 0x145   :  { %770 = vmatpush.bf16.msra.mxu2 %v732_v55  ;;  %783 = vmatpush.bf16.msra.mxu3 %v735_v56 }
 0x147   :  { %6674 = vmatmul.msk.bf16.vlgmr.msrb.gmra.mxu3 %vm262_vm3, %v6670_v10 }
 0x148   :  { %6666 = vmatmul.msk.bf16.vlgmr.msra.gmra.mxu0 %vm262_vm3, %v6665_v17 }
 0x14a   :  { %v710_v3 = vpop.permute.xlu1 %709  ;;  %v848_v12 = vpop.permute.xlu0 %847 }
 0x14b   :  { %v718_v24 = vsel %vm10135_vm14, %v708_v21, %v710_v3  ;;  %v719_v7 = vsel %vm10135_vm14, %v710_v3, %v712_v58  ;;  %v853_v60 = vsel %vm10134_vm15, %v846_v16, %v848_v12  ;;  %v976_v27 = vpop.permute.xlu2 %975  ;;  %v6675_v3 = vld [vmem:[%s10112_s1 + $0x10] sm:$0xf]  ;;  %vm10137_vm14 = vcmask 908288  }
 0x14c   :  { %v867_v59 = vsel %vm266_vm11, %v853_v60, 0  ;;  %v726_v54 = vsel %vm266_vm11, %v718_v24, 0  ;;  %v729_v43 = vsel %vm266_vm11, %v719_v7, 0 }
 0x14d   :  { %744 = vmatpush.bf16.msra.mxu0 %v726_v54  ;;  %757 = vmatpush.bf16.msra.mxu1 %v729_v43 }
 0x14e   :  { %915 = vmatpush.bf16.msrb.mxu3 %v867_v59 }
 0x150   :  { %6672 = vmatmul.msk.bf16.vlgmr.msrb.gmra.mxu1 %vm262_vm3, %v6670_v10  ;;  %6673 = vmatmul.msk.bf16.vlgmr.msrb.gmra.mxu2 %vm262_vm3, %v6670_v10 }
 0x152   :  { %v844_v17 = vpop.permute.xlu1 %843  ;;  %v978_v21 = vpop.permute.xlu0 %977 }
 0x153   :  { %v851_v58 = vsel %vm10134_vm15, %v842_v57, %v844_v17  ;;  %v852_v49 = vsel %vm10134_vm15, %v844_v17, %v846_v16  ;;  %v972_v31 = vpop.permute.xlu2 %971  ;;  %v984_v59 = vsel %vm981_vm8, %v976_v27, %v978_v21 }
 0x154   :  { %v861_v55 = vsel %vm266_vm11, %v851_v58, 0  ;;  %v864_v56 = vsel %vm266_vm11, %v852_v49, 0 }
 0x155   :  { %889 = vmatpush.bf16.msrb.mxu1 %v861_v55  ;;  %902 = vmatpush.bf16.msrb.mxu2 %v864_v56 }
 0x157   :  { %6679 = vmatmul.msk.bf16.vlgmr.msra.gmra.mxu3 %vm262_vm3, %v6675_v3 }
 0x158   :  { %6671 = vmatmul.msk.bf16.vlgmr.msrb.gmra.mxu0 %vm262_vm3, %v6670_v10  ;;  %v996_v10 = vsel %vm266_vm11, %v984_v59, 0 }
 0x15a   :  { %v840_v12 = vpop.permute.xlu1 %839  ;;  %v974_v24 = vpop.permute.xlu0 %973 }
 0x15b   :  { %v850_v16 = vsel %vm10134_vm15, %v840_v12, %v842_v57  ;;  %v1112_v7 = vpop.permute.xlu2 %1111  ;;  %v983_v54 = vsel %vm981_vm8, %v974_v24, %v976_v27  ;;  %vm1507_vm15 = vcmask 531456   ;;  %v6680_v12 = vld [vmem:[%s10112_s1 + $0x14] sm:$0xf] }
 0x15c   :  { %v858_v60 = vsel %vm266_vm11, %v850_v16, 0  ;;  %v993_v43 = vsel %vm266_vm11, %v983_v54, 0  ;;  %v982_v16 = vsel %vm981_vm8, %v972_v31, %v974_v24 }
 0x15d   :  { %876 = vmatpush.bf16.msrb.mxu0 %v858_v60  ;;  %v990_v59 = vsel %vm266_vm11, %v982_v16, 0 }
 0x160   :  { %6677 = vmatmul.msk.bf16.vlgmr.msra.gmra.mxu1 %vm262_vm3, %v6675_v3  ;;  %6678 = vmatmul.msk.bf16.vlgmr.msra.gmra.mxu2 %vm262_vm3, %v6675_v3 }
 0x161   :  { %1021 = vmatpush.bf16.msra.mxu1 %v993_v43  ;;  %1034 = vmatpush.bf16.msra.mxu2 %v996_v10 }
 0x162   :  { %v980_v17 = vpop.permute.xlu1 %979  ;;  %v1108_v57 = vpop.permute.xlu0 %1107 }
 0x163   :  { %v985_v58 = vsel %vm981_vm8, %v978_v21, %v980_v17  ;;  %v7887_v49 = vpop.permute.xlu2 %7053 }
 0x164   :  { %v999_v27 = vsel %vm266_vm11, %v985_v58, 0  ;;  %v7056_v55 = vunpack.i.h.bf16 %v7887_v49  ;;  %v7055_v56 = vunpack.i.l.bf16 %v7887_v49 }
 0x165   :  { %1047 = vmatpush.bf16.msra.mxu3 %v999_v27 }
 0x166   :  { %v7897_v60 = vsel %vm1507_vm15, %v7055_v56, %v7056_v55 }
 0x167   :  { %10252 = vst [vmem:[#allocation37_spill] sm:$0xff] %v7897_v60  ;;  %v1518_v21 = vmul.f32 %v7897_v60, %v7470_v62  ;;  %6684 = vmatmul.msk.bf16.vlgmr.msrb.gmra.mxu3 %vm262_vm3, %v6680_v12 }
 0x168   :  { %6676 = vmatmul.msk.bf16.vlgmr.msra.gmra.mxu0 %vm262_vm3, %v6675_v3 }
 0x169   :  { %1008 = vmatpush.bf16.msra.mxu0 %v990_v59  ;;  %v1523_v54 = vpack.c.bf16 %v1518_v21, %v1518_v21 }
 0x16a   :  { %v1110_v43 = vpop.permute.xlu1 %1109  ;;  %v1104_v10 = vpop.permute.xlu0 %1103 }
 0x16b   :  { %v1117_v31 = vsel %vm10137_vm14, %v1110_v43, %v1112_v7  ;;  %1537 = vrot.lane.b32.xlu0 %v1523_v54, %s7267_s25  ;;  %v1116_v17 = vsel %vm10137_vm14, %v1108_v57, %v1110_v43  ;;  %v1264_v58 = vpop.permute.xlu2 %1263  ;;  %v6685_v54 = vld [vmem:[%s10112_s1 + $0x18] sm:$0xf]  ;;  %v1884_v43 = vperm.slane %v7429_v13, 2 }
 0x16c   :  { %v1131_v24 = vsel %vm266_vm11, %v1117_v31, 0  ;;  %v1128_v3 = vsel %vm266_vm11, %v1116_v17, 0 }
 0x16d   :  { %1179 = vmatpush.bf16.msrb.mxu3 %v1131_v24 }
 0x170   :  { %6682 = vmatmul.msk.bf16.vlgmr.msrb.gmra.mxu1 %vm262_vm3, %v6680_v12  ;;  %6683 = vmatmul.msk.bf16.vlgmr.msrb.gmra.mxu2 %vm262_vm3, %v6680_v12 }
 0x171   :  { %1166 = vmatpush.bf16.msrb.mxu2 %v1128_v3 }
 0x172   :  { %v1106_v49 = vpop.permute.xlu1 %1105  ;;  %v7059_v27 = vpop.permute.xlu0 %7058 }
 0x173   :  { %v1115_v7 = vsel %vm10137_vm14, %v1106_v49, %v1108_v57  ;;  %v7912_v16 = vunpack.i.h.bf16 %v7059_v27  ;;  %v7914_v21 = vunpack.i.l.bf16 %v7059_v27  ;;  %v1114_v31 = vsel %vm10137_vm14, %v1104_v10, %v1106_v49 }
 0x174   :  { %v1125_v59 = vsel %vm266_vm11, %v1115_v7, 0  ;;  %v1885_v27 = vperm.slane %v7431_v25, 2  ;;  %v1883_v7 = vperm.slane %v7386_v30, 2  ;;  %v1886_v10 = vperm.slane %v7388_v33, 2 }
 0x175   :  { %10253 = vst [vmem:[#allocation38_spill] sm:$0xff] %v7912_v16  ;;  %1153 = vmatpush.bf16.msrb.mxu1 %v1125_v59  ;;  %v1520_v24 = vmul.f32 %v7914_v21, %v7456_v51  ;;  %v1516_v57 = vmul.f32 %v7912_v16, %v7482_v5  ;;  %v7928_v17 = vsel %vm1507_vm15, %v7056_v55, %v7914_v21  ;;  %v1122_v60 = vsel %vm266_vm11, %v1114_v31, 0 }
 0x176   :  { %10254 = vst [vmem:[#allocation39_spill] sm:$0xff] %v7914_v21  ;;  %v1519_v3 = vmul.f32 %v7928_v17, %v7472_v63  ;;  %vm1267_vm14 = vcmask 900096   ;;  %v1260_v21 = vpop.permute.xlu2 %1259  ;;  %v1890_v23 = vunpack.c.l.bf16 %v1886_v10 }
 0x177   :  { %10255 = vst [vmem:[#allocation40_spill] sm:$0xff] %v7928_v17  ;;  %v1525_v49 = vpack.c.bf16 %v1520_v24, %v1520_v24  ;;  %v1521_v59 = vpack.c.bf16 %v1516_v57, %v1516_v57  ;;  %6689 = vmatmul.msk.bf16.vlgmr.msra.gmra.mxu3 %vm262_vm3, %v6685_v54  ;;  %v1888_v17 = vunpack.c.l.bf16 %v1884_v43  ;;  %v1889_v24 = vunpack.c.l.bf16 %v1885_v27 }
 0x178   :  { %6681 = vmatmul.msk.bf16.vlgmr.msrb.gmra.mxu0 %vm262_vm3, %v6680_v12  ;;  %v1524_v55 = vpack.c.bf16 %v1519_v3, %v1519_v3  ;;  %v1887_v57 = vunpack.c.l.bf16 %v1883_v7  ;;  %v7943_v12 = vsel %vm1507_vm15, %v7912_v16, %v7055_v56  ;;  %vm1639_vm15 = vcmask 539648  }
 0x179   :  { %1140 = vmatpush.bf16.msrb.mxu0 %v1122_v60  ;;  %1541 = vrot.lane.b32.xlu2 %v1525_v49, %s7267_s25  ;;  %10256 = vst [vmem:[#allocation41_spill] sm:$0xff] %v7943_v12  ;;  %v1517_v49 = vmul.f32 %v7943_v12, %v7484_v6 }
 0x17a   :  { %1533 = vrot.lane.b32.xlu0 %v1521_v59, %s7267_s25  ;;  %v1262_v50 = vpop.permute.xlu1 %1261  ;;  %v1266_v32 = vpop.permute.xlu0 %1265  ;;  %1539 = vrot.lane.b32.xlu1 %v1524_v55, %s7267_s25  ;;  %v7082_v59 = vpack.i.bf16 %v1889_v24, %v1888_v17  ;;  %v7087_v27 = vpack.i.bf16 %v1887_v57, %v1890_v23 }
 0x17b   :  { %v1271_v31 = vsel %vm1267_vm14, %v1264_v58, %v1266_v32  ;;  %v1269_v3 = vsel %vm1267_vm14, %v1260_v21, %v1262_v50  ;;  %v1270_v43 = vsel %vm1267_vm14, %v1262_v50, %v1264_v58  ;;  %v1522_v7 = vpack.c.bf16 %v1517_v49, %v1517_v49 }
 0x17c   :  { %v1285_v60 = vsel %vm266_vm11, %v1271_v31, 0  ;;  %v1279_v56 = vsel %vm266_vm11, %v1269_v3, 0  ;;  %v1282_v32 = vsel %vm266_vm11, %v1270_v43, 0  ;;  %v6690_v31 = vld [vmem:[%s10112_s1 + $0x1c] sm:$0xf] }
 0x17d   :  { %1333 = vmatpush.bf16.msra.mxu3 %v1285_v60 }
 0x17e   :  { %v1406_v17 = vpop.permute.xlu2 %1405 }
 0x180   :  { %6687 = vmatmul.msk.bf16.vlgmr.msra.gmra.mxu1 %vm262_vm3, %v6685_v54  ;;  %6688 = vmatmul.msk.bf16.vlgmr.msra.gmra.mxu2 %vm262_vm3, %v6685_v54 }
 0x181   :  { %1307 = vmatpush.bf16.msra.mxu1 %v1279_v56  ;;  %1320 = vmatpush.bf16.msra.mxu2 %v1282_v32 }
 0x182   :  { %7083 = vrot.lane.b32.xlu2 %v7082_v59, %s7247_s17  ;;  %7088 = vrot.lane.b32.xlu0 %v7087_v27, %s7247_s17  ;;  %v1258_v50 = vpop.permute.xlu1 %1257  ;;  %v7064_v58 = vpop.permute.xlu0 %7063  ;;  %v2015_v27 = vperm.slane %v7441_v37, 3  ;;  %v2014_v37 = vperm.slane %v7419_v8, 3 }
 0x183   :  { %v7066_v23 = vunpack.i.h.bf16 %v7064_v58  ;;  %v7065_v10 = vunpack.i.l.bf16 %v7064_v58  ;;  %1535 = vrot.lane.b32.xlu1 %v1522_v7, %s7267_s25  ;;  %v1268_v55 = vsel %vm1267_vm14, %v1258_v50, %v1260_v21  ;;  %v2016_v50 = vperm.slane %v7443_v38, 3 }
 0x184   :  { %v1276_v60 = vsel %vm266_vm11, %v1268_v55, 0  ;;  %v2019_v38 = vunpack.c.l.bf16 %v2015_v27 }
 0x185   :  { %v7960_v24 = vsel %vm1639_vm15, %v7065_v10, %v7066_v23 }
 0x186   :  { %10257 = vst [vmem:[#allocation42_spill] sm:$0xff] %v7960_v24  ;;  %v1650_v57 = vmul.f32 %v7960_v24, %v7470_v62  ;;  %v1402_v56 = vpop.permute.xlu2 %1401 }
 0x187   :  { %6694 = vmatmul.msk.bf16.vlgmr.msrb.gmra.mxu3 %vm262_vm3, %v6690_v31 }
 0x188   :  { %6686 = vmatmul.msk.bf16.vlgmr.msra.gmra.mxu0 %vm262_vm3, %v6685_v54  ;;  %v1655_v3 = vpack.c.bf16 %v1650_v57, %v1650_v57 }
 0x189   :  { %1294 = vmatpush.bf16.msra.mxu0 %v1276_v60  ;;  %v2017_v60 = vperm.slane %v7423_v9, 3 }
 0x18a   :  { %v7069_v43 = vpop.permute.xlu1 %7068 }
 0x18b   :  { %v1408_v21 = vpop.permute.xlu0 %1407  ;;  %v7970_v49 = vunpack.i.h.bf16 %v7069_v43  ;;  %v7972_v59 = vunpack.i.l.bf16 %v7069_v43  ;;  %1669 = vrot.lane.b32.xlu1 %v1655_v3, %s7268_s19 }
 0x18c   :  { %v1414_v32 = vsel %vm10157_vm9, %v1406_v17, %v1408_v21 }
 0x18d   :  { %10258 = vst [vmem:[#allocation43_spill] sm:$0xff] %v7970_v49  ;;  %v1652_v7 = vmul.f32 %v7972_v59, %v7456_v51  ;;  %v7981_v54 = vsel %vm1639_vm15, %v7066_v23, %v7972_v59  ;;  %v1648_v55 = vmul.f32 %v7970_v49, %v7482_v5  ;;  %v1426_v3 = vsel %vm266_vm11, %v1414_v32, 0 }
 0x18e   :  { %10259 = vst [vmem:[#allocation44_spill] sm:$0xff] %v7972_v59  ;;  %v1651_v58 = vmul.f32 %v7981_v54, %v7472_v63  ;;  %v2018_v32 = vunpack.c.l.bf16 %v2014_v37 }
 0x18f   :  { %10260 = vst [vmem:[#allocation45_spill] sm:$0xff] %v7981_v54  ;;  %v1657_v57 = vpack.c.bf16 %v1652_v7, %v1652_v7  ;;  %v1653_v23 = vpack.c.bf16 %v1648_v55, %v1648_v55  ;;  %v2020_v54 = vunpack.c.l.bf16 %v2016_v50  ;;  %v7996_v7 = vsel %vm1639_vm15, %v7970_v49, %v7065_v10  ;;  %v7079_v49 = vpop.permute.xlu2 %7078 }
 0x190   :  { %6693 = vmatmul.msk.bf16.vlgmr.msrb.gmra.mxu2 %vm262_vm3, %v6690_v31  ;;  %v1656_v43 = vpack.c.bf16 %v1651_v58, %v1651_v58  ;;  %6692 = vmatmul.msk.bf16.vlgmr.msrb.gmra.mxu1 %vm262_vm3, %v6690_v31  ;;  %10261 = vst [vmem:[#allocation46_spill] sm:$0xff] %v7996_v7  ;;  %v2021_v58 = vunpack.c.l.bf16 %v2017_v60  ;;  %v1649_v27 = vmul.f32 %v7996_v7, %v7484_v6  ;;  %vm1771_vm15 = vcmask 588800  }
 0x191   :  { %1464 = vmatpush.bf16.msrb.mxu2 %v1426_v3  ;;  %1673 = vrot.lane.b32.xlu0 %v1657_v57, %s7268_s19 }
 0x192   :  { %1671 = vrot.lane.b32.xlu2 %v1656_v43, %s7268_s19  ;;  %v7092_v43 = vpack.i.bf16 %v2020_v54, %v2019_v38  ;;  %v1654_v37 = vpack.c.bf16 %v1649_v27, %v1649_v27 }
 0x193   :  { %1665 = vrot.lane.b32.xlu1 %v1653_v23, %s7268_s19  ;;  %v7097_v23 = vpack.i.bf16 %v2018_v32, %v2021_v58  ;;  %v8023_v58 = vunpack.i.h.bf16 %v7079_v49 }
 0x194   :  { %v1410_v8 = vpop.permute.xlu1 %1409  ;;  %v1404_v9 = vpop.permute.xlu0 %1403 }
 0x195   :  { %v1415_v55 = vsel %vm10157_vm9, %v1408_v21, %v1410_v8  ;;  %v1413_v3 = vsel %vm10157_vm9, %v1404_v9, %v1406_v17  ;;  %v1412_v10 = vsel %vm10157_vm9, %v1402_v56, %v1404_v9  ;;  %v8009_v17 = vunpack.i.l.bf16 %v7079_v49  ;;  %10265 = vst [vmem:[#allocation50_spill] sm:$0xff] %v8023_v58 }
 0x196   :  { %v1429_v50 = vsel %vm266_vm11, %v1415_v55, 0  ;;  %v1423_v57 = vsel %vm266_vm11, %v1413_v3, 0  ;;  %v1420_v21 = vsel %vm266_vm11, %v1412_v10, 0  ;;  %v2147_v55 = vperm.slane %v7429_v13, 3 }
 0x197   :  { %1451 = vmatpush.bf16.msrb.mxu1 %v1423_v57  ;;  %1477 = vmatpush.bf16.msrb.mxu3 %v1429_v50  ;;  %10262 = vst [vmem:[#allocation47_spill] sm:$0xff] %v8009_v17  ;;  %v2148_v3 = vperm.slane %v7431_v25, 3  ;;  %v1780_v13 = vmul.f32 %v8023_v58, %v7482_v5  ;;  %vm2034_vm9 = vcmask 605184  }
 0x198   :  { %6691 = vmatmul.msk.bf16.vlgmr.msrb.gmra.mxu0 %vm262_vm3, %v6690_v31  ;;  %v1784_v31 = vmul.f32 %v8009_v17, %v7456_v51 }
 0x199   :  { %1438 = vmatpush.bf16.msrb.mxu0 %v1420_v21  ;;  %7093 = vrot.lane.b32.xlu0 %v7092_v43, %s7269_s20  ;;  %v2151_v43 = vunpack.c.l.bf16 %v2147_v55  ;;  %v2152_v49 = vunpack.c.l.bf16 %v2148_v3  ;;  %v2149_v21 = vperm.slane %v7388_v33, 3 }
 0x19a   :  { %1667 = vrot.lane.b32.xlu2 %v1654_v37, %s7268_s19  ;;  %v1789_v10 = vpack.c.bf16 %v1784_v31, %v1784_v31 }
 0x19b   :  { %7098 = vrot.lane.b32.xlu1 %v7097_v23, %s7269_s20  ;;  %v2146_v23 = vperm.slane %v7386_v30, 3  ;;  %v7102_v37 = vpack.i.bf16 %v2152_v49, %v2151_v43  ;;  %v2153_v31 = vunpack.c.l.bf16 %v2149_v21  ;;  %s7272_s20 = smov 55  }
 0x19c   :  { %v7074_v56 = vpop.permute.xlu1 %7073 }
 0x19d   :  { %v7076_v54 = vunpack.i.h.bf16 %v7074_v56  ;;  %v7075_v60 = vunpack.i.l.bf16 %v7074_v56  ;;  %v1785_v56 = vpack.c.bf16 %v1780_v13, %v1780_v13  ;;  %v90_v13 = vld [vmem:[%s10113_s2 + $0x20] sm:$0xff] }
 0x19f   :  { %v8012_v38 = vsel %vm1771_vm15, %v7075_v60, %v7076_v54  ;;  %v8015_v8 = vsel %vm1771_vm15, %v7076_v54, %v8009_v17  ;;  %v8028_v57 = vsel %vm1771_vm15, %v8023_v58, %v7075_v60  ;;  %v2150_v60 = vunpack.c.l.bf16 %v2146_v23 }
 0x1a0   :  { %10263 = vst [vmem:[#allocation48_spill] sm:$0xff] %v8012_v38  ;;  %v1782_v9 = vmul.f32 %v8012_v38, %v7470_v62  ;;  %v1783_v32 = vmul.f32 %v8015_v8, %v7472_v63  ;;  %v1781_v25 = vmul.f32 %v8028_v57, %v7484_v6  ;;  %vm10155_vm15 = vcmask 515072  }
 0x1a1   :  { %10264 = vst [vmem:[#allocation49_spill] sm:$0xff] %v8015_v8  ;;  %v2280_v23 = vunpack.c.l.b16 %v90_v13 }
 0x1a2   :  { %v1787_v27 = vpack.c.bf16 %v1782_v9, %v1782_v9  ;;  %v1788_v50 = vpack.c.bf16 %v1783_v32, %v1783_v32  ;;  %10266 = vst [vmem:[#allocation51_spill] sm:$0xff] %v8028_v57  ;;  %v1786_v54 = vpack.c.bf16 %v1781_v25, %v1781_v25  ;;  %v7107_v9 = vpack.i.bf16 %v2150_v60, %v2153_v31  ;;  %v6695_v32 = vld [vmem:[%s10112_s1 + $0x20] sm:$0xf]  ;;  %v91_v25 = vld [vmem:[%s10113_s2 + $0x28] sm:$0xff] }
 0x1a3   :  { %1805 = vrot.lane.b32.xlu1 %v1789_v10, %s7270_s21  ;;  %6697 = vmatmul.msk.bf16.vlgmr.msra.gmra.mxu1 %vm262_vm3, %v6695_v32  ;;  %v2283_v21 = vunpack.c.h.b16 %v91_v25 }
 0x1a4   :  { %1801 = vrot.lane.b32.xlu2 %v1787_v27, %s7270_s21  ;;  %1803 = vrot.lane.b32.xlu0 %v1788_v50, %s7270_s21  ;;  %v6700_v27 = vld [vmem:[%s10112_s1 + $0x24] sm:$0xf] }
 0x1a5   :  { %6698 = vmatmul.msk.bf16.vlgmr.msra.gmra.mxu2 %vm262_vm3, %v6695_v32  ;;  %6699 = vmatmul.msk.bf16.vlgmr.msra.gmra.mxu3 %vm262_vm3, %v6695_v32 }
 0x1a8   :  { %6696 = vmatmul.msk.bf16.vlgmr.msra.gmra.mxu0 %vm262_vm3, %v6695_v32 }
 0x1ab   :  { %7103 = vrot.lane.b32.xlu1 %v7102_v37, %s7271_s24 }
 0x1ac   :  { %1797 = vrot.lane.b32.xlu2 %v1785_v56, %s7270_s21  ;;  %1799 = vrot.lane.b32.xlu0 %v1786_v54, %s7270_s21  ;;  %v2281_v56 = vunpack.c.h.b16 %v90_v13  ;;  %v2282_v54 = vunpack.c.l.b16 %v91_v25 }
 0x1b3   :  { %6702 = vmatmul.msk.bf16.vlgmr.msrb.gmra.mxu1 %vm262_vm3, %v6700_v27 }
 0x1b4   :  { %7108 = vrot.lane.b32.xlu2 %v7107_v9, %s7271_s24 }
 0x1b5   :  { %6703 = vmatmul.msk.bf16.vlgmr.msrb.gmra.mxu2 %vm262_vm3, %v6700_v27  ;;  %6704 = vmatmul.msk.bf16.vlgmr.msrb.gmra.mxu3 %vm262_vm3, %v6700_v27 }
 0x1b8   :  { %6701 = vmatmul.msk.bf16.vlgmr.msrb.gmra.mxu0 %vm262_vm3, %v6700_v27 }
 0x1d3   :  { %v1542_v30 = vpop.permute.xlu2 %1541 }
 0x1dc   :  { %v8048_v33 = vpop.permute.xlu2 %7083 }
 0x1dd   :  { %v7086_v55 = vunpack.i.h.bf16 %v8048_v33  ;;  %v10145_v3 = vunpack.i.l.bf16 %v8048_v33  ;;  %v1538_v49 = vpop.permute.xlu0 %1537 }
 0x1df   :  { %v8058_v50 = vsel %vm123_vm0, %v10145_v3, %v7086_v55  ;;  %v8081_v3 = vpack.c.b16 %v2281_v56, %v2281_v56 }
 0x1e0   :  { %10267 = vst [vmem:[#allocation52_spill] sm:$0xff] %v8058_v50  ;;  %v1913_v10 = vmul.f32 %v8058_v50, %v7470_v62  ;;  %v8083_v50 = vpack.c.b16 %v2282_v54, %v2282_v54 }
 0x1e2   :  { %v1918_v43 = vpack.c.bf16 %v1913_v10, %v1913_v10  ;;  %v8077_v10 = vpack.c.b16 %v2280_v23, %v2280_v23  ;;  %v8095_v23 = vpack.i.b16 %v8081_v3, %v8081_v3 }
 0x1e4   :  { %1932 = vrot.lane.b32.xlu0 %v1918_v43, %s7272_s20  ;;  %v8079_v43 = vpack.c.b16 %v2283_v21, %v2283_v21  ;;  %v8087_v25 = vpack.i.b16 %v8077_v10, %v8077_v10  ;;  %v8099_v21 = vpack.i.b16 %v8083_v50, %v8083_v50  ;;  %v2295_v57 = vperm.slane %v8095_v23, 0 }
 0x1e6   :  { %v2299_v7 = vperm.slane %v8099_v21, 0 }
 0x1ec   :  { %v1534_v37 = vpop.permute.xlu0 %1533  ;;  %v1540_v60 = vpop.permute.xlu1 %1539 }
 0x1ed   :  { %v1546_v31 = vsel %vm10155_vm15, %v1538_v49, %v1540_v60  ;;  %v1547_v9 = vsel %vm10155_vm15, %v1540_v60, %v1542_v30  ;;  %v1672_v13 = vpop.permute.xlu2 %1671  ;;  %v8091_v30 = vpack.i.b16 %v8079_v43, %v8079_v43 }
 0x1ee   :  { %v1558_v32 = vsel %vm266_vm11, %v1546_v31, 0  ;;  %v1561_v27 = vsel %vm266_vm11, %v1547_v9, 0  ;;  %v2291_v9 = vperm.slane %v8087_v25, 0 }
 0x1ef   :  { %1596 = vmatpush.bf16.msra.mxu2 %v1558_v32  ;;  %1609 = vmatpush.bf16.msra.mxu3 %v1561_v27  ;;  %v2303_v32 = vperm.slane %v8091_v30, 0 }
 0x1f0   :  { %v2304_v16 = vunpack.c.l.bf16 %v2291_v9 }
 0x1f1   :  { %v2307_v59 = vunpack.c.l.bf16 %v2303_v32 }
 0x1f4   :  { %v7089_v60 = vpop.permute.xlu0 %7088 }
 0x1f5   :  { %v8101_v56 = vunpack.i.h.bf16 %v7089_v60  ;;  %v8103_v54 = vunpack.i.l.bf16 %v7089_v60  ;;  %v1536_v31 = vpop.permute.xlu1 %1535  ;;  %v1668_v9 = vpop.permute.xlu2 %1667 }
 0x1f6   :  { %v1544_v27 = vsel %vm10155_vm15, %v1534_v37, %v1536_v31  ;;  %v1545_v17 = vsel %vm10155_vm15, %v1536_v31, %v1538_v49  ;;  %v6705_v49 = vld [vmem:[%s10112_s1 + $0x28] sm:$0xf]  ;;  %vm10158_vm15 = vcmask 506880  }
 0x1f7   :  { %10268 = vst [vmem:[#allocation53_spill] sm:$0xff] %v8101_v56  ;;  %v1552_v58 = vsel %vm266_vm11, %v1544_v27, 0  ;;  %v1555_v8 = vsel %vm266_vm11, %v1545_v17, 0  ;;  %v1911_v60 = vmul.f32 %v8101_v56, %v7482_v5  ;;  %v1915_v38 = vmul.f32 %v8103_v54, %v7456_v51  ;;  %6708 = vmatmul.msk.bf16.vlgmr.msra.gmra.mxu2 %vm262_vm3, %v6705_v49  ;;  %6709 = vmatmul.msk.bf16.vlgmr.msra.gmra.mxu3 %vm262_vm3, %v6705_v49 }
 0x1f8   :  { %10269 = vst [vmem:[#allocation54_spill] sm:$0xff] %v8103_v54  ;;  %1570 = vmatpush.bf16.msra.mxu0 %v1552_v58  ;;  %1583 = vmatpush.bf16.msra.mxu1 %v1555_v8  ;;  %v8119_v37 = vsel %vm123_vm0, %v7086_v55, %v8103_v54  ;;  %v2305_v58 = vunpack.c.l.bf16 %v2295_v57  ;;  %v2306_v55 = vunpack.c.l.bf16 %v2299_v7  ;;  %v7117_v57 = vpack.i.bf16 %v2304_v16, %v2307_v59 }
 0x1f9   :  { %10270 = vst [vmem:[#allocation55_spill] sm:$0xff] %v8119_v37  ;;  %v1916_v31 = vpack.c.bf16 %v1911_v60, %v1911_v60  ;;  %v1920_v27 = vpack.c.bf16 %v1915_v38, %v1915_v38  ;;  %v1914_v17 = vmul.f32 %v8119_v37, %v7472_v63  ;;  %v10271_v60 = vunpack.i.l.bf16 %v8048_v33 }
 0x1fb   :  { %1928 = vrot.lane.b32.xlu0 %v1916_v31, %s7272_s20  ;;  %1936 = vrot.lane.b32.xlu2 %v1920_v27, %s7272_s20  ;;  %v1919_v8 = vpack.c.bf16 %v1914_v17, %v1914_v17  ;;  %v8134_v38 = vsel %vm123_vm0, %v8101_v56, %v10271_v60  ;;  %v7112_v17 = vpack.i.bf16 %v2306_v55, %v2305_v58  ;;  %v2436_v58 = vshrl.u32 %v8081_v3, 16 }
 0x1fc   :  { %10272 = vst [vmem:[#allocation56_spill] sm:$0xff] %v8134_v38  ;;  %6706 = vmatmul.msk.bf16.vlgmr.msra.gmra.mxu0 %vm262_vm3, %v6705_v49  ;;  %6707 = vmatmul.msk.bf16.vlgmr.msra.gmra.mxu1 %vm262_vm3, %v6705_v49  ;;  %v1912_v60 = vmul.f32 %v8134_v38, %v7484_v6 }
 0x1fd   :  { %1934 = vrot.lane.b32.xlu1 %v1919_v8, %s7272_s20  ;;  %v1670_v32 = vpop.permute.xlu1 %1669 }
 0x1fe   :  { %v1677_v31 = vsel %vm10158_vm15, %v1668_v9, %v1670_v32  ;;  %v1678_v27 = vsel %vm10158_vm15, %v1670_v32, %v1672_v13  ;;  %v1917_v8 = vpack.c.bf16 %v1912_v60, %v1912_v60  ;;  %v1802_v55 = vpop.permute.xlu2 %1801 }
 0x1ff   :  { %v1687_v7 = vsel %vm266_vm11, %v1677_v31, 0  ;;  %v1690_v33 = vsel %vm266_vm11, %v1678_v27, 0  ;;  %v2440_v27 = vshrl.u32 %v8083_v50, 16  ;;  %v2432_v50 = vshrl.u32 %v8077_v10, 16 }
 0x200   :  { %1715 = vmatpush.bf16.msrb.mxu1 %v1687_v7  ;;  %1728 = vmatpush.bf16.msrb.mxu2 %v1690_v33 }
 0x203   :  { %7118 = vrot.lane.b32.xlu0 %v7117_v57, %s7273_s26  ;;  %7113 = vrot.lane.b32.xlu2 %v7112_v17, %s7273_s26  ;;  %v1674_v49 = vpop.permute.xlu0 %1673  ;;  %v8152_v57 = vpack.i.b16 %v2436_v58, %v2436_v58 }
 0x204   :  { %v1679_v56 = vsel %vm10158_vm15, %v1672_v13, %v1674_v49  ;;  %v8154_v13 = vpack.i.b16 %v2440_v27, %v2440_v27 }
 0x205   :  { %v1693_v32 = vsel %vm266_vm11, %v1679_v56, 0  ;;  %1930 = vrot.lane.b32.xlu1 %v1917_v8, %s7272_s20  ;;  %v1666_v16 = vpop.permute.xlu1 %1665  ;;  %v2444_v8 = vshrl.u32 %v8079_v43, 16 }
 0x206   :  { %v1676_v59 = vsel %vm10158_vm15, %v1666_v16, %v1668_v9  ;;  %1741 = vmatpush.bf16.msrb.mxu3 %v1693_v32  ;;  %v2439_v9 = vperm.slane %v8152_v57, 0  ;;  %v2443_v49 = vperm.slane %v8154_v13, 0  ;;  %vm10169_vm15 = vcmask 457728  }
 0x207   :  { %v1684_v31 = vsel %vm266_vm11, %v1676_v59, 0 }
 0x208   :  { %1702 = vmatpush.bf16.msrb.mxu0 %v1684_v31  ;;  %v1798_v31 = vpop.permute.xlu2 %1797 }
 0x20b   :  { %v7094_v7 = vpop.permute.xlu0 %7093 }
 0x20c   :  { %v7096_v56 = vunpack.i.h.bf16 %v7094_v7  ;;  %v7095_v33 = vunpack.i.l.bf16 %v7094_v7 }
 0x20d   :  { %v7099_v17 = vpop.permute.xlu1 %7098 }
 0x20e   :  { %v8156_v60 = vunpack.i.l.bf16 %v7099_v17  ;;  %v8160_v3 = vsel %vm2034_vm9, %v7095_v33, %v7096_v56  ;;  %v8165_v32 = vunpack.i.h.bf16 %v7099_v17  ;;  %v2449_v17 = vunpack.c.l.bf16 %v2439_v9 }
 0x20f   :  { %10274 = vst [vmem:[#allocation58_spill] sm:$0xff] %v8160_v3  ;;  %v2045_v16 = vmul.f32 %v8160_v3, %v7470_v62  ;;  %v2450_v3 = vunpack.c.l.bf16 %v2443_v49 }
 0x210   :  { %10273 = vst [vmem:[#allocation57_spill] sm:$0xff] %v8156_v60  ;;  %v2047_v59 = vmul.f32 %v8156_v60, %v7456_v51  ;;  %v8173_v58 = vsel %vm2034_vm9, %v7096_v56, %v8156_v60  ;;  %v8181_v38 = vsel %vm2034_vm9, %v8165_v32, %v7095_v33  ;;  %v8183_v56 = vpack.i.b16 %v2432_v50, %v2432_v50  ;;  %v7109_v54 = vpop.permute.xlu2 %7108 }
 0x211   :  { %10275 = vst [vmem:[#allocation59_spill] sm:$0xff] %v8165_v32  ;;  %v2046_v27 = vmul.f32 %v8173_v58, %v7472_v63  ;;  %v2050_v7 = vpack.c.bf16 %v2045_v16, %v2045_v16  ;;  %v8185_v60 = vpack.i.b16 %v2444_v8, %v2444_v8  ;;  %v2044_v33 = vmul.f32 %v8181_v38, %v7484_v6 }
 0x212   :  { %10276 = vst [vmem:[#allocation60_spill] sm:$0xff] %v8173_v58  ;;  %v2052_v10 = vpack.c.bf16 %v2047_v59, %v2047_v59  ;;  %v2043_v59 = vmul.f32 %v8165_v32, %v7482_v5  ;;  %v7122_v8 = vpack.i.bf16 %v2450_v3, %v2449_v17  ;;  %vm2166_vm9 = vcmask 654336  }
 0x213   :  { %v2051_v43 = vpack.c.bf16 %v2046_v27, %v2046_v27  ;;  %2064 = vrot.lane.b32.xlu1 %v2050_v7, %s7274_s27  ;;  %10277 = vst [vmem:[#allocation61_spill] sm:$0xff] %v8181_v38  ;;  %v2435_v7 = vperm.slane %v8183_v56, 0  ;;  %v2049_v37 = vpack.c.bf16 %v2044_v33, %v2044_v33 }
 0x214   :  { %2068 = vrot.lane.b32.xlu0 %v2052_v10, %s7274_s27  ;;  %v2447_v10 = vperm.slane %v8185_v60, 0 }
 0x215   :  { %2066 = vrot.lane.b32.xlu2 %v2051_v43, %s7274_s27  ;;  %v1806_v9 = vpop.permute.xlu1 %1805  ;;  %v2048_v43 = vpack.c.bf16 %v2043_v59, %v2043_v59 }
 0x216   :  { %v1804_v58 = vpop.permute.xlu0 %1803 }
 0x217   :  { %v1810_v16 = vsel %vm10169_vm15, %v1802_v55, %v1804_v58  ;;  %v1811_v27 = vsel %vm10169_vm15, %v1804_v58, %v1806_v9  ;;  %v2448_v58 = vunpack.c.l.bf16 %v2435_v7 }
 0x218   :  { %v1822_v49 = vsel %vm266_vm11, %v1810_v16, 0  ;;  %v1825_v50 = vsel %vm266_vm11, %v1811_v27, 0  ;;  %v2451_v16 = vunpack.c.l.bf16 %v2447_v10  ;;  %v8200_v27 = vunpack.i.l.bf16 %v7109_v54 }
 0x219   :  { %1860 = vmatpush.bf16.msra.mxu2 %v1822_v49  ;;  %1873 = vmatpush.bf16.msra.mxu3 %v1825_v50  ;;  %v8217_v10 = vunpack.i.h.bf16 %v7109_v54 }
 0x21a   :  { %10278 = vst [vmem:[#allocation62_spill] sm:$0xff] %v8200_v27 }
 0x21b   :  { %2060 = vrot.lane.b32.xlu1 %v2048_v43, %s7274_s27  ;;  %10281 = vst [vmem:[#allocation65_spill] sm:$0xff] %v8217_v10  ;;  %v2175_v54 = vmul.f32 %v8217_v10, %v7482_v5 }
 0x21c   :  { %7123 = vrot.lane.b32.xlu0 %v7122_v8, %s7275_s14  ;;  %v7127_v8 = vpack.i.bf16 %v2448_v58, %v2451_v16  ;;  %v2179_v16 = vmul.f32 %v8200_v27, %v7456_v51 }
 0x21d   :  { %2062 = vrot.lane.b32.xlu2 %v2049_v37, %s7274_s27  ;;  %v7104_v49 = vpop.permute.xlu1 %7103 }
 0x21e   :  { %v1800_v9 = vpop.permute.xlu0 %1799  ;;  %v7106_v59 = vunpack.i.h.bf16 %v7104_v49  ;;  %v7105_v50 = vunpack.i.l.bf16 %v7104_v49  ;;  %v2184_v49 = vpack.c.bf16 %v2179_v16, %v2179_v16  ;;  %v314_v16 = vpop.f32.mrf.mxu2 }
 0x21f   :  { %v1808_v3 = vsel %vm10169_vm15, %v1798_v31, %v1800_v9  ;;  %v1809_v17 = vsel %vm10169_vm15, %v1800_v9, %v1802_v55  ;;  %vm10185_vm15 = vcmask 449536  }
 0x220   :  { %v1816_v33 = vsel %vm266_vm11, %v1808_v3, 0  ;;  %v1819_v43 = vsel %vm266_vm11, %v1809_v17, 0  ;;  %v8208_v37 = vsel %vm2166_vm9, %v7106_v59, %v8200_v27  ;;  %v8211_v7 = vsel %vm2166_vm9, %v7105_v50, %v7106_v59  ;;  %v6715_v27 = vld [vmem:[%s10112_s1 + $0x30] sm:$0xf] }
 0x221   :  { %1834 = vmatpush.bf16.msra.mxu0 %v1816_v33  ;;  %1847 = vmatpush.bf16.msra.mxu1 %v1819_v43  ;;  %10279 = vst [vmem:[#allocation63_spill] sm:$0xff] %v8208_v37  ;;  %v2178_v55 = vmul.f32 %v8208_v37, %v7472_v63  ;;  %v2177_v31 = vmul.f32 %v8211_v7, %v7470_v62  ;;  %v6710_v33 = vld [vmem:[%s10112_s1 + $0x2c] sm:$0xf] }
 0x222   :  { %10280 = vst [vmem:[#allocation64_spill] sm:$0xff] %v8211_v7  ;;  %v8221_v58 = vsel %vm2166_vm9, %v8217_v10, %v7105_v50  ;;  %v2180_v50 = vpack.c.bf16 %v2175_v54, %v2175_v54  ;;  %6713 = vmatmul.msk.bf16.vlgmr.msrb.gmra.mxu2 %vm262_vm3, %v6710_v33  ;;  %6714 = vmatmul.msk.bf16.vlgmr.msrb.gmra.mxu3 %vm262_vm3, %v6710_v33  ;;  %vm2320_vm9 = vcmask 662528   ;;  %v327_v54 = vpop.f32.mrf.mxu3 }
 0x223   :  { %7128 = vrot.lane.b32.xlu1 %v7127_v8, %s7275_s14  ;;  %v2183_v9 = vpack.c.bf16 %v2178_v55, %v2178_v55  ;;  %v2182_v3 = vpack.c.bf16 %v2177_v31, %v2177_v31  ;;  %10282 = vst [vmem:[#allocation66_spill] sm:$0xff] %v8221_v58  ;;  %v2176_v17 = vmul.f32 %v8221_v58, %v7484_v6  ;;  %s7277_s14 = smov 47  }
 0x224   :  { %6711 = vmatmul.msk.bf16.vlgmr.msrb.gmra.mxu0 %vm262_vm3, %v6710_v33  ;;  %6712 = vmatmul.msk.bf16.vlgmr.msrb.gmra.mxu1 %vm262_vm3, %v6710_v33 }
 0x225   :  { %2198 = vrot.lane.b32.xlu0 %v2183_v9, %s7276_s18  ;;  %2196 = vrot.lane.b32.xlu2 %v2182_v3, %s7276_s18  ;;  %v2181_v59 = vpack.c.bf16 %v2176_v17, %v2176_v17  ;;  %v301_v3 = vpop.f32.mrf.mxu1 }
 0x226   :  { %v316_v58 = vpop.f32.mrf.mxu2 }
 0x22b   :  { %2200 = vrot.lane.b32.xlu1 %v2184_v49, %s7276_s18 }
 0x22d   :  { %2194 = vrot.lane.b32.xlu0 %v2181_v59, %s7276_s18  ;;  %2192 = vrot.lane.b32.xlu2 %v2180_v50, %s7276_s18  ;;  %v288_v50 = vpop.f32.mrf.mxu0  ;;  %v303_v33 = vpop.f32.mrf.mxu1 }
 0x232   :  { %6718 = vmatmul.msk.bf16.vlgmr.msra.gmra.mxu2 %vm262_vm3, %v6715_v27 }
 0x234   :  { %6717 = vmatmul.msk.bf16.vlgmr.msra.gmra.mxu1 %vm262_vm3, %v6715_v27 }
 0x235   :  { %v290_v33 = vpop.f32.mrf.mxu0  ;;  %6716 = vmatmul.msk.bf16.vlgmr.msra.gmra.mxu0 %vm262_vm3, %v6715_v27 }
 0x23d   :  { %v355_v20 = vpop.f32.mrf.mxu0 }
 0x255   :  { %v1937_v43 = vpop.permute.xlu2 %1936 }
 0x256   :  { %v1933_v59 = vpop.permute.xlu0 %1932 }
 0x25d   :  { %v8241_v8 = vpop.permute.xlu2 %7113 }
 0x25e   :  { %v7116_v55 = vunpack.i.h.bf16 %v8241_v8  ;;  %v10167_v31 = vunpack.i.l.bf16 %v8241_v8  ;;  %v10286_v22 = vunpack.i.l.bf16 %v8241_v8 }
 0x260   :  { %v8248_v9 = vsel %vm2320_vm9, %v10167_v31, %v7116_v55  ;;  %v329_v31 = vpop.f32.mrf.mxu3  ;;  %6719 = vmatmul.msk.bf16.vlgmr.msra.gmra.mxu3 %vm262_vm3, %v6715_v27  ;;  %v2666_v27 = vperm.slane %v8152_v57, 1 }
 0x261   :  { %10283 = vst [vmem:[#allocation67_spill] sm:$0xff] %v8248_v9  ;;  %v2331_v17 = vmul.f32 %v8248_v9, %v7470_v62  ;;  %v381_v31 = vpop.f32.mrf.mxu2 }
 0x262   :  { %v8264_v37 = vadd.f32 %v381_v31, %v314_v16 }
 0x263   :  { %v2336_v49 = vpack.c.bf16 %v2331_v17, %v2331_v17 }
 0x265   :  { %2350 = vrot.lane.b32.xlu1 %v2336_v49, %s7277_s14 }
 0x268   :  { %v394_v40 = vpop.f32.mrf.mxu3 }
 0x269   :  { %v383_v45 = vpop.f32.mrf.mxu2  ;;  %v395_v42 = vadd.f32 %v394_v40, %v327_v54 }
 0x26d   :  { %v1929_v9 = vpop.permute.xlu0 %1928 }
 0x26f   :  { %v1935_v17 = vpop.permute.xlu1 %1934 }
 0x270   :  { %v1941_v38 = vsel %vm10185_vm15, %v1933_v59, %v1935_v17  ;;  %v1942_v49 = vsel %vm10185_vm15, %v1935_v17, %v1937_v43  ;;  %v2665_v43 = vperm.slane %v8183_v56, 1  ;;  %v2668_v17 = vperm.slane %v8185_v60, 1  ;;  %v396_v54 = vpop.f32.mrf.mxu3 }
 0x271   :  { %v1953_v10 = vsel %vm266_vm11, %v1941_v38, 0  ;;  %v1956_v58 = vsel %vm266_vm11, %v1942_v49, 0  ;;  %v2667_v38 = vperm.slane %v8154_v13, 1 }
 0x272   :  { %1991 = vmatpush.bf16.msrb.mxu2 %v1953_v10  ;;  %2004 = vmatpush.bf16.msrb.mxu3 %v1956_v58  ;;  %v2670_v29 = vunpack.c.l.bf16 %v2665_v43 }
 0x275   :  { %v7119_v7 = vpop.permute.xlu0 %7118 }
 0x276   :  { %v8266_v32 = vunpack.i.h.bf16 %v7119_v7  ;;  %v8268_v24 = vunpack.i.l.bf16 %v7119_v7 }
 0x277   :  { %v1931_v12 = vpop.permute.xlu1 %1930 }
 0x278   :  { %10284 = vst [vmem:[#allocation68_spill] sm:$0xff] %v8266_v32  ;;  %v1939_v49 = vsel %vm10185_vm15, %v1929_v9, %v1931_v12  ;;  %v1940_v10 = vsel %vm10185_vm15, %v1931_v12, %v1933_v59  ;;  %v2329_v16 = vmul.f32 %v8266_v32, %v7482_v5  ;;  %v2333_v7 = vmul.f32 %v8268_v24, %v7456_v51  ;;  %v6720_v12 = vld [vmem:[%s10112_s1 + $0x34] sm:$0xf] }
 0x279   :  { %10285 = vst [vmem:[#allocation69_spill] sm:$0xff] %v8268_v24  ;;  %v1947_v33 = vsel %vm266_vm11, %v1939_v49, 0  ;;  %v1950_v58 = vsel %vm266_vm11, %v1940_v10, 0  ;;  %v8284_v31 = vsel %vm2320_vm9, %v7116_v55, %v8268_v24  ;;  %v368_v49 = vpop.f32.mrf.mxu1  ;;  %v2067_v10 = vpop.permute.xlu2 %2066  ;;  %v356_v55 = vadd.f32 %v355_v20, %v288_v50  ;;  %6723 = vmatmul.msk.bf16.vlgmr.msrb.gmra.mxu2 %vm262_vm3, %v6720_v12  ;;  %6724 = vmatmul.msk.bf16.vlgmr.msrb.gmra.mxu3 %vm262_vm3, %v6720_v12 }
 0x27a   :  { %1965 = vmatpush.bf16.msrb.mxu0 %v1947_v33  ;;  %1978 = vmatpush.bf16.msrb.mxu1 %v1950_v58  ;;  %v2334_v9 = vpack.c.bf16 %v2329_v16, %v2329_v16  ;;  %v2338_v59 = vpack.c.bf16 %v2333_v7, %v2333_v7  ;;  %v2332_v2 = vmul.f32 %v8284_v31, %v7472_v63  ;;  %v2673_v58 = vunpack.c.l.bf16 %v2668_v17 }
 0x27b   :  { %v369_v24 = vadd.f32 %v368_v49, %v301_v3  ;;  %v2671_v16 = vunpack.c.l.bf16 %v2666_v27  ;;  %v2672_v7 = vunpack.c.l.bf16 %v2667_v38  ;;  %v8298_v45 = vsel %vm2320_vm9, %v8266_v32, %v10286_v22 }
 0x27c   :  { %2346 = vrot.lane.b32.xlu1 %v2334_v9, %s7277_s14  ;;  %2354 = vrot.lane.b32.xlu0 %v2338_v59, %s7277_s14  ;;  %v2337_v33 = vpack.c.bf16 %v2332_v2, %v2332_v2  ;;  %10287 = vst [vmem:[#allocation70_spill] sm:$0xff] %v8298_v45  ;;  %v7137_v20 = vpack.i.bf16 %v2670_v29, %v2673_v58  ;;  %v357_v2 = vpop.f32.mrf.mxu0  ;;  %vm10186_vm9 = vcmask 441344   ;;  %vm2464_vm15 = vcmask 670720  }
 0x27d   :  { %v7132_v40 = vpack.i.bf16 %v2672_v7, %v2671_v16  ;;  %v2330_v3 = vmul.f32 %v8298_v45, %v7484_v6  ;;  %6721 = vmatmul.msk.bf16.vlgmr.msrb.gmra.mxu0 %vm262_vm3, %v6720_v12  ;;  %v509_v2 = vpop.f32.mrf.mxu2 }
 0x27e   :  { %2352 = vrot.lane.b32.xlu2 %v2337_v33, %s7277_s14 }
 0x27f   :  { %v2335_v22 = vpack.c.bf16 %v2330_v3, %v2330_v3 }
 0x281   :  { %v370_v50 = vpop.f32.mrf.mxu1  ;;  %6722 = vmatmul.msk.bf16.vlgmr.msrb.gmra.mxu1 %vm262_vm3, %v6720_v12  ;;  %v2063_v29 = vpop.permute.xlu2 %2062 }
 0x282   :  { %v522_v50 = vpop.f32.mrf.mxu3 }
 0x284   :  { %7138 = vrot.lane.b32.xlu1 %v7137_v20, %s7246_s16  ;;  %7133 = vrot.lane.b32.xlu0 %v7132_v40, %s7246_s16  ;;  %v483_v20 = vpop.f32.mrf.mxu0  ;;  %s10197_s16 = smov 46  }
 0x285   :  { %v2065_v8 = vpop.permute.xlu1 %2064  ;;  %v526_v3 = vadd.f32 %v483_v20, %v356_v55  ;;  %v2798_v55 = vperm.slane %v8099_v21, 2 }
 0x286   :  { %2348 = vrot.lane.b32.xlu2 %v2335_v22, %s7277_s14  ;;  %v2069_v43 = vpop.permute.xlu0 %2068  ;;  %v2072_v17 = vsel %vm10186_vm9, %v2063_v29, %v2065_v8  ;;  %v2073_v27 = vsel %vm10186_vm9, %v2065_v8, %v2067_v10  ;;  %v528_v8 = vadd.f32 %v509_v2, %v8264_v37  ;;  %v2799_v37 = vperm.slane %v8091_v30, 2 }
 0x287   :  { %v2074_v38 = vsel %vm10186_vm9, %v2067_v10, %v2069_v43  ;;  %v2082_v12 = vsel %vm266_vm11, %v2072_v17, 0  ;;  %v2085_v59 = vsel %vm266_vm11, %v2073_v27, 0  ;;  %v529_v43 = vadd.f32 %v522_v50, %v395_v42 }
 0x288   :  { %v2088_v9 = vsel %vm266_vm11, %v2074_v38, 0  ;;  %2110 = vmatpush.bf16.msra.mxu1 %v2082_v12  ;;  %2123 = vmatpush.bf16.msra.mxu2 %v2085_v59  ;;  %v2796_v42 = vperm.slane %v8087_v25, 2 }
 0x289   :  { %2136 = vmatpush.bf16.msra.mxu3 %v2088_v9  ;;  %v496_v40 = vpop.f32.mrf.mxu1  ;;  %v2197_v17 = vpop.permute.xlu2 %2196 }
 0x28a   :  { %v527_v54 = vadd.f32 %v496_v40, %v369_v24  ;;  %v2797_v24 = vperm.slane %v8095_v23, 2  ;;  %v524_v50 = vpop.f32.mrf.mxu3  ;;  %v2800_v32 = vunpack.c.l.bf16 %v2796_v42 }
 0x28c   :  { %v485_v59 = vpop.f32.mrf.mxu0 }
 0x28d   :  { %v2061_v49 = vpop.permute.xlu1 %2060  ;;  %v2802_v59 = vunpack.c.l.bf16 %v2798_v55 }
 0x28e   :  { %v7124_v33 = vpop.permute.xlu0 %7123  ;;  %v2071_v58 = vsel %vm10186_vm9, %v2061_v49, %v2063_v29  ;;  %vm2202_vm9 = vcmask 392192  }
 0x28f   :  { %v7126_v16 = vunpack.i.h.bf16 %v7124_v33  ;;  %v7125_v7 = vunpack.i.l.bf16 %v7124_v33  ;;  %v2079_v10 = vsel %vm266_vm11, %v2071_v58, 0  ;;  %v511_v58 = vpop.f32.mrf.mxu2 }
 0x290   :  { %2097 = vmatpush.bf16.msra.mxu0 %v2079_v10 }
 0x291   :  { %v8318_v22 = vsel %vm2464_vm15, %v7125_v7, %v7126_v16  ;;  %v498_v49 = vpop.f32.mrf.mxu1 }
 0x292   :  { %10288 = vst [vmem:[#allocation71_spill] sm:$0xff] %v8318_v22  ;;  %v2475_v29 = vmul.f32 %v8318_v22, %v7470_v62  ;;  %v2803_v22 = vunpack.c.l.bf16 %v2799_v37  ;;  %v2929_v37 = vperm.slane %v8185_v60, 2 }
 0x294   :  { %v2480_v27 = vpack.c.bf16 %v2475_v29, %v2475_v29  ;;  %v7147_v42 = vpack.i.bf16 %v2800_v32, %v2803_v22  ;;  %v2927_v32 = vperm.slane %v8152_v57, 2 }
 0x295   :  { %v7129_v38 = vpop.permute.xlu1 %7128 }
 0x296   :  { %2494 = vrot.lane.b32.xlu2 %v2480_v27, %s10197_s16  ;;  %v8326_v9 = vunpack.i.h.bf16 %v7129_v38  ;;  %v8328_v12 = vunpack.i.l.bf16 %v7129_v38  ;;  %v2801_v38 = vunpack.c.l.bf16 %v2797_v24  ;;  %v2926_v24 = vperm.slane %v8183_v56, 2 }
 0x297   :  { %v2199_v33 = vpop.permute.xlu0 %2198 }
 0x298   :  { %10289 = vst [vmem:[#allocation72_spill] sm:$0xff] %v8326_v9  ;;  %v2205_v20 = vsel %vm2202_vm9, %v2197_v17, %v2199_v33  ;;  %v2477_v40 = vmul.f32 %v8328_v12, %v7456_v51  ;;  %v8337_v10 = vsel %vm2464_vm15, %v7126_v16, %v8328_v12  ;;  %v2473_v2 = vmul.f32 %v8326_v9, %v7482_v5  ;;  %v2193_v5 = vpop.permute.xlu2 %2192 }
 0x299   :  { %10290 = vst [vmem:[#allocation73_spill] sm:$0xff] %v8337_v10  ;;  %v2217_v29 = vsel %vm266_vm11, %v2205_v20, 0  ;;  %v2476_v27 = vmul.f32 %v8337_v10, %v7472_v63  ;;  %v8347_v16 = vsel %vm2464_vm15, %v8326_v9, %v7125_v7  ;;  %v7142_v20 = vpack.i.bf16 %v2802_v59, %v2801_v38  ;;  %v640_v10 = vpop.f32.mrf.mxu2 }
 0x29a   :  { %2255 = vmatpush.bf16.msrb.mxu2 %v2217_v29  ;;  %v2482_v49 = vpack.c.bf16 %v2477_v40, %v2477_v40  ;;  %v2478_v58 = vpack.c.bf16 %v2473_v2, %v2473_v2  ;;  %10291 = vst [vmem:[#allocation74_spill] sm:$0xff] %v8347_v16  ;;  %v614_v40 = vpop.f32.mrf.mxu0  ;;  %v627_v2 = vpop.f32.mrf.mxu1  ;;  %v659_v22 = vadd.f32 %v640_v10, %v528_v8  ;;  %v2931_v8 = vunpack.c.l.bf16 %v2927_v32 }
 0x29b   :  { %v2481_v45 = vpack.c.bf16 %v2476_v27, %v2476_v27  ;;  %v2474_v27 = vmul.f32 %v8347_v16, %v7484_v6  ;;  %vm2356_vm15 = vcmask 384000  }
 0x29c   :  { %2498 = vrot.lane.b32.xlu1 %v2482_v49, %s10197_s16  ;;  %v657_v49 = vadd.f32 %v614_v40, %v526_v3 }
 0x29d   :  { %v2201_v50 = vpop.permute.xlu1 %2200  ;;  %2496 = vrot.lane.b32.xlu0 %v2481_v45, %s10197_s16  ;;  %v658_v45 = vadd.f32 %v627_v2, %v527_v54  ;;  %v2479_v3 = vpack.c.bf16 %v2474_v27, %v2474_v27  ;;  %v2930_v54 = vunpack.c.l.bf16 %v2926_v24  ;;  %v6725_v24 = vld [vmem:[%s10112_s1 + $0x38] sm:$0xf] }
 0x29e   :  { %2490 = vrot.lane.b32.xlu2 %v2478_v58, %s10197_s16  ;;  %v2206_v55 = vsel %vm2202_vm9, %v2199_v33, %v2201_v50  ;;  %v653_v33 = vpop.f32.mrf.mxu3  ;;  %v2928_v50 = vperm.slane %v8154_v13, 2  ;;  %6728 = vmatmul.msk.bf16.vlgmr.msra.gmra.mxu2 %vm262_vm3, %v6725_v24 }
 0x29f   :  { %v2220_v29 = vsel %vm266_vm11, %v2206_v55, 0  ;;  %v2195_v7 = vpop.permute.xlu0 %2194  ;;  %v660_v55 = vadd.f32 %v653_v33, %v529_v43  ;;  %6727 = vmatmul.msk.bf16.vlgmr.msra.gmra.mxu1 %vm262_vm3, %v6725_v24  ;;  %6726 = vmatmul.msk.bf16.vlgmr.msra.gmra.mxu0 %vm262_vm3, %v6725_v24 }
 0x2a0   :  { %v2203_v58 = vsel %vm2202_vm9, %v2193_v5, %v2195_v7  ;;  %v2204_v9 = vsel %vm2202_vm9, %v2195_v7, %v2197_v17  ;;  %2268 = vmatpush.bf16.msrb.mxu3 %v2220_v29  ;;  %v2933_v5 = vunpack.c.l.bf16 %v2929_v37  ;;  %v2932_v17 = vunpack.c.l.bf16 %v2928_v50 }
 0x2a1   :  { %v2211_v38 = vsel %vm266_vm11, %v2203_v58, 0  ;;  %v2214_v59 = vsel %vm266_vm11, %v2204_v9, 0  ;;  %v642_v2 = vpop.f32.mrf.mxu2  ;;  %6729 = vmatmul.msk.bf16.vlgmr.msra.gmra.mxu3 %vm262_vm3, %v6725_v24 }
 0x2a2   :  { %2229 = vmatpush.bf16.msrb.mxu0 %v2211_v38  ;;  %2242 = vmatpush.bf16.msrb.mxu1 %v2214_v59  ;;  %v616_v10 = vpop.f32.mrf.mxu0  ;;  %v629_v40 = vpop.f32.mrf.mxu1  ;;  %v7157_v9 = vpack.i.bf16 %v2930_v54, %v2933_v5  ;;  %v7152_v7 = vpack.i.bf16 %v2932_v17, %v2931_v8 }
 0x2a4   :  { %7143 = vrot.lane.b32.xlu1 %v7142_v20, %s7248_s22 }
 0x2a5   :  { %2492 = vrot.lane.b32.xlu0 %v2479_v3, %s10197_s16 }
 0x2a6   :  { %7148 = vrot.lane.b32.xlu2 %v7147_v42, %s7248_s22  ;;  %v655_v29 = vpop.f32.mrf.mxu3 }
 0x2a9   :  { %v772_v37 = vpop.f32.mrf.mxu2 }
 0x2aa   :  { %v746_v43 = vpop.f32.mrf.mxu0  ;;  %v759_v20 = vpop.f32.mrf.mxu1  ;;  %v791_v38 = vadd.f32 %v772_v37, %v659_v22 }
 0x2ab   :  { %v789_v42 = vadd.f32 %v746_v43, %v657_v49  ;;  %v790_v27 = vadd.f32 %v759_v20, %v658_v45 }
 0x2ac   :  { %7158 = vrot.lane.b32.xlu1 %v7157_v9, %s7252_s30 }
 0x2ad   :  { %7153 = vrot.lane.b32.xlu0 %v7152_v7, %s7252_s30 }
 0x2ae   :  { %v785_v58 = vpop.f32.mrf.mxu3 }
 0x2af   :  { %v792_v50 = vadd.f32 %v785_v58, %v660_v55 }
 0x2b1   :  { %v774_v59 = vpop.f32.mrf.mxu2 }
 0x2b2   :  { %v748_v32 = vpop.f32.mrf.mxu0  ;;  %v761_v33 = vpop.f32.mrf.mxu1 }
 0x2b6   :  { %v787_v3 = vpop.f32.mrf.mxu3 }
 0x2b9   :  { %v904_v8 = vpop.f32.mrf.mxu2 }
 0x2ba   :  { %v878_v54 = vpop.f32.mrf.mxu0  ;;  %v891_v5 = vpop.f32.mrf.mxu1  ;;  %v923_v45 = vadd.f32 %v904_v8, %v791_v38 }
 0x2bb   :  { %v921_v2 = vadd.f32 %v878_v54, %v789_v42  ;;  %v922_v49 = vadd.f32 %v891_v5, %v790_v27  ;;  %v6730_v5 = vld [vmem:[%s10112_s1 + $0x3c] sm:$0xf] }
 0x2bc   :  { %6733 = vmatmul.msk.bf16.vlgmr.msrb.gmra.mxu2 %vm262_vm3, %v6730_v5  ;;  %6734 = vmatmul.msk.bf16.vlgmr.msrb.gmra.mxu3 %vm262_vm3, %v6730_v5 }
 0x2bd   :  { %6731 = vmatmul.msk.bf16.vlgmr.msrb.gmra.mxu0 %vm262_vm3, %v6730_v5  ;;  %6732 = vmatmul.msk.bf16.vlgmr.msrb.gmra.mxu1 %vm262_vm3, %v6730_v5 }
 0x2be   :  { %v917_v17 = vpop.f32.mrf.mxu3 }
 0x2bf   :  { %v924_v9 = vadd.f32 %v917_v17, %v792_v50 }
 0x2c1   :  { %v906_v29 = vpop.f32.mrf.mxu2 }
 0x2c2   :  { %v880_v10 = vpop.f32.mrf.mxu0  ;;  %v893_v40 = vpop.f32.mrf.mxu1 }
 0x2c6   :  { %v919_v7 = vpop.f32.mrf.mxu3 }
 0x2c9   :  { %v1036_v37 = vpop.f32.mrf.mxu2 }
 0x2ca   :  { %v1010_v20 = vpop.f32.mrf.mxu0  ;;  %v1023_v22 = vpop.f32.mrf.mxu1  ;;  %v1055_v3 = vadd.f32 %v1036_v37, %v923_v45 }
 0x2cb   :  { %v1053_v33 = vadd.f32 %v1010_v20, %v921_v2  ;;  %v1054_v59 = vadd.f32 %v1023_v22, %v922_v49 }
 0x2ce   :  { %v1049_v32 = vpop.f32.mrf.mxu3 }
 0x2cf   :  { %v1056_v54 = vadd.f32 %v1049_v32, %v924_v9 }
 0x2d1   :  { %v1038_v8 = vpop.f32.mrf.mxu2 }
 0x2d2   :  { %v1012_v42 = vpop.f32.mrf.mxu0  ;;  %v1025_v38 = vpop.f32.mrf.mxu1 }
 0x2d6   :  { %v1051_v10 = vpop.f32.mrf.mxu3 }
 0x2d7   :  { %v2351_v43 = vpop.permute.xlu1 %2350  ;;  %v3057_v10 = vperm.slane %v8095_v23, 3 }
 0x2d8   :  { %v2353_v24 = vpop.permute.xlu2 %2352 }
 0x2d9   :  { %v2359_v55 = vsel %vm2356_vm15, %v2351_v43, %v2353_v24  ;;  %v1168_v49 = vpop.f32.mrf.mxu2 }
 0x2da   :  { %v2371_v58 = vsel %vm266_vm11, %v2359_v55, 0  ;;  %v1142_v40 = vpop.f32.mrf.mxu0  ;;  %v1155_v2 = vpop.f32.mrf.mxu1  ;;  %v1187_v42 = vadd.f32 %v1168_v49, %v1055_v3  ;;  %v8400_v3 = vunpack.c.l.bf16 %v7450_v35 }
 0x2db   :  { %2409 = vmatpush.bf16.msra.mxu2 %v2371_v58  ;;  %v1185_v7 = vadd.f32 %v1142_v40, %v1053_v33  ;;  %v6735_v33 = vld [vmem:[%s10112_s1 + $0x40] sm:$0xf]  ;;  %v3058_v40 = vperm.slane %v8099_v21, 3 }
 0x2de   :  { %v1181_v45 = vpop.f32.mrf.mxu3  ;;  %6738 = vmatmul.msk.bf16.vlgmr.msra.gmra.mxu2 %vm262_vm3, %v6735_v33 }
 0x2df   :  { %v1188_v38 = vadd.f32 %v1181_v45, %v1056_v54 }
 0x2e0   :  { %v2349_v27 = vpop.permute.xlu2 %2348 }
 0x2e1   :  { %v2358_v50 = vsel %vm2356_vm15, %v2349_v27, %v2351_v43  ;;  %v1186_v43 = vadd.f32 %v1155_v2, %v1054_v59 }
 0x2e2   :  { %v2368_v17 = vsel %vm266_vm11, %v2358_v50, 0  ;;  %v1144_v55 = vpop.f32.mrf.mxu0  ;;  %v1157_v32 = vpop.f32.mrf.mxu1 }
 0x2e3   :  { %2396 = vmatpush.bf16.msra.mxu1 %v2368_v17  ;;  %v1170_v50 = vpop.f32.mrf.mxu2 }
 0x2e6   :  { %v1183_v59 = vpop.f32.mrf.mxu3  ;;  %6737 = vmatmul.msk.bf16.vlgmr.msra.gmra.mxu1 %vm262_vm3, %v6735_v33 }
 0x2ea   :  { %v1296_v50 = vpop.f32.mrf.mxu0 }
 0x2ee   :  { %v2347_v9 = vpop.permute.xlu1 %2346  ;;  %v2355_v29 = vpop.permute.xlu0 %2354 }
 0x2ef   :  { %v2357_v20 = vsel %vm2356_vm15, %v2347_v9, %v2349_v27  ;;  %v2360_v22 = vsel %vm2356_vm15, %v2353_v24, %v2355_v29 }
 0x2f0   :  { %v2365_v37 = vsel %vm266_vm11, %v2357_v20, 0  ;;  %v2374_v58 = vsel %vm266_vm11, %v2360_v22, 0  ;;  %v8395_v24 = vpop.permute.xlu2 %2494 }
 0x2f1   :  { %2383 = vmatpush.bf16.msra.mxu0 %v2365_v37  ;;  %2422 = vmatpush.bf16.msra.mxu3 %v2374_v58  ;;  %v3061_v37 = vunpack.c.l.bf16 %v3057_v10  ;;  %v3062_v58 = vunpack.c.l.bf16 %v3058_v40  ;;  %v1322_v40 = vpop.f32.mrf.mxu2 }
 0x2f4   :  { %6739 = vmatmul.msk.bf16.vlgmr.msra.gmra.mxu3 %vm262_vm3, %v6735_v33  ;;  %6736 = vmatmul.msk.bf16.vlgmr.msra.gmra.mxu0 %vm262_vm3, %v6735_v33  ;;  %v1309_v33 = vpop.f32.mrf.mxu1 }
 0x2f6   :  { %v7139_v27 = vpop.permute.xlu1 %7138  ;;  %v7134_v5 = vpop.permute.xlu0 %7133 }
 0x2f7   :  { %v8402_v54 = vunpack.i.l.bf16 %v7139_v27  ;;  %v7136_v8 = vunpack.i.h.bf16 %v7134_v5  ;;  %v7135_v17 = vunpack.i.l.bf16 %v7134_v5  ;;  %v8406_v2 = vunpack.i.h.bf16 %v7139_v27 }
 0x2f8   :  { %v8428_v59 = vpop.permute.xlu2 %2490  ;;  %v1339_v27 = vadd.f32 %v1296_v50, %v1185_v7  ;;  %v1340_v5 = vadd.f32 %v1309_v33, %v1186_v43 }
 0x2f9   :  { %10292 = vst [vmem:[#allocation75_spill] sm:$0xff] %v8402_v54  ;;  %v2698_v49 = vmul.f32 %v8402_v54, %v8400_v3  ;;  %v8412_v45 = vsel %vm10195_vm1, %v7136_v8, %v8402_v54  ;;  %v8415_v35 = vsel %vm10195_vm1, %v7135_v17, %v7136_v8  ;;  %v8424_v32 = vsel %vm10195_vm1, %v8406_v2, %v7135_v17  ;;  %v1298_v54 = vpop.f32.mrf.mxu0  ;;  %v1324_v16 = vpop.f32.mrf.mxu2 }
 0x2fa   :  { %10293 = vst [vmem:[#allocation76_spill] sm:$0xff] %v8406_v2  ;;  %v2697_v9 = vmul.f32 %v8412_v45, %v7456_v51  ;;  %v2696_v29 = vmul.f32 %v8415_v35, %v7472_v63  ;;  %v2695_v8 = vmul.f32 %v8424_v32, %v7470_v62  ;;  %v2694_v10 = vmul.f32 %v8406_v2, %v7484_v6 }
 0x2fb   :  { %v2703_v20 = vpack.c.bf16 %v2698_v49, %v2698_v49  ;;  %10294 = vst [vmem:[#allocation77_spill] sm:$0xff] %v8424_v32  ;;  %v7162_v49 = vpack.i.bf16 %v3062_v58, %v3061_v37  ;;  %v3056_v17 = vperm.slane %v8087_v25, 3  ;;  %vm2500_vm1 = vcmask 375808  }
 0x2fc   :  { %v2702_v22 = vpack.c.bf16 %v2697_v9, %v2697_v9  ;;  %v2701_v55 = vpack.c.bf16 %v2696_v29, %v2696_v29  ;;  %v3059_v9 = vperm.slane %v8091_v30, 3  ;;  %v2579_v29 = vperm.slane %v8091_v30, 1  ;;  %v1311_v32 = vpop.f32.mrf.mxu1 }
 0x2fd   :  { %2719 = vrot.lane.b32.xlu1 %v2703_v20, %s7256_s7  ;;  %v1335_v20 = vpop.f32.mrf.mxu3  ;;  %v2700_v43 = vpack.c.bf16 %v2695_v8, %v2695_v8  ;;  %v2699_v50 = vpack.c.bf16 %v2694_v10, %v2694_v10  ;;  %v3060_v37 = vunpack.c.l.bf16 %v3056_v17  ;;  %v2576_v8 = vperm.slane %v8087_v25, 1 }
 0x2fe   :  { %2717 = vrot.lane.b32.xlu0 %v2702_v22, %s7256_s7  ;;  %2715 = vrot.lane.b32.xlu2 %v2701_v55, %s7256_s7  ;;  %v2578_v22 = vperm.slane %v8099_v21, 1  ;;  %v1341_v55 = vadd.f32 %v1322_v40, %v1187_v42  ;;  %v1342_v7 = vadd.f32 %v1335_v20, %v1188_v38  ;;  %v3063_v58 = vunpack.c.l.bf16 %v3059_v9 }
 0x2ff   :  { %v8441_v33 = vunpack.c.l.bf16 %v2579_v29  ;;  %v8457_v32 = vunpack.c.l.bf16 %v2576_v8  ;;  %v3188_v8 = vperm.slane %v8154_v13, 3  ;;  %v6740_v13 = vld [vmem:[%s10112_s1 + $0x44] sm:$0xf] }
 0x300   :  { %v8443_v30 = vunpack.c.l.bf16 %v2578_v22  ;;  %v8445_v21 = vpop.permute.xlu2 %7148  ;;  %v7167_v42 = vpack.i.bf16 %v3060_v37, %v3063_v58  ;;  %v3187_v37 = vperm.slane %v8152_v57, 3 }
 0x301   :  { %10295 = vst [vmem:[#allocation78_spill] sm:$0xff] %v8441_v33  ;;  %v2587_v38 = vmul.f32 %v8441_v33, %v7456_v51  ;;  %v8454_v54 = vunpack.i.l.bf16 %v8445_v21  ;;  %v1440_v17 = vpop.f32.mrf.mxu0  ;;  %v1466_v58 = vpop.f32.mrf.mxu2 }
 0x302   :  { %10296 = vst [vmem:[#allocation79_spill] sm:$0xff] %v8443_v30  ;;  %v2586_v40 = vmul.f32 %v8443_v30, %v7472_v63  ;;  %v8461_v22 = vadd.f32 %v1440_v17, %v1339_v27  ;;  %v2584_v17 = vmul.f32 %v8457_v32, %v7484_v6 }
 0x303   :  { %10297 = vst [vmem:[#allocation80_spill] sm:$0xff] %v8454_v54  ;;  %v2591_v16 = vpack.c.bf16 %v2587_v38, %v2587_v38 }
 0x304   :  { %10298 = vst [vmem:[#allocation81_spill] sm:$0xff] %v8457_v32  ;;  %v1453_v9 = vpop.f32.mrf.mxu1  ;;  %v2590_v20 = vpack.c.bf16 %v2586_v40, %v2586_v40 }
 0x305   :  { %7163 = vrot.lane.b32.xlu1 %v7162_v49, %s7249_s23  ;;  %v1337_v10 = vpop.f32.mrf.mxu3  ;;  %v2577_v49 = vperm.slane %v8095_v23, 1  ;;  %v2607_v40 = vsel %vm266_vm11, %v2591_v16, 0 }
 0x306   :  { %2713 = vrot.lane.b32.xlu0 %v2700_v43, %s7256_s7  ;;  %2711 = vrot.lane.b32.xlu2 %v2699_v50, %s7256_s7  ;;  %v8463_v43 = vadd.f32 %v1453_v9, %v1340_v5  ;;  %v2828_v50 = vmul.f32 %v8454_v54, %v8400_v3  ;;  %v8472_v10 = vadd.f32 %v1466_v58, %v1341_v55  ;;  %v2604_v57 = vsel %vm266_vm11, %v2590_v20, 0 }
 0x307   :  { %v8459_v25 = vunpack.c.l.bf16 %v2577_v49 }
 0x308   :  { %v2833_v16 = vpack.c.bf16 %v2828_v50, %v2828_v50 }
 0x309   :  { %10299 = vst [vmem:[#allocation82_spill] sm:$0xff] %v8459_v25  ;;  %v2585_v9 = vmul.f32 %v8459_v25, %v7470_v62  ;;  %v1442_v20 = vpop.f32.mrf.mxu0 }
 0x30c   :  { %v1455_v58 = vpop.f32.mrf.mxu1 }
 0x30d   :  { %v1479_v49 = vpop.f32.mrf.mxu3 }
 0x30e   :  { %7168 = vrot.lane.b32.xlu2 %v7167_v42, %s7249_s23  ;;  %v2499_v29 = vpop.permute.xlu1 %2498  ;;  %v8485_v55 = vadd.f32 %v1479_v49, %v1342_v7  ;;  %v1468_v49 = vpop.f32.mrf.mxu2 }
 0x30f   :  { %v2497_v23 = vpop.permute.xlu0 %2496 }
 0x310   :  { %v2503_v42 = vsel %vm2500_vm1, %v8395_v24, %v2497_v23  ;;  %v2504_v38 = vsel %vm2500_vm1, %v2497_v23, %v2499_v29  ;;  %v3191_v29 = vunpack.c.l.bf16 %v3187_v37  ;;  %v3192_v23 = vunpack.c.l.bf16 %v3188_v8 }
 0x311   :  { %v2515_v27 = vsel %vm266_vm11, %v2503_v42, 0  ;;  %v2518_v5 = vsel %vm266_vm11, %v2504_v38, 0  ;;  %v2588_v38 = vpack.c.bf16 %v2584_v17, %v2584_v17 }
 0x312   :  { %2553 = vmatpush.bf16.msrb.mxu2 %v2515_v27  ;;  %2566 = vmatpush.bf16.msrb.mxu3 %v2518_v5  ;;  %v2589_v27 = vpack.c.bf16 %v2585_v9, %v2585_v9  ;;  %v7172_v8 = vpack.i.bf16 %v3192_v23, %v3191_v29  ;;  %v8510_v23 = vunpack.i.h.bf16 %v8445_v21 }
 0x314   :  { %v2601_v20 = vsel %vm266_vm11, %v2589_v27, 0  ;;  %10302 = vst [vmem:[#allocation85_spill] sm:$0xff] %v8510_v23  ;;  %v1572_v27 = vpop.f32.mrf.mxu0 }
 0x315   :  { %6743 = vmatmul.msk.bf16.vlgmr.msrb.gmra.mxu2 %vm262_vm3, %v6740_v13  ;;  %6744 = vmatmul.msk.bf16.vlgmr.msrb.gmra.mxu3 %vm262_vm3, %v6740_v13  ;;  %v1615_v21 = vadd.f32 %v1572_v27, %v8461_v22  ;;  %v92_v22 = vld [vmem:[%s10113_s2 + $0x30] sm:$0x33] }
 0x316   :  { %2642 = vmatpush.bf16.msra.mxu2 %v2604_v57  ;;  %2655 = vmatpush.bf16.msra.mxu3 %v2607_v40  ;;  %v7144_v42 = vpop.permute.xlu1 %7143  ;;  %v3318_v30 = vunpack.c.l.b16 %v92_v22 }
 0x317   :  { %2849 = vrot.lane.b32.xlu2 %v2833_v16, %s7257_s8  ;;  %v7146_v5 = vunpack.i.h.bf16 %v7144_v42  ;;  %v7145_v32 = vunpack.i.l.bf16 %v7144_v42  ;;  %v2493_v7 = vpop.permute.xlu0 %2492  ;;  %v1481_v16 = vpop.f32.mrf.mxu3 }
 0x318   :  { %v2501_v50 = vsel %vm2500_vm1, %v8428_v59, %v2493_v7  ;;  %v2502_v37 = vsel %vm2500_vm1, %v2493_v7, %v8395_v24  ;;  %v2598_v59 = vsel %vm266_vm11, %v2588_v38, 0  ;;  %v3186_v16 = vperm.slane %v8183_v56, 3  ;;  %v6745_v56 = vld [vmem:[%s10112_s1 + $0x48] sm:$0xf] }
 0x319   :  { %v2509_v40 = vsel %vm266_vm11, %v2501_v50, 0  ;;  %v2512_v57 = vsel %vm266_vm11, %v2502_v37, 0  ;;  %v8497_v17 = vsel %vm418_vm2, %v7145_v32, %v7146_v5  ;;  %v8501_v9 = vsel %vm418_vm2, %v7146_v5, %v8454_v54  ;;  %v1585_v5 = vpop.f32.mrf.mxu1 }
 0x31a   :  { %10300 = vst [vmem:[#allocation83_spill] sm:$0xff] %v8497_v17  ;;  %2527 = vmatpush.bf16.msrb.mxu0 %v2509_v40  ;;  %2540 = vmatpush.bf16.msrb.mxu1 %v2512_v57  ;;  %v2826_v24 = vmul.f32 %v8497_v17, %v7472_v63  ;;  %v2827_v29 = vmul.f32 %v8501_v9, %v7456_v51 }
 0x31b   :  { %10301 = vst [vmem:[#allocation84_spill] sm:$0xff] %v8501_v9  ;;  %v8515_v38 = vsel %vm418_vm2, %v8510_v23, %v7145_v32  ;;  %v1616_v49 = vadd.f32 %v1585_v5, %v8463_v43  ;;  %v2824_v32 = vmul.f32 %v8510_v23, %v7484_v6  ;;  %v93_v43 = vld [vmem:[%s10113_s2 + $0x38] sm:$0x33]  ;;  %v3190_v5 = vunpack.c.l.bf16 %v3186_v16 }
 0x31c   :  { %v2831_v58 = vpack.c.bf16 %v2826_v24, %v2826_v24  ;;  %v2832_v42 = vpack.c.bf16 %v2827_v29, %v2827_v29  ;;  %10303 = vst [vmem:[#allocation86_spill] sm:$0xff] %v8515_v38  ;;  %v2825_v57 = vmul.f32 %v8515_v38, %v7470_v62  ;;  %v3189_v29 = vperm.slane %v8185_v60, 3  ;;  %v1574_v23 = vpop.f32.mrf.mxu0 }
 0x31d   :  { %6741 = vmatmul.msk.bf16.vlgmr.msrb.gmra.mxu0 %vm262_vm3, %v6740_v13  ;;  %6742 = vmatmul.msk.bf16.vlgmr.msrb.gmra.mxu1 %vm262_vm3, %v6740_v13  ;;  %v3320_v33 = vunpack.c.l.b16 %v93_v43  ;;  %v3321_v16 = vunpack.c.h.b16 %v93_v43  ;;  %vm10320_vm2 = vcmask 973824  }
 0x31e   :  { %2616 = vmatpush.bf16.msra.mxu0 %v2598_v59  ;;  %2629 = vmatpush.bf16.msra.mxu1 %v2601_v20  ;;  %v7159_v7 = vpop.permute.xlu1 %7158  ;;  %v2830_v27 = vpack.c.bf16 %v2825_v57, %v2825_v57  ;;  %v3193_v57 = vunpack.c.l.bf16 %v3189_v29 }
 0x31f   :  { %7173 = vrot.lane.b32.xlu2 %v7172_v8, %s7254_s5  ;;  %2845 = vrot.lane.b32.xlu0 %v2831_v58, %s7257_s8  ;;  %v8522_v50 = vunpack.i.l.bf16 %v7159_v7  ;;  %v7154_v37 = vpop.permute.xlu0 %7153  ;;  %v1598_v8 = vpop.f32.mrf.mxu2  ;;  %v8536_v24 = vunpack.i.h.bf16 %v7159_v7  ;;  %v2829_v58 = vpack.c.bf16 %v2824_v32, %v2824_v32 }
 0x320   :  { %2847 = vrot.lane.b32.xlu1 %v2832_v42, %s7257_s8  ;;  %v7156_v40 = vunpack.i.h.bf16 %v7154_v37  ;;  %v7155_v59 = vunpack.i.l.bf16 %v7154_v37  ;;  %v1611_v20 = vpop.f32.mrf.mxu3  ;;  %v3319_v37 = vunpack.c.h.b16 %v92_v22  ;;  %v1617_v60 = vadd.f32 %v1598_v8, %v8472_v10 }
 0x321   :  { %10304 = vst [vmem:[#allocation87_spill] sm:$0xff] %v8522_v50  ;;  %v1587_v17 = vpop.f32.mrf.mxu1  ;;  %v8568_v8 = vpack.c.b16 %v3320_v33, %v3320_v33  ;;  %v7177_v29 = vpack.i.bf16 %v3190_v5, %v3193_v57 }
 0x322   :  { %10305 = vst [vmem:[#allocation88_spill] sm:$0xff] %v8536_v24  ;;  %v8540_v13 = vsel %vm262_vm3, %v7156_v40, %v8522_v50  ;;  %v8549_v25 = vsel %vm262_vm3, %v7155_v59, %v7156_v40  ;;  %v8555_v32 = vsel %vm262_vm3, %v8536_v24, %v7155_v59  ;;  %v1618_v40 = vadd.f32 %v1611_v20, %v8485_v55 }
 0x323   :  { %10306 = vst [vmem:[#allocation89_spill] sm:$0xff] %v8540_v13  ;;  %v2957_v42 = vmul.f32 %v8540_v13, %v7456_v51  ;;  %v2956_v10 = vmul.f32 %v8549_v25, %v7472_v63  ;;  %v2955_v17 = vmul.f32 %v8555_v32, %v7470_v62  ;;  %v8566_v23 = vpack.c.b16 %v3319_v37, %v3319_v37 }
 0x324   :  { %10307 = vst [vmem:[#allocation90_spill] sm:$0xff] %v8549_v25  ;;  %v8570_v59 = vpack.c.b16 %v3318_v30, %v3318_v30  ;;  %v8572_v55 = vpack.c.b16 %v3321_v16, %v3321_v16  ;;  %v1704_v30 = vpop.f32.mrf.mxu0 }
 0x325   :  { %v2962_v7 = vpack.c.bf16 %v2957_v42, %v2957_v42  ;;  %6748 = vmatmul.msk.bf16.vlgmr.msra.gmra.mxu2 %vm262_vm3, %v6745_v56  ;;  %10308 = vst [vmem:[#allocation91_spill] sm:$0xff] %v8555_v32  ;;  %6749 = vmatmul.msk.bf16.vlgmr.msra.gmra.mxu3 %vm262_vm3, %v6745_v56  ;;  %v2961_v20 = vpack.c.bf16 %v2956_v10, %v2956_v10 }
 0x326   :  { %v8576_v42 = vpack.i.b16 %v8566_v23, %v8566_v23  ;;  %v8584_v33 = vpack.i.b16 %v8570_v59, %v8570_v59  ;;  %v8591_v37 = vpack.i.b16 %v8572_v55, %v8572_v55  ;;  %v2954_v10 = vmul.f32 %v8536_v24, %v7484_v6 }
 0x327   :  { %2841 = vrot.lane.b32.xlu0 %v2829_v58, %s7257_s8  ;;  %2977 = vrot.lane.b32.xlu2 %v2962_v7, %s7258_s9  ;;  %v1600_v22 = vpop.f32.mrf.mxu2  ;;  %v2960_v58 = vpack.c.bf16 %v2955_v17, %v2955_v17  ;;  %v1747_v7 = vadd.f32 %v1704_v30, %v1615_v21 }
 0x328   :  { %2843 = vrot.lane.b32.xlu1 %v2830_v27, %s7257_s8  ;;  %v1613_v43 = vpop.f32.mrf.mxu3  ;;  %v8580_v27 = vpack.i.b16 %v8568_v8, %v8568_v8  ;;  %v2958_v22 = vmul.f32 %v8522_v50, %v8400_v3  ;;  %v3329_v21 = vperm.slane %v8584_v33, 0 }
 0x329   :  { %v1717_v5 = vpop.f32.mrf.mxu1  ;;  %v3333_v43 = vperm.slane %v8576_v42, 0 }
 0x32a   :  { %v1748_v57 = vadd.f32 %v1717_v5, %v1616_v49  ;;  %v3341_v49 = vperm.slane %v8591_v37, 0  ;;  %v2963_v30 = vpack.c.bf16 %v2958_v22, %v2958_v22 }
 0x32b   :  { %v3343_v13 = vunpack.c.l.bf16 %v3333_v43 }
 0x32c   :  { %v1706_v5 = vpop.f32.mrf.mxu0  ;;  %v3345_v24 = vunpack.c.l.bf16 %v3341_v49 }
 0x32d   :  { %6746 = vmatmul.msk.bf16.vlgmr.msra.gmra.mxu0 %vm262_vm3, %v6745_v56  ;;  %6747 = vmatmul.msk.bf16.vlgmr.msra.gmra.mxu1 %vm262_vm3, %v6745_v56  ;;  %v2959_v56 = vpack.c.bf16 %v2954_v10, %v2954_v10 }
 0x32f   :  { %7178 = vrot.lane.b32.xlu0 %v7177_v29, %s7254_s5  ;;  %2973 = vrot.lane.b32.xlu2 %v2960_v58, %s7258_s9  ;;  %v1730_v16 = vpop.f32.mrf.mxu2 }
 0x330   :  { %2975 = vrot.lane.b32.xlu1 %v2961_v20, %s7258_s9  ;;  %v1749_v17 = vadd.f32 %v1730_v16, %v1617_v60  ;;  %v1743_v29 = vpop.f32.mrf.mxu3  ;;  %v3337_v20 = vperm.slane %v8580_v27, 0  ;;  %v3342_v16 = vunpack.c.l.bf16 %v3329_v21 }
 0x331   :  { %v1750_v58 = vadd.f32 %v1743_v29, %v1618_v40  ;;  %v1719_v32 = vpop.f32.mrf.mxu1 }
 0x332   :  { %v3344_v60 = vunpack.c.l.bf16 %v3337_v20  ;;  %v7187_v54 = vpack.i.bf16 %v3342_v16, %v3345_v24 }
 0x334   :  { %v7182_v38 = vpack.i.bf16 %v3344_v60, %v3343_v13  ;;  %v1836_v9 = vpop.f32.mrf.mxu0 }
 0x335   :  { %v1879_v40 = vadd.f32 %v1836_v9, %v1747_v7 }
 0x337   :  { %2979 = vrot.lane.b32.xlu0 %v2963_v30, %s7258_s9  ;;  %v1732_v50 = vpop.f32.mrf.mxu2 }
 0x338   :  { %2971 = vrot.lane.b32.xlu1 %v2959_v56, %s7258_s9  ;;  %v1745_v25 = vpop.f32.mrf.mxu3 }
 0x339   :  { %v1849_v2 = vpop.f32.mrf.mxu1 }
 0x33a   :  { %v1880_v32 = vadd.f32 %v1849_v2, %v1748_v57 }
 0x33c   :  { %v1838_v43 = vpop.f32.mrf.mxu0 }
 0x33f   :  { %7183 = vrot.lane.b32.xlu0 %v7182_v38, %s7250_s28  ;;  %v1862_v22 = vpop.f32.mrf.mxu2 }
 0x340   :  { %7188 = vrot.lane.b32.xlu1 %v7187_v54, %s7250_s28  ;;  %v1881_v10 = vadd.f32 %v1862_v22, %v1749_v17  ;;  %v1875_v29 = vpop.f32.mrf.mxu3  ;;  %s10409_s28 = smov 46  }
 0x341   :  { %v1882_v30 = vadd.f32 %v1875_v29, %v1750_v58  ;;  %v1851_v20 = vpop.f32.mrf.mxu1 }
 0x344   :  { %v1967_v50 = vpop.f32.mrf.mxu0 }
 0x345   :  { %v2010_v13 = vadd.f32 %v1967_v50, %v1879_v40  ;;  %v3472_v40 = vshrl.u32 %v8566_v23, 16 }
 0x347   :  { %v1864_v21 = vpop.f32.mrf.mxu2  ;;  %v3473_v50 = vpack.i.b16 %v3472_v40, %v3472_v40 }
 0x348   :  { %v1877_v49 = vpop.f32.mrf.mxu3 }
 0x349   :  { %v1980_v25 = vpop.f32.mrf.mxu1 }
 0x34a   :  { %v2011_v24 = vadd.f32 %v1980_v25, %v1880_v32  ;;  %v3476_v32 = vshrl.u32 %v8568_v8, 16 }
 0x34c   :  { %v1969_v16 = vpop.f32.mrf.mxu0  ;;  %v3477_v25 = vpack.i.b16 %v3476_v32, %v3476_v32 }
 0x34f   :  { %v1993_v56 = vpop.f32.mrf.mxu2 }
 0x350   :  { %v2012_v5 = vadd.f32 %v1993_v56, %v1881_v10  ;;  %v2006_v60 = vpop.f32.mrf.mxu3 }
 0x351   :  { %v2013_v38 = vadd.f32 %v2006_v60, %v1882_v30  ;;  %v1982_v54 = vpop.f32.mrf.mxu1 }
 0x354   :  { %v2099_v57 = vpop.f32.mrf.mxu0 }
 0x355   :  { %v2142_v58 = vadd.f32 %v2099_v57, %v2010_v13 }
 0x357   :  { %v1995_v2 = vpop.f32.mrf.mxu2 }
 0x358   :  { %v2716_v9 = vpop.permute.xlu2 %2715  ;;  %v2008_v7 = vpop.f32.mrf.mxu3 }
 0x359   :  { %v2112_v17 = vpop.f32.mrf.mxu1 }
 0x35a   :  { %v2143_v22 = vadd.f32 %v2112_v17, %v2011_v24  ;;  %v3475_v24 = vperm.slane %v3473_v50, 0 }
 0x35c   :  { %v2101_v49 = vpop.f32.mrf.mxu0  ;;  %v3485_v8 = vunpack.c.l.bf16 %v3475_v24 }
 0x35f   :  { %v2125_v43 = vpop.f32.mrf.mxu2 }
 0x360   :  { %v2712_v29 = vpop.permute.xlu2 %2711  ;;  %v2144_v20 = vadd.f32 %v2125_v43, %v2012_v5  ;;  %v2138_v21 = vpop.f32.mrf.mxu3  ;;  %v3479_v5 = vperm.slane %v3477_v25, 0 }
 0x361   :  { %v2145_v10 = vadd.f32 %v2138_v21, %v2013_v38  ;;  %v2114_v30 = vpop.f32.mrf.mxu1 }
 0x362   :  { %v3486_v38 = vunpack.c.l.bf16 %v3479_v5 }
 0x364   :  { %v2231_v7 = vpop.f32.mrf.mxu0 }
 0x365   :  { %v2274_v17 = vadd.f32 %v2231_v7, %v2142_v58  ;;  %v7192_v58 = vpack.i.bf16 %v3486_v38, %v3485_v8 }
 0x367   :  { %v2127_v60 = vpop.f32.mrf.mxu2 }
 0x368   :  { %v7169_v56 = vpop.permute.xlu2 %7168  ;;  %v2140_v54 = vpop.f32.mrf.mxu3 }
 0x369   :  { %v8609_v16 = vunpack.i.l.bf16 %v7169_v56  ;;  %v2244_v23 = vpop.f32.mrf.mxu1  ;;  %v6750_v54 = vld [vmem:[%s10112_s1 + $0x4c] sm:$0xf] }
 0x36a   :  { %v2275_v43 = vadd.f32 %v2244_v23, %v2143_v22 }
 0x36b   :  { %v3088_v13 = vmul.f32 %v8609_v16, %v8400_v3 }
 0x36c   :  { %v2233_v24 = vpop.f32.mrf.mxu0 }
 0x36d   :  { %v3093_v2 = vpack.c.bf16 %v3088_v13, %v3088_v13 }
 0x36f   :  { %v2720_v57 = vpop.permute.xlu1 %2719  ;;  %3109 = vrot.lane.b32.xlu1 %v3093_v2, %s7259_s10  ;;  %v2257_v49 = vpop.f32.mrf.mxu2 }
 0x370   :  { %v2718_v21 = vpop.permute.xlu0 %2717  ;;  %v2276_v25 = vadd.f32 %v2257_v49, %v2144_v20  ;;  %v2270_v60 = vpop.f32.mrf.mxu3 }
 0x371   :  { %v2723_v40 = vsel %vm257_vm10, %v2716_v9, %v2718_v21  ;;  %v2724_v32 = vsel %vm257_vm10, %v2718_v21, %v2720_v57  ;;  %v2277_v22 = vadd.f32 %v2270_v60, %v2145_v10  ;;  %v8621_v13 = vpop.permute.xlu2 %2849  ;;  %v2246_v5 = vpop.f32.mrf.mxu1  ;;  %v3480_v60 = vshrl.u32 %v8572_v55, 16 }
 0x372   :  { %v2735_v30 = vsel %vm266_vm11, %v2723_v40, 0  ;;  %v2738_v50 = vsel %vm266_vm11, %v2724_v32, 0 }
 0x373   :  { %2773 = vmatpush.bf16.msrb.mxu2 %v2735_v30  ;;  %2786 = vmatpush.bf16.msrb.mxu3 %v2738_v50  ;;  %v3468_v50 = vshrl.u32 %v8570_v59, 16 }
 0x375   :  { %v3469_v55 = vpack.i.b16 %v3468_v50, %v3468_v50 }
 0x376   :  { %6753 = vmatmul.msk.bf16.vlgmr.msrb.gmra.mxu2 %vm262_vm3, %v6750_v54  ;;  %6754 = vmatmul.msk.bf16.vlgmr.msrb.gmra.mxu3 %vm262_vm3, %v6750_v54 }
 0x377   :  { %v7164_v2 = vpop.permute.xlu1 %7163  ;;  %7193 = vrot.lane.b32.xlu1 %v7192_v58, %s7251_s29  ;;  %v2259_v8 = vpop.f32.mrf.mxu2 }
 0x378   :  { %v7166_v20 = vunpack.i.h.bf16 %v7164_v2  ;;  %v7165_v7 = vunpack.i.l.bf16 %v7164_v2  ;;  %v2714_v23 = vpop.permute.xlu0 %2713  ;;  %v2272_v32 = vpop.f32.mrf.mxu3 }
 0x379   :  { %v2721_v57 = vsel %vm257_vm10, %v2712_v29, %v2714_v23  ;;  %v2722_v21 = vsel %vm257_vm10, %v2714_v23, %v2716_v9  ;;  %v8641_v29 = vunpack.i.h.bf16 %v7169_v56  ;;  %v2385_v2 = vpop.f32.mrf.mxu0  ;;  %v8650_v23 = vpop.permute.xlu2 %7173 }
 0x37a   :  { %v8629_v10 = vsel %vm681_vm4, %v7165_v7, %v7166_v20  ;;  %v8633_v38 = vsel %vm681_vm4, %v7166_v20, %v8609_v16  ;;  %v2729_v40 = vsel %vm266_vm11, %v2721_v57, 0  ;;  %v2732_v49 = vsel %vm266_vm11, %v2722_v21, 0  ;;  %v2398_v20 = vpop.f32.mrf.mxu1 }
 0x37b   :  { %2747 = vmatpush.bf16.msrb.mxu0 %v2729_v40  ;;  %v3087_v30 = vmul.f32 %v8633_v38, %v7456_v51  ;;  %v3086_v9 = vmul.f32 %v8629_v10, %v7472_v63  ;;  %2760 = vmatpush.bf16.msrb.mxu1 %v2732_v49  ;;  %v8647_v5 = vsel %vm681_vm4, %v8641_v29, %v7165_v7  ;;  %v10214_v8 = vunpack.i.h.bf16 %v8650_v23  ;;  %vm10321_vm4 = vmmov %vm10320_vm2 }
 0x37c   :  { %v2428_v56 = vadd.f32 %v2385_v2, %v2274_v17  ;;  %v8654_v59 = vadd.f32 %v2398_v20, %v2275_v43  ;;  %v3481_v57 = vpack.i.b16 %v3480_v60, %v3480_v60  ;;  %v3085_v7 = vmul.f32 %v8647_v5, %v7470_v62 }
 0x37d   :  { %v3092_v58 = vpack.c.bf16 %v3087_v30, %v3087_v30  ;;  %v3091_v24 = vpack.c.bf16 %v3086_v9, %v3086_v9  ;;  %v10213_v40 = vunpack.i.l.bf16 %v8650_v23  ;;  %v3471_v17 = vperm.slane %v3469_v55, 0 }
 0x37e   :  { %6751 = vmatmul.msk.bf16.vlgmr.msrb.gmra.mxu0 %vm262_vm3, %v6750_v54  ;;  %6752 = vmatmul.msk.bf16.vlgmr.msrb.gmra.mxu1 %vm262_vm3, %v6750_v54  ;;  %v3084_v54 = vmul.f32 %v8641_v29, %v7484_v6  ;;  %v3483_v43 = vperm.slane %v3481_v57, 0  ;;  %v3090_v9 = vpack.c.bf16 %v3085_v7, %v3085_v7 }
 0x37f   :  { %3107 = vrot.lane.b32.xlu0 %v3092_v58, %s7259_s10  ;;  %3105 = vrot.lane.b32.xlu2 %v3091_v24, %s7259_s10  ;;  %v2411_v21 = vpop.f32.mrf.mxu2  ;;  %v8668_v50 = vsel %vm813_vm5, %v10213_v40, %v10214_v8 }
 0x380   :  { %v2430_v32 = vadd.f32 %v2411_v21, %v2276_v25  ;;  %v2424_v49 = vpop.f32.mrf.mxu3  ;;  %v3089_v60 = vpack.c.bf16 %v3084_v54, %v3084_v54  ;;  %v3484_v25 = vunpack.c.l.bf16 %v3471_v17  ;;  %v3487_v2 = vunpack.c.l.bf16 %v3483_v43 }
 0x381   :  { %v2431_v30 = vadd.f32 %v2424_v49, %v2277_v22  ;;  %v2387_v58 = vpop.f32.mrf.mxu0  ;;  %v3216_v22 = vmul.f32 %v8668_v50, %v7472_v63 }
 0x382   :  { %v2400_v24 = vpop.f32.mrf.mxu1  ;;  %v7197_v57 = vpack.i.bf16 %v3484_v25, %v3487_v2  ;;  %v44_v58 = vld [vmem:[%s10111_s0 + $0x18] sm:$0xff] }
 0x383   :  { %v3221_v7 = vpack.c.bf16 %v3216_v22, %v3216_v22  ;;  %v8687_v24 = vpop.permute.xlu2 %2977  ;;  %59 = vst [vmem:[#allocation1 + $0x30] ss:$2 sm:$0xff] %v44_v58 }
 0x387   :  { %3103 = vrot.lane.b32.xlu0 %v3090_v9, %s7259_s10  ;;  %3101 = vrot.lane.b32.xlu2 %v3089_v60, %s7259_s10  ;;  %v2413_v20 = vpop.f32.mrf.mxu2  ;;  %v6755_v60 = vld [vmem:[%s10112_s1 + $0x50] sm:$0xf] }
 0x388   :  { %v2426_v55 = vpop.f32.mrf.mxu3 }
 0x38a   :  { %v63_v40 = vld.sshfl [vmem:[#allocation1 + $0x38] sm:$0xff pattern:$0x75316420] }
 0x38f   :  { %3235 = vrot.lane.b32.xlu0 %v3221_v7, %s7260_s11  ;;  %7198 = vrot.lane.b32.xlu2 %v7197_v57, %s7251_s29 }
 0x391   :  { %v2846_v21 = vpop.permute.xlu0 %2845 }
 0x392   :  { %v2848_v54 = vpop.permute.xlu1 %2847 }
 0x393   :  { %v2853_v49 = vsel %vm454_vm12, %v2846_v21, %v2848_v54  ;;  %v2854_v9 = vsel %vm454_vm12, %v2848_v54, %v8621_v13  ;;  %v43_v13 = vld [vmem:[%s10111_s0 + $0x10] sm:$0xff] }
 0x394   :  { %v2865_v17 = vsel %vm266_vm11, %v2853_v49, 0  ;;  %v2868_v43 = vsel %vm266_vm11, %v2854_v9, 0  ;;  %57 = vst [vmem:[#allocation1 + $0x20] ss:$2 sm:$0xff] %v43_v13 }
 0x395   :  { %2903 = vmatpush.bf16.msra.mxu2 %v2865_v17  ;;  %2916 = vmatpush.bf16.msra.mxu3 %v2868_v43  ;;  %v62_v13 = vld.sshfl [vmem:[#allocation1 + $0x30] sm:$0xff pattern:$0x75316420] }
 0x398   :  { %6758 = vmatmul.msk.bf16.vlgmr.msra.gmra.mxu2 %vm262_vm3, %v6755_v60  ;;  %6759 = vmatmul.msk.bf16.vlgmr.msra.gmra.mxu3 %vm262_vm3, %v6755_v60  ;;  %v2555_v55 = vpop.f32.mrf.mxu2  ;;  %v2568_v57 = vpop.f32.mrf.mxu3 }
 0x399   :  { %v2842_v25 = vpop.permute.xlu0 %2841  ;;  %v2574_v9 = vadd.f32 %v2555_v55, %v2430_v32  ;;  %v8698_v17 = vadd.f32 %v2568_v57, %v2431_v30  ;;  %v2974_v30 = vpop.permute.xlu2 %2973 }
 0x39a   :  { %v2844_v2 = vpop.permute.xlu1 %2843  ;;  %v2529_v49 = vpop.f32.mrf.mxu0 }
 0x39b   :  { %v2851_v22 = vsel %vm454_vm12, %v2842_v25, %v2844_v2  ;;  %v2852_v20 = vsel %vm454_vm12, %v2844_v2, %v2846_v21  ;;  %v8700_v43 = vadd.f32 %v2529_v49, %v2428_v56  ;;  %v2542_v58 = vpop.f32.mrf.mxu1  ;;  %v75_v21 = vpack.c.bf16 %v63_v40, %v62_v13  ;;  %v60_v2 = vld.sshfl [vmem:[#allocation1 + $0x20] sm:$0xff pattern:$0x75316420]  ;;  %v61_v8 = vld.sshfl [vmem:[#allocation1 + $0x28] sm:$0xff pattern:$0x75316420] }
 0x39c   :  { %v2859_v7 = vsel %vm266_vm11, %v2851_v22, 0  ;;  %v2862_v54 = vsel %vm266_vm11, %v2852_v20, 0  ;;  %v8703_v25 = vadd.f32 %v2542_v58, %v8654_v59  ;;  %v74_v32 = vpack.c.bf16 %v61_v8, %v60_v2  ;;  %v6760_v13 = vld [vmem:[%s10112_s1 + $0x54] sm:$0xf] }
 0x39d   :  { %2877 = vmatpush.bf16.msra.mxu0 %v2859_v7  ;;  %2890 = vmatpush.bf16.msra.mxu1 %v2862_v54  ;;  %80 = vst [vmem:[#allocation2 + $0x10] sm:$0x33] %v75_v21  ;;  %v10310_v49 = vunpack.i.h.bf16 %v8650_v23  ;;  %v3611_v2 = vperm.slane %v8576_v42, 1  ;;  %v10311_v42 = vunpack.i.l.bf16 %v8650_v23 }
 0x39e   :  { %79 = vst [vmem:[#allocation2 + $0x30] sm:$0x33] %v74_v32  ;;  %v3612_v32 = vperm.slane %v8580_v27, 1 }
 0x3a0   :  { %6756 = vmatmul.msk.bf16.vlgmr.msra.gmra.mxu0 %vm262_vm3, %v6755_v60  ;;  %6757 = vmatmul.msk.bf16.vlgmr.msra.gmra.mxu1 %vm262_vm3, %v6755_v60  ;;  %v2557_v57 = vpop.f32.mrf.mxu2  ;;  %v2570_v7 = vpop.f32.mrf.mxu3 }
 0x3a1   :  { %v7179_v22 = vpop.permute.xlu0 %7178 }
 0x3a2   :  { %v2976_v20 = vpop.permute.xlu1 %2975  ;;  %v8707_v56 = vunpack.i.h.bf16 %v7179_v22  ;;  %v8709_v55 = vunpack.i.l.bf16 %v7179_v22  ;;  %v2531_v60 = vpop.f32.mrf.mxu0 }
 0x3a3   :  { %v2982_v59 = vsel %vm585_vm13, %v2974_v30, %v2976_v20  ;;  %v2983_v40 = vsel %vm585_vm13, %v2976_v20, %v8687_v24  ;;  %v2544_v57 = vpop.f32.mrf.mxu1  ;;  %v3615_v60 = vunpack.c.l.bf16 %v3611_v2 }
 0x3a4   :  { %10309 = vst [vmem:[#allocation92_spill] sm:$0xff] %v8707_v56  ;;  %v2992_v54 = vsel %vm266_vm11, %v2982_v59, 0  ;;  %v2995_v8 = vsel %vm266_vm11, %v2983_v40, 0  ;;  %v8720_v58 = vsel %vm813_vm5, %v10310_v49, %v8709_v55  ;;  %v3218_v21 = vmul.f32 %v8709_v55, %v8400_v3 }
 0x3a5   :  { %3020 = vmatpush.bf16.msrb.mxu1 %v2992_v54  ;;  %3033 = vmatpush.bf16.msrb.mxu2 %v2995_v8  ;;  %v3214_v22 = vmul.f32 %v8707_v56, %v7484_v6  ;;  %v3217_v20 = vmul.f32 %v8720_v58, %v7456_v51  ;;  %v3610_v59 = vperm.slane %v8584_v33, 1  ;;  %v3613_v40 = vperm.slane %v8591_v37, 1 }
 0x3a6   :  { %v3223_v7 = vpack.c.bf16 %v3218_v21, %v3218_v21  ;;  %v8740_v27 = vsel %vm813_vm5, %v8707_v56, %v10311_v42  ;;  %v3616_v49 = vunpack.c.l.bf16 %v3612_v32  ;;  %vm10322_vm5 = vmmov %vm10320_vm2 }
 0x3a7   :  { %v3219_v54 = vpack.c.bf16 %v3214_v22, %v3214_v22  ;;  %v3222_v8 = vpack.c.bf16 %v3217_v20, %v3217_v20  ;;  %v3614_v21 = vunpack.c.l.bf16 %v3610_v59  ;;  %v3617_v57 = vunpack.c.l.bf16 %v3613_v40 }
 0x3a8   :  { %6763 = vmatmul.msk.bf16.vlgmr.msrb.gmra.mxu2 %vm262_vm3, %v6760_v13  ;;  %3239 = vrot.lane.b32.xlu2 %v3223_v7, %s7260_s11  ;;  %v2644_v20 = vpop.f32.mrf.mxu2  ;;  %v3215_v2 = vmul.f32 %v8740_v27, %v7470_v62  ;;  %v7202_v59 = vpack.i.bf16 %v3616_v49, %v3615_v60 }
 0x3a9   :  { %3231 = vrot.lane.b32.xlu0 %v3219_v54, %s7260_s11  ;;  %v2980_v33 = vpop.permute.xlu0 %2979  ;;  %3237 = vrot.lane.b32.xlu1 %v3222_v8, %s7260_s11  ;;  %v8752_v54 = vadd.f32 %v2644_v20, %v2574_v9  ;;  %v2657_v8 = vpop.f32.mrf.mxu3 }
 0x3aa   :  { %v2972_v37 = vpop.permute.xlu1 %2971  ;;  %v2984_v22 = vsel %vm585_vm13, %v8687_v24, %v2980_v33  ;;  %v2618_v32 = vpop.f32.mrf.mxu0  ;;  %v8758_v24 = vadd.f32 %v2657_v8, %v8698_v17  ;;  %v3220_v9 = vpack.c.bf16 %v3215_v2, %v3215_v2  ;;  %v3768_v8 = vld [vmem:[#allocation2 + $0x10] sm:$0xff] }
 0x3ab   :  { %v2981_v23 = vsel %vm585_vm13, %v2972_v37, %v2974_v30  ;;  %v2998_v42 = vsel %vm266_vm11, %v2984_v22, 0  ;;  %v8755_v40 = vadd.f32 %v2618_v32, %v8700_v43  ;;  %v7207_v30 = vpack.i.bf16 %v3614_v21, %v3617_v57  ;;  %v2631_v33 = vpop.f32.mrf.mxu1 }
 0x3ac   :  { %v2989_v7 = vsel %vm266_vm11, %v2981_v23, 0  ;;  %3046 = vmatpush.bf16.msrb.mxu3 %v2998_v42  ;;  %v8761_v37 = vadd.f32 %v2631_v33, %v8703_v25 }
 0x3ad   :  { %3007 = vmatpush.bf16.msrb.mxu0 %v2989_v7 }
 0x3af   :  { %6764 = vmatmul.msk.bf16.vlgmr.msrb.gmra.mxu3 %vm262_vm3, %v6760_v13 }
 0x3b0   :  { %6761 = vmatmul.msk.bf16.vlgmr.msrb.gmra.mxu0 %vm262_vm3, %v6760_v13  ;;  %6762 = vmatmul.msk.bf16.vlgmr.msrb.gmra.mxu1 %vm262_vm3, %v6760_v13  ;;  %v2646_v25 = vpop.f32.mrf.mxu2 }
 0x3b1   :  { %7203 = vrot.lane.b32.xlu2 %v7202_v59, %s7255_s6  ;;  %7208 = vrot.lane.b32.xlu0 %v7207_v30, %s7255_s6  ;;  %v7184_v43 = vpop.permute.xlu0 %7183  ;;  %v2659_v57 = vpop.f32.mrf.mxu3  ;;  %v3767_v59 = vld [vmem:[#allocation2 + $0x30] sm:$0xff] }
 0x3b2   :  { %3233 = vrot.lane.b32.xlu1 %v3220_v9, %s7260_s11  ;;  %v7189_v17 = vpop.permute.xlu1 %7188  ;;  %v7186_v60 = vunpack.i.h.bf16 %v7184_v43  ;;  %v7185_v49 = vunpack.i.l.bf16 %v7184_v43  ;;  %v2620_v22 = vpop.f32.mrf.mxu0  ;;  %v3781_v9 = vunpack.c.h.b16 %v3768_v8  ;;  %v3779_v43 = vunpack.c.h.b16 %v3767_v59 }
 0x3b3   :  { %v8769_v21 = vunpack.i.l.bf16 %v7189_v17  ;;  %v2633_v2 = vpop.f32.mrf.mxu1  ;;  %v8787_v25 = vunpack.i.h.bf16 %v7189_v17 }
 0x3b4   :  { %v8772_v23 = vsel %vm945_vm6, %v7185_v49, %v7186_v60  ;;  %v3785_v57 = vpack.c.b16 %v3781_v9, %v3781_v9  ;;  %v3783_v22 = vpack.c.b16 %v3779_v43, %v3779_v43  ;;  %v3770_v2 = vld [vmem:[#allocation2 + $0x8] sm:$0xf]  ;;  %v3778_v9 = vunpack.c.l.b16 %v3767_v59 }
 0x3b5   :  { %v8776_v13 = vsel %vm945_vm6, %v7186_v60, %v8769_v21  ;;  %v3370_v20 = vmul.f32 %v8769_v21, %v8400_v3  ;;  %v3368_v42 = vmul.f32 %v8772_v23, %v7472_v63  ;;  %v3780_v60 = vunpack.c.l.b16 %v3768_v8  ;;  %10313 = vst [vmem:[#allocation94_spill] sm:$0xff] %v8787_v25  ;;  %v3765_v8 = vld [vmem:[#allocation2 + $0x38] sm:$0xff] }
 0x3b6   :  { %10312 = vst [vmem:[#allocation93_spill] sm:$0xff] %v8776_v13  ;;  %v3369_v7 = vmul.f32 %v8776_v13, %v7456_v51 }
 0x3b7   :  { %v3375_v32 = vpack.c.bf16 %v3370_v20, %v3370_v20  ;;  %v3373_v30 = vpack.c.bf16 %v3368_v42, %v3368_v42  ;;  %v3784_v13 = vpack.c.b16 %v3780_v60, %v3780_v60  ;;  %v8791_v20 = vsel %vm945_vm6, %v8787_v25, %v7185_v49  ;;  %vm10323_vm6 = vmmov %vm10320_vm2 }
 0x3b8   :  { %v3374_v33 = vpack.c.bf16 %v3369_v7, %v3369_v7  ;;  %10314 = vst [vmem:[#allocation95_spill] sm:$0xff] %v8791_v20  ;;  %v3801_v42 = vunpack.c.l.b16 %v3770_v2  ;;  %v3366_v7 = vmul.f32 %v8787_v25, %v7484_v6  ;;  %v3367_v17 = vmul.f32 %v8791_v20, %v7470_v62 }
 0x3b9   :  { %3391 = vrot.lane.b32.xlu0 %v3375_v32, %s7261_s12  ;;  %v3772_v49 = vunpack.c.h.b16 %v3765_v8 }
 0x3ba   :  { %3387 = vrot.lane.b32.xlu1 %v3373_v30, %s7261_s12  ;;  %3389 = vrot.lane.b32.xlu2 %v3374_v33, %s7261_s12  ;;  %v3802_v32 = vpack.c.b16 %v3801_v42, %v3801_v42  ;;  %v3371_v30 = vpack.c.bf16 %v3366_v7, %v3366_v7  ;;  %v3372_v33 = vpack.c.bf16 %v3367_v17, %v3367_v17 }
 0x3bb   :  { %v3773_v43 = vpack.c.b16 %v3772_v49, %v3772_v49 }
 0x3c1   :  { %3792 = vrot.lane.b32.xlu0 %v3785_v57, %s7247_s17 }
 0x3c2   :  { %3788 = vrot.lane.b32.xlu1 %v3783_v22, %s7247_s17  ;;  %3790 = vrot.lane.b32.xlu2 %v3784_v13, %s7247_s17  ;;  %v3782_v13 = vpack.c.b16 %v3778_v9, %v3778_v9 }
 0x3c9   :  { %3803 = vrot.lane.b32.xlu0 %v3802_v32, %s7247_s17 }
 0x3ca   :  { %3383 = vrot.lane.b32.xlu1 %v3371_v30, %s7261_s12  ;;  %3385 = vrot.lane.b32.xlu2 %v3372_v33, %s7261_s12 }
 0x3d2   :  { %3774 = vrot.lane.b32.xlu1 %v3773_v43, %s7247_s17  ;;  %3786 = vrot.lane.b32.xlu2 %v3782_v13, %s7247_s17 }
 0x3d9   :  { %v3106_v60 = vpop.permute.xlu2 %3105 }
 0x3e1   :  { %v3110_v57 = vpop.permute.xlu1 %3109  ;;  %v3102_v22 = vpop.permute.xlu2 %3101 }
 0x3e9   :  { %v7194_v2 = vpop.permute.xlu1 %7193  ;;  %v7199_v42 = vpop.permute.xlu2 %7198 }
 0x3ea   :  { %v7196_v7 = vunpack.i.h.bf16 %v7194_v2  ;;  %v7195_v17 = vunpack.i.l.bf16 %v7194_v2  ;;  %v8805_v32 = vunpack.i.l.bf16 %v7199_v42  ;;  %v8810_v30 = vunpack.i.h.bf16 %v7199_v42 }
 0x3ec   :  { %10315 = vst [vmem:[#allocation96_spill] sm:$0xff] %v8805_v32  ;;  %v8808_v8 = vsel %vm1077_vm7, %v7195_v17, %v7196_v7  ;;  %v8814_v59 = vsel %vm1077_vm7, %v7196_v7, %v8805_v32  ;;  %v3512_v33 = vmul.f32 %v8805_v32, %v8400_v3  ;;  %v8824_v42 = vsel %vm1077_vm7, %v8810_v30, %v7195_v17  ;;  %v6765_v17 = vld [vmem:[%s10112_s1 + $0x58] sm:$0xf] }
 0x3ed   :  { %10316 = vst [vmem:[#allocation97_spill] sm:$0xff] %v8808_v8  ;;  %v3510_v49 = vmul.f32 %v8808_v8, %v7472_v63  ;;  %v3511_v9 = vmul.f32 %v8814_v59, %v7456_v51  ;;  %vm10324_vm7 = vcmask 146432  }
 0x3ee   :  { %10317 = vst [vmem:[#allocation98_spill] sm:$0xff] %v8810_v30  ;;  %v3517_v43 = vpack.c.bf16 %v3512_v33, %v3512_v33 }
 0x3ef   :  { %10318 = vst [vmem:[#allocation99_spill] sm:$0xff] %v8814_v59  ;;  %v3515_v13 = vpack.c.bf16 %v3510_v49, %v3510_v49  ;;  %v3516_v2 = vpack.c.bf16 %v3511_v9, %v3511_v9  ;;  %v3508_v49 = vmul.f32 %v8810_v30, %v7484_v6  ;;  %v3509_v9 = vmul.f32 %v8824_v42, %v7470_v62 }
 0x3f0   :  { %10319 = vst [vmem:[#allocation100_spill] sm:$0xff] %v8824_v42  ;;  %3533 = vrot.lane.b32.xlu2 %v3517_v43, %s7262_s13 }
 0x3f1   :  { %v3108_v7 = vpop.permute.xlu0 %3107  ;;  %3529 = vrot.lane.b32.xlu0 %v3515_v13, %s7262_s13  ;;  %3531 = vrot.lane.b32.xlu1 %v3516_v2, %s7262_s13 }
 0x3f2   :  { %v3113_v32 = vsel %vm10320_vm2, %v3106_v60, %v3108_v7  ;;  %v3114_v20 = vsel %vm10321_vm4, %v3108_v7, %v3110_v57  ;;  %v3513_v57 = vpack.c.bf16 %v3508_v49, %v3508_v49  ;;  %vm10325_vm2 = vcmask 965632  }
 0x3f3   :  { %v3125_v59 = vsel %vm266_vm11, %v3113_v32, 0  ;;  %v3128_v33 = vsel %vm266_vm11, %v3114_v20, 0  ;;  %v3514_v32 = vpack.c.bf16 %v3509_v9, %v3509_v9  ;;  %vm10326_vm4 = vmmov %vm10325_vm2 }
 0x3f4   :  { %3163 = vmatpush.bf16.msra.mxu2 %v3125_v59  ;;  %3176 = vmatpush.bf16.msra.mxu3 %v3128_v33 }
 0x3f7   :  { %6768 = vmatmul.msk.bf16.vlgmr.msra.gmra.mxu2 %vm262_vm3, %v6765_v17  ;;  %6769 = vmatmul.msk.bf16.vlgmr.msra.gmra.mxu3 %vm262_vm3, %v6765_v17 }
 0x3f9   :  { %v2775_v43 = vpop.f32.mrf.mxu2  ;;  %v2788_v20 = vpop.f32.mrf.mxu3  ;;  %3525 = vrot.lane.b32.xlu0 %v3513_v57, %s7262_s13  ;;  %3527 = vrot.lane.b32.xlu1 %v3514_v32, %s7262_s13 }
 0x3fa   :  { %v2794_v59 = vadd.f32 %v2775_v43, %v8752_v54  ;;  %v2795_v13 = vadd.f32 %v2788_v20, %v8758_v24  ;;  %v3104_v2 = vpop.permute.xlu0 %3103 }
 0x3fb   :  { %v3111_v7 = vsel %vm10322_vm5, %v3102_v22, %v3104_v2  ;;  %v3112_v33 = vsel %vm10323_vm6, %v3104_v2, %v3106_v60  ;;  %v2749_v42 = vpop.f32.mrf.mxu0  ;;  %v2762_v49 = vpop.f32.mrf.mxu1  ;;  %vm10327_vm5 = vmmov %vm10325_vm2 }
 0x3fc   :  { %v2792_v30 = vadd.f32 %v2749_v42, %v8755_v40  ;;  %v3119_v9 = vsel %vm266_vm11, %v3111_v7, 0  ;;  %v3122_v8 = vsel %vm266_vm11, %v3112_v33, 0  ;;  %v2793_v57 = vadd.f32 %v2762_v49, %v8761_v37  ;;  %vm10328_vm6 = vmmov %vm10325_vm2 }
 0x3fd   :  { %3137 = vmatpush.bf16.msra.mxu0 %v3119_v9  ;;  %3150 = vmatpush.bf16.msra.mxu1 %v3122_v8 }
 0x400   :  { %6766 = vmatmul.msk.bf16.vlgmr.msra.gmra.mxu0 %vm262_vm3, %v6765_v17  ;;  %6767 = vmatmul.msk.bf16.vlgmr.msra.gmra.mxu1 %vm262_vm3, %v6765_v17 }
 0x401   :  { %v2777_v54 = vpop.f32.mrf.mxu2  ;;  %v2790_v24 = vpop.f32.mrf.mxu3 }
 0x402   :  { %v3240_v22 = vpop.permute.xlu2 %3239  ;;  %v3236_v8 = vpop.permute.xlu0 %3235 }
 0x403   :  { %v2751_v60 = vpop.f32.mrf.mxu0  ;;  %v2764_v32 = vpop.f32.mrf.mxu1 }
 0x40b   :  { %v7204_v43 = vpop.permute.xlu2 %7203 }
 0x40c   :  { %v7206_v40 = vunpack.i.h.bf16 %v7204_v43  ;;  %v7205_v42 = vunpack.i.l.bf16 %v7204_v43 }
 0x40e   :  { %v8855_v20 = vsel %vm10324_vm7, %v7205_v42, %v7206_v40 }
 0x40f   :  { %v3640_v37 = vmul.f32 %v8855_v20, %v7472_v63 }
 0x411   :  { %v3645_v2 = vpack.c.bf16 %v3640_v37, %v3640_v37 }
 0x413   :  { %3659 = vrot.lane.b32.xlu2 %v3645_v2, %s7264_s15 }
 0x414   :  { %v3390_v7 = vpop.permute.xlu2 %3389 }
 0x41b   :  { %v2905_v17 = vpop.f32.mrf.mxu2  ;;  %v2918_v33 = vpop.f32.mrf.mxu3 }
 0x41c   :  { %v3232_v49 = vpop.permute.xlu0 %3231  ;;  %v2924_v9 = vadd.f32 %v2905_v17, %v2794_v59  ;;  %v8860_v54 = vadd.f32 %v2918_v33, %v2795_v13  ;;  %v3238_v24 = vpop.permute.xlu1 %3237  ;;  %v6770_v59 = vld [vmem:[%s10112_s1 + $0x5c] sm:$0xf] }
 0x41d   :  { %v3243_v60 = vsel %vm10325_vm2, %v3236_v8, %v3238_v24  ;;  %v3244_v32 = vsel %vm10326_vm4, %v3238_v24, %v3240_v22  ;;  %v2879_v43 = vpop.f32.mrf.mxu0  ;;  %v2892_v56 = vpop.f32.mrf.mxu1  ;;  %vm10329_vm2 = vmmov %vm10324_vm7 }
 0x41e   :  { %v2922_v25 = vadd.f32 %v2879_v43, %v2792_v30  ;;  %v3255_v63 = vsel %vm266_vm11, %v3243_v60, 0  ;;  %v3258_v37 = vsel %vm266_vm11, %v3244_v32, 0  ;;  %v2923_v2 = vadd.f32 %v2892_v56, %v2793_v57  ;;  %v8869_v13 = vpop.permute.xlu2 %3790 }
 0x41f   :  { %3293 = vmatpush.bf16.msrb.mxu2 %v3255_v63  ;;  %3306 = vmatpush.bf16.msrb.mxu3 %v3258_v37 }
 0x422   :  { %6773 = vmatmul.msk.bf16.vlgmr.msrb.gmra.mxu2 %vm262_vm3, %v6770_v59  ;;  %6774 = vmatmul.msk.bf16.vlgmr.msrb.gmra.mxu3 %vm262_vm3, %v6770_v59 }
 0x423   :  { %v2907_v22 = vpop.f32.mrf.mxu2  ;;  %v2920_v30 = vpop.f32.mrf.mxu3 }
 0x424   :  { %v7209_v17 = vpop.permute.xlu0 %7208  ;;  %v3234_v33 = vpop.permute.xlu1 %3233 }
 0x425   :  { %v8873_v24 = vunpack.i.h.bf16 %v7209_v17  ;;  %v8875_v60 = vunpack.i.l.bf16 %v7209_v17  ;;  %v3241_v56 = vsel %vm10327_vm5, %v3232_v49, %v3234_v33  ;;  %v3242_v57 = vsel %vm10328_vm6, %v3234_v33, %v3236_v8  ;;  %v2881_v32 = vpop.f32.mrf.mxu0  ;;  %v2894_v43 = vpop.f32.mrf.mxu1 }
 0x426   :  { %v3249_v63 = vsel %vm266_vm11, %v3241_v56, 0  ;;  %v3252_v37 = vsel %vm266_vm11, %v3242_v57, 0  ;;  %v3386_v57 = vpop.permute.xlu2 %3385 }
 0x427   :  { %v8883_v22 = vsel %vm10324_vm7, %v7206_v40, %v8875_v60  ;;  %3267 = vmatpush.bf16.msrb.mxu0 %v3249_v63  ;;  %3280 = vmatpush.bf16.msrb.mxu1 %v3252_v37  ;;  %v3642_v30 = vmul.f32 %v8875_v60, %v8400_v3  ;;  %v3638_v49 = vmul.f32 %v8873_v24, %v7484_v6  ;;  %vm10380_vm7 = vcmask 973824  }
 0x428   :  { %v3641_v8 = vmul.f32 %v8883_v22, %v7456_v51  ;;  %v8893_v33 = vsel %vm10329_vm2, %v8873_v24, %v7205_v42  ;;  %vm10381_vm2 = vmmov %vm10380_vm7 }
 0x429   :  { %v3647_v17 = vpack.c.bf16 %v3642_v30, %v3642_v30  ;;  %v3643_v40 = vpack.c.bf16 %v3638_v49, %v3638_v49  ;;  %v3639_v37 = vmul.f32 %v8893_v33, %v7470_v62 }
 0x42a   :  { %6771 = vmatmul.msk.bf16.vlgmr.msrb.gmra.mxu0 %vm262_vm3, %v6770_v59  ;;  %6772 = vmatmul.msk.bf16.vlgmr.msrb.gmra.mxu1 %vm262_vm3, %v6770_v59  ;;  %v3646_v56 = vpack.c.bf16 %v3641_v8, %v3641_v8 }
 0x42b   :  { %3663 = vrot.lane.b32.xlu1 %v3647_v17, %s7264_s15  ;;  %v3035_v3 = vpop.f32.mrf.mxu2  ;;  %3655 = vrot.lane.b32.xlu2 %v3643_v40, %s7264_s15  ;;  %v3644_v62 = vpack.c.bf16 %v3639_v37, %v3639_v37 }
 0x42c   :  { %v8899_v6 = vadd.f32 %v3035_v3, %v2924_v9  ;;  %3661 = vrot.lane.b32.xlu0 %v3646_v56, %s7264_s15  ;;  %v3392_v51 = vpop.permute.xlu0 %3391  ;;  %v3388_v32 = vpop.permute.xlu1 %3387 }
 0x42d   :  { %v3396_v42 = vsel %vm981_vm8, %v3390_v7, %v3392_v51  ;;  %v3394_v43 = vsel %vm981_vm8, %v3386_v57, %v3388_v32  ;;  %v3395_v59 = vsel %vm981_vm8, %v3388_v32, %v3390_v7  ;;  %v3009_v63 = vpop.f32.mrf.mxu0  ;;  %v3022_v9 = vpop.f32.mrf.mxu1  ;;  %v6775_v7 = vld [vmem:[%s10112_s1 + $0x60] sm:$0xf] }
 0x42e   :  { %v3410_v30 = vsel %vm266_vm11, %v3396_v42, 0  ;;  %v8908_v49 = vadd.f32 %v3009_v63, %v2922_v25  ;;  %v3404_v8 = vsel %vm266_vm11, %v3394_v43, 0  ;;  %v3407_v17 = vsel %vm266_vm11, %v3395_v59, 0  ;;  %v3787_v25 = vpop.permute.xlu2 %3786 }
 0x42f   :  { %v8912_v40 = vadd.f32 %v3022_v9, %v2923_v2  ;;  %3458 = vmatpush.bf16.msra.mxu3 %v3410_v30  ;;  %3432 = vmatpush.bf16.msra.mxu1 %v3404_v8 }
 0x430   :  { %3445 = vmatpush.bf16.msra.mxu2 %v3407_v17 }
 0x432   :  { %6779 = vmatmul.msk.bf16.vlgmr.msra.gmra.mxu3 %vm262_vm3, %v6775_v7  ;;  %v3048_v3 = vpop.f32.mrf.mxu3 }
 0x433   :  { %6778 = vmatmul.msk.bf16.vlgmr.msra.gmra.mxu2 %vm262_vm3, %v6775_v7  ;;  %v3037_v56 = vpop.f32.mrf.mxu2  ;;  %v8921_v2 = vadd.f32 %v3048_v3, %v8860_v54 }
 0x434   :  { %3657 = vrot.lane.b32.xlu0 %v3644_v62, %s7264_s15  ;;  %v3793_v51 = vpop.permute.xlu0 %3792  ;;  %v3789_v42 = vpop.permute.xlu1 %3788 }
 0x435   :  { %v3796_v32 = vsel %vm123_vm0, %v8869_v13, %v3793_v51  ;;  %v3011_v43 = vpop.f32.mrf.mxu0  ;;  %v3795_v63 = vsel %vm123_vm0, %v3789_v42, %v8869_v13  ;;  %v3024_v37 = vpop.f32.mrf.mxu1  ;;  %v3794_v9 = vsel %vm123_vm0, %v3787_v25, %v3789_v42 }
 0x436   :  { %v8925_v59 = vunpack.c.l.bf16 %v3796_v32  ;;  %v8929_v30 = vunpack.c.l.bf16 %v3795_v63  ;;  %v8936_v17 = vunpack.c.l.bf16 %v3794_v9 }
 0x438   :  { %v3831_v8 = vmul.f32 %v8925_v59, %v7465_v18  ;;  %v3830_v54 = vmul.f32 %v8929_v30, %v7468_v61  ;;  %v3829_v43 = vmul.f32 %v8936_v17, %v7488_v1  ;;  %v3994_v1 = vmul.f32 %v8929_v30, %v7502_v28 }
 0x43a   :  { %6777 = vmatmul.msk.bf16.vlgmr.msra.gmra.mxu1 %vm262_vm3, %v6775_v7  ;;  %v3836_v62 = vpack.c.bf16 %v3831_v8, %v3831_v8  ;;  %v3835_v56 = vpack.c.bf16 %v3830_v54, %v3830_v54  ;;  %v3050_v13 = vpop.f32.mrf.mxu3  ;;  %v3834_v8 = vpack.c.bf16 %v3829_v43, %v3829_v43 }
 0x43c   :  { %v8939_v3 = vpop.permute.xlu0 %3803  ;;  %3850 = vrot.lane.b32.xlu2 %v3836_v62, %s7256_s7  ;;  %v3384_v42 = vpop.permute.xlu1 %3383  ;;  %3848 = vrot.lane.b32.xlu1 %v3835_v56, %s7256_s7  ;;  %v3999_v56 = vpack.c.bf16 %v3994_v1, %v3994_v1 }
 0x43d   :  { %v3812_v32 = vsel %vm123_vm0, %v3793_v51, %v8939_v3  ;;  %v3393_v61 = vsel %vm981_vm8, %v3384_v42, %v3386_v57 }
 0x43e   :  { %v8945_v18 = vunpack.c.l.bf16 %v3812_v32  ;;  %v3401_v63 = vsel %vm266_vm11, %v3393_v61, 0  ;;  %v4096_v61 = vmul.f32 %v8925_v59, %v7516_v44  ;;  %v4197_v44 = vmul.f32 %v8925_v59, %v7564_v26 }
 0x43f   :  { %3419 = vmatpush.bf16.msra.mxu0 %v3401_v63 }
 0x440   :  { %v3832_v37 = vmul.f32 %v7452_v47, %v8945_v18  ;;  %v3996_v54 = vmul.f32 %v7492_v11, %v8945_v18  ;;  %v4095_v11 = vmul.f32 %v8929_v30, %v7549_v0  ;;  %v3993_v0 = vmul.f32 %v8936_v17, %v7534_v53 }
 0x441   :  { %v4101_v43 = vpack.c.bf16 %v4096_v61, %v4096_v61  ;;  %v4202_v53 = vpack.c.bf16 %v4197_v44, %v4197_v44  ;;  %v4198_v26 = vmul.f32 %v7556_v19, %v8945_v18  ;;  %v10336_v44 = vld [vmem:[#allocation18_spill] sm:$0xff] }
 0x442   :  { %v3837_v9 = vpack.c.bf16 %v3832_v37, %v3832_v37  ;;  %6776 = vmatmul.msk.bf16.vlgmr.msra.gmra.mxu0 %vm262_vm3, %v6775_v7  ;;  %v4001_v7 = vpack.c.bf16 %v3996_v54, %v3996_v54  ;;  %v3998_v63 = vpack.c.bf16 %v3993_v0, %v3993_v0  ;;  %v4094_v37 = vmul.f32 %v8936_v17, %v7528_v52  ;;  %v10334_v0 = vld [vmem:[#allocation9_spill] sm:$0xff] }
 0x444   :  { %3852 = vrot.lane.b32.xlu0 %v3837_v9, %s7256_s7  ;;  %3846 = vrot.lane.b32.xlu2 %v3834_v8, %s7256_s7  ;;  %v3775_v51 = vpop.permute.xlu1 %3774  ;;  %v4099_v9 = vpack.c.bf16 %v4094_v37, %v4094_v37 }
 0x445   :  { %v3808_v57 = vsel %vm123_vm0, %v3775_v51, %v3787_v25  ;;  %v3995_v25 = vmul.f32 %v8925_v59, %v7508_v36  ;;  %vm10330_vm0 = vcmask 908288  }
 0x446   :  { %v8961_v62 = vunpack.c.l.bf16 %v3808_v57  ;;  %vm10331_vm4 = vmmov %vm10330_vm0 }
 0x447   :  { %v4000_v42 = vpack.c.bf16 %v3995_v25, %v3995_v25  ;;  %vm10332_vm5 = vmmov %vm10330_vm0 }
 0x448   :  { %v3828_v47 = vmul.f32 %v7474_v15, %v8961_v62  ;;  %v3992_v28 = vmul.f32 %v7520_v34, %v8961_v62  ;;  %v4100_v15 = vpack.c.bf16 %v4095_v11, %v4095_v11  ;;  %v4093_v34 = vmul.f32 %v7524_v46, %v8961_v62  ;;  %vm10333_vm6 = vmmov %vm10330_vm0 }
 0x449   :  { %v4097_v46 = vmul.f32 %v7510_v39, %v8945_v18  ;;  %v4195_v39 = vmul.f32 %v8936_v17, %v7579_v48 }
 0x44a   :  { %v3833_v13 = vpack.c.bf16 %v3828_v47, %v3828_v47  ;;  %v3997_v32 = vpack.c.bf16 %v3992_v28, %v3992_v28  ;;  %v4098_v36 = vpack.c.bf16 %v4093_v34, %v4093_v34  ;;  %v3534_v57 = vpop.permute.xlu2 %3533  ;;  %v4203_v28 = vpack.c.bf16 %v4198_v26, %v4198_v26 }
 0x44b   :  { %v4102_v8 = vpack.c.bf16 %v4097_v46, %v4097_v46  ;;  %v4200_v11 = vpack.c.bf16 %v4195_v39, %v4195_v39  ;;  %v4398_v46 = vmul.f32 %v8929_v30, %v10336_v44 }
 0x44c   :  { %4012 = vrot.lane.b32.xlu0 %v3999_v56, %s7257_s8  ;;  %4016 = vrot.lane.b32.xlu2 %v4001_v7, %s7257_s8  ;;  %v4196_v7 = vmul.f32 %v8929_v30, %v7544_v4 }
 0x44d   :  { %3844 = vrot.lane.b32.xlu1 %v3833_v13, %s7256_s7  ;;  %v6780_v13 = vld [vmem:[%s10112_s1 + $0x64] sm:$0xf] }
 0x44e   :  { %v4201_v19 = vpack.c.bf16 %v4196_v7, %v4196_v7 }
 0x454   :  { %4008 = vrot.lane.b32.xlu0 %v3997_v32, %s7257_s8  ;;  %4113 = vrot.lane.b32.xlu2 %v4100_v15, %s7258_s9  ;;  %v4297_v15 = vmul.f32 %v8929_v30, %v7593_v14 }
 0x455   :  { %4014 = vrot.lane.b32.xlu1 %v4000_v42, %s7257_s8  ;;  %v4299_v42 = vmul.f32 %v7575_v41, %v8945_v18  ;;  %v10335_v41 = vld [vmem:[#allocation14_spill] sm:$0xff] }
 0x456   :  { %v4295_v14 = vmul.f32 %v10335_v41, %v8961_v62 }
 0x45c   :  { %4115 = vrot.lane.b32.xlu0 %v4101_v43, %s7258_s9  ;;  %4109 = vrot.lane.b32.xlu2 %v4098_v36, %s7258_s9  ;;  %v4194_v43 = vmul.f32 %v10334_v0, %v8961_v62  ;;  %v4302_v36 = vpack.c.bf16 %v4297_v15, %v4297_v15 }
 0x45d   :  { %4010 = vrot.lane.b32.xlu1 %v3998_v63, %s7257_s8  ;;  %v4304_v63 = vpack.c.bf16 %v4299_v42, %v4299_v42 }
 0x45e   :  { %v4199_v37 = vpack.c.bf16 %v4194_v43, %v4194_v43  ;;  %v10343_v43 = vld [vmem:[#allocation10_spill] sm:$0xff] }
 0x463   :  { %v3530_v51 = vpop.permute.xlu0 %3529  ;;  %v3532_v1 = vpop.permute.xlu1 %3531 }
 0x464   :  { %4111 = vrot.lane.b32.xlu0 %v4099_v9, %s7258_s9  ;;  %4216 = vrot.lane.b32.xlu2 %v4202_v53, %s7259_s10  ;;  %v3538_v52 = vsel %vm10330_vm0, %v3532_v1, %v3534_v57  ;;  %v3537_v54 = vsel %vm10331_vm4, %v3530_v51, %v3532_v1  ;;  %v10337_v9 = vld [vmem:[#allocation12_spill] sm:$0xff]  ;;  %vm10382_vm0 = vmmov %vm10381_vm2 }
 0x465   :  { %4117 = vrot.lane.b32.xlu1 %v4102_v8, %s7258_s9  ;;  %v3552_v47 = vsel %vm266_vm11, %v3538_v52, 0  ;;  %v3549_v56 = vsel %vm266_vm11, %v3537_v54, 0  ;;  %v4298_v53 = vmul.f32 %v8925_v59, %v10337_v9  ;;  %v4300_v8 = vpack.c.bf16 %v4295_v14, %v4295_v14  ;;  %vm10386_vm4 = vmmov %vm10382_vm0 }
 0x466   :  { %3587 = vmatpush.bf16.msrb.mxu2 %v3549_v56  ;;  %3600 = vmatpush.bf16.msrb.mxu3 %v3552_v47  ;;  %v10338_v56 = vld [vmem:[#allocation11_spill] sm:$0xff] }
 0x467   :  { %v4303_v52 = vpack.c.bf16 %v4298_v53, %v4298_v53  ;;  %v4399_v7 = vmul.f32 %v8925_v59, %v10338_v56  ;;  %v10345_v53 = vld [vmem:[#allocation22_spill] sm:$0xff]  ;;  %v10347_v56 = vld [vmem:[#allocation24_spill] sm:$0xff] }
 0x469   :  { %6783 = vmatmul.msk.bf16.vlgmr.msrb.gmra.mxu2 %vm262_vm3, %v6780_v13  ;;  %6784 = vmatmul.msk.bf16.vlgmr.msrb.gmra.mxu3 %vm262_vm3, %v6780_v13 }
 0x46b   :  { %v3526_v48 = vpop.permute.xlu0 %3525  ;;  %v3528_v25 = vpop.permute.xlu1 %3527 }
 0x46c   :  { %4218 = vrot.lane.b32.xlu0 %v4203_v28, %s7259_s10  ;;  %4212 = vrot.lane.b32.xlu2 %v4200_v11, %s7259_s10  ;;  %v3536_v4 = vsel %vm10332_vm5, %v3528_v25, %v3530_v51  ;;  %v3535_v32 = vsel %vm10333_vm6, %v3526_v48, %v3528_v25  ;;  %v4403_v51 = vpack.c.bf16 %v4398_v46, %v4398_v46  ;;  %v10340_v11 = vld [vmem:[#allocation16_spill] sm:$0xff]  ;;  %v10344_v46 = vld [vmem:[#allocation19_spill] sm:$0xff]  ;;  %vm10391_vm5 = vcmask 965632  }
 0x46d   :  { %4214 = vrot.lane.b32.xlu1 %v4201_v19, %s7259_s10  ;;  %v3546_v61 = vsel %vm266_vm11, %v3536_v4, 0  ;;  %v3543_v34 = vsel %vm266_vm11, %v3535_v32, 0  ;;  %v4296_v19 = vmul.f32 %v8936_v17, %v10340_v11  ;;  %v4404_v48 = vpack.c.bf16 %v4399_v7, %v4399_v7  ;;  %v9058_v42 = vpop.permute.xlu2 %3659  ;;  %v10349_v11 = vld [vmem:[#allocation20_spill] sm:$0xff]  ;;  %vm10392_vm6 = vmmov %vm10391_vm5 }
 0x46e   :  { %3561 = vmatpush.bf16.msrb.mxu0 %v3543_v34  ;;  %3574 = vmatpush.bf16.msrb.mxu1 %v3546_v61  ;;  %v10342_v61 = vld [vmem:[#allocation21_spill] sm:$0xff]  ;;  %v4501_v9 = vmul.f32 %v10344_v46, %v8945_v18  ;;  %v4600_v7 = vmul.f32 %v8929_v30, %v10347_v56 }
 0x46f   :  { %v4301_v4 = vpack.c.bf16 %v4296_v19, %v4296_v19  ;;  %v4500_v34 = vmul.f32 %v8925_v59, %v10342_v61  ;;  %v4497_v19 = vmul.f32 %v10349_v11, %v8961_v62 }
 0x471   :  { %6781 = vmatmul.msk.bf16.vlgmr.msrb.gmra.mxu0 %vm262_vm3, %v6780_v13  ;;  %6782 = vmatmul.msk.bf16.vlgmr.msrb.gmra.mxu1 %vm262_vm3, %v6780_v13  ;;  %v10339_v13 = vld [vmem:[#allocation13_spill] sm:$0xff]  ;;  %v4505_v41 = vpack.c.bf16 %v4500_v34, %v4500_v34  ;;  %v10351_v34 = vld [vmem:[#allocation36_spill] sm:$0xff] }
 0x472   :  { %v4396_v28 = vmul.f32 %v10339_v13, %v8961_v62  ;;  %v10348_v13 = vld [vmem:[#allocation23_spill] sm:$0xff] }
 0x474   :  { %4315 = vrot.lane.b32.xlu0 %v4302_v36, %s7260_s11  ;;  %4319 = vrot.lane.b32.xlu2 %v4304_v63, %s7260_s11  ;;  %v4401_v25 = vpack.c.bf16 %v4396_v28, %v4396_v28  ;;  %v4400_v36 = vmul.f32 %v10343_v43, %v8945_v18  ;;  %v4602_v28 = vmul.f32 %v10348_v13, %v8945_v18 }
 0x475   :  { %4210 = vrot.lane.b32.xlu1 %v4199_v37, %s7259_s10 }
 0x476   :  { %v4405_v14 = vpack.c.bf16 %v4400_v36, %v4400_v36 }
 0x47a   :  { %v3165_v57 = vpop.f32.mrf.mxu2  ;;  %v3178_v1 = vpop.f32.mrf.mxu3 }
 0x47b   :  { %v9035_v54 = vadd.f32 %v3165_v57, %v8899_v6  ;;  %v9038_v26 = vadd.f32 %v3178_v1, %v8921_v2  ;;  %v4506_v1 = vpack.c.bf16 %v4501_v9, %v4501_v9 }
 0x47c   :  { %4311 = vrot.lane.b32.xlu0 %v4300_v8, %s7260_s11  ;;  %4416 = vrot.lane.b32.xlu2 %v4403_v51, %s7261_s12  ;;  %v4498_v8 = vmul.f32 %v8936_v17, %v10345_v53  ;;  %v10346_v51 = vld [vmem:[#allocation17_spill] sm:$0xff] }
 0x47d   :  { %4317 = vrot.lane.b32.xlu1 %v4303_v52, %s7260_s11  ;;  %v3139_v39 = vpop.f32.mrf.mxu0  ;;  %v3152_v47 = vpop.f32.mrf.mxu1  ;;  %v4499_v57 = vmul.f32 %v8929_v30, %v10346_v51  ;;  %v6785_v53 = vld [vmem:[%s10112_s1 + $0x68] sm:$0xf] }
 0x47e   :  { %v9048_v6 = vadd.f32 %v3139_v39, %v8908_v49  ;;  %v9051_v2 = vadd.f32 %v3152_v47, %v8912_v40  ;;  %v10341_v49 = vld [vmem:[#allocation15_spill] sm:$0xff]  ;;  %v4503_v52 = vpack.c.bf16 %v4498_v8, %v4498_v8 }
 0x47f   :  { %v4397_v40 = vmul.f32 %v8936_v17, %v10341_v49  ;;  %v4504_v39 = vpack.c.bf16 %v4499_v57, %v4499_v57 }
 0x481   :  { %v4402_v37 = vpack.c.bf16 %v4397_v40, %v4397_v40  ;;  %v10350_v40 = vld [vmem:[#allocation25_spill] sm:$0xff] }
 0x482   :  { %v3167_v32 = vpop.f32.mrf.mxu2  ;;  %v3180_v15 = vpop.f32.mrf.mxu3  ;;  %v4598_v61 = vmul.f32 %v10350_v40, %v8961_v62 }
 0x484   :  { %4418 = vrot.lane.b32.xlu0 %v4404_v48, %s7261_s12  ;;  %4412 = vrot.lane.b32.xlu2 %v4401_v25, %s7261_s12  ;;  %v4605_v48 = vpack.c.bf16 %v4600_v7, %v4600_v7  ;;  %v4607_v25 = vpack.c.bf16 %v4602_v28, %v4602_v28  ;;  %v4603_v46 = vpack.c.bf16 %v4598_v61, %v4598_v61  ;;  %v10353_v7 = vld [vmem:[#allocation29_spill] sm:$0xff] }
 0x485   :  { %4313 = vrot.lane.b32.xlu1 %v4301_v4, %s7260_s11  ;;  %v3141_v0 = vpop.f32.mrf.mxu0  ;;  %v3154_v63 = vpop.f32.mrf.mxu1  ;;  %v4502_v4 = vpack.c.bf16 %v4497_v19, %v4497_v19  ;;  %v4702_v13 = vmul.f32 %v8925_v59, %v10353_v7  ;;  %v10354_v28 = vld [vmem:[#allocation33_spill] sm:$0xff] }
 0x486   :  { %v3656_v44 = vpop.permute.xlu2 %3655  ;;  %v4701_v0 = vmul.f32 %v8929_v30, %v10351_v34  ;;  %v4699_v11 = vmul.f32 %v10354_v28, %v8961_v62 }
 0x488   :  { %v4706_v9 = vpack.c.bf16 %v4701_v0, %v4701_v0  ;;  %v4704_v34 = vpack.c.bf16 %v4699_v11, %v4699_v11  ;;  %v10356_v0 = vld [vmem:[#allocation31_spill] sm:$0xff] }
 0x48c   :  { %4414 = vrot.lane.b32.xlu0 %v4402_v37, %s7261_s12  ;;  %4519 = vrot.lane.b32.xlu2 %v4505_v41, %s7262_s13  ;;  %v10352_v41 = vld [vmem:[#allocation27_spill] sm:$0xff] }
 0x48d   :  { %4420 = vrot.lane.b32.xlu1 %v4405_v14, %s7261_s12  ;;  %v4601_v14 = vmul.f32 %v8925_v59, %v10352_v41 }
 0x48f   :  { %v4606_v8 = vpack.c.bf16 %v4601_v14, %v4601_v14 }
 0x494   :  { %4521 = vrot.lane.b32.xlu0 %v4506_v1, %s7262_s13  ;;  %4515 = vrot.lane.b32.xlu2 %v4503_v52, %s7262_s13 }
 0x495   :  { %4517 = vrot.lane.b32.xlu1 %v4504_v39, %s7262_s13 }
 0x496   :  { %v9078_v47 = vpop.permute.xlu2 %3850 }
 0x49c   :  { %4618 = vrot.lane.b32.xlu0 %v4605_v48, %s7264_s15  ;;  %4622 = vrot.lane.b32.xlu2 %v4607_v25, %s7264_s15 }
 0x49d   :  { %v3664_v32 = vpop.permute.xlu1 %3663  ;;  %4513 = vrot.lane.b32.xlu1 %v4502_v4, %s7262_s13 }
 0x49e   :  { %v3662_v15 = vpop.permute.xlu0 %3661  ;;  %v9089_v49 = vpop.permute.xlu2 %3846 }
 0x49f   :  { %v3667_v43 = vsel %vm1267_vm14, %v9058_v42, %v3662_v15  ;;  %v3668_v36 = vsel %vm1267_vm14, %v3662_v15, %v3664_v32 }
 0x4a0   :  { %v3679_v63 = vsel %vm266_vm11, %v3667_v43, 0  ;;  %v3682_v37 = vsel %vm266_vm11, %v3668_v36, 0  ;;  %v10357_v43 = vld [vmem:[#allocation32_spill] sm:$0xff] }
 0x4a1   :  { %3717 = vmatpush.bf16.msra.mxu2 %v3679_v63  ;;  %3730 = vmatpush.bf16.msra.mxu3 %v3682_v37  ;;  %v3820_v36 = vmul.f32 %v8929_v30, %v10357_v43 }
 0x4a3   :  { %v3824_v14 = vpack.c.bf16 %v3820_v36, %v3820_v36 }
 0x4a4   :  { %4614 = vrot.lane.b32.xlu0 %v4603_v46, %s7264_s15  ;;  %4719 = vrot.lane.b32.xlu2 %v4706_v9, %s7253_s4  ;;  %v10358_v46 = vld [vmem:[#allocation34_spill] sm:$0xff] }
 0x4a5   :  { %6788 = vmatmul.msk.bf16.vlgmr.msra.gmra.mxu2 %vm262_vm3, %v6785_v53  ;;  %6789 = vmatmul.msk.bf16.vlgmr.msra.gmra.mxu3 %vm262_vm3, %v6785_v53  ;;  %v3295_v51 = vpop.f32.mrf.mxu2  ;;  %v3308_v57 = vpop.f32.mrf.mxu3  ;;  %v4700_v9 = vmul.f32 %v8936_v17, %v10358_v46 }
 0x4a6   :  { %4620 = vrot.lane.b32.xlu1 %v4606_v8, %s7264_s15  ;;  %v9111_v1 = vadd.f32 %v3295_v51, %v9035_v54  ;;  %v3315_v52 = vadd.f32 %v3308_v57, %v9038_v26  ;;  %v3658_v39 = vpop.permute.xlu0 %3657  ;;  %v9114_v56 = vpop.permute.xlu2 %4016  ;;  %v10355_v54 = vld [vmem:[#allocation30_spill] sm:$0xff]  ;;  %v10359_v8 = vld [vmem:[#allocation40_spill] sm:$0xff] }
 0x4a7   :  { %v3665_v19 = vsel %vm1267_vm14, %v3656_v44, %v3658_v39  ;;  %v3666_v48 = vsel %vm1267_vm14, %v3658_v39, %v9058_v42  ;;  %v3269_v25 = vpop.f32.mrf.mxu0  ;;  %v3282_v4 = vpop.f32.mrf.mxu1  ;;  %v4599_v32 = vmul.f32 %v8936_v17, %v10355_v54  ;;  %v4707_v44 = vpack.c.bf16 %v4702_v13, %v4702_v13  ;;  %v10360_v13 = vld [vmem:[#allocation28_spill] sm:$0xff] }
 0x4a8   :  { %v3673_v26 = vsel %vm266_vm11, %v3665_v19, 0  ;;  %v3676_v15 = vsel %vm266_vm11, %v3666_v48, 0  ;;  %v9128_v40 = vadd.f32 %v3269_v25, %v9048_v6  ;;  %v3313_v61 = vadd.f32 %v3282_v4, %v9051_v2  ;;  %v10361_v25 = vld [vmem:[#allocation26_spill] sm:$0xff] }
 0x4a9   :  { %3691 = vmatpush.bf16.msra.mxu0 %v3673_v26  ;;  %3704 = vmatpush.bf16.msra.mxu1 %v3676_v15  ;;  %v3819_v42 = vmul.f32 %v8936_v17, %v10356_v0  ;;  %v4604_v63 = vpack.c.bf16 %v4599_v32, %v4599_v32  ;;  %v4803_v51 = vmul.f32 %v8925_v59, %v10359_v8  ;;  %v3935_v32 = vsel %vm266_vm11, %v3824_v14, 0 }
 0x4aa   :  { %v4703_v28 = vmul.f32 %v10360_v13, %v8945_v18  ;;  %v3821_v4 = vmul.f32 %v8925_v59, %v10361_v25  ;;  %v4705_v26 = vpack.c.bf16 %v4700_v9, %v4700_v9  ;;  %v10366_v25 = vld [vmem:[#allocation42_spill] sm:$0xff] }
 0x4ab   :  { %v3823_v41 = vpack.c.bf16 %v3819_v42, %v3819_v42  ;;  %v4808_v15 = vpack.c.bf16 %v4803_v51, %v4803_v51 }
 0x4ac   :  { %4721 = vrot.lane.b32.xlu0 %v4707_v44, %s7253_s4  ;;  %4715 = vrot.lane.b32.xlu2 %v4704_v34, %s7253_s4  ;;  %v6790_v44 = vld [vmem:[%s10112_s1 + $0x4] sm:$0xf]  ;;  %v4708_v34 = vpack.c.bf16 %v4703_v28, %v4703_v28  ;;  %v3825_v42 = vpack.c.bf16 %v3821_v4, %v3821_v4  ;;  %v4903_v4 = vmul.f32 %v8929_v30, %v10366_v25 }
 0x4ad   :  { %6786 = vmatmul.msk.bf16.vlgmr.msra.gmra.mxu0 %vm262_vm3, %v6785_v53  ;;  %6787 = vmatmul.msk.bf16.vlgmr.msra.gmra.mxu1 %vm262_vm3, %v6785_v53  ;;  %v3297_v6 = vpop.f32.mrf.mxu2  ;;  %v3310_v2 = vpop.f32.mrf.mxu3  ;;  %v3932_v54 = vsel %vm266_vm11, %v3823_v41, 0  ;;  %v10363_v41 = vld [vmem:[#allocation41_spill] sm:$0xff] }
 0x4ae   :  { %4616 = vrot.lane.b32.xlu1 %v4604_v63, %s7264_s15  ;;  %v9140_v37 = vpop.permute.xlu2 %4113  ;;  %v3849_v57 = vpop.permute.xlu1 %3848  ;;  %v10362_v6 = vld [vmem:[#allocation39_spill] sm:$0xff]  ;;  %v4801_v14 = vmul.f32 %v8936_v17, %v10363_v41 }
 0x4af   :  { %v3284_v39 = vpop.f32.mrf.mxu1  ;;  %v3855_v7 = vsel %vm257_vm10, %v9089_v49, %v3849_v57  ;;  %v3856_v53 = vsel %vm257_vm10, %v3849_v57, %v9078_v47  ;;  %v3271_v11 = vpop.f32.mrf.mxu0  ;;  %v4804_v2 = vmul.f32 %v10362_v6, %v8945_v18 }
 0x4b0   :  { %v3865_v19 = vsel %vm266_vm11, %v3855_v7, 0  ;;  %v3868_v48 = vsel %vm266_vm11, %v3856_v53, 0  ;;  %v3938_v53 = vsel %vm266_vm11, %v3825_v42, 0  ;;  %v4806_v28 = vpack.c.bf16 %v4801_v14, %v4801_v14 }
 0x4b1   :  { %3893 = vmatpush.bf16.msrb.mxu1 %v3865_v19  ;;  %3906 = vmatpush.bf16.msrb.mxu2 %v3868_v48  ;;  %v4809_v13 = vpack.c.bf16 %v4804_v2, %v4804_v2 }
 0x4b4   :  { %4717 = vrot.lane.b32.xlu0 %v4705_v26, %s7253_s4  ;;  %4822 = vrot.lane.b32.xlu2 %v4808_v15, %s7267_s25 }
 0x4b5   :  { %3960 = vmatpush.bf16.msra.mxu1 %v3932_v54  ;;  %3973 = vmatpush.bf16.msra.mxu2 %v3935_v32  ;;  %v3460_v0 = vpop.f32.mrf.mxu3  ;;  %v10367_v54 = vld [vmem:[#allocation44_spill] sm:$0xff] }
 0x4b6   :  { %6793 = vmatmul.msk.bf16.vlgmr.msrb.gmra.mxu2 %vm262_vm3, %v6790_v44  ;;  %4723 = vrot.lane.b32.xlu1 %v4708_v34, %s7253_s4  ;;  %v3853_v43 = vpop.permute.xlu0 %3852  ;;  %v3447_v36 = vpop.f32.mrf.mxu2  ;;  %v9165_v63 = vadd.f32 %v3460_v0, %v3315_v52  ;;  %v10364_v52 = vld [vmem:[#allocation37_spill] sm:$0xff]  ;;  %v4905_v32 = vmul.f32 %v10367_v54, %v8945_v18  ;;  %s7281_s4 = smov 512  }
 0x4b7   :  { %v3857_v46 = vsel %vm257_vm10, %v9078_v47, %v3853_v43  ;;  %v9174_v9 = vadd.f32 %v3447_v36, %v9111_v1  ;;  %v9176_v8 = vpop.permute.xlu2 %4109  ;;  %v3434_v51 = vpop.f32.mrf.mxu1  ;;  %v4802_v7 = vmul.f32 %v8929_v30, %v10364_v52  ;;  %v10365_v47 = vld [vmem:[#allocation35_spill] sm:$0xff]  ;;  %v10368_v43 = vld [vmem:[#allocation38_spill] sm:$0xff] }
 0x4b8   :  { %v3871_v57 = vsel %vm266_vm11, %v3857_v46, 0  ;;  %v9179_v39 = vadd.f32 %v3434_v51, %v3313_v61  ;;  %v3818_v1 = vmul.f32 %v8961_v62, %v10365_v47  ;;  %v4800_v36 = vmul.f32 %v10368_v43, %v8961_v62  ;;  %v10369_v52 = vld [vmem:[#allocation43_spill] sm:$0xff] }
 0x4b9   :  { %3919 = vmatpush.bf16.msrb.mxu3 %v3871_v57  ;;  %v4807_v11 = vpack.c.bf16 %v4802_v7, %v4802_v7  ;;  %v4908_v46 = vpack.c.bf16 %v4903_v4, %v4903_v4  ;;  %v4910_v51 = vpack.c.bf16 %v4905_v32, %v4905_v32  ;;  %v3826_v57 = vld [vmem:[%s10112_s1] sm:$0xf]  ;;  %v4901_v7 = vmul.f32 %v10369_v52, %v8961_v62 }
 0x4ba   :  { %v3822_v48 = vpack.c.bf16 %v3818_v1, %v3818_v1 }
 0x4bb   :  { %v4906_v54 = vpack.c.bf16 %v4901_v7, %v4901_v7 }
 0x4bc   :  { %4824 = vrot.lane.b32.xlu0 %v4809_v13, %s7267_s25  ;;  %4818 = vrot.lane.b32.xlu2 %v4806_v28, %s7267_s25  ;;  %v3929_v14 = vsel %vm266_vm11, %v3822_v48, 0 }
 0x4bd   :  { %3986 = vmatpush.bf16.msra.mxu3 %v3938_v53  ;;  %6792 = vmatmul.msk.bf16.vlgmr.msrb.gmra.mxu1 %vm262_vm3, %v6790_v44  ;;  %v3462_v61 = vpop.f32.mrf.mxu3  ;;  %v10370_v53 = vld [vmem:[#allocation48_spill] sm:$0xff] }
 0x4be   :  { %6794 = vmatmul.msk.bf16.vlgmr.msrb.gmra.mxu3 %vm262_vm3, %v6790_v44  ;;  %4820 = vrot.lane.b32.xlu1 %v4807_v11, %s7267_s25  ;;  %v4013_v19 = vpop.permute.xlu0 %4012  ;;  %v3449_v26 = vpop.f32.mrf.mxu2  ;;  %v5004_v13 = vmul.f32 %v8929_v30, %v10370_v53 }
 0x4bf   :  { %v9195_v15 = vpop.permute.xlu2 %4216  ;;  %v3845_v34 = vpop.permute.xlu1 %3844 }
 0x4c0   :  { %v3854_v0 = vsel %vm257_vm10, %v3845_v34, %v9089_v49  ;;  %v3421_v42 = vpop.f32.mrf.mxu0  ;;  %v3436_v6 = vpop.f32.mrf.mxu1  ;;  %v4805_v49 = vpack.c.bf16 %v4800_v36, %v4800_v36  ;;  %v5009_v32 = vpack.c.bf16 %v5004_v13, %v5004_v13  ;;  %v10372_v34 = vld [vmem:[#allocation49_spill] sm:$0xff] }
 0x4c1   :  { %v3862_v2 = vsel %vm266_vm11, %v3854_v0, 0  ;;  %v9203_v41 = vadd.f32 %v3421_v42, %v9128_v40  ;;  %v5005_v0 = vmul.f32 %v8925_v59, %v10372_v34  ;;  %v10373_v42 = vld [vmem:[#allocation50_spill] sm:$0xff] }
 0x4c2   :  { %3880 = vmatpush.bf16.msrb.mxu0 %v3862_v2  ;;  %v5002_v43 = vmul.f32 %v10373_v42, %v8961_v62 }
 0x4c3   :  { %v5010_v13 = vpack.c.bf16 %v5005_v0, %v5005_v0  ;;  %v10377_v0 = vld [vmem:[#allocation47_spill] sm:$0xff] }
 0x4c4   :  { %4921 = vrot.lane.b32.xlu0 %v4908_v46, %s7268_s19  ;;  %4925 = vrot.lane.b32.xlu2 %v4910_v51, %s7268_s19  ;;  %v5006_v42 = vmul.f32 %v10377_v0, %v8945_v18 }
 0x4c5   :  { %6791 = vmatmul.msk.bf16.vlgmr.msrb.gmra.mxu0 %vm262_vm3, %v6790_v44  ;;  %v10371_v44 = vld [vmem:[#allocation45_spill] sm:$0xff] }
 0x4c6   :  { %3947 = vmatpush.bf16.msra.mxu0 %v3929_v14  ;;  %6797 = vmatmul.msk.bf16.vlgmr.msra.gmra.mxu2 %vm262_vm3, %v3826_v57  ;;  %v4009_v40 = vpop.permute.xlu0 %4008  ;;  %v4904_v61 = vmul.f32 %v8925_v59, %v10371_v44 }
 0x4c7   :  { %4816 = vrot.lane.b32.xlu1 %v4805_v49, %s7267_s25  ;;  %v9218_v28 = vpop.permute.xlu2 %4212  ;;  %v4015_v47 = vpop.permute.xlu1 %4014  ;;  %v10374_v49 = vld [vmem:[#allocation46_spill] sm:$0xff] }
 0x4c8   :  { %v4020_v1 = vsel %vm454_vm12, %v4013_v19, %v4015_v47  ;;  %v4021_v11 = vsel %vm454_vm12, %v4015_v47, %v9114_v56  ;;  %v3423_v48 = vpop.f32.mrf.mxu0  ;;  %v4909_v26 = vpack.c.bf16 %v4904_v61, %v4904_v61  ;;  %v4902_v52 = vmul.f32 %v8936_v17, %v10374_v49  ;;  %v10376_v61 = vld [vmem:[#allocation55_spill] sm:$0xff] }
 0x4c9   :  { %v4032_v25 = vsel %vm266_vm11, %v4020_v1, 0  ;;  %v4035_v4 = vsel %vm266_vm11, %v4021_v11, 0  ;;  %v5007_v47 = vpack.c.bf16 %v5002_v43, %v5002_v43  ;;  %v6799_v1 = vld [vmem:[%s10112_s1 + $0x8] sm:$0xf]  ;;  %v10375_v11 = vld [vmem:[#allocation51_spill] sm:$0xff]  ;;  %v5106_v48 = vmul.f32 %v8925_v59, %v10376_v61 }
 0x4ca   :  { %4070 = vmatpush.bf16.msrb.mxu2 %v4032_v25  ;;  %4083 = vmatpush.bf16.msrb.mxu3 %v4035_v4  ;;  %v5003_v44 = vmul.f32 %v8936_v17, %v10375_v11 }
 0x4cc   :  { %4917 = vrot.lane.b32.xlu0 %v4906_v54, %s7268_s19  ;;  %5022 = vrot.lane.b32.xlu2 %v5009_v32, %s7270_s21 }
 0x4cd   :  { %6796 = vmatmul.msk.bf16.vlgmr.msra.gmra.mxu1 %vm262_vm3, %v3826_v57 }
 0x4ce   :  { %6798 = vmatmul.msk.bf16.vlgmr.msra.gmra.mxu3 %vm262_vm3, %v3826_v57  ;;  %v4116_v56 = vpop.permute.xlu0 %4115 }
 0x4cf   :  { %4923 = vrot.lane.b32.xlu1 %v4909_v26, %s7268_s19  ;;  %v4121_v36 = vsel %vm585_vm13, %v9140_v37, %v4116_v56  ;;  %v9238_v6 = vpop.permute.xlu2 %4319  ;;  %v4011_v2 = vpop.permute.xlu1 %4010 }
 0x4d0   :  { %v4133_v14 = vsel %vm266_vm11, %v4121_v36, 0  ;;  %v4018_v46 = vsel %vm454_vm12, %v4009_v40, %v4011_v2  ;;  %v4019_v51 = vsel %vm454_vm12, %v4011_v2, %v4013_v19  ;;  %v4907_v19 = vpack.c.bf16 %v4902_v52, %v4902_v52  ;;  %v10378_v2 = vld [vmem:[#allocation54_spill] sm:$0xff] }
 0x4d1   :  { %v4026_v7 = vsel %vm266_vm11, %v4018_v46, 0  ;;  %v4029_v53 = vsel %vm266_vm11, %v4019_v51, 0  ;;  %4171 = vmatpush.bf16.msra.mxu2 %v4133_v14  ;;  %v5111_v36 = vpack.c.bf16 %v5106_v48, %v5106_v48  ;;  %v5107_v14 = vmul.f32 %v10378_v2, %v8945_v18  ;;  %v10379_v46 = vld [vmem:[#allocation56_spill] sm:$0xff] }
 0x4d2   :  { %4044 = vmatpush.bf16.msrb.mxu0 %v4026_v7  ;;  %4057 = vmatpush.bf16.msrb.mxu1 %v4029_v53  ;;  %v5104_v51 = vmul.f32 %v8936_v17, %v10379_v46 }
 0x4d3   :  { %v5112_v61 = vpack.c.bf16 %v5107_v14, %v5107_v14  ;;  %v10388_v14 = vld [vmem:[#allocation59_spill] sm:$0xff] }
 0x4d4   :  { %5024 = vrot.lane.b32.xlu0 %v5010_v13, %s7270_s21  ;;  %5018 = vrot.lane.b32.xlu2 %v5007_v47, %s7270_s21  ;;  %v5109_v48 = vpack.c.bf16 %v5104_v51, %v5104_v51 }
 0x4d5   :  { %6795 = vmatmul.msk.bf16.vlgmr.msra.gmra.mxu0 %vm262_vm3, %v3826_v57 }
 0x4d6   :  { %6802 = vmatmul.msk.bf16.vlgmr.msrb.gmra.mxu2 %vm262_vm3, %v6799_v1  ;;  %v4112_v40 = vpop.permute.xlu0 %4111 }
 0x4d7   :  { %4919 = vrot.lane.b32.xlu1 %v4907_v19, %s7268_s19  ;;  %v4119_v25 = vsel %vm585_vm13, %v9176_v8, %v4112_v40  ;;  %v4120_v4 = vsel %vm585_vm13, %v4112_v40, %v9140_v37  ;;  %v9263_v54 = vpop.permute.xlu2 %4416  ;;  %v4118_v57 = vpop.permute.xlu1 %4117  ;;  %v5008_v8 = vpack.c.bf16 %v5003_v44, %v5003_v44  ;;  %v5011_v37 = vpack.c.bf16 %v5006_v42, %v5006_v42  ;;  %v10383_v19 = vld [vmem:[#allocation52_spill] sm:$0xff] }
 0x4d8   :  { %v4127_v32 = vsel %vm266_vm11, %v4119_v25, 0  ;;  %v4130_v26 = vsel %vm266_vm11, %v4120_v4, 0  ;;  %v4122_v34 = vsel %vm585_vm13, %v4116_v56, %v4118_v57  ;;  %v5105_v40 = vmul.f32 %v8929_v30, %v10383_v19  ;;  %v6804_v25 = vld [vmem:[%s10112_s1 + $0xc] sm:$0xf]  ;;  %v10384_v57 = vld [vmem:[#allocation58_spill] sm:$0xff] }
 0x4d9   :  { %v4136_v43 = vsel %vm266_vm11, %v4122_v34, 0  ;;  %4145 = vmatpush.bf16.msra.mxu0 %v4127_v32  ;;  %4158 = vmatpush.bf16.msra.mxu1 %v4130_v26  ;;  %v5206_v32 = vmul.f32 %v8929_v30, %v10384_v57  ;;  %v10385_v26 = vld [vmem:[#allocation57_spill] sm:$0xff] }
 0x4da   :  { %4184 = vmatpush.bf16.msra.mxu3 %v4136_v43  ;;  %v5208_v34 = vmul.f32 %v10385_v26, %v8945_v18 }
 0x4dc   :  { %5020 = vrot.lane.b32.xlu0 %v5008_v8, %s7270_s21  ;;  %5125 = vrot.lane.b32.xlu2 %v5111_v36, %s7272_s20  ;;  %v10387_v8 = vld [vmem:[#allocation53_spill] sm:$0xff] }
 0x4dd   :  { %6801 = vmatmul.msk.bf16.vlgmr.msrb.gmra.mxu1 %vm262_vm3, %v6799_v1 }
 0x4de   :  { %6803 = vmatmul.msk.bf16.vlgmr.msrb.gmra.mxu3 %vm262_vm3, %v6799_v1  ;;  %v4219_v56 = vpop.permute.xlu0 %4218 }
 0x4df   :  { %5026 = vrot.lane.b32.xlu1 %v5011_v37, %s7270_s21  ;;  %v4223_v49 = vsel %vm10380_vm7, %v9195_v15, %v4219_v56  ;;  %v9282_v52 = vpop.permute.xlu2 %4412  ;;  %v4215_v7 = vpop.permute.xlu1 %4214  ;;  %v5211_v37 = vpack.c.bf16 %v5206_v32, %v5206_v32  ;;  %v5213_v56 = vpack.c.bf16 %v5208_v34, %v5208_v34  ;;  %vm10396_vm7 = vmmov %vm10391_vm5 }
 0x4e0   :  { %v4237_v53 = vsel %vm266_vm11, %v4223_v49, 0  ;;  %v4221_v13 = vsel %vm10381_vm2, %v9218_v28, %v4215_v7  ;;  %v4222_v47 = vsel %vm10382_vm0, %v4215_v7, %v9195_v15  ;;  %v5110_v15 = vpack.c.bf16 %v5105_v40, %v5105_v40  ;;  %v10389_v49 = vld [vmem:[#allocation64_spill] sm:$0xff]  ;;  %vm10397_vm2 = vmmov %vm10391_vm5 }
 0x4e1   :  { %v4231_v11 = vsel %vm266_vm11, %v4221_v13, 0  ;;  %v4234_v44 = vsel %vm266_vm11, %v4222_v47, 0  ;;  %4285 = vmatpush.bf16.msrb.mxu3 %v4237_v53  ;;  %v5307_v7 = vmul.f32 %v8929_v30, %v10389_v49  ;;  %vm10402_vm0 = vcmask 908288  }
 0x4e2   :  { %4259 = vmatpush.bf16.msrb.mxu1 %v4231_v11  ;;  %4272 = vmatpush.bf16.msrb.mxu2 %v4234_v44  ;;  %v10390_v44 = vld [vmem:[#allocation60_spill] sm:$0xff] }
 0x4e4   :  { %5127 = vrot.lane.b32.xlu0 %v5112_v61, %s7272_s20  ;;  %5121 = vrot.lane.b32.xlu2 %v5109_v48, %s7272_s20  ;;  %v5207_v61 = vmul.f32 %v8925_v59, %v10390_v44 }
 0x4e5   :  { %6800 = vmatmul.msk.bf16.vlgmr.msrb.gmra.mxu0 %vm262_vm3, %v6799_v1  ;;  %v5103_v1 = vmul.f32 %v10387_v8, %v8961_v62 }
 0x4e6   :  { %6807 = vmatmul.msk.bf16.vlgmr.msra.gmra.mxu2 %vm262_vm3, %v6804_v25  ;;  %v4316_v4 = vpop.permute.xlu0 %4315 }
 0x4e7   :  { %5123 = vrot.lane.b32.xlu1 %v5110_v15, %s7272_s20  ;;  %v9305_v0 = vpop.permute.xlu2 %4519  ;;  %v4211_v42 = vpop.permute.xlu1 %4210  ;;  %v5108_v2 = vpack.c.bf16 %v5103_v1, %v5103_v1  ;;  %v10394_v1 = vld [vmem:[#allocation65_spill] sm:$0xff] }
 0x4e8   :  { %v4220_v43 = vsel %vm10386_vm4, %v4211_v42, %v9218_v28  ;;  %v5204_v28 = vmul.f32 %v10388_v14, %v8961_v62  ;;  %v5312_v42 = vpack.c.bf16 %v5307_v7, %v5307_v7  ;;  %vm10404_vm4 = vmmov %vm10402_vm0 }
 0x4e9   :  { %v4228_v36 = vsel %vm266_vm11, %v4220_v43, 0  ;;  %v6809_v43 = vld [vmem:[%s10112_s1 + $0x10] sm:$0xf] }
 0x4ea   :  { %4246 = vmatpush.bf16.msrb.mxu0 %v4228_v36  ;;  %v5209_v32 = vpack.c.bf16 %v5204_v28, %v5204_v28  ;;  %v5305_v36 = vmul.f32 %v10394_v1, %v8961_v62 }
 0x4ec   :  { %5224 = vrot.lane.b32.xlu0 %v5211_v37, %s7274_s27  ;;  %5228 = vrot.lane.b32.xlu2 %v5213_v56, %s7274_s27  ;;  %v3589_v46 = vpop.f32.mrf.mxu2  ;;  %v3602_v13 = vpop.f32.mrf.mxu3 }
 0x4ed   :  { %6806 = vmatmul.msk.bf16.vlgmr.msra.gmra.mxu1 %vm262_vm3, %v6804_v25  ;;  %v9322_v53 = vadd.f32 %v3589_v46, %v9174_v9  ;;  %v9327_v19 = vadd.f32 %v3602_v13, %v9165_v63  ;;  %v10395_v46 = vld [vmem:[#allocation61_spill] sm:$0xff] }
 0x4ee   :  { %6808 = vmatmul.msk.bf16.vlgmr.msra.gmra.mxu3 %vm262_vm3, %v6804_v25  ;;  %v4312_v51 = vpop.permute.xlu0 %4311  ;;  %v3563_v11 = vpop.f32.mrf.mxu0  ;;  %v5205_v49 = vmul.f32 %v8936_v17, %v10395_v46 }
 0x4ef   :  { %5119 = vrot.lane.b32.xlu1 %v5108_v2, %s7272_s20  ;;  %v9324_v47 = vpop.permute.xlu2 %4515  ;;  %v4318_v40 = vpop.permute.xlu1 %4317  ;;  %v9335_v57 = vadd.f32 %v3563_v11, %v9203_v41  ;;  %v5212_v41 = vpack.c.bf16 %v5207_v61, %v5207_v61 }
 0x4f0   :  { %v4323_v48 = vsel %vm10391_vm5, %v4316_v4, %v4318_v40  ;;  %v4324_v15 = vsel %vm10392_vm6, %v4318_v40, %v9238_v6  ;;  %v3576_v9 = vpop.f32.mrf.mxu1  ;;  %v10393_v6 = vld [vmem:[#allocation63_spill] sm:$0xff]  ;;  %vm10405_vm5 = vmmov %vm10402_vm0 }
 0x4f1   :  { %v4335_v26 = vsel %vm266_vm11, %v4323_v48, 0  ;;  %v4338_v63 = vsel %vm266_vm11, %v4324_v15, 0  ;;  %v9340_v34 = vadd.f32 %v3576_v9, %v9179_v39  ;;  %v5308_v8 = vmul.f32 %v8925_v59, %v10393_v6  ;;  %vm10408_vm6 = vmmov %vm10402_vm0 }
 0x4f2   :  { %4373 = vmatpush.bf16.msra.mxu2 %v4335_v26  ;;  %4386 = vmatpush.bf16.msra.mxu3 %v4338_v63  ;;  %v5310_v15 = vpack.c.bf16 %v5305_v36, %v5305_v36  ;;  %v5210_v9 = vpack.c.bf16 %v5205_v49, %v5205_v49  ;;  %v5409_v26 = vmul.f32 %v8925_v59, %v8284_v31  ;;  %v10401_v49 = vld [vmem:[#allocation70_spill] sm:$0xff] }
 0x4f3   :  { %v5313_v48 = vpack.c.bf16 %v5308_v8, %v5308_v8  ;;  %v10399_v8 = vld [vmem:[#allocation62_spill] sm:$0xff] }
 0x4f4   :  { %5220 = vrot.lane.b32.xlu0 %v5209_v32, %s7274_s27  ;;  %5325 = vrot.lane.b32.xlu2 %v5312_v42, %s7276_s18  ;;  %v3591_v37 = vpop.f32.mrf.mxu2  ;;  %v3604_v14 = vpop.f32.mrf.mxu3  ;;  %v5309_v1 = vmul.f32 %v10399_v8, %v8945_v18 }
 0x4f5   :  { %6805 = vmatmul.msk.bf16.vlgmr.msra.gmra.mxu0 %vm262_vm3, %v6804_v25  ;;  %v5414_v14 = vpack.c.bf16 %v5409_v26, %v5409_v26 }
 0x4f6   :  { %6812 = vmatmul.msk.bf16.vlgmr.msrb.gmra.mxu2 %vm262_vm3, %v6809_v43  ;;  %v4419_v39 = vpop.permute.xlu0 %4418  ;;  %v3565_v7 = vpop.f32.mrf.mxu0 }
 0x4f7   :  { %5226 = vrot.lane.b32.xlu1 %v5212_v41, %s7274_s27  ;;  %v4424_v56 = vsel %vm981_vm8, %v9263_v54, %v4419_v39  ;;  %v9356_v2 = vpop.permute.xlu2 %4622  ;;  %v4314_v28 = vpop.permute.xlu1 %4313  ;;  %v5407_v7 = vmul.f32 %v8936_v17, %v10401_v49 }
 0x4f8   :  { %v4436_v25 = vsel %vm266_vm11, %v4424_v56, 0  ;;  %v4321_v13 = vsel %vm10396_vm7, %v4312_v51, %v4314_v28  ;;  %v4322_v40 = vsel %vm10397_vm2, %v4314_v28, %v4316_v4  ;;  %v3578_v11 = vpop.f32.mrf.mxu1  ;;  %v10398_v51 = vld [vmem:[#allocation66_spill] sm:$0xff]  ;;  %vm10414_vm7 = vcmask 523264  }
 0x4f9   :  { %4474 = vmatpush.bf16.msrb.mxu2 %v4436_v25  ;;  %v4329_v44 = vsel %vm266_vm11, %v4321_v13, 0  ;;  %v4332_v61 = vsel %vm266_vm11, %v4322_v40, 0  ;;  %v5306_v32 = vmul.f32 %v8936_v17, %v10398_v51  ;;  %v5314_v25 = vpack.c.bf16 %v5309_v1, %v5309_v1  ;;  %vm10418_vm2 = vmmov %vm10414_vm7 }
 0x4fa   :  { %4347 = vmatpush.bf16.msra.mxu0 %v4329_v44  ;;  %4360 = vmatpush.bf16.msra.mxu1 %v4332_v61 }
 0x4fb   :  { %v5311_v31 = vpack.c.bf16 %v5306_v32, %v5306_v32 }
 0x4fc   :  { %5327 = vrot.lane.b32.xlu0 %v5313_v48, %s7276_s18  ;;  %5321 = vrot.lane.b32.xlu2 %v5310_v15, %s7276_s18 }
 0x4fd   :  { %6811 = vmatmul.msk.bf16.vlgmr.msrb.gmra.mxu1 %vm262_vm3, %v6809_v43 }
 0x4fe   :  { %6813 = vmatmul.msk.bf16.vlgmr.msrb.gmra.mxu3 %vm262_vm3, %v6809_v43  ;;  %v4415_v4 = vpop.permute.xlu0 %4414 }
 0x4ff   :  { %5222 = vrot.lane.b32.xlu1 %v5210_v9, %s7274_s27  ;;  %v4423_v63 = vsel %vm981_vm8, %v4415_v4, %v9263_v54  ;;  %v9376_v42 = vpop.permute.xlu2 %4719  ;;  %v4421_v6 = vpop.permute.xlu1 %4420  ;;  %v4422_v37 = vsel %vm981_vm8, %v9282_v52, %v4415_v4  ;;  %v6814_v54 = vld [vmem:[%s10112_s1 + $0x14] sm:$0xf]  ;;  %v10400_v52 = vld [vmem:[#allocation69_spill] sm:$0xff]  ;;  %v5412_v4 = vpack.c.bf16 %v5407_v7, %v5407_v7 }
 0x500   :  { %v4433_v41 = vsel %vm266_vm11, %v4423_v63, 0  ;;  %v4425_v36 = vsel %vm981_vm8, %v4419_v39, %v4421_v6  ;;  %v4430_v39 = vsel %vm266_vm11, %v4422_v37, 0  ;;  %v5410_v28 = vmul.f32 %v10400_v52, %v8945_v18  ;;  %v10406_v63 = vld [vmem:[#allocation71_spill] sm:$0xff] }
 0x501   :  { %4461 = vmatpush.bf16.msrb.mxu1 %v4433_v41  ;;  %v4439_v56 = vsel %vm266_vm11, %v4425_v36, 0  ;;  %v5509_v41 = vmul.f32 %v8929_v30, %v10406_v63  ;;  %v5511_v6 = vmul.f32 %v8328_v12, %v8945_v18  ;;  %v10407_v36 = vld [vmem:[#allocation68_spill] sm:$0xff]  ;;  %v10413_v63 = vld [vmem:[#allocation74_spill] sm:$0xff] }
 0x502   :  { %4487 = vmatpush.bf16.msrb.mxu3 %v4439_v56  ;;  %v5415_v44 = vpack.c.bf16 %v5410_v28, %v5410_v28  ;;  %v5406_v37 = vmul.f32 %v10407_v36, %v8961_v62 }
 0x504   :  { %5323 = vrot.lane.b32.xlu0 %v5311_v31, %s7276_s18  ;;  %5428 = vrot.lane.b32.xlu2 %v5414_v14, %s7277_s14  ;;  %v5514_v31 = vpack.c.bf16 %v5509_v41, %v5509_v41  ;;  %v5516_v14 = vpack.c.bf16 %v5511_v6, %v5511_v6  ;;  %v5508_v41 = vmul.f32 %v8936_v17, %v10413_v63 }
 0x505   :  { %6810 = vmatmul.msk.bf16.vlgmr.msrb.gmra.mxu0 %vm262_vm3, %v6809_v43  ;;  %v10403_v43 = vld [vmem:[#allocation67_spill] sm:$0xff] }
 0x506   :  { %6817 = vmatmul.msk.bf16.vlgmr.msra.gmra.mxu2 %vm262_vm3, %v6814_v54  ;;  %4448 = vmatpush.bf16.msrb.mxu0 %v4430_v39  ;;  %v4522_v46 = vpop.permute.xlu0 %4521  ;;  %v5408_v61 = vmul.f32 %v8929_v30, %v10403_v43  ;;  %v5411_v39 = vpack.c.bf16 %v5406_v37, %v5406_v37  ;;  %v6824_v37 = vld [vmem:[%s10112_s1 + $0x1c] sm:$0xf] }
 0x507   :  { %5329 = vrot.lane.b32.xlu1 %v5314_v25, %s7276_s18  ;;  %v9398_v13 = vpop.permute.xlu2 %4715  ;;  %v4518_v40 = vpop.permute.xlu1 %4517  ;;  %v4526_v48 = vsel %vm10404_vm4, %v9305_v0, %v4522_v46  ;;  %v6819_v25 = vld [vmem:[%s10112_s1 + $0x18] sm:$0xf]  ;;  %v5691_v46 = vmul.f32 %v8925_v59, %v8415_v35 }
 0x508   :  { %v4525_v11 = vsel %vm10402_vm0, %v4518_v40, %v9305_v0  ;;  %v4524_v15 = vsel %vm10405_vm5, %v9324_v47, %v4518_v40  ;;  %v4540_v51 = vsel %vm266_vm11, %v4526_v48, 0  ;;  %v5413_v0 = vpack.c.bf16 %v5408_v61, %v5408_v61  ;;  %vm10419_vm0 = vmmov %vm10418_vm2 }
 0x509   :  { %v4537_v9 = vsel %vm266_vm11, %v4525_v11, 0  ;;  %v4534_v32 = vsel %vm266_vm11, %v4524_v15, 0  ;;  %v10411_v11 = vld [vmem:[#allocation73_spill] sm:$0xff]  ;;  %v5692_v15 = vmul.f32 %v8945_v18, %v8412_v45  ;;  %vm10423_vm4 = vmmov %vm10419_vm0  ;;  %vm10424_vm5 = vcmask 515072  }
 0x50a   :  { %4575 = vmatpush.bf16.msra.mxu2 %v4537_v9  ;;  %v10412_v9 = vld [vmem:[#allocation76_spill] sm:$0xff] }
 0x50c   :  { %5430 = vrot.lane.b32.xlu0 %v5415_v44, %s7277_s14  ;;  %5424 = vrot.lane.b32.xlu2 %v5412_v4, %s7277_s14  ;;  %v5689_v4 = vmul.f32 %v10412_v9, %v8936_v17 }
 0x50d   :  { %6816 = vmatmul.msk.bf16.vlgmr.msra.gmra.mxu1 %vm262_vm3, %v6814_v54 }
 0x50e   :  { %6818 = vmatmul.msk.bf16.vlgmr.msra.gmra.mxu3 %vm262_vm3, %v6814_v54  ;;  %4562 = vmatpush.bf16.msra.mxu1 %v4534_v32  ;;  %v4619_v26 = vpop.permute.xlu0 %4618  ;;  %v5694_v36 = vpack.c.bf16 %v5689_v4, %v5689_v4 }
 0x50f   :  { %4588 = vmatpush.bf16.msra.mxu3 %v4540_v51  ;;  %5426 = vrot.lane.b32.xlu1 %v5413_v0, %s7277_s14  ;;  %v9420_v8 = vpop.permute.xlu2 %4822  ;;  %v4514_v1 = vpop.permute.xlu1 %4513  ;;  %v5697_v0 = vpack.c.bf16 %v5692_v15, %v5692_v15 }
 0x510   :  { %v4523_v56 = vsel %vm10408_vm6, %v4514_v1, %v9324_v47  ;;  %v10410_v47 = vld [vmem:[#allocation72_spill] sm:$0xff]  ;;  %vm10428_vm6 = vmmov %vm10424_vm5 }
 0x511   :  { %v4531_v12 = vsel %vm266_vm11, %v4523_v56, 0  ;;  %v5507_v28 = vmul.f32 %v10410_v47, %v8961_v62  ;;  %v5696_v62 = vpack.c.bf16 %v5691_v46, %v5691_v46  ;;  %v10416_v47 = vld [vmem:[#allocation84_spill] sm:$0xff] }
 0x513   :  { %v5512_v61 = vpack.c.bf16 %v5507_v28, %v5507_v28  ;;  %v5793_v28 = vmul.f32 %v8945_v18, %v10416_v47 }
 0x514   :  { %5527 = vrot.lane.b32.xlu0 %v5514_v31, %s10409_s28  ;;  %5531 = vrot.lane.b32.xlu2 %v5516_v14, %s10409_s28 }
 0x515   :  { %6815 = vmatmul.msk.bf16.vlgmr.msra.gmra.mxu0 %vm262_vm3, %v6814_v54  ;;  %v5510_v54 = vmul.f32 %v8925_v59, %v10411_v11  ;;  %v5798_v15 = vpack.c.bf16 %v5793_v28, %v5793_v28 }
 0x516   :  { %6822 = vmatmul.msk.bf16.vlgmr.msrb.gmra.mxu2 %vm262_vm3, %v6819_v25  ;;  %4549 = vmatpush.bf16.msra.mxu0 %v4531_v12  ;;  %v4615_v52 = vpop.permute.xlu0 %4614  ;;  %v5513_v12 = vpack.c.bf16 %v5508_v41, %v5508_v41 }
 0x517   :  { %5422 = vrot.lane.b32.xlu1 %v5411_v39, %s7277_s14  ;;  %v9439_v7 = vpop.permute.xlu2 %4818  ;;  %v5515_v48 = vpack.c.bf16 %v5510_v54, %v5510_v54  ;;  %v10415_v39 = vld [vmem:[#allocation77_spill] sm:$0xff]  ;;  %v10417_v54 = vld [vmem:[#allocation75_spill] sm:$0xff] }
 0x518   :  { %v4621_v49 = vpop.permute.xlu1 %4620 }
 0x519   :  { %v4626_v40 = vsel %vm1267_vm14, %v4619_v26, %v4621_v49  ;;  %v4627_v44 = vsel %vm1267_vm14, %v4621_v49, %v9356_v2 }
 0x51a   :  { %v4638_v43 = vsel %vm266_vm11, %v4626_v40, 0  ;;  %v4641_v35 = vsel %vm266_vm11, %v4627_v44, 0 }
 0x51b   :  { %4676 = vmatpush.bf16.msrb.mxu2 %v4638_v43 }
 0x51c   :  { %5523 = vrot.lane.b32.xlu0 %v5512_v61, %s10409_s28  ;;  %5709 = vrot.lane.b32.xlu2 %v5696_v62, %s7256_s7 }
 0x51d   :  { %6821 = vmatmul.msk.bf16.vlgmr.msrb.gmra.mxu1 %vm262_vm3, %v6819_v25 }
 0x51e   :  { %6823 = vmatmul.msk.bf16.vlgmr.msrb.gmra.mxu3 %vm262_vm3, %v6819_v25  ;;  %v4722_v2 = vpop.permute.xlu0 %4721 }
 0x51f   :  { %4689 = vmatpush.bf16.msrb.mxu3 %v4641_v35  ;;  %5529 = vrot.lane.b32.xlu1 %v5515_v48, %s10409_s28  ;;  %v4727_v6 = vsel %vm10414_vm7, %v9376_v42, %v4722_v2  ;;  %v9467_v56 = vpop.permute.xlu2 %4925  ;;  %vm10429_vm7 = vmmov %vm10424_vm5 }
 0x520   :  { %v4617_v51 = vpop.permute.xlu1 %4616  ;;  %v4739_v31 = vsel %vm266_vm11, %v4727_v6, 0  ;;  %v10422_v6 = vld [vmem:[#allocation83_spill] sm:$0xff] }
 0x521   :  { %v4625_v32 = vsel %vm1267_vm14, %v4617_v51, %v4619_v26  ;;  %v4624_v1 = vsel %vm1267_vm14, %v4615_v52, %v4617_v51  ;;  %v9470_v26 = vunpack.c.l.bf16 %v8939_v3  ;;  %v5690_v52 = vmul.f32 %v8929_v30, %v10415_v39 }
 0x522   :  { %v4635_v45 = vsel %vm266_vm11, %v4625_v32, 0  ;;  %v4632_v14 = vsel %vm266_vm11, %v4624_v1, 0  ;;  %v10421_v32 = vld [vmem:[#allocation86_spill] sm:$0xff]  ;;  %v5792_v1 = vmul.f32 %v8925_v59, %v10422_v6 }
 0x523   :  { %4663 = vmatpush.bf16.msrb.mxu1 %v4635_v45  ;;  %v5693_v44 = vmul.f32 %v10417_v54, %v9470_v26 }
 0x524   :  { %5711 = vrot.lane.b32.xlu0 %v5697_v0, %s7256_s7  ;;  %5705 = vrot.lane.b32.xlu2 %v5694_v36, %s7256_s7  ;;  %v5791_v0 = vmul.f32 %v8929_v30, %v10421_v32 }
 0x525   :  { %6820 = vmatmul.msk.bf16.vlgmr.msrb.gmra.mxu0 %vm262_vm3, %v6819_v25  ;;  %v5695_v25 = vpack.c.bf16 %v5690_v52, %v5690_v52  ;;  %v6829_v52 = vld [vmem:[%s10112_s1 + $0x20] sm:$0xf] }
 0x526   :  { %6827 = vmatmul.msk.bf16.vlgmr.msra.gmra.mxu2 %vm262_vm3, %v6824_v37  ;;  %4650 = vmatpush.bf16.msrb.mxu0 %v4632_v14  ;;  %v4718_v3 = vpop.permute.xlu0 %4717  ;;  %v5796_v39 = vpack.c.bf16 %v5791_v0, %v5791_v0 }
 0x527   :  { %4777 = vmatpush.bf16.msra.mxu2 %v4739_v31  ;;  %5525 = vrot.lane.b32.xlu1 %v5513_v12, %s10409_s28  ;;  %v4726_v43 = vsel %vm10418_vm2, %v4718_v3, %v9376_v42  ;;  %v9503_v4 = vpop.permute.xlu2 %5022  ;;  %v4725_v36 = vsel %vm10423_vm4, %v9398_v13, %v4718_v3  ;;  %v5797_v13 = vpack.c.bf16 %v5792_v1, %v5792_v1  ;;  %vm10432_vm2 = vmmov %vm10424_vm5 }
 0x528   :  { %v4724_v46 = vpop.permute.xlu1 %4723  ;;  %v3719_v49 = vpop.f32.mrf.mxu2  ;;  %v4736_v42 = vsel %vm266_vm11, %v4726_v43, 0  ;;  %v4733_v28 = vsel %vm266_vm11, %v4725_v36, 0  ;;  %v10431_v36 = vld [vmem:[#allocation89_spill] sm:$0xff] }
 0x529   :  { %v9484_v40 = vadd.f32 %v3719_v49, %v9322_v53  ;;  %v3732_v11 = vpop.f32.mrf.mxu3  ;;  %v4728_v61 = vsel %vm10419_vm0, %v4722_v2, %v4724_v46  ;;  %v5698_v2 = vpack.c.bf16 %v5693_v44, %v5693_v44  ;;  %v10425_v49 = vld [vmem:[#allocation90_spill] sm:$0xff]  ;;  %vm10433_vm0 = vcmask 506880  }
 0x52a   :  { %v9492_v62 = vadd.f32 %v3732_v11, %v9327_v19  ;;  %v3693_v35 = vpop.f32.mrf.mxu0  ;;  %v3706_v48 = vpop.f32.mrf.mxu1  ;;  %v4742_v19 = vsel %vm266_vm11, %v4728_v61, 0  ;;  %v5893_v11 = vmul.f32 %v8925_v59, %v10425_v49  ;;  %vm10435_vm4 = vmmov %vm10433_vm0 }
 0x52b   :  { %v9495_v9 = vadd.f32 %v3693_v35, %v9335_v57  ;;  %v9498_v53 = vadd.f32 %v3706_v48, %v9340_v34  ;;  %v10420_v34 = vld [vmem:[#allocation80_spill] sm:$0xff]  ;;  %v10427_v35 = vld [vmem:[#allocation85_spill] sm:$0xff] }
 0x52c   :  { %5707 = vrot.lane.b32.xlu0 %v5695_v25, %s7256_s7  ;;  %5812 = vrot.lane.b32.xlu2 %v5798_v15, %s7257_s8  ;;  %v5794_v51 = vmul.f32 %v10420_v34, %v9470_v26  ;;  %v10426_v25 = vld [vmem:[#allocation87_spill] sm:$0xff] }
 0x52d   :  { %6826 = vmatmul.msk.bf16.vlgmr.msra.gmra.mxu1 %vm262_vm3, %v6824_v37  ;;  %v5895_v54 = vmul.f32 %v10426_v25, %v9470_v26 }
 0x52e   :  { %6828 = vmatmul.msk.bf16.vlgmr.msra.gmra.mxu3 %vm262_vm3, %v6824_v37  ;;  %4764 = vmatpush.bf16.msra.mxu1 %v4736_v42  ;;  %v4825_v57 = vpop.permute.xlu0 %4824  ;;  %v5799_v12 = vpack.c.bf16 %v5794_v51, %v5794_v51 }
 0x52f   :  { %4790 = vmatpush.bf16.msra.mxu3 %v4742_v19  ;;  %5713 = vrot.lane.b32.xlu1 %v5698_v2, %s7256_s7  ;;  %v9532_v44 = vpop.permute.xlu2 %5018  ;;  %v4829_v48 = vsel %vm10428_vm6, %v9420_v8, %v4825_v57  ;;  %v5898_v19 = vpack.c.bf16 %v5893_v11, %v5893_v11  ;;  %v5900_v2 = vpack.c.bf16 %v5895_v54, %v5895_v54  ;;  %v10430_v57 = vld [vmem:[#allocation88_spill] sm:$0xff]  ;;  %vm10437_vm6 = vcmask 457728  }
 0x530   :  { %v4821_v63 = vpop.permute.xlu1 %4820  ;;  %v3721_v41 = vpop.f32.mrf.mxu2  ;;  %v4843_v34 = vsel %vm266_vm11, %v4829_v48, 0  ;;  %v5891_v0 = vmul.f32 %v10430_v57, %v8936_v17  ;;  %v5992_v54 = vmul.f32 %v8641_v29, %v8936_v17 }
 0x531   :  { %v3734_v45 = vpop.f32.mrf.mxu3  ;;  %v4828_v31 = vsel %vm10424_vm5, %v4821_v63, %v9420_v8  ;;  %v4827_v15 = vsel %vm10429_vm7, %v9439_v7, %v4821_v63  ;;  %v5994_v63 = vmul.f32 %v8925_v59, %v8629_v10  ;;  %v6834_v10 = vld [vmem:[%s10112_s1 + $0x24] sm:$0xf]  ;;  %vm10436_vm5 = vmmov %vm10433_vm0 }
 0x532   :  { %v3708_v14 = vpop.f32.mrf.mxu1  ;;  %v3695_v47 = vpop.f32.mrf.mxu0  ;;  %v4840_v46 = vsel %vm266_vm11, %v4828_v31, 0  ;;  %v4837_v51 = vsel %vm266_vm11, %v4827_v15, 0  ;;  %v5894_v31 = vmul.f32 %v8945_v18, %v10431_v36  ;;  %v10434_v15 = vld [vmem:[#allocation91_spill] sm:$0xff]  ;;  %vm10438_vm7 = vmmov %vm10433_vm0 }
 0x534   :  { %5814 = vrot.lane.b32.xlu0 %v5799_v12, %s7257_s8  ;;  %5808 = vrot.lane.b32.xlu2 %v5796_v39, %s7257_s8  ;;  %v5899_v11 = vpack.c.bf16 %v5894_v31, %v5894_v31 }
 0x535   :  { %6825 = vmatmul.msk.bf16.vlgmr.msra.gmra.mxu0 %vm262_vm3, %v6824_v37  ;;  %v5790_v37 = vmul.f32 %v10427_v35, %v8936_v17 }
 0x536   :  { %6832 = vmatmul.msk.bf16.vlgmr.msrb.gmra.mxu2 %vm262_vm3, %v6829_v52  ;;  %4751 = vmatpush.bf16.msra.mxu0 %v4733_v28  ;;  %v4922_v3 = vpop.permute.xlu0 %4921  ;;  %v5896_v28 = vpack.c.bf16 %v5891_v0, %v5891_v0 }
 0x537   :  { %4878 = vmatpush.bf16.msrb.mxu2 %v4840_v46  ;;  %5810 = vrot.lane.b32.xlu1 %v5797_v13, %s7257_s8  ;;  %v5795_v32 = vpack.c.bf16 %v5790_v37, %v5790_v37  ;;  %v9552_v1 = vpop.permute.xlu2 %5125  ;;  %v5999_v46 = vpack.c.bf16 %v5994_v63, %v5994_v63 }
 0x539   :  { %v4817_v43 = vpop.permute.xlu1 %4816  ;;  %v3908_v61 = vpop.f32.mrf.mxu2 }
 0x53a   :  { %v3895_v42 = vpop.f32.mrf.mxu1  ;;  %v4826_v14 = vsel %vm10432_vm2, %v4817_v43, %v9439_v7  ;;  %v5995_v7 = vmul.f32 %v8945_v18, %v8633_v38  ;;  %vm10439_vm2 = vmmov %vm10437_vm6 }
 0x53b   :  { %v4834_v13 = vsel %vm266_vm11, %v4826_v14, 0  ;;  %v5996_v14 = vmul.f32 %v8609_v16, %v9470_v26 }
 0x53c   :  { %5911 = vrot.lane.b32.xlu0 %v5898_v19, %s7258_s9  ;;  %5915 = vrot.lane.b32.xlu2 %v5900_v2, %s7258_s9  ;;  %v6000_v48 = vpack.c.bf16 %v5995_v7, %v5995_v7  ;;  %v6097_v7 = vmul.f32 %v8709_v55, %v9470_v26 }
 0x53d   :  { %6831 = vmatmul.msk.bf16.vlgmr.msrb.gmra.mxu1 %vm262_vm3, %v6829_v52 }
 0x53e   :  { %6833 = vmatmul.msk.bf16.vlgmr.msrb.gmra.mxu3 %vm262_vm3, %v6829_v52  ;;  %4865 = vmatpush.bf16.msrb.mxu1 %v4837_v51  ;;  %v4918_v8 = vpop.permute.xlu0 %4917 }
 0x53f   :  { %4891 = vmatpush.bf16.msrb.mxu3 %v4843_v34  ;;  %5806 = vrot.lane.b32.xlu1 %v5795_v32, %s7257_s8  ;;  %v5997_v32 = vpack.c.bf16 %v5992_v54, %v5992_v54  ;;  %v9580_v57 = vpop.permute.xlu2 %5121  ;;  %v6094_v54 = vmul.f32 %v8929_v30, %v8740_v27 }
 0x541   :  { %v4924_v41 = vpop.permute.xlu1 %4923  ;;  %v3921_v6 = vpop.f32.mrf.mxu3  ;;  %v6099_v27 = vpack.c.bf16 %v6094_v54, %v6094_v54 }
 0x542   :  { %v3910_v45 = vpop.f32.mrf.mxu2  ;;  %v4929_v12 = vsel %vm10433_vm0, %v4922_v3, %v4924_v41  ;;  %v3897_v39 = vpop.f32.mrf.mxu1  ;;  %v4930_v19 = vsel %vm10435_vm4, %v4924_v41, %v9467_v56  ;;  %vm10440_vm0 = vmmov %vm10439_vm2 }
 0x543   :  { %v3882_v47 = vpop.f32.mrf.mxu0  ;;  %v4941_v49 = vsel %vm266_vm11, %v4929_v12, 0  ;;  %v4944_v0 = vsel %vm266_vm11, %v4930_v19, 0  ;;  %vm10442_vm4 = vmmov %vm10440_vm0 }
 0x544   :  { %5907 = vrot.lane.b32.xlu0 %v5896_v28, %s7258_s9  ;;  %6012 = vrot.lane.b32.xlu2 %v5999_v46, %s7259_s10 }
 0x545   :  { %6830 = vmatmul.msk.bf16.vlgmr.msrb.gmra.mxu0 %vm262_vm3, %v6829_v52  ;;  %v5892_v52 = vmul.f32 %v8929_v30, %v10434_v15 }
 0x546   :  { %6837 = vmatmul.msk.bf16.vlgmr.msra.gmra.mxu2 %vm262_vm3, %v6834_v10  ;;  %4852 = vmatpush.bf16.msrb.mxu0 %v4834_v13  ;;  %v9570_v25 = vpop.permute.xlu0 %5024 }
 0x547   :  { %4979 = vmatpush.bf16.msra.mxu2 %v4941_v49  ;;  %5913 = vrot.lane.b32.xlu1 %v5899_v11, %s7258_s9  ;;  %v5897_v56 = vpack.c.bf16 %v5892_v52, %v5892_v52  ;;  %v5030_v12 = vsel %vm10437_vm6, %v9503_v4, %v9570_v25 }
 0x548   :  { %v5042_v16 = vsel %vm266_vm11, %v5030_v12, 0 }
 0x549   :  { %v4920_v43 = vpop.permute.xlu1 %4919  ;;  %v3923_v35 = vpop.f32.mrf.mxu3 }
 0x54a   :  { %v3975_v37 = vpop.f32.mrf.mxu2  ;;  %v4928_v38 = vsel %vm10436_vm5, %v4920_v43, %v4922_v3  ;;  %v3962_v34 = vpop.f32.mrf.mxu1  ;;  %v4927_v39 = vsel %vm10438_vm7, %v4918_v8, %v4920_v43  ;;  %v6001_v8 = vpack.c.bf16 %v5996_v14, %v5996_v14  ;;  %vm10443_vm5 = vcmask 449536  }
 0x54b   :  { %v3976_v2 = vadd.f32 %v3975_v37, %v3908_v61  ;;  %v3884_v51 = vpop.f32.mrf.mxu0  ;;  %v3963_v29 = vadd.f32 %v3962_v34, %v3895_v42  ;;  %v4938_v63 = vsel %vm266_vm11, %v4928_v38, 0  ;;  %v5993_v61 = vmul.f32 %v8929_v30, %v8647_v5  ;;  %vm10447_vm6 = vmmov %vm10443_vm5 }
 0x54c   :  { %6014 = vrot.lane.b32.xlu0 %v6000_v48, %s7259_s10  ;;  %6008 = vrot.lane.b32.xlu2 %v5997_v32, %s7259_s10  ;;  %v6096_v42 = vmul.f32 %v8945_v18, %v8720_v58  ;;  %v6839_v58 = vld [vmem:[%s10112_s1 + $0x28] sm:$0xf]  ;;  %v4935_v11 = vsel %vm266_vm11, %v4927_v39, 0  ;;  %v6102_v48 = vpack.c.bf16 %v6097_v7, %v6097_v7  ;;  %v6198_v32 = vmul.f32 %v8769_v21, %v9470_v26  ;;  %v6844_v39 = vld [vmem:[%s10112_s1 + $0x2c] sm:$0xf]  ;;  %vm10448_vm7 = vmmov %vm10443_vm5 }
 0x54d   :  { %6836 = vmatmul.msk.bf16.vlgmr.msra.gmra.mxu1 %vm262_vm3, %v6834_v10  ;;  %v5998_v46 = vpack.c.bf16 %v5993_v61, %v5993_v61 }
 0x54e   :  { %6838 = vmatmul.msk.bf16.vlgmr.msra.gmra.mxu3 %vm262_vm3, %v6834_v10  ;;  %4966 = vmatpush.bf16.msra.mxu1 %v4938_v63  ;;  %v9588_v3 = vpop.permute.xlu0 %5020  ;;  %v6101_v13 = vpack.c.bf16 %v6096_v42, %v6096_v42  ;;  %v10441_v42 = vld [vmem:[#allocation92_spill] sm:$0xff]  ;;  %v6203_v12 = vpack.c.bf16 %v6198_v32, %v6198_v32 }
 0x54f   :  { %4992 = vmatpush.bf16.msra.mxu3 %v4944_v0  ;;  %5909 = vrot.lane.b32.xlu1 %v5897_v56, %s7258_s9  ;;  %v5029_v15 = vsel %vm10439_vm2, %v9588_v3, %v9503_v4  ;;  %vm10452_vm2 = vmmov %vm10443_vm5 }
 0x550   :  { %v5039_v51 = vsel %vm266_vm11, %v5029_v15, 0 }
 0x551   :  { %v5027_v41 = vpop.permute.xlu1 %5026  ;;  %v3988_v45 = vpop.f32.mrf.mxu3 }
 0x552   :  { %v3989_v36 = vadd.f32 %v3988_v45, %v3921_v6  ;;  %v3977_v31 = vpop.f32.mrf.mxu2  ;;  %v3964_v28 = vpop.f32.mrf.mxu1  ;;  %v5031_v55 = vsel %vm10440_vm0, %v9570_v25, %v5027_v41  ;;  %v6093_v41 = vmul.f32 %v10441_v42, %v8936_v17  ;;  %v5028_v45 = vsel %vm10442_vm4, %v9532_v44, %v9588_v3 }
 0x553   :  { %v3949_v5 = vpop.f32.mrf.mxu0  ;;  %v9607_v6 = vpop.permute.xlu2 %5228  ;;  %v5036_v28 = vsel %vm266_vm11, %v5028_v45, 0  ;;  %vm10453_vm0 = vcmask 441344  }
 0x554   :  { %v3950_v49 = vadd.f32 %v3949_v5, %v3882_v47  ;;  %6010 = vrot.lane.b32.xlu0 %v5998_v46, %s7259_s10  ;;  %6115 = vrot.lane.b32.xlu2 %v6101_v13, %s7260_s11  ;;  %v6098_v3 = vpack.c.bf16 %v6093_v41, %v6093_v41  ;;  %v10444_v5 = vld [vmem:[#allocation94_spill] sm:$0xff]  ;;  %vm10456_vm4 = vmmov %vm10453_vm0 }
 0x555   :  { %6835 = vmatmul.msk.bf16.vlgmr.msra.gmra.mxu0 %vm262_vm3, %v6834_v10  ;;  %v6095_v10 = vmul.f32 %v8925_v59, %v8668_v50  ;;  %v5045_v50 = vsel %vm266_vm11, %v5031_v55, 0  ;;  %v6194_v46 = vmul.f32 %v10444_v5, %v8936_v17  ;;  %v10454_v5 = vld [vmem:[#allocation100_spill] sm:$0xff] }
 0x556   :  { %6842 = vmatmul.msk.bf16.vlgmr.msrb.gmra.mxu2 %vm262_vm3, %v6839_v58  ;;  %4953 = vmatpush.bf16.msra.mxu0 %v4935_v11  ;;  %v5128_v47 = vpop.permute.xlu0 %5127 }
 0x557   :  { %5080 = vmatpush.bf16.msrb.mxu2 %v5042_v16  ;;  %6016 = vrot.lane.b32.xlu1 %v6001_v8, %s7259_s10  ;;  %v6100_v4 = vpack.c.bf16 %v6095_v10, %v6095_v10  ;;  %v6199_v54 = vpack.c.bf16 %v6194_v46, %v6194_v46  ;;  %v6296_v46 = vmul.f32 %v8929_v30, %v10454_v5 }
 0x559   :  { %v5124_v43 = vpop.permute.xlu1 %5123  ;;  %v3990_v35 = vpop.f32.mrf.mxu3 }
 0x55a   :  { %v4072_v37 = vpop.f32.mrf.mxu2  ;;  %v4059_v19 = vpop.f32.mrf.mxu1 }
 0x55b   :  { %v4091_v52 = vadd.f32 %v4072_v37, %v3976_v2  ;;  %v3951_v38 = vpop.f32.mrf.mxu0  ;;  %v4090_v34 = vadd.f32 %v4059_v19, %v3963_v29  ;;  %v6196_v2 = vmul.f32 %v8925_v59, %v8772_v23  ;;  %v9636_v29 = vpop.permute.xlu2 %5325  ;;  %v5131_v23 = vsel %vm10443_vm5, %v5124_v43, %v9552_v1  ;;  %vm10457_vm5 = vmmov %vm10453_vm0 }
 0x55c   :  { %6117 = vrot.lane.b32.xlu0 %v6102_v48, %s7260_s11  ;;  %6111 = vrot.lane.b32.xlu2 %v6099_v27, %s7260_s11  ;;  %v5143_v44 = vsel %vm266_vm11, %v5131_v23, 0  ;;  %v5132_v37 = vsel %vm10447_vm6, %v9552_v1, %v5128_v47  ;;  %v5130_v48 = vsel %vm10448_vm7, %v9580_v57, %v5124_v43  ;;  %v10449_v47 = vld [vmem:[#allocation99_spill] sm:$0xff]  ;;  %vm10458_vm6 = vmmov %vm10453_vm0 }
 0x55d   :  { %6841 = vmatmul.msk.bf16.vlgmr.msrb.gmra.mxu1 %vm262_vm3, %v6839_v58  ;;  %v6201_v14 = vpack.c.bf16 %v6196_v2, %v6196_v2  ;;  %v6298_v43 = vmul.f32 %v8945_v18, %v10449_v47 }
 0x55e   :  { %6843 = vmatmul.msk.bf16.vlgmr.msrb.gmra.mxu3 %vm262_vm3, %v6839_v58  ;;  %5067 = vmatpush.bf16.msrb.mxu1 %v5039_v51  ;;  %v9630_v25 = vpop.permute.xlu0 %5224  ;;  %v5146_v51 = vsel %vm266_vm11, %v5132_v37, 0 }
 0x55f   :  { %5093 = vmatpush.bf16.msrb.mxu3 %v5045_v50  ;;  %6113 = vrot.lane.b32.xlu1 %v6100_v4, %s7260_s11  ;;  %v5140_v50 = vsel %vm266_vm11, %v5130_v48, 0 }
 0x561   :  { %v4085_v0 = vpop.f32.mrf.mxu3  ;;  %v5120_v63 = vpop.permute.xlu1 %5119 }
 0x562   :  { %v4092_v56 = vadd.f32 %v4085_v0, %v3989_v36  ;;  %v4074_v61 = vpop.f32.mrf.mxu2  ;;  %v4061_v31 = vpop.f32.mrf.mxu1  ;;  %v5129_v41 = vsel %vm10452_vm2, %v5120_v63, %v9580_v57 }
 0x563   :  { %v4046_v21 = vpop.f32.mrf.mxu0  ;;  %v9662_v8 = vpop.permute.xlu2 %5321  ;;  %v10451_v61 = vld [vmem:[#allocation95_spill] sm:$0xff]  ;;  %v5137_v57 = vsel %vm266_vm11, %v5129_v41, 0 }
 0x564   :  { %v4089_v36 = vadd.f32 %v4046_v21, %v3950_v49  ;;  %6214 = vrot.lane.b32.xlu0 %v6201_v14, %s7261_s12  ;;  %6218 = vrot.lane.b32.xlu2 %v6203_v12, %s7261_s12  ;;  %v10445_v49 = vld [vmem:[#allocation97_spill] sm:$0xff]  ;;  %v6195_v42 = vmul.f32 %v8929_v30, %v10451_v61  ;;  %v6303_v21 = vpack.c.bf16 %v6298_v43, %v6298_v43  ;;  %v6849_v12 = vld [vmem:[%s10112_s1 + $0x30] sm:$0xf] }
 0x565   :  { %6840 = vmatmul.msk.bf16.vlgmr.msrb.gmra.mxu0 %vm262_vm3, %v6839_v58  ;;  %v6297_v16 = vmul.f32 %v8925_v59, %v10445_v49  ;;  %v10446_v58 = vld [vmem:[#allocation93_spill] sm:$0xff]  ;;  %v6398_v43 = vmul.f32 %v8925_v59, %v8855_v20 }
 0x566   :  { %6847 = vmatmul.msk.bf16.vlgmr.msra.gmra.mxu2 %vm262_vm3, %v6844_v39  ;;  %5054 = vmatpush.bf16.msrb.mxu0 %v5036_v28  ;;  %v9657_v13 = vpop.permute.xlu0 %5220  ;;  %v6197_v35 = vmul.f32 %v8945_v18, %v10446_v58 }
 0x567   :  { %5181 = vmatpush.bf16.msra.mxu2 %v5143_v44  ;;  %6109 = vrot.lane.b32.xlu1 %v6098_v3, %s7260_s11  ;;  %v6302_v19 = vpack.c.bf16 %v6297_v16, %v6297_v16  ;;  %v6200_v3 = vpack.c.bf16 %v6195_v42, %v6195_v42  ;;  %v6403_v41 = vpack.c.bf16 %v6398_v43, %v6398_v43 }
 0x568   :  { %v6202_v1 = vpack.c.bf16 %v6197_v35, %v6197_v35  ;;  %v3753_v43 = vmul.f32 %v9495_v9, %v9495_v9 }
 0x569   :  { %v4087_v11 = vpop.f32.mrf.mxu3  ;;  %v5227_v38 = vpop.permute.xlu1 %5226 }
 0x56a   :  { %v4173_v7 = vpop.f32.mrf.mxu2  ;;  %v4160_v15 = vpop.f32.mrf.mxu1  ;;  %v5232_v45 = vsel %vm10453_vm0, %v9630_v25, %v5227_v38  ;;  %v5233_v58 = vsel %vm10456_vm4, %v5227_v38, %v9607_v6 }
 0x56b   :  { %v4192_v10 = vadd.f32 %v4173_v7, %v4091_v52  ;;  %v4048_v55 = vpop.f32.mrf.mxu0  ;;  %v4191_v27 = vadd.f32 %v4160_v15, %v4090_v34  ;;  %v10450_v52 = vld [vmem:[#allocation98_spill] sm:$0xff]  ;;  %v5244_v63 = vsel %vm266_vm11, %v5232_v45, 0  ;;  %v6301_v7 = vpack.c.bf16 %v6296_v46, %v6296_v46 }
 0x56c   :  { %6210 = vrot.lane.b32.xlu0 %v6199_v54, %s7261_s12  ;;  %6315 = vrot.lane.b32.xlu2 %v6302_v19, %s7262_s13  ;;  %v6295_v34 = vmul.f32 %v10450_v52, %v8936_v17  ;;  %v10455_v54 = vld [vmem:[#allocation96_spill] sm:$0xff]  ;;  %v5247_v19 = vsel %vm266_vm11, %v5233_v58, 0 }
 0x56d   :  { %6846 = vmatmul.msk.bf16.vlgmr.msra.gmra.mxu1 %vm262_vm3, %v6844_v39 }
 0x56e   :  { %6848 = vmatmul.msk.bf16.vlgmr.msra.gmra.mxu3 %vm262_vm3, %v6844_v39  ;;  %5168 = vmatpush.bf16.msra.mxu1 %v5140_v50  ;;  %v9681_v4 = vpop.permute.xlu0 %5327  ;;  %v6300_v14 = vpack.c.bf16 %v6295_v34, %v6295_v34 }
 0x56f   :  { %5194 = vmatpush.bf16.msra.mxu3 %v5146_v51  ;;  %6216 = vrot.lane.b32.xlu1 %v6202_v1, %s7261_s12  ;;  %v5333_v52 = vsel %vm2202_vm9, %v9636_v29, %v9681_v4 }
 0x570   :  { %v5345_v20 = vsel %vm266_vm11, %v5333_v52, 0  ;;  %v3754_v52 = vmul.f32 %v9498_v53, %v9498_v53 }
 0x571   :  { %v4186_v2 = vpop.f32.mrf.mxu3  ;;  %v5223_v44 = vpop.permute.xlu1 %5222 }
 0x572   :  { %v4193_v32 = vadd.f32 %v4186_v2, %v4092_v56  ;;  %v4175_v0 = vpop.f32.mrf.mxu2  ;;  %v4162_v23 = vpop.f32.mrf.mxu1  ;;  %v5231_v35 = vsel %vm10457_vm5, %v5223_v44, %v9630_v25  ;;  %v6400_v25 = vmul.f32 %v8875_v60, %v9470_v26  ;;  %v5230_v34 = vsel %vm10458_vm6, %v9657_v13, %v5223_v44 }
 0x573   :  { %v4147_v31 = vpop.f32.mrf.mxu0  ;;  %v9692_v56 = vpop.permute.xlu2 %5428  ;;  %v5241_v51 = vsel %vm266_vm11, %v5231_v35, 0  ;;  %v6854_v0 = vld [vmem:[%s10112_s1 + $0x34] sm:$0xf]  ;;  %v5238_v42 = vsel %vm266_vm11, %v5230_v34, 0 }
 0x574   :  { %v4190_v28 = vadd.f32 %v4147_v31, %v4089_v36  ;;  %6317 = vrot.lane.b32.xlu0 %v6303_v21, %s7262_s13  ;;  %6311 = vrot.lane.b32.xlu2 %v6300_v14, %s7262_s13  ;;  %v6399_v36 = vmul.f32 %v8945_v18, %v8883_v22  ;;  %v6405_v2 = vpack.c.bf16 %v6400_v25, %v6400_v25 }
 0x575   :  { %6845 = vmatmul.msk.bf16.vlgmr.msra.gmra.mxu0 %vm262_vm3, %v6844_v39  ;;  %v6299_v39 = vmul.f32 %v10455_v54, %v9470_v26  ;;  %v6396_v21 = vmul.f32 %v8873_v24, %v8936_v17 }
 0x576   :  { %6852 = vmatmul.msk.bf16.vlgmr.msrb.gmra.mxu2 %vm262_vm3, %v6849_v12  ;;  %5155 = vmatpush.bf16.msra.mxu0 %v5137_v57  ;;  %v9705_v16 = vpop.permute.xlu0 %5323  ;;  %v6404_v22 = vpack.c.bf16 %v6399_v36, %v6399_v36 }
 0x577   :  { %5282 = vmatpush.bf16.msrb.mxu2 %v5244_v63  ;;  %6212 = vrot.lane.b32.xlu1 %v6200_v3, %s7261_s12  ;;  %v6304_v6 = vpack.c.bf16 %v6299_v39, %v6299_v39  ;;  %v5332_v14 = vsel %vm2202_vm9, %v9705_v16, %v9636_v29  ;;  %v6401_v24 = vpack.c.bf16 %v6396_v21, %v6396_v21  ;;  %v6859_v39 = vld [vmem:[%s10112_s1 + $0x38] sm:$0xf] }
 0x578   :  { %v5342_v3 = vsel %vm266_vm11, %v5332_v14, 0 }
 0x579   :  { %v4188_v49 = vpop.f32.mrf.mxu3 }
 0x57a   :  { %v4274_v11 = vpop.f32.mrf.mxu2  ;;  %v4261_v48 = vpop.f32.mrf.mxu1  ;;  %v5331_v49 = vsel %vm2202_vm9, %v9662_v8, %v9705_v16 }
 0x57b   :  { %v4293_v37 = vadd.f32 %v4274_v11, %v4192_v10  ;;  %v4149_v15 = vpop.f32.mrf.mxu0  ;;  %v4292_v55 = vadd.f32 %v4261_v48, %v4191_v27  ;;  %v9719_v38 = vpop.permute.xlu2 %5424  ;;  %v6397_v10 = vmul.f32 %v8929_v30, %v8893_v33  ;;  %v5339_v48 = vsel %vm266_vm11, %v5331_v49, 0  ;;  %v10459_v49 = vld [vmem:[#allocation79_spill] sm:$0xff] }
 0x57c   :  { %6313 = vrot.lane.b32.xlu0 %v6301_v7, %s7262_s13  ;;  %6418 = vrot.lane.b32.xlu2 %v6404_v22, %s7264_s15  ;;  %v5330_v27 = vpop.permute.xlu1 %5329 }
 0x57d   :  { %6851 = vmatmul.msk.bf16.vlgmr.msrb.gmra.mxu1 %vm262_vm3, %v6849_v12  ;;  %v6402_v33 = vpack.c.bf16 %v6397_v10, %v6397_v10 }
 0x57e   :  { %6853 = vmatmul.msk.bf16.vlgmr.msrb.gmra.mxu3 %vm262_vm3, %v6849_v12  ;;  %5269 = vmatpush.bf16.msrb.mxu1 %v5241_v51 }
 0x57f   :  { %5295 = vmatpush.bf16.msrb.mxu3 %v5247_v19  ;;  %6319 = vrot.lane.b32.xlu1 %v6304_v6, %s7262_s13  ;;  %s6644_s13 = sshll.u32 %s10114_s3, 4  ;;  %s6645_s13 = int_to_ptr.hbm [resolvable:$true] %s6644_s13 }
 0x581   :  { %v4287_v50 = vpop.f32.mrf.mxu3 }
 0x582   :  { %v4294_v1 = vadd.f32 %v4287_v50, %v4193_v32  ;;  %v4276_v47 = vpop.f32.mrf.mxu2  ;;  %v4263_v60 = vpop.f32.mrf.mxu1 }
 0x583   :  { %v4248_v26 = vpop.f32.mrf.mxu0  ;;  %v5431_v32 = vpop.permute.xlu0 %5430 }
 0x584   :  { %v4291_v61 = vadd.f32 %v4248_v26, %v4190_v28  ;;  %6420 = vrot.lane.b32.xlu0 %v6405_v2, %s7264_s15  ;;  %6414 = vrot.lane.b32.xlu2 %v6402_v33, %s7264_s15  ;;  %v9743_v13 = vpop.permute.xlu2 %5531  ;;  %v5427_v23 = vpop.permute.xlu1 %5426 }
 0x585   :  { %6850 = vmatmul.msk.bf16.vlgmr.msrb.gmra.mxu0 %vm262_vm3, %v6849_v12  ;;  %v5334_v12 = vsel %vm2202_vm9, %v9681_v4, %v5330_v27  ;;  %v5434_v11 = vsel %vm2356_vm15, %v5427_v23, %v9692_v56  ;;  %v5433_v19 = vsel %vm2356_vm15, %v9719_v38, %v5427_v23  ;;  %vm10467_vm9 = vcmask 965632  }
 0x586   :  { %6857 = vmatmul.msk.bf16.vlgmr.msra.gmra.mxu2 %vm262_vm3, %v6854_v0  ;;  %5256 = vmatpush.bf16.msrb.mxu0 %v5238_v42  ;;  %v5348_v5 = vsel %vm266_vm11, %v5334_v12, 0  ;;  %v5446_v15 = vsel %vm266_vm11, %v5434_v11, 0  ;;  %v3745_v42 = vadd.f32 %v9498_v53, %v9495_v9  ;;  %v5610_v11 = vmul.f32 %v8925_v59, %v10459_v49  ;;  %vm10472_vm4 = vmmov %vm10467_vm9 }
 0x587   :  { %5383 = vmatpush.bf16.msra.mxu2 %v5345_v20  ;;  %6416 = vrot.lane.b32.xlu1 %v6403_v41, %s7264_s15  ;;  %v3757_v41 = vadd.f32 %v3754_v52, %v3753_v43  ;;  %vm10473_vm5 = vmmov %vm10472_vm4 }
 0x588   :  { %vm10474_vm6 = vmmov %vm10472_vm4 }
 0x589   :  { %v4289_v45 = vpop.f32.mrf.mxu3 }
 0x58a   :  { %v4375_v31 = vpop.f32.mrf.mxu2  ;;  %v4362_v57 = vpop.f32.mrf.mxu1 }
 0x58b   :  { %v4394_v28 = vadd.f32 %v4375_v31, %v4293_v37  ;;  %v4250_v63 = vpop.f32.mrf.mxu0  ;;  %v4393_v44 = vadd.f32 %v4362_v57, %v4292_v55  ;;  %v9754_v46 = vpop.permute.xlu0 %5527  ;;  %v5435_v55 = vsel %vm2356_vm15, %v9692_v56, %v5431_v32  ;;  %v3746_v57 = vadd.f32 %v3745_v42, %v9484_v40 }
 0x58c   :  { %v9767_v58 = vpop.permute.xlu2 %5709  ;;  %v5423_v35 = vpop.permute.xlu1 %5422  ;;  %v5449_v27 = vsel %vm266_vm11, %v5435_v55, 0  ;;  %v6869_v55 = vld [vmem:[%s10112_s1 + $0x40] sm:$0xf] }
 0x58d   :  { %6856 = vmatmul.msk.bf16.vlgmr.msra.gmra.mxu1 %vm262_vm3, %v6854_v0  ;;  %v5432_v2 = vsel %vm2356_vm15, %v5423_v35, %v9719_v38  ;;  %v3755_v38 = vmul.f32 %v9484_v40, %v9484_v40  ;;  %vm10468_vm15 = vcmask 7168  }
 0x58e   :  { %6858 = vmatmul.msk.bf16.vlgmr.msra.gmra.mxu3 %vm262_vm3, %v6854_v0  ;;  %5370 = vmatpush.bf16.msra.mxu1 %v5342_v3  ;;  %v5440_v45 = vsel %vm266_vm11, %v5432_v2, 0  ;;  %vm10469_vm7 = vmmov %vm10468_vm15 }
 0x58f   :  { %5396 = vmatpush.bf16.msra.mxu3 %v5348_v5  ;;  %6412 = vrot.lane.b32.xlu1 %v6401_v24, %s7264_s15  ;;  %vm10470_vm2 = vmmov %vm10469_vm7  ;;  %s7282_s15 = smov 32  }
 0x590   :  { %vm10471_vm0 = vmmov %vm10470_vm2 }
 0x591   :  { %v4388_v29 = vpop.f32.mrf.mxu3 }
 0x592   :  { %v4395_v4 = vadd.f32 %v4388_v29, %v4294_v1  ;;  %v4377_v36 = vpop.f32.mrf.mxu2  ;;  %v4364_v7 = vpop.f32.mrf.mxu1  ;;  %v5443_v1 = vsel %vm266_vm11, %v5433_v19, 0  ;;  %v3756_v29 = vmul.f32 %v9492_v62, %v9492_v62 }
 0x593   :  { %v4349_v54 = vpop.f32.mrf.mxu0  ;;  %v9773_v8 = vpop.permute.xlu0 %5523 }
 0x594   :  { %v4392_v37 = vadd.f32 %v4349_v54, %v4291_v61  ;;  %v9780_v50 = vpop.permute.xlu2 %5705  ;;  %v5530_v47 = vpop.permute.xlu1 %5529  ;;  %v6864_v61 = vld [vmem:[%s10112_s1 + $0x3c] sm:$0xf] }
 0x595   :  { %6855 = vmatmul.msk.bf16.vlgmr.msra.gmra.mxu0 %vm262_vm3, %v6854_v0  ;;  %v5535_v33 = vsel %vm2500_vm1, %v9754_v46, %v5530_v47  ;;  %v5536_v63 = vsel %vm2500_vm1, %v5530_v47, %v9743_v13 }
 0x596   :  { %6862 = vmatmul.msk.bf16.vlgmr.msrb.gmra.mxu2 %vm262_vm3, %v6859_v39  ;;  %5357 = vmatpush.bf16.msra.mxu0 %v5339_v48  ;;  %v5547_v23 = vsel %vm266_vm11, %v5535_v33, 0  ;;  %v5550_v7 = vsel %vm266_vm11, %v5536_v63, 0  ;;  %v5614_v48 = vpack.c.bf16 %v5610_v11, %v5610_v11 }
 0x597   :  { %5484 = vmatpush.bf16.msrb.mxu2 %v5446_v15 }
 0x599   :  { %v4390_v16 = vpop.f32.mrf.mxu3 }
 0x59a   :  { %v4476_v22 = vpop.f32.mrf.mxu2  ;;  %v4463_v6 = vpop.f32.mrf.mxu1 }
 0x59b   :  { %v4495_v51 = vadd.f32 %v4476_v22, %v4394_v28  ;;  %v4351_v25 = vpop.f32.mrf.mxu0  ;;  %v4494_v10 = vadd.f32 %v4463_v6, %v4393_v44  ;;  %v9789_v34 = vpop.permute.xlu0 %5711  ;;  %v3758_v28 = vadd.f32 %v3757_v41, %v3755_v38 }
 0x59c   :  { %v9806_v31 = vpop.permute.xlu2 %5812  ;;  %v5526_v21 = vpop.permute.xlu1 %5525  ;;  %v5627_v25 = vsel %vm266_vm11, %v5614_v48, 0 }
 0x59d   :  { %6861 = vmatmul.msk.bf16.vlgmr.msrb.gmra.mxu1 %vm262_vm3, %v6859_v39  ;;  %v5534_v44 = vsel %vm2500_vm1, %v5526_v21, %v9754_v46  ;;  %v3759_v13 = vadd.f32 %v3758_v28, %v3756_v29  ;;  %v3747_v46 = vadd.f32 %v3746_v57, %v9492_v62  ;;  %v5533_v15 = vsel %vm2500_vm1, %v9773_v8, %v5526_v21  ;;  %v6874_v28 = vld [vmem:[%s10112_s1 + $0x44] sm:$0xf] }
 0x59e   :  { %6863 = vmatmul.msk.bf16.vlgmr.msrb.gmra.mxu3 %vm262_vm3, %v6859_v39  ;;  %5471 = vmatpush.bf16.msrb.mxu1 %v5443_v1  ;;  %v5544_v54 = vsel %vm266_vm11, %v5534_v44, 0  ;;  %v5717_v21 = vsel %vm257_vm10, %v9767_v58, %v9789_v34  ;;  %vm10463_vm1 = vcmask 973824  }
 0x59f   :  { %5497 = vmatpush.bf16.msrb.mxu3 %v5449_v27  ;;  %v10461_v27 = vld [vmem:[#allocation78_spill] sm:$0xff] }
 0x5a0   :  { %v5611_v1 = vmul.f32 %v8945_v18, %v10461_v27 }
 0x5a1   :  { %v4489_v56 = vpop.f32.mrf.mxu3 }
 0x5a2   :  { %v4496_v60 = vadd.f32 %v4489_v56, %v4395_v4  ;;  %v4478_v26 = vpop.f32.mrf.mxu2  ;;  %v4465_v0 = vpop.f32.mrf.mxu1  ;;  %v5615_v52 = vpack.c.bf16 %v5611_v1, %v5611_v1 }
 0x5a3   :  { %v4450_v32 = vpop.f32.mrf.mxu0  ;;  %v9815_v4 = vpop.permute.xlu0 %5707 }
 0x5a4   :  { %v4493_v20 = vadd.f32 %v4450_v32, %v4392_v37  ;;  %v9824_v35 = vpop.permute.xlu2 %5808  ;;  %v5714_v32 = vpop.permute.xlu1 %5713  ;;  %v5630_v18 = vsel %vm266_vm11, %v5615_v52, 0 }
 0x5a5   :  { %6860 = vmatmul.msk.bf16.vlgmr.msrb.gmra.mxu0 %vm262_vm3, %v6859_v39  ;;  %v5718_v49 = vsel %vm257_vm10, %v9789_v34, %v5714_v32 }
 0x5a6   :  { %6867 = vmatmul.msk.bf16.vlgmr.msra.gmra.mxu2 %vm262_vm3, %v6864_v61  ;;  %5458 = vmatpush.bf16.msrb.mxu0 %v5440_v45 }
 0x5a7   :  { %5585 = vmatpush.bf16.msra.mxu2 %v5547_v23 }
 0x5a9   :  { %v4491_v14 = vpop.f32.mrf.mxu3 }
 0x5aa   :  { %v4577_v12 = vpop.f32.mrf.mxu2  ;;  %v4564_v5 = vpop.f32.mrf.mxu1 }
 0x5ab   :  { %v4596_v3 = vadd.f32 %v4577_v12, %v4495_v51  ;;  %v4452_v24 = vpop.f32.mrf.mxu0  ;;  %v4595_v36 = vadd.f32 %v4564_v5, %v4494_v10  ;;  %v5541_v51 = vsel %vm266_vm11, %v5533_v15, 0  ;;  %v9832_v6 = vpop.permute.xlu0 %5814  ;;  %v10460_v10 = vld [vmem:[#allocation82_spill] sm:$0xff]  ;;  %v5715_v15 = vsel %vm257_vm10, %v9780_v50, %v9815_v4 }
 0x5ac   :  { %v5609_v8 = vmul.f32 %v8929_v30, %v10460_v10  ;;  %v9841_v33 = vpop.permute.xlu2 %5915  ;;  %v5723_v10 = vsel %vm266_vm11, %v5715_v15, 0  ;;  %v5819_v1 = vsel %vm454_vm12, %v9806_v31, %v9832_v6 }
 0x5ad   :  { %6866 = vmatmul.msk.bf16.vlgmr.msra.gmra.mxu1 %vm262_vm3, %v6864_v61  ;;  %3760 = vadd.xlane.f32.xlu2 %v3759_v13 }
 0x5ae   :  { %6868 = vmatmul.msk.bf16.vlgmr.msra.gmra.mxu3 %vm262_vm3, %v6864_v61  ;;  %5572 = vmatpush.bf16.msra.mxu1 %v5544_v54  ;;  %v5613_v43 = vpack.c.bf16 %v5609_v8, %v5609_v8 }
 0x5af   :  { %5598 = vmatpush.bf16.msra.mxu3 %v5550_v7  ;;  %3748 = vadd.xlane.f32.xlu0 %v3747_v46 }
 0x5b0   :  { %v5624_v30 = vsel %vm266_vm11, %v5613_v43, 0 }
 0x5b1   :  { %v4590_v39 = vpop.f32.mrf.mxu3 }
 0x5b2   :  { %v4597_v37 = vadd.f32 %v4590_v39, %v4496_v60  ;;  %v4579_v59 = vpop.f32.mrf.mxu2  ;;  %v4566_v16 = vpop.f32.mrf.mxu1  ;;  %v5732_v39 = vsel %vm266_vm11, %v5718_v49, 0 }
 0x5b3   :  { %v4551_v22 = vpop.f32.mrf.mxu0  ;;  %v9849_v42 = vpop.permute.xlu0 %5911 }
 0x5b4   :  { %v4594_v19 = vadd.f32 %v4551_v22, %v4493_v20  ;;  %v9858_v63 = vpop.permute.xlu2 %6012 }
 0x5b5   :  { %6865 = vmatmul.msk.bf16.vlgmr.msra.gmra.mxu0 %vm262_vm3, %v6864_v61  ;;  %v10462_v61 = vld [vmem:[#allocation81_spill] sm:$0xff] }
 0x5b6   :  { %6872 = vmatmul.msk.bf16.vlgmr.msrb.gmra.mxu2 %vm262_vm3, %v6869_v55  ;;  %5559 = vmatpush.bf16.msra.mxu0 %v5541_v51  ;;  %v5608_v20 = vmul.f32 %v8936_v17, %v10462_v61  ;;  %v5729_v17 = vsel %vm266_vm11, %v5717_v21, 0 }
 0x5b7   :  { %5665 = vmatpush.bf16.msrb.mxu2 %v5627_v25 }
 0x5b8   :  { %v5612_v38 = vpack.c.bf16 %v5608_v20, %v5608_v20 }
 0x5b9   :  { %v4592_v47 = vpop.f32.mrf.mxu3 }
 0x5ba   :  { %v4678_v56 = vpop.f32.mrf.mxu2  ;;  %v4665_v26 = vpop.f32.mrf.mxu1  ;;  %v5621_v44 = vsel %vm266_vm11, %v5612_v38, 0 }
 0x5bb   :  { %v4697_v60 = vadd.f32 %v4678_v56, %v4596_v3  ;;  %v4553_v2 = vpop.f32.mrf.mxu0  ;;  %v4696_v0 = vadd.f32 %v4665_v26, %v4595_v36  ;;  %v5811_v3 = vpop.permute.xlu1 %5810  ;;  %v5716_v36 = vsel %vm257_vm10, %v9815_v4, %v9767_v58  ;;  %vm10464_vm10 = vmmov %vm10463_vm1 }
 0x5bc   :  { %v9863_v24 = vpop.permute.xlu0 %5907  ;;  %v5726_v46 = vsel %vm266_vm11, %v5716_v36, 0  ;;  %v5818_v16 = vsel %vm454_vm12, %v5811_v3, %v9806_v31  ;;  %v5817_v47 = vsel %vm454_vm12, %v9824_v35, %v5811_v3  ;;  %v5833_v2 = vsel %vm266_vm11, %v5819_v1, 0 }
 0x5bd   :  { %6871 = vmatmul.msk.bf16.vlgmr.msrb.gmra.mxu1 %vm262_vm3, %v6869_v55  ;;  %v5830_v8 = vsel %vm266_vm11, %v5818_v16, 0 }
 0x5be   :  { %6873 = vmatmul.msk.bf16.vlgmr.msrb.gmra.mxu3 %vm262_vm3, %v6869_v55  ;;  %5652 = vmatpush.bf16.msrb.mxu1 %v5624_v30 }
 0x5bf   :  { %5678 = vmatpush.bf16.msrb.mxu3 %v5630_v18 }
 0x5c1   :  { %v4691_v41 = vpop.f32.mrf.mxu3 }
 0x5c2   :  { %v4698_v45 = vadd.f32 %v4691_v41, %v4597_v37  ;;  %v4680_v23 = vpop.f32.mrf.mxu2  ;;  %v4667_v14 = vpop.f32.mrf.mxu1 }
 0x5c3   :  { %v4652_v12 = vpop.f32.mrf.mxu0  ;;  %v9874_v37 = vpop.permute.xlu2 %6008 }
 0x5c4   :  { %v4695_v57 = vadd.f32 %v4652_v12, %v4594_v19  ;;  %v5807_v59 = vpop.permute.xlu1 %5806  ;;  %v6879_v19 = vld [vmem:[%s10112_s1 + $0x48] sm:$0xf]  ;;  %v9884_v51 = vpop.permute.xlu0 %6014 }
 0x5c5   :  { %6870 = vmatmul.msk.bf16.vlgmr.msrb.gmra.mxu0 %vm262_vm3, %v6869_v55  ;;  %v5816_v18 = vsel %vm454_vm12, %v5807_v59, %v9824_v35  ;;  %vm10465_vm12 = vmmov %vm10463_vm1 }
 0x5c6   :  { %6877 = vmatmul.msk.bf16.vlgmr.msra.gmra.mxu2 %vm262_vm3, %v6874_v28  ;;  %5639 = vmatpush.bf16.msrb.mxu0 %v5621_v44  ;;  %v5824_v21 = vsel %vm266_vm11, %v5816_v18, 0 }
 0x5c7   :  { %5767 = vmatpush.bf16.msra.mxu2 %v5729_v17 }
 0x5c9   :  { %v4693_v5 = vpop.f32.mrf.mxu3 }
 0x5ca   :  { %v4779_v29 = vpop.f32.mrf.mxu2  ;;  %v4766_v7 = vpop.f32.mrf.mxu1 }
 0x5cb   :  { %v4798_v11 = vadd.f32 %v4779_v29, %v4697_v60  ;;  %v4654_v54 = vpop.f32.mrf.mxu0  ;;  %v4797_v13 = vadd.f32 %v4766_v7, %v4696_v0  ;;  %v9890_v4 = vpop.permute.xlu2 %6115  ;;  %v5827_v0 = vsel %vm266_vm11, %v5817_v47, 0 }
 0x5cc   :  { %v5914_v60 = vpop.permute.xlu1 %5913  ;;  %v9899_v32 = vpop.permute.xlu0 %6010 }
 0x5cd   :  { %6876 = vmatmul.msk.bf16.vlgmr.msra.gmra.mxu1 %vm262_vm3, %v6874_v28  ;;  %v5919_v61 = vsel %vm585_vm13, %v9849_v42, %v5914_v60  ;;  %v5920_v17 = vsel %vm585_vm13, %v5914_v60, %v9841_v33 }
 0x5ce   :  { %6878 = vmatmul.msk.bf16.vlgmr.msra.gmra.mxu3 %vm262_vm3, %v6874_v28  ;;  %5754 = vmatpush.bf16.msra.mxu1 %v5726_v46  ;;  %v5931_v14 = vsel %vm266_vm11, %v5919_v61, 0  ;;  %v5934_v49 = vsel %vm266_vm11, %v5920_v17, 0 }
 0x5cf   :  { %5780 = vmatpush.bf16.msra.mxu3 %v5732_v39  ;;  %v6020_v39 = vsel %vm10463_vm1, %v9858_v63, %v9884_v51 }
 0x5d0   :  { %v6032_v16 = vsel %vm266_vm11, %v6020_v39, 0 }
 0x5d1   :  { %v4792_v58 = vpop.f32.mrf.mxu3 }
 0x5d2   :  { %v4799_v48 = vadd.f32 %v4792_v58, %v4698_v45  ;;  %v4781_v34 = vpop.f32.mrf.mxu2  ;;  %v4768_v22 = vpop.f32.mrf.mxu1  ;;  %v6884_v45 = vld [vmem:[%s10112_s1 + $0x4c] sm:$0xf] }
 0x5d3   :  { %v4753_v55 = vpop.f32.mrf.mxu0  ;;  %v9910_v38 = vpop.permute.xlu2 %6111  ;;  %v6889_v34 = vld [vmem:[%s10112_s1 + $0x50] sm:$0xf] }
 0x5d4   :  { %v4796_v25 = vadd.f32 %v4753_v55, %v4695_v57  ;;  %v5910_v12 = vpop.permute.xlu1 %5909  ;;  %v9916_v35 = vpop.permute.xlu0 %6117 }
 0x5d5   :  { %6875 = vmatmul.msk.bf16.vlgmr.msra.gmra.mxu0 %vm262_vm3, %v6874_v28  ;;  %v5918_v44 = vsel %vm585_vm13, %v5910_v12, %v9849_v42  ;;  %v5917_v58 = vsel %vm585_vm13, %v9863_v24, %v5910_v12  ;;  %vm10466_vm13 = vmmov %vm10463_vm1  ;;  %vm10475_vm1 = vcmask 908288  }
 0x5d6   :  { %6882 = vmatmul.msk.bf16.vlgmr.msrb.gmra.mxu2 %vm262_vm3, %v6879_v19  ;;  %5741 = vmatpush.bf16.msra.mxu0 %v5723_v10  ;;  %v5925_v22 = vsel %vm266_vm11, %v5917_v58, 0  ;;  %v6019_v10 = vsel %vm10464_vm10, %v9899_v32, %v9858_v63  ;;  %vm10476_vm10 = vmmov %vm10471_vm0 }
 0x5d7   :  { %5868 = vmatpush.bf16.msrb.mxu2 %v5830_v8 }
 0x5d9   :  { %v4794_v50 = vpop.f32.mrf.mxu3 }
 0x5da   :  { %v4880_v27 = vpop.f32.mrf.mxu2  ;;  %v4867_v43 = vpop.f32.mrf.mxu1 }
 0x5db   :  { %v4899_v56 = vadd.f32 %v4880_v27, %v4798_v11  ;;  %v4755_v52 = vpop.f32.mrf.mxu0  ;;  %v4898_v26 = vadd.f32 %v4867_v43, %v4797_v13  ;;  %v5928_v11 = vsel %vm266_vm11, %v5918_v44, 0  ;;  %v9926_v7 = vpop.permute.xlu2 %6218  ;;  %v6029_v43 = vsel %vm266_vm11, %v6019_v10, 0 }
 0x5dc   :  { %v6017_v33 = vpop.permute.xlu1 %6016  ;;  %v9928_v13 = vpop.permute.xlu0 %6214 }
 0x5dd   :  { %6881 = vmatmul.msk.bf16.vlgmr.msrb.gmra.mxu1 %vm262_vm3, %v6879_v19  ;;  %v6021_v8 = vsel %vm10465_vm12, %v9884_v51, %v6017_v33  ;;  %v6018_v51 = vsel %vm10466_vm13, %v9874_v37, %v9899_v32  ;;  %vm10478_vm12 = vmmov %vm10475_vm1 }
 0x5de   :  { %6883 = vmatmul.msk.bf16.vlgmr.msrb.gmra.mxu3 %vm262_vm3, %v6879_v19  ;;  %5855 = vmatpush.bf16.msrb.mxu1 %v5827_v0  ;;  %v6035_v52 = vsel %vm266_vm11, %v6021_v8, 0  ;;  %v6026_v37 = vsel %vm266_vm11, %v6018_v51, 0  ;;  %v6904_v51 = vld [vmem:[%s10112_s1 + $0x5c] sm:$0xf]  ;;  %vm10479_vm13 = vmmov %vm10475_vm1 }
 0x5df   :  { %5881 = vmatpush.bf16.msrb.mxu3 %v5833_v2 }
 0x5e1   :  { %v4893_v31 = vpop.f32.mrf.mxu3 }
 0x5e2   :  { %v4900_v6 = vadd.f32 %v4893_v31, %v4799_v48  ;;  %v4882_v30 = vpop.f32.mrf.mxu2  ;;  %v4869_v20 = vpop.f32.mrf.mxu1 }
 0x5e3   :  { %v4854_v41 = vpop.f32.mrf.mxu0  ;;  %v9942_v55 = vpop.permute.xlu2 %6315  ;;  %v7279_v30 = vmov 0.0  }
 0x5e4   :  { %v4897_v23 = vadd.f32 %v4854_v41, %v4796_v25  ;;  %v9949_v47 = vpop.permute.xlu0 %6210  ;;  %84 = vst.msk [vmem:[#allocation5] sm:$0xff] %vm10468_vm15, %v7279_v30  ;;  %vm10481_vm15 = vmmov %vm10471_vm0 }
 0x5e5   :  { %6880 = vmatmul.msk.bf16.vlgmr.msrb.gmra.mxu0 %vm262_vm3, %v6879_v19  ;;  %v6114_v19 = vpop.permute.xlu1 %6113  ;;  %82 = vst.msk [vmem:[#allocation4] sm:$0xff] %vm10469_vm7, %v7279_v30  ;;  %vm10482_vm7 = vmmov %vm10471_vm0 }
 0x5e6   :  { %6887 = vmatmul.msk.bf16.vlgmr.msra.gmra.mxu2 %vm262_vm3, %v6884_v45  ;;  %5842 = vmatpush.bf16.msrb.mxu0 %v5824_v21  ;;  %v6121_v2 = vsel %vm10467_vm9, %v6114_v19, %v9890_v4  ;;  %83 = vst.msk [vmem:[#allocation4 + $0x8] sm:$0xff] %vm10470_vm2, %v7279_v30  ;;  %v6122_v21 = vsel %vm10472_vm4, %v9890_v4, %v9916_v35  ;;  %vm10480_vm9 = vmmov %vm10475_vm1 }
 0x5e7   :  { %5969 = vmatpush.bf16.msra.mxu2 %v5931_v14  ;;  %v6133_v32 = vsel %vm266_vm11, %v6121_v2, 0  ;;  %85 = vst.msk [vmem:[#allocation5 + $0x8] sm:$0xff] %vm10471_vm0, %v7279_v30  ;;  %v6120_v14 = vsel %vm10473_vm5, %v9910_v38, %v6114_v19  ;;  %v6136_v44 = vsel %vm266_vm11, %v6122_v21, 0 }
 0x5e9   :  { %v4895_v28 = vpop.f32.mrf.mxu3 }
 0x5ea   :  { %v4981_v57 = vpop.f32.mrf.mxu2  ;;  %v4968_v5 = vpop.f32.mrf.mxu1 }
 0x5eb   :  { %v5000_v3 = vadd.f32 %v4981_v57, %v4899_v56  ;;  %v4856_v29 = vpop.f32.mrf.mxu0  ;;  %v4999_v36 = vadd.f32 %v4968_v5, %v4898_v26  ;;  %v9965_v20 = vpop.permute.xlu2 %6311 }
 0x5ec   :  { %v9970_v41 = vpop.permute.xlu0 %6317 }
 0x5ed   :  { %6886 = vmatmul.msk.bf16.vlgmr.msra.gmra.mxu1 %vm262_vm3, %v6884_v45  ;;  %v6110_v18 = vpop.permute.xlu1 %6109 }
 0x5ee   :  { %6888 = vmatmul.msk.bf16.vlgmr.msra.gmra.mxu3 %vm262_vm3, %v6884_v45  ;;  %5956 = vmatpush.bf16.msra.mxu1 %v5928_v11  ;;  %v6119_v11 = vsel %vm10474_vm6, %v6110_v18, %v9910_v38 }
 0x5ef   :  { %5982 = vmatpush.bf16.msra.mxu3 %v5934_v49  ;;  %v6127_v58 = vsel %vm266_vm11, %v6119_v11, 0  ;;  %v6909_v11 = vld [vmem:[%s10112_s1 + $0x60] sm:$0xf] }
 0x5f1   :  { %v4994_v54 = vpop.f32.mrf.mxu3 }
 0x5f2   :  { %v5001_v42 = vadd.f32 %v4994_v54, %v4900_v6  ;;  %v4983_v46 = vpop.f32.mrf.mxu2  ;;  %v4970_v59 = vpop.f32.mrf.mxu1  ;;  %v6894_v6 = vld [vmem:[%s10112_s1 + $0x54] sm:$0xf] }
 0x5f3   :  { %v4955_v48 = vpop.f32.mrf.mxu0  ;;  %v9984_v29 = vpop.permute.xlu2 %6418  ;;  %v6899_v46 = vld [vmem:[%s10112_s1 + $0x58] sm:$0xf] }
 0x5f4   :  { %v4998_v15 = vadd.f32 %v4955_v48, %v4897_v23  ;;  %v9986_v4 = vpop.permute.xlu0 %6313 }
 0x5f5   :  { %6885 = vmatmul.msk.bf16.vlgmr.msra.gmra.mxu0 %vm262_vm3, %v6884_v45  ;;  %v6217_v5 = vpop.permute.xlu1 %6216 }
 0x5f6   :  { %6892 = vmatmul.msk.bf16.vlgmr.msrb.gmra.mxu2 %vm262_vm3, %v6889_v34  ;;  %5943 = vmatpush.bf16.msra.mxu0 %v5925_v22  ;;  %v6222_v33 = vsel %vm981_vm8, %v9928_v13, %v6217_v5  ;;  %v6223_v22 = vsel %vm981_vm8, %v6217_v5, %v9926_v7  ;;  %v3744_v7 = vld [vmem:[#allocation4] sm:$0xff] }
 0x5f7   :  { %6070 = vmatpush.bf16.msrb.mxu2 %v6032_v16  ;;  %v6234_v59 = vsel %vm266_vm11, %v6222_v33, 0 }
 0x5f9   :  { %v4996_v24 = vpop.f32.mrf.mxu3 }
 0x5fa   :  { %v5082_v25 = vpop.f32.mrf.mxu2  ;;  %v5069_v27 = vpop.f32.mrf.mxu1 }
 0x5fb   :  { %v5101_v50 = vadd.f32 %v5082_v25, %v5000_v3  ;;  %v4957_v1 = vpop.f32.mrf.mxu0  ;;  %v5100_v56 = vadd.f32 %v5069_v27, %v4999_v36  ;;  %v6130_v3 = vsel %vm266_vm11, %v6120_v14, 0  ;;  %v9999_v48 = vpop.permute.xlu2 %6414 }
 0x5fd   :  { %6891 = vmatmul.msk.bf16.vlgmr.msrb.gmra.mxu1 %vm262_vm3, %v6889_v34  ;;  %v6213_v38 = vpop.permute.xlu1 %6212 }
 0x5fe   :  { %6893 = vmatmul.msk.bf16.vlgmr.msrb.gmra.mxu3 %vm262_vm3, %v6889_v34  ;;  %6057 = vmatpush.bf16.msrb.mxu1 %v6029_v43  ;;  %v6221_v24 = vsel %vm981_vm8, %v6213_v38, %v9928_v13  ;;  %v6323_v13 = vsel %vm10475_vm1, %v9942_v55, %v9970_v41 }
 0x5ff   :  { %6083 = vmatpush.bf16.msrb.mxu3 %v6035_v52  ;;  %v6231_v27 = vsel %vm266_vm11, %v6221_v24, 0  ;;  %v6335_v18 = vsel %vm266_vm11, %v6323_v13, 0 }
 0x601   :  { %v5095_v63 = vpop.f32.mrf.mxu3 }
 0x602   :  { %v5102_v60 = vadd.f32 %v5095_v63, %v5001_v42  ;;  %v5084_v26 = vpop.f32.mrf.mxu2  ;;  %v5071_v0 = vpop.f32.mrf.mxu1  ;;  %v6220_v63 = vsel %vm981_vm8, %v9949_v47, %v6213_v38  ;;  %vm10477_vm8 = vmmov %vm10471_vm0 }
 0x603   :  { %v5056_v31 = vpop.f32.mrf.mxu0 }
 0x604   :  { %v5099_v61 = vadd.f32 %v5056_v31, %v4998_v15  ;;  %v10001_v15 = vpop.permute.xlu0 %6420 }
 0x605   :  { %6890 = vmatmul.msk.bf16.vlgmr.msrb.gmra.mxu0 %vm262_vm3, %v6889_v34 }
 0x606   :  { %6897 = vmatmul.msk.bf16.vlgmr.msra.gmra.mxu2 %vm262_vm3, %v6894_v6  ;;  %6044 = vmatpush.bf16.msrb.mxu0 %v6026_v37  ;;  %v6320_v37 = vpop.permute.xlu1 %6319 }
 0x607   :  { %6171 = vmatpush.bf16.msra.mxu2 %v6133_v32 }
 0x609   :  { %v5097_v45 = vpop.f32.mrf.mxu3 }
 0x60a   :  { %v5183_v23 = vpop.f32.mrf.mxu2  ;;  %v5170_v28 = vpop.f32.mrf.mxu1  ;;  %v6322_v45 = vsel %vm10478_vm12, %v9986_v4, %v9942_v55 }
 0x60b   :  { %v5202_v12 = vadd.f32 %v5183_v23, %v5101_v50  ;;  %v5058_v57 = vpop.f32.mrf.mxu0  ;;  %v5201_v17 = vadd.f32 %v5170_v28, %v5100_v56  ;;  %v6237_v50 = vsel %vm266_vm11, %v6223_v22, 0  ;;  %v3752_v56 = vld [vmem:[#allocation5] sm:$0xff]  ;;  %v6324_v23 = vsel %vm10479_vm13, %v9970_v41, %v6320_v37 }
 0x60c   :  { %v6332_v57 = vsel %vm266_vm11, %v6322_v45, 0 }
 0x60d   :  { %6896 = vmatmul.msk.bf16.vlgmr.msra.gmra.mxu1 %vm262_vm3, %v6894_v6 }
 0x60e   :  { %6898 = vmatmul.msk.bf16.vlgmr.msra.gmra.mxu3 %vm262_vm3, %v6894_v6  ;;  %6158 = vmatpush.bf16.msra.mxu1 %v6130_v3  ;;  %v6417_v55 = vpop.permute.xlu1 %6416 }
 0x60f   :  { %6184 = vmatpush.bf16.msra.mxu3 %v6136_v44 }
 0x611   :  { %v5196_v35 = vpop.f32.mrf.mxu3 }
 0x612   :  { %v5203_v36 = vadd.f32 %v5196_v35, %v5102_v60  ;;  %v5185_v49 = vpop.f32.mrf.mxu2  ;;  %v5172_v54 = vpop.f32.mrf.mxu1 }
 0x613   :  { %v5157_v42 = vpop.f32.mrf.mxu0  ;;  %v6424_v49 = vsel %vm1267_vm14, %v6417_v55, %v9984_v29 }
 0x614   :  { %v5200_v39 = vadd.f32 %v5157_v42, %v5099_v61  ;;  %v6228_v61 = vsel %vm266_vm11, %v6220_v63, 0 }
 0x615   :  { %6895 = vmatmul.msk.bf16.vlgmr.msra.gmra.mxu0 %vm262_vm3, %v6894_v6 }
 0x616   :  { %6902 = vmatmul.msk.bf16.vlgmr.msrb.gmra.mxu2 %vm262_vm3, %v6899_v46  ;;  %6145 = vmatpush.bf16.msra.mxu0 %v6127_v58  ;;  %v6425_v58 = vsel %vm1267_vm14, %v9984_v29, %v10001_v15 }
 0x617   :  { %6272 = vmatpush.bf16.msrb.mxu2 %v6234_v59  ;;  %v6423_v59 = vsel %vm1267_vm14, %v9999_v48, %v6417_v55  ;;  %v6439_v24 = vsel %vm266_vm11, %v6425_v58, 0 }
 0x619   :  { %v5198_v34 = vpop.f32.mrf.mxu3 }
 0x61a   :  { %v5284_v16 = vpop.f32.mrf.mxu2  ;;  %v5271_v25 = vpop.f32.mrf.mxu1 }
 0x61b   :  { %v5303_v19 = vadd.f32 %v5284_v16, %v5202_v12  ;;  %v5159_v10 = vpop.f32.mrf.mxu0  ;;  %v5302_v8 = vadd.f32 %v5271_v25, %v5201_v17  ;;  %v6338_v17 = vsel %vm266_vm11, %v6324_v23, 0  ;;  %v6413_v25 = vpop.permute.xlu1 %6412 }
 0x61d   :  { %6901 = vmatmul.msk.bf16.vlgmr.msrb.gmra.mxu1 %vm262_vm3, %v6899_v46 }
 0x61e   :  { %6903 = vmatmul.msk.bf16.vlgmr.msrb.gmra.mxu3 %vm262_vm3, %v6899_v46  ;;  %6259 = vmatpush.bf16.msrb.mxu1 %v6231_v27 }
 0x61f   :  { %6285 = vmatpush.bf16.msrb.mxu3 %v6237_v50  ;;  %v6914_v50 = vld [vmem:[%s10112_s1 + $0x64] sm:$0xf] }
 0x620   :  { %v3761_v60 = vpop.xlane.xlu2 %3760 }
 0x621   :  { %v5297_v1 = vpop.f32.mrf.mxu3  ;;  %v3762_v2 = vadd.f32 %v3761_v60, %v3752_v56 }
 0x622   :  { %v5304_v43 = vadd.f32 %v5297_v1, %v5203_v36  ;;  %v5286_v52 = vpop.f32.mrf.mxu2  ;;  %v3749_v26 = vpop.xlane.xlu0 %3748  ;;  %v6321_v36 = vsel %vm10480_vm9, %v9965_v20, %v9986_v4 }
 0x623   :  { %v3750_v0 = vadd.f32 %v3749_v26, %v3744_v7  ;;  %v5273_v31 = vpop.f32.mrf.mxu1  ;;  %v5258_v6 = vpop.f32.mrf.mxu0  ;;  %3763 = vst.msk [vmem:[#allocation5] sm:$0xff] %vm10476_vm10, %v3762_v2 }
 0x624   :  { %v5301_v30 = vadd.f32 %v5258_v6, %v5200_v39  ;;  %v6436_v39 = vsel %vm266_vm11, %v6424_v49, 0 }
 0x625   :  { %6900 = vmatmul.msk.bf16.vlgmr.msrb.gmra.mxu0 %vm262_vm3, %v6899_v46  ;;  %3751 = vst.msk [vmem:[#allocation4] sm:$0xff] %vm10477_vm8, %v3750_v0  ;;  %v6329_v46 = vsel %vm266_vm11, %v6321_v36, 0  ;;  %v6919_v0 = vld [vmem:[%s10112_s1 + $0x68] sm:$0xf]  ;;  %s7280_s1 = smov [#allocation6]  }
 0x626   :  { %6907 = vmatmul.msk.bf16.vlgmr.msra.gmra.mxu2 %vm262_vm3, %v6904_v51  ;;  %6246 = vmatpush.bf16.msrb.mxu0 %v6228_v61  ;;  %s6642_s26 = sshll.u32 %s7280_s1, 4  ;;  %s6643_s26 = int_to_ptr.vmem [resolvable:$true] %s6642_s26 }
 0x627   :  { %6373 = vmatpush.bf16.msra.mxu2 %v6335_v18 }
 0x629   :  { %v5299_v47 = vpop.f32.mrf.mxu3 }
 0x62a   :  { %v5385_v32 = vpop.f32.mrf.mxu2 }
 0x62b   :  { %v5404_v21 = vadd.f32 %v5385_v32, %v5303_v19  ;;  %v5372_v14 = vpop.f32.mrf.mxu1  ;;  %v5260_v12 = vpop.f32.mrf.mxu0  ;;  %v6433_v19 = vsel %vm266_vm11, %v6423_v59, 0 }
 0x62c   :  { %v5403_v28 = vadd.f32 %v5372_v14, %v5302_v8  ;;  %v6527_v44 = vld [vmem:[#allocation4] sm:$0xff]  ;;  %v6422_v8 = vsel %vm1267_vm14, %v6413_v25, %v9999_v48 }
 0x62d   :  { %6906 = vmatmul.msk.bf16.vlgmr.msra.gmra.mxu1 %vm262_vm3, %v6904_v51  ;;  %v10034_v3 = vmul.f32 0.001953125, %v6527_v44  ;;  %v6430_v7 = vsel %vm266_vm11, %v6422_v8, 0 }
 0x62e   :  { %6908 = vmatmul.msk.bf16.vlgmr.msra.gmra.mxu3 %vm262_vm3, %v6904_v51  ;;  %6360 = vmatpush.bf16.msra.mxu1 %v6332_v57 }
 0x62f   :  { %6386 = vmatpush.bf16.msra.mxu3 %v6338_v17  ;;  %6550 = vperm.xlu0 %7212, %v10034_v3  }
 0x631   :  { %v5398_v41 = vpop.f32.mrf.mxu3 }
 0x632   :  { %v5405_v5 = vadd.f32 %v5398_v41, %v5304_v43  ;;  %v5387_v35 = vpop.f32.mrf.mxu2 }
 0x633   :  { %v5374_v33 = vpop.f32.mrf.mxu1  ;;  %v5359_v54 = vpop.f32.mrf.mxu0 }
 0x634   :  { %v5402_v42 = vadd.f32 %v5359_v54, %v5301_v30 }
 0x635   :  { %6905 = vmatmul.msk.bf16.vlgmr.msra.gmra.mxu0 %vm262_vm3, %v6904_v51 }
 0x636   :  { %6912 = vmatmul.msk.bf16.vlgmr.msrb.gmra.mxu2 %vm262_vm3, %v6909_v11  ;;  %6347 = vmatpush.bf16.msra.mxu0 %v6329_v46 }
 0x637   :  { %6474 = vmatpush.bf16.msrb.mxu2 %v6436_v39 }
 0x639   :  { %v5400_v20 = vpop.f32.mrf.mxu3 }
 0x63a   :  { %v5486_v4 = vpop.f32.mrf.mxu2 }
 0x63b   :  { %v5505_v38 = vadd.f32 %v5486_v4, %v5404_v21  ;;  %v5473_v34 = vpop.f32.mrf.mxu1  ;;  %v5361_v16 = vpop.f32.mrf.mxu0 }
 0x63c   :  { %v5504_v22 = vadd.f32 %v5473_v34, %v5403_v28 }
 0x63d   :  { %6911 = vmatmul.msk.bf16.vlgmr.msrb.gmra.mxu1 %vm262_vm3, %v6909_v11 }
 0x63e   :  { %6913 = vmatmul.msk.bf16.vlgmr.msrb.gmra.mxu3 %vm262_vm3, %v6909_v11  ;;  %6461 = vmatpush.bf16.msrb.mxu1 %v6433_v19 }
 0x63f   :  { %6487 = vmatpush.bf16.msrb.mxu3 %v6439_v24 }
 0x641   :  { %v5499_v10 = vpop.f32.mrf.mxu3 }
 0x642   :  { %v5506_v29 = vadd.f32 %v5499_v10, %v5405_v5  ;;  %v5488_v15 = vpop.f32.mrf.mxu2 }
 0x643   :  { %v5475_v27 = vpop.f32.mrf.mxu1  ;;  %v5460_v1 = vpop.f32.mrf.mxu0 }
 0x644   :  { %v5503_v56 = vadd.f32 %v5460_v1, %v5402_v42 }
 0x645   :  { %6910 = vmatmul.msk.bf16.vlgmr.msrb.gmra.mxu0 %vm262_vm3, %v6909_v11 }
 0x646   :  { %6917 = vmatmul.msk.bf16.vlgmr.msra.gmra.mxu2 %vm262_vm3, %v6914_v50  ;;  %6448 = vmatpush.bf16.msrb.mxu0 %v6430_v7 }
 0x649   :  { %v5501_v43 = vpop.f32.mrf.mxu3 }
 0x64a   :  { %v5587_v52 = vpop.f32.mrf.mxu2 }
 0x64b   :  { %v5606_v13 = vadd.f32 %v5587_v52, %v5505_v38  ;;  %v5574_v63 = vpop.f32.mrf.mxu1  ;;  %v5462_v60 = vpop.f32.mrf.mxu0 }
 0x64c   :  { %v5605_v48 = vadd.f32 %v5574_v63, %v5504_v22 }
 0x64d   :  { %6916 = vmatmul.msk.bf16.vlgmr.msra.gmra.mxu1 %vm262_vm3, %v6914_v50 }
 0x64e   :  { %6918 = vmatmul.msk.bf16.vlgmr.msra.gmra.mxu3 %vm262_vm3, %v6914_v50 }
 0x651   :  { %v5600_v26 = vpop.f32.mrf.mxu3 }
 0x652   :  { %v5607_v51 = vadd.f32 %v5600_v26, %v5506_v29  ;;  %v5589_v2 = vpop.f32.mrf.mxu2 }
 0x653   :  { %v5576_v31 = vpop.f32.mrf.mxu1  ;;  %v5561_v6 = vpop.f32.mrf.mxu0 }
 0x654   :  { %v5604_v30 = vadd.f32 %v5561_v6, %v5503_v56 }
 0x655   :  { %6915 = vmatmul.msk.bf16.vlgmr.msra.gmra.mxu0 %vm262_vm3, %v6914_v50 }
 0x656   :  { %6922 = vmatmul.msk.bf16.vlgmr.msrb.gmra.mxu2 %vm262_vm3, %v6919_v0 }
 0x659   :  { %v5602_v18 = vpop.f32.mrf.mxu3 }
 0x65a   :  { %v5667_v61 = vpop.f32.mrf.mxu2 }
 0x65b   :  { %v5686_v37 = vadd.f32 %v5667_v61, %v5606_v13  ;;  %v5654_v47 = vpop.f32.mrf.mxu1  ;;  %v5563_v32 = vpop.f32.mrf.mxu0 }
 0x65c   :  { %v5685_v45 = vadd.f32 %v5654_v47, %v5605_v48 }
 0x65d   :  { %6921 = vmatmul.msk.bf16.vlgmr.msrb.gmra.mxu1 %vm262_vm3, %v6919_v0 }
 0x65e   :  { %6923 = vmatmul.msk.bf16.vlgmr.msrb.gmra.mxu3 %vm262_vm3, %v6919_v0 }
 0x661   :  { %v5680_v23 = vpop.f32.mrf.mxu3 }
 0x662   :  { %v5687_v21 = vadd.f32 %v5680_v23, %v5607_v51  ;;  %v5669_v14 = vpop.f32.mrf.mxu2 }
 0x663   :  { %v5656_v12 = vpop.f32.mrf.mxu1  ;;  %v5641_v28 = vpop.f32.mrf.mxu0 }
 0x664   :  { %v5684_v57 = vadd.f32 %v5641_v28, %v5604_v30 }
 0x665   :  { %6920 = vmatmul.msk.bf16.vlgmr.msrb.gmra.mxu0 %vm262_vm3, %v6919_v0 }
 0x669   :  { %v5682_v17 = vpop.f32.mrf.mxu3 }
 0x66a   :  { %v5769_v44 = vpop.f32.mrf.mxu2 }
 0x66b   :  { %v5788_v55 = vadd.f32 %v5769_v44, %v5686_v37  ;;  %v5756_v41 = vpop.f32.mrf.mxu1  ;;  %v5643_v5 = vpop.f32.mrf.mxu0 }
 0x66c   :  { %v5787_v35 = vadd.f32 %v5756_v41, %v5685_v45 }
 0x671   :  { %v5782_v36 = vpop.f32.mrf.mxu3 }
 0x672   :  { %v5789_v49 = vadd.f32 %v5782_v36, %v5687_v21  ;;  %v5771_v11 = vpop.f32.mrf.mxu2 }
 0x673   :  { %v5758_v33 = vpop.f32.mrf.mxu1  ;;  %v5743_v54 = vpop.f32.mrf.mxu0 }
 0x674   :  { %v5786_v42 = vadd.f32 %v5743_v54, %v5684_v57 }
 0x679   :  { %v5784_v46 = vpop.f32.mrf.mxu3 }
 0x67a   :  { %v5870_v39 = vpop.f32.mrf.mxu2 }
 0x67b   :  { %v5889_v20 = vadd.f32 %v5870_v39, %v5788_v55  ;;  %v5857_v4 = vpop.f32.mrf.mxu1  ;;  %v5745_v58 = vpop.f32.mrf.mxu0  ;;  %v6529_v39 = vld [vmem:[#allocation5] sm:$0xff] }
 0x67c   :  { %v5888_v59 = vadd.f32 %v5857_v4, %v5787_v35 }
 0x681   :  { %v5883_v38 = vpop.f32.mrf.mxu3 }
 0x682   :  { %v5890_v34 = vadd.f32 %v5883_v38, %v5789_v49  ;;  %v5872_v16 = vpop.f32.mrf.mxu2 }
 0x683   :  { %v5859_v22 = vpop.f32.mrf.mxu1  ;;  %v5844_v24 = vpop.f32.mrf.mxu0 }
 0x684   :  { %v5887_v19 = vadd.f32 %v5844_v24, %v5786_v42 }
 0x689   :  { %v5885_v25 = vpop.f32.mrf.mxu3 }
 0x68a   :  { %v5971_v10 = vpop.f32.mrf.mxu2 }
 0x68b   :  { %v5990_v29 = vadd.f32 %v5971_v10, %v5889_v20  ;;  %v5958_v15 = vpop.f32.mrf.mxu1  ;;  %v5846_v8 = vpop.f32.mrf.mxu0  ;;  %v6531_v20 = vmul.f32 %v10034_v3, %v10034_v3 }
 0x68c   :  { %v5989_v50 = vadd.f32 %v5958_v15, %v5888_v59 }
 0x691   :  { %v5984_v27 = vpop.f32.mrf.mxu3 }
 0x692   :  { %v5991_v1 = vadd.f32 %v5984_v27, %v5890_v34  ;;  %v5973_v56 = vpop.f32.mrf.mxu2  ;;  %v6530_v34 = vmul.f32 0.001953125, %v6529_v39 }
 0x693   :  { %v5960_v7 = vpop.f32.mrf.mxu1  ;;  %v5945_v43 = vpop.f32.mrf.mxu0 }
 0x694   :  { %v5988_v52 = vadd.f32 %v5945_v43, %v5887_v19  ;;  %v6532_v25 = vsub.f32 %v6530_v34, %v6531_v20 }
 0x699   :  { %v5986_v13 = vpop.f32.mrf.mxu3 }
 0x69a   :  { %v6072_v63 = vpop.f32.mrf.mxu2 }
 0x69b   :  { %v6091_v60 = vadd.f32 %v6072_v63, %v5990_v29  ;;  %v6059_v48 = vpop.f32.mrf.mxu1  ;;  %v5947_v26 = vpop.f32.mrf.mxu0 }
 0x69c   :  { %v6090_v51 = vadd.f32 %v6059_v48, %v5989_v50 }
 0x6a1   :  { %v6085_v2 = vpop.f32.mrf.mxu3 }
 0x6a2   :  { %v6074_v0 = vpop.f32.mrf.mxu2  ;;  %v6092_v16 = vadd.f32 %v6085_v2, %v5991_v1 }
 0x6a3   :  { %v6061_v31 = vpop.f32.mrf.mxu1  ;;  %v6046_v6 = vpop.f32.mrf.mxu0 }
 0x6a4   :  { %v6089_v59 = vadd.f32 %v6046_v6, %v5988_v52 }
 0x6a9   :  { %v6087_v30 = vpop.f32.mrf.mxu3 }
 0x6aa   :  { %v6173_v18 = vpop.f32.mrf.mxu2 }
 0x6ab   :  { %v6160_v61 = vpop.f32.mrf.mxu1  ;;  %v6048_v37 = vpop.f32.mrf.mxu0  ;;  %v6192_v22 = vadd.f32 %v6173_v18, %v6091_v60  ;;  %v6533_v60 = vadd.f32 1e-05, %v6532_v25 }
 0x6ac   :  { %v6191_v38 = vadd.f32 %v6160_v61, %v6090_v51 }
 0x6ad   :  { %7215 = vrsqrt.f32 %v6533_v60  ;;  %vm6540_vm11 = vweird.f32 %v6533_v60 }
 0x6b1   :  { %v6186_v47 = vpop.f32.mrf.mxu3 }
 0x6b2   :  { %v6175_v32 = vpop.f32.mrf.mxu2  ;;  %v6193_v10 = vadd.f32 %v6186_v47, %v6092_v16 }
 0x6b3   :  { %v6162_v45 = vpop.f32.mrf.mxu1  ;;  %v6147_v23 = vpop.f32.mrf.mxu0 }
 0x6b4   :  { %v6190_v24 = vadd.f32 %v6147_v23, %v6089_v59  ;;  %v7216_v23 = vpop.eup %7215 }
 0x6b5   :  { %vm6541_vm3 = vweird.f32 %v7216_v23 }
 0x6b6   :  { %vm6542_vm14 = vmor %vm6540_vm11, %vm6541_vm3 }
 0x6b9   :  { %v6188_v21 = vpop.f32.mrf.mxu3 }
 0x6ba   :  { %v6274_v14 = vpop.f32.mrf.mxu2  ;;  %v6535_v21 = vmul.f32 %v7216_v23, %v6533_v60 }
 0x6bb   :  { %v6261_v12 = vpop.f32.mrf.mxu1  ;;  %v6149_v28 = vpop.f32.mrf.mxu0  ;;  %v6293_v29 = vadd.f32 %v6274_v14, %v6192_v22 }
 0x6bc   :  { %v6292_v19 = vadd.f32 %v6261_v12, %v6191_v38  ;;  %v6536_v14 = vmul.f32 %v7216_v23, %v6535_v21 }
 0x6be   :  { %v6537_v12 = vmul.f32 0.5, %v6536_v14 }
 0x6c0   :  { %v6538_v28 = vsub.f32 1.5, %v6537_v12 }
 0x6c1   :  { %v6287_v57 = vpop.f32.mrf.mxu3 }
 0x6c2   :  { %v6276_v17 = vpop.f32.mrf.mxu2  ;;  %v6294_v56 = vadd.f32 %v6287_v57, %v6193_v10  ;;  %v6539_v57 = vmul.f32 %v7216_v23, %v6538_v28 }
 0x6c3   :  { %v6263_v44 = vpop.f32.mrf.mxu1  ;;  %v6248_v55 = vpop.f32.mrf.mxu0 }
 0x6c4   :  { %v6291_v15 = vadd.f32 %v6248_v55, %v6190_v24  ;;  %v6543_v17 = vsel %vm6542_vm14, %v7216_v23, %v6539_v57  ;;  %v6503_v44 = vld [vmem:[#allocation4 + $0x8] sm:$0xff] }
 0x6c9   :  { %v6289_v41 = vpop.f32.mrf.mxu3 }
 0x6ca   :  { %v6375_v5 = vpop.f32.mrf.mxu2  ;;  %v6512_v41 = vld [vmem:[#allocation5 + $0x8] sm:$0xff] }
 0x6cb   :  { %v6362_v35 = vpop.f32.mrf.mxu1  ;;  %v6250_v36 = vpop.f32.mrf.mxu0  ;;  %v6394_v7 = vadd.f32 %v6375_v5, %v6293_v29 }
 0x6cc   :  { %v6393_v8 = vadd.f32 %v6362_v35, %v6292_v19 }
 0x6d1   :  { %v6388_v49 = vpop.f32.mrf.mxu3 }
 0x6d2   :  { %v6377_v11 = vpop.f32.mrf.mxu2  ;;  %v6395_v63 = vadd.f32 %v6388_v49, %v6294_v56  ;;  %v6551_v49 = vpop.permute.xlu0 %6550 }
 0x6d3   :  { %v6364_v33 = vpop.f32.mrf.mxu1  ;;  %v6349_v54 = vpop.f32.mrf.mxu0  ;;  %v6553_v11 = vsub.f32 %v9495_v9, %v6551_v49 }
 0x6d4   :  { %v6392_v43 = vadd.f32 %v6349_v54, %v6291_v15  ;;  %v6554_v33 = vsub.f32 %v9498_v53, %v6551_v49  ;;  %v6555_v54 = vsub.f32 %v9484_v40, %v6551_v49 }
 0x6d9   :  { %v6390_v42 = vpop.f32.mrf.mxu3 }
 0x6da   :  { %v6476_v46 = vpop.f32.mrf.mxu2  ;;  %v6556_v42 = vsub.f32 %v9492_v62, %v6551_v49 }
 0x6db   :  { %v6463_v4 = vpop.f32.mrf.mxu1  ;;  %v6351_v58 = vpop.f32.mrf.mxu0  ;;  %v10080_v48 = vadd.f32 %v6476_v46, %v6394_v7 }
 0x6dc   :  { %v10078_v3 = vadd.f32 %v6463_v4, %v6393_v8 }
 0x6dd   :  { %v6515_v31 = vmul.f32 %v10080_v48, %v10080_v48 }
 0x6de   :  { %v6514_v26 = vmul.f32 %v10078_v3, %v10078_v3 }
 0x6e1   :  { %v6489_v50 = vpop.f32.mrf.mxu3 }
 0x6e2   :  { %v6478_v27 = vpop.f32.mrf.mxu2  ;;  %v10086_v51 = vadd.f32 %v6489_v50, %v6395_v63 }
 0x6e3   :  { %v6450_v13 = vpop.f32.mrf.mxu0  ;;  %v6465_v52 = vpop.f32.mrf.mxu1 }
 0x6e4   :  { %v10082_v1 = vadd.f32 %v6450_v13, %v6392_v43  ;;  %v6516_v61 = vmul.f32 %v10086_v51, %v10086_v51 }
 0x6e6   :  { %v6504_v2 = vadd.f32 %v10078_v3, %v10082_v1  ;;  %v6513_v0 = vmul.f32 %v10082_v1, %v10082_v1 }
 0x6e8   :  { %v6517_v6 = vadd.f32 %v6514_v26, %v6513_v0  ;;  %v6505_v30 = vadd.f32 %v6504_v2, %v10080_v48 }
 0x6e9   :  { %v6491_v18 = vpop.f32.mrf.mxu3 }
 0x6ea   :  { %v6506_v37 = vadd.f32 %v6505_v30, %v10086_v51  ;;  %v6518_v47 = vadd.f32 %v6517_v6, %v6515_v31 }
 0x6eb   :  { %v6452_v32 = vpop.f32.mrf.mxu0 }
 0x6ec   :  { %6507 = vadd.xlane.f32.xlu1 %v6506_v37  ;;  %v6519_v45 = vadd.f32 %v6518_v47, %v6516_v61 }
 0x6ee   :  { %6520 = vadd.xlane.f32.xlu2 %v6519_v45 }
 0x706   :  { %6559 = vperm.xlu2 %7214, %v6543_v17  }
 0x75f   :  { %v6508_v55 = vpop.xlane.xlu1 %6507 }
 0x760   :  { %v6509_v5 = vadd.f32 %v6508_v55, %v6503_v44 }
 0x761   :  { %v6521_v35 = vpop.xlane.xlu2 %6520 }
 0x762   :  { %6510 = vst.msk [vmem:[#allocation4 + $0x8] sm:$0xff] %vm10481_vm15, %v6509_v5  ;;  %v6522_v36 = vadd.f32 %v6521_v35, %v6512_v41 }
 0x764   :  { %6523 = vst.msk [vmem:[#allocation5 + $0x8] sm:$0xff] %vm10482_vm7, %v6522_v36 }
 0x769   :  { %v6560_v46 = vpop.permute.xlu2 %6559  ;;  %v6582_v39 = vld [vmem:[#allocation4 + $0x8] sm:$0xff] }
 0x76a   :  { %v6562_v20 = vmul.f32 %v6560_v46, %v6553_v11  ;;  %v6563_v4 = vmul.f32 %v6560_v46, %v6554_v33  ;;  %v6564_v58 = vmul.f32 %v6560_v46, %v6555_v54  ;;  %v6565_v59 = vmul.f32 %v6560_v46, %v6556_v42 }
 0x76b   :  { %v6583_v38 = vmul.f32 0.001953125, %v6582_v39  ;;  %v6584_v34 = vld [vmem:[#allocation5 + $0x8] sm:$0xff] }
 0x76c   :  { %vm6566_vm2 = vcmp.ge.f32.partialorder %v6562_v20, 0.0  ;;  %vm6567_vm0 = vcmp.ge.f32.partialorder %v6563_v4, 0.0  ;;  %vm6568_vm4 = vcmp.ge.f32.partialorder %v6564_v58, 0.0  ;;  %vm6569_vm5 = vcmp.ge.f32.partialorder %v6565_v59, 0.0 }
 0x76d   :  { %v6570_v16 = vmul.f32 0.01, %v6562_v20  ;;  %v6571_v9 = vmul.f32 0.01, %v6563_v4  ;;  %v6572_v22 = vmul.f32 0.01, %v6564_v58  ;;  %6605 = vperm.xlu1 %7213, %v6583_v38   ;;  %v6586_v53 = vmul.f32 %v6583_v38, %v6583_v38 }
 0x76e   :  { %v6573_v40 = vmul.f32 0.01, %v6565_v59  ;;  %v6585_v24 = vmul.f32 0.001953125, %v6584_v34 }
 0x76f   :  { %v6574_v62 = vsel %vm6566_vm2, %v6562_v20, %v6570_v16  ;;  %v6575_v19 = vsel %vm6567_vm0, %v6563_v4, %v6571_v9  ;;  %v6576_v25 = vsel %vm6568_vm4, %v6564_v58, %v6572_v22 }
 0x770   :  { %v6577_v10 = vsel %vm6569_vm5, %v6565_v59, %v6573_v40  ;;  %6578 = vst [vmem:[#allocation6] sm:$0xff] %v6574_v62  ;;  %v6587_v29 = vsub.f32 %v6585_v24, %v6586_v53 }
 0x771   :  { %6579 = vst [vmem:[#allocation6 + $0x8] sm:$0xff] %v6575_v19 }
 0x772   :  { %6580 = vst [vmem:[#allocation6 + $0x10] sm:$0xff] %v6576_v25  ;;  %v6588_v15 = vadd.f32 1e-05, %v6587_v29 }
 0x773   :  { %6581 = vst [vmem:[#allocation6 + $0x18] sm:$0xff] %v6577_v10 }
 0x774   :  { %7217 = vrsqrt.f32 %v6588_v15  ;;  %vm6595_vm1 = vweird.f32 %v6588_v15 }
 0x77a   :  { %v7218_v8 = vpop.eup %7217 }
 0x77b   :  { %v6590_v50 = vmul.f32 %v7218_v8, %v6588_v15  ;;  %vm6596_vm6 = vweird.f32 %v7218_v8 }
 0x77c   :  { %vm6597_vm10 = vmor %vm6595_vm1, %vm6596_vm6 }
 0x77d   :  { %v6591_v27 = vmul.f32 %v7218_v8, %v6590_v50 }
 0x77f   :  { %v6592_v56 = vmul.f32 0.5, %v6591_v27 }
 0x781   :  { %v6593_v7 = vsub.f32 1.5, %v6592_v56 }
 0x783   :  { %v6594_v43 = vmul.f32 %v7218_v8, %v6593_v7 }
 0x785   :  { %v6598_v13 = vsel %vm6597_vm10, %v7218_v8, %v6594_v43 }
 0x786   :  { %6614 = vperm.xlu1 %7213, %v6598_v13  }
 0x7df   :  { %v6606_v52 = vpop.permute.xlu1 %6605 }
 0x7e0   :  { %v6608_v63 = vsub.f32 %v10082_v1, %v6606_v52  ;;  %v6609_v60 = vsub.f32 %v10078_v3, %v6606_v52  ;;  %v6610_v26 = vsub.f32 %v10080_v48, %v6606_v52  ;;  %v6611_v2 = vsub.f32 %v10086_v51, %v6606_v52 }
 0x7f8   :  { %v6615_v0 = vpop.permute.xlu1 %6614 }
 0x7f9   :  { %v6617_v31 = vmul.f32 %v6615_v0, %v6608_v63  ;;  %v6618_v6 = vmul.f32 %v6615_v0, %v6609_v60  ;;  %v6619_v30 = vmul.f32 %v6615_v0, %v6610_v26  ;;  %v6620_v18 = vmul.f32 %v6615_v0, %v6611_v2 }
 0x7fb   :  { %vm6621_vm8 = vcmp.ge.f32.partialorder %v6617_v31, 0.0  ;;  %vm6622_vm12 = vcmp.ge.f32.partialorder %v6618_v6, 0.0  ;;  %vm6623_vm13 = vcmp.ge.f32.partialorder %v6619_v30, 0.0  ;;  %vm6624_vm9 = vcmp.ge.f32.partialorder %v6620_v18, 0.0 }
 0x7fc   :  { %v6625_v3 = vmul.f32 0.01, %v6617_v31  ;;  %v6626_v1 = vmul.f32 0.01, %v6618_v6  ;;  %v6627_v48 = vmul.f32 0.01, %v6619_v30 }
 0x7fd   :  { %v6628_v61 = vmul.f32 0.01, %v6620_v18 }
 0x7fe   :  { %v6629_v51 = vsel %vm6621_vm8, %v6617_v31, %v6625_v3  ;;  %v6630_v37 = vsel %vm6622_vm12, %v6618_v6, %v6626_v1  ;;  %v6631_v47 = vsel %vm6623_vm13, %v6619_v30, %v6627_v48 }
 0x7ff   :  { %v6632_v32 = vsel %vm6624_vm9, %v6620_v18, %v6628_v61  ;;  %6634 = vst [vmem:[#allocation6 + $0x20] sm:$0xff] %v6629_v51 }
 0x800   :  { %6635 = vst [vmem:[#allocation6 + $0x28] sm:$0xff] %v6630_v37 }
 0x801   :  { %6636 = vst [vmem:[#allocation6 + $0x30] sm:$0xff] %v6631_v47 }
 0x802   :  { %6637 = vst [vmem:[#allocation6 + $0x38] sm:$0xff] %v6632_v32 }
 0x803   :  { %6650 = dma.vmem_to_hbm [thread:$0]  %s6643_s26, 1024, %s6645_s13, [#allocation7], %s7281_s4, %s7281_s4, %s7282_s15  }
 0x804   :  { %7243 = dma.done.wait [#allocation7], 1024  }
 0x805   :  { %7244 = vsyncadd [#allocation7], 4294966272 }
 0x806   :  { %6655 = vsyncpa [#allocation7], 1 }

</bundles_post_ra>
